<compile_context>
chip_gen: v5e
topology: v5e:2x2
jax: 0.10.0
libtpu: 0.0.40
codegen_flags: <defaults>
</compile_context>

<pallas_src>
import functools

import jax
import jax.numpy as jnp
from jax.experimental import pallas as pl
from jax.experimental.pallas import tpu as pltpu

CPAD = 128  # lane-dense padded channel width for all intermediate activations


# ---------------------------------------------------------------------------
# Pallas kernels
# ---------------------------------------------------------------------------

def _conv_kernel(*refs, taps, rows, relu, has_gate):
    """Fused conv (tap-sum matmul) + bias + ReLU + optional spatial-filter gate.

    refs = (x_ref, w_ref, b_ref[, g_ref], o_ref)
      x_ref: [1, P, R, Cin]   phase-split, row-flattened padded activation (bf16)
      w_ref: [T, Cin, Npad]   per-tap weights (bf16, Npad = 128)
      b_ref: [1, Npad]        bias (f32)
      g_ref: [1, rows, 1]     optional gating filter (f32)
      o_ref: [1, rows, Npad]  output rows (bf16), rows = Ho * Wq
    """
    if has_gate:
        x_ref, w_ref, b_ref, g_ref, o_ref = refs
    else:
        x_ref, w_ref, b_ref, o_ref = refs
        g_ref = None

    acc = None
    for t, (p_idx, off) in enumerate(taps):
        xt = x_ref[0, p_idx, off:off + rows, :]                 # [rows, Cin] bf16
        part = jnp.dot(xt, w_ref[t], preferred_element_type=jnp.float32)
        acc = part if acc is None else acc + part
    acc = acc + b_ref[...]                                      # f32 epilogue
    if relu:
        acc = jnp.maximum(acc, 0.0)
    if has_gate:
        acc = acc * g_ref[0]                                    # lane-broadcast [rows,1]
    o_ref[0] = acc.astype(o_ref.dtype)


def _aspp_kernel(x_ref, w0_ref, w1_ref, w2_ref, wp_ref, bb_ref, wpr_ref, bpr_ref,
                 o_ref, *, rows, wrow, denom):
    """Fused ASPP: 1x1 + 3x3(d=1) + 3x3(d=2) + image-pool branches, per-branch
    bias/ReLU, concat and 1x1 projection — all in a single kernel.

      x_ref:  [1, R, C]       row-flattened, spatially 2-padded stride-16 features (bf16)
      w0/wp:  [C, 128]        1x1 / pooling-branch weights (bf16)
      w1/w2:  [9, C, 128]     3x3 branch weights, dilation 1 / 2 (bf16)
      bb:     [4, 128]        per-branch biases (f32)
      wpr:    [4, C, 128]     projection weight, split per branch (bf16)
      bpr:    [1, 128]        projection bias (f32)
      o_ref:  [1, rows, 128]  rows = Ho * (Wo + 4)
    """

    def tap(off, w):
        xt = x_ref[0, off:off + rows, :]
        return jnp.dot(xt, w, preferred_element_type=jnp.float32)

    # 1x1 branch (center tap of the 2-wide halo).
    a0 = jnp.maximum(tap(2 * wrow + 2, w0_ref[...]) + bb_ref[0:1, :], 0.0)

    # 3x3 branch, dilation 1.
    acc1 = None
    for ki in range(3):
        for kj in range(3):
            p = tap((1 + ki) * wrow + (1 + kj), w1_ref[ki * 3 + kj])
            acc1 = p if acc1 is None else acc1 + p
    a1 = jnp.maximum(acc1 + bb_ref[1:2, :], 0.0)

    # 3x3 branch, dilation 2.
    acc2 = None
    for ki in range(3):
        for kj in range(3):
            p = tap(2 * ki * wrow + 2 * kj, w2_ref[ki * 3 + kj])
            acc2 = p if acc2 is None else acc2 + p
    a2 = jnp.maximum(acc2 + bb_ref[2:3, :], 0.0)

    # Image-pooling branch: spatial pads are zero so a full-row sum is exact.
    pooled = jnp.sum(x_ref[0].astype(jnp.float32), axis=0, keepdims=True) * (1.0 / denom)
    ap = jnp.maximum(
        jnp.dot(pooled.astype(jnp.bfloat16), wp_ref[...],
                preferred_element_type=jnp.float32) + bb_ref[3:4, :], 0.0)

    # Fused concat + 1x1 projection + ReLU (projection weight split along K).
    def proj(a, i):
        return jnp.dot(a.astype(jnp.bfloat16), wpr_ref[i],
                       preferred_element_type=jnp.float32)

    out = proj(a0, 0) + proj(a1, 1) + proj(a2, 2) + bpr_ref[...]
    out = out + proj(ap, 3)                                     # [1,128] broadcast
    out = jnp.maximum(out, 0.0)
    o_ref[0] = out.astype(o_ref.dtype)


# ---------------------------------------------------------------------------
# Wrappers: phase-split / flatten glue + pallas_call plumbing
# ---------------------------------------------------------------------------

def _phase_split_flat(x, k, stride, dilation):
    """Pad + phase-split + row-flatten an NHWC activation for the tap-sum kernel.

    Returns xflat [B, s*s, R, C], a static tap list [(phase_idx, row_offset)], and
    (Ho, Wo, Wq).  The kernel produces Ho*Wq output rows laid out as [Ho, Wq];
    columns >= Wo are junk and get sliced off by the caller.
    """
    B, H, W, C = x.shape
    s, d = stride, dilation
    pad = d * (k - 1) // 2
    Ho = (H + 2 * pad - d * (k - 1) - 1) // s + 1
    Wo = (W + 2 * pad - d * (k - 1) - 1) // s + 1
    Hq = -(-(H + 2 * pad) // s)
    Wq = -(-(W + 2 * pad) // s)
    xp = jnp.pad(x, ((0, 0), (pad, Hq * s - H - pad), (pad, Wq * s - W - pad), (0, 0)))
    xq = xp.reshape(B, Hq, s, Wq, s, C).transpose(0, 2, 4, 1, 3, 5)
    xflat = xq.reshape(B, s * s, Hq * Wq, C)
    taps, max_cj = [], 0
    for ki in range(k):
        for kj in range(k):
            r, c = ki * d, kj * d
            taps.append(((r % s) * s + (c % s), (r // s) * Wq + (c // s)))
            max_cj = max(max_cj, c // s)
    if max_cj:  # slack rows so every tap slice stays in bounds (reads land in junk cols)
        xflat = jnp.pad(xflat, ((0, 0), (0, 0), (0, max_cj), (0, 0)))
    return xflat, tuple(taps), (Ho, Wo, Wq)


def conv2d(x, w, b, *, stride=1, dilation=1, relu=True, gate=None):
    """x: [B,H,W,Cin] bf16, w: [taps, Cin, Npad] bf16, b: [1, Npad] f32,
    gate: optional [B,Ho,Wo,1] f32 multiplied into the fused epilogue."""
    B, H, W, C = x.shape
    T, Cw, npad = w.shape
    assert Cw == C, (Cw, C)
    k = 3 if T == 9 else 1
    xflat, taps, (Ho, Wo, Wq) = _phase_split_flat(x, k, stride, dilation)
    _, P, R, _ = xflat.shape
    rows = Ho * Wq

    in_specs = [
        pl.BlockSpec((1, P, R, C), lambda bi: (bi, 0, 0, 0)),
        pl.BlockSpec((T, C, npad), lambda bi: (0, 0, 0)),
        pl.BlockSpec((1, npad), lambda bi: (0, 0)),
    ]
    args = [xflat, w, b]
    if gate is not None:
        gq = jnp.pad(gate, ((0, 0), (0, 0), (0, Wq - Wo), (0, 0))).reshape(B, rows, 1)
        in_specs.append(pl.BlockSpec((1, rows, 1), lambda bi: (bi, 0, 0)))
        args.append(gq)

    out = pl.pallas_call(
        functools.partial(_conv_kernel, taps=taps, rows=rows, relu=relu,
                          has_gate=gate is not None),
        grid=(B,),
        in_specs=in_specs,
        out_specs=pl.BlockSpec((1, rows, npad), lambda bi: (bi, 0, 0)),
        out_shape=jax.ShapeDtypeStruct((B, rows, npad), jnp.bfloat16),
        compiler_params=pltpu.CompilerParams(
            dimension_semantics=("parallel",),           # 2 TCs on v7x split the batch
            vmem_limit_bytes=64 * 1024 * 1024),
    )(*args)
    return out.reshape(B, Ho, Wq, npad)[:, :, :Wo, :]


def aspp_fused(high, p):
    """high: [B, Ho, Wo, CPAD] bf16 stride-16 features -> [B, Ho, Wo, CPAD] bf16."""
    B, Ho, Wo, C = high.shape
    Hp, Wp = Ho + 4, Wo + 4
    hp = jnp.pad(high, ((0, 0), (2, 2), (2, 2), (0, 0))).reshape(B, Hp * Wp, C)
    hp = jnp.pad(hp, ((0, 0), (0, 4), (0, 0)))          # slack rows for max col offset 4
    R = Hp * Wp + 4
    rows = Ho * Wp

    out = pl.pallas_call(
        functools.partial(_aspp_kernel, rows=rows, wrow=Wp, denom=float(Ho * Wo)),
        grid=(B,),
        in_specs=[
            pl.BlockSpec((1, R, C), lambda b: (b, 0, 0)),
            pl.BlockSpec((C, CPAD), lambda b: (0, 0)),
            pl.BlockSpec((9, C, CPAD), lambda b: (0, 0, 0)),
            pl.BlockSpec((9, C, CPAD), lambda b: (0, 0, 0)),
            pl.BlockSpec((C, CPAD), lambda b: (0, 0)),
            pl.BlockSpec((4, CPAD), lambda b: (0, 0)),
            pl.BlockSpec((4, C, CPAD), lambda b: (0, 0, 0)),
            pl.BlockSpec((1, CPAD), lambda b: (0, 0)),
        ],
        out_specs=pl.BlockSpec((1, rows, CPAD), lambda b: (b, 0, 0)),
        out_shape=jax.ShapeDtypeStruct((B, rows, CPAD), jnp.bfloat16),
        compiler_params=pltpu.CompilerParams(
            dimension_semantics=("parallel",),
            vmem_limit_bytes=64 * 1024 * 1024),
    )(hp, p["aspp0_w"], p["aspp1_w"], p["aspp2_w"], p["aspp_pool_w"],
      p["aspp_b"], p["aspp_proj_w"], p["aspp_proj_b"])
    return out.reshape(B, Ho, Wp, CPAD)[:, :, :Wo, :]


# ---------------------------------------------------------------------------
# Parameters (deterministic synthetic init, pre-packed into lane-dense layout)
# ---------------------------------------------------------------------------

def init_params(key, in_ch, num_classes):
    keys = iter(jax.random.split(key, 32))

    def conv_w(cin, cout, k):
        w = jax.random.normal(next(keys), (k, k, cin, cout), jnp.float32)
        return w * (2.0 / (k * k * cin)) ** 0.5

    def pack_w(w, in_segments, n_pad=CPAD):
        """HWIO weight -> [taps, padded_Cin, n_pad] bf16, zero-filled pad rows/cols."""
        kh, kw, cin, cout = w.shape
        assert sum(r for r, _ in in_segments) == cin
        wp = jnp.zeros((kh * kw, sum(p for _, p in in_segments), n_pad), jnp.float32)
        w2 = w.reshape(kh * kw, cin, cout)
        r0 = p0 = 0
        for real, padded in in_segments:
            wp = wp.at[:, p0:p0 + real, :cout].set(w2[:, r0:r0 + real, :])
            r0 += real
            p0 += padded
        return wp.astype(jnp.bfloat16)

    def zbias():
        return jnp.zeros((1, CPAD), jnp.float32)

    p = {}
    # backbone (real channel widths: in_ch -> 8 -> 16 -> 32 -> 32)
    p["stem_w"] = pack_w(conv_w(in_ch, 8, 3), [(in_ch, in_ch)]); p["stem_b"] = zbias()
    p["layer1_w"] = pack_w(conv_w(8, 16, 3), [(8, CPAD)]);       p["layer1_b"] = zbias()
    p["layer2_w"] = pack_w(conv_w(16, 32, 3), [(16, CPAD)]);     p["layer2_b"] = zbias()
    p["layer3_w"] = pack_w(conv_w(32, 32, 3), [(32, CPAD)]);     p["layer3_b"] = zbias()
    # ASPP (branch width 16, projection 64 -> 32)
    p["aspp0_w"] = pack_w(conv_w(32, 16, 1), [(32, CPAD)])[0]        # [128,128]
    p["aspp1_w"] = pack_w(conv_w(32, 16, 3), [(32, CPAD)])           # [9,128,128]
    p["aspp2_w"] = pack_w(conv_w(32, 16, 3), [(32, CPAD)])
    p["aspp_pool_w"] = pack_w(conv_w(32, 16, 1), [(32, CPAD)])[0]
    p["aspp_b"] = jnp.zeros((4, CPAD), jnp.float32)
    wproj = conv_w(64, 32, 1)                                        # [1,1,64,32]
    p["aspp_proj_w"] = jnp.stack(
        [pack_w(wproj[:, :, i * 16:(i + 1) * 16, :], [(16, CPAD)])[0] for i in range(4)],
        axis=0)                                                      # [4,128,128]
    p["aspp_proj_b"] = zbias()
    # decoder
    p["dec_low_w"] = pack_w(conv_w(16, 8, 1), [(16, CPAD)]);         p["dec_low_b"] = zbias()
    p["dec_conv1_w"] = pack_w(conv_w(40, 32, 3), [(32, CPAD), (8, CPAD)])
    p["dec_conv1_b"] = zbias()
    p["dec_conv2_w"] = pack_w(conv_w(32, 32, 3), [(32, CPAD)]);      p["dec_conv2_b"] = zbias()
    p["cls_w"] = pack_w(conv_w(32, num_classes, 1), [(32, CPAD)]);   p["cls_b"] = zbias()
    return p


# ---------------------------------------------------------------------------
# Forward pass (NCHW in / NCHW out, matching the PyTorch module interface)
# ---------------------------------------------------------------------------

def deeplab_forward(params, x_nchw, filter4_nchw, filter16_nchw, *, num_classes=3):
    x = jnp.transpose(x_nchw, (0, 2, 3, 1)).astype(jnp.bfloat16)
    f4 = jnp.transpose(filter4_nchw, (0, 2, 3, 1)).astype(jnp.float32)
    f16 = jnp.transpose(filter16_nchw, (0, 2, 3, 1)).astype(jnp.float32)
    B, H, W, _ = x.shape

    # backbone; filter4 / filter16 gating fused into the conv epilogues
    h = conv2d(x, params["stem_w"], params["stem_b"], stride=2)                    # /2
    low = conv2d(h, params["layer1_w"], params["layer1_b"], stride=2, gate=f4)     # /4
    h = conv2d(low, params["layer2_w"], params["layer2_b"], stride=2)              # /8
    high = conv2d(h, params["layer3_w"], params["layer3_b"], stride=2, gate=f16)   # /16

    # fused ASPP head (branches + image pooling + concat + projection)
    aspp = aspp_fused(high, params)

    # decoder
    dec = jax.image.resize(aspp.astype(jnp.float32),
                           (B, low.shape[1], low.shape[2], aspp.shape[-1]),
                           method="bilinear").astype(jnp.bfloat16)
    lowp = conv2d(low, params["dec_low_w"], params["dec_low_b"])
    dec = jnp.concatenate([dec, lowp], axis=-1)          # padded-channel concat (32+8 real)
    dec = conv2d(dec, params["dec_conv1_w"], params["dec_conv1_b"])
    dec = conv2d(dec, params["dec_conv2_w"], params["dec_conv2_b"])
    logits = conv2d(dec, params["cls_w"], params["cls_b"], relu=False)
    logits = logits[..., :num_classes].astype(jnp.float32)
    logits = jax.image.resize(logits, (B, H, W, num_classes), method="bilinear")
    return jnp.transpose(logits, (0, 3, 1, 2))           # back to NCHW


if __name__ == "__main__":
    param = {"input_channels": 4, "output_channels": 3}
    key = jax.random.PRNGKey(0)
    kp, kx, k4, k16 = jax.random.split(key, 4)

    B, C, H, W = 2, param["input_channels"], 32, 32
    params = init_params(kp, param["input_channels"], param["output_channels"])
    x = jax.random.normal(kx, (B, C, H, W), jnp.float32)
    filter4 = jax.nn.sigmoid(jax.random.normal(k4, (B, 1, H // 4, W // 4), jnp.float32))
    filter16 = jax.nn.sigmoid(jax.random.normal(k16, (B, 1, H // 16, W // 16), jnp.float32))

    fwd = jax.jit(functools.partial(deeplab_forward,
                                    num_classes=param["output_channels"]))
    out = fwd(params, x, filter4, filter16)
    jax.block_until_ready(out)
    assert out.shape == (B, param["output_channels"], H, W), out.shape
    assert out.dtype == jnp.float32
    print("KERNEL_OK")
</pallas_src>

<mosaic_0001>
module attributes {stable_mosaic.version = 11 : i64} {
  func.func @_conv_kernel(%arg0: i32, %arg1: memref<1x4x290x4xbf16, #tpu.memory_space<vmem>>, %arg2: memref<9x4x128xbf16, #tpu.memory_space<vmem>>, %arg3: memref<1x128xf32, #tpu.memory_space<vmem>>, %arg4: memref<1x272x128xbf16, #tpu.memory_space<vmem>>) attributes {dimension_semantics = [#tpu.dimension_semantics<parallel>], iteration_bounds = array<i64: 2>, scalar_prefetch = 0 : i64, scratch_operands = 0 : i64, tpu.core_type = #tpu.core_type<tc>, window_params = [{transform_indices = @transform_0, window_bounds = array<i64: 1, 4, 290, 4>}, {pipeline_mode = #tpu.pipeline_mode<synchronous>, transform_indices = @transform_1, window_bounds = array<i64: 9, 4, 128>}, {pipeline_mode = #tpu.pipeline_mode<synchronous>, transform_indices = @transform_2, window_bounds = array<i64: 1, 128>}, {transform_indices = @transform_3, window_bounds = array<i64: 1, 272, 128>}]} {
    %c0 = arith.constant 0 : index
    %c0_0 = arith.constant 0 : index
    %c0_1 = arith.constant 0 : index
    %c0_2 = arith.constant 0 : index
    %0 = vector.load %arg1[%c0, %c0_0, %c0_1, %c0_2] : memref<1x4x290x4xbf16, #tpu.memory_space<vmem>>, vector<1x1x272x4xbf16>
    %1 = vector.shape_cast %0 : vector<1x1x272x4xbf16> to vector<272x4xbf16>
    %c0_3 = arith.constant 0 : index
    %c0_4 = arith.constant 0 : index
    %c0_5 = arith.constant 0 : index
    %2 = vector.load %arg2[%c0_3, %c0_4, %c0_5] : memref<9x4x128xbf16, #tpu.memory_space<vmem>>, vector<1x4x128xbf16>
    %3 = vector.shape_cast %2 : vector<1x4x128xbf16> to vector<4x128xbf16>
    %cst = arith.constant dense<0.000000e+00> : vector<272x128xf32>
    %4 = tpu.matmul %1, %3, %cst {dimension_numbers = #tpu.dot_dimension_numbers<[1], [0], [0], [1], [0, 0, 1, 1], [], []>} : vector<272x4xbf16>, vector<4x128xbf16>, vector<272x128xf32> -> vector<272x128xf32>
    %c0_6 = arith.constant 0 : index
    %c1 = arith.constant 1 : index
    %c0_7 = arith.constant 0 : index
    %c0_8 = arith.constant 0 : index
    %5 = vector.load %arg1[%c0_6, %c1, %c0_7, %c0_8] : memref<1x4x290x4xbf16, #tpu.memory_space<vmem>>, vector<1x1x272x4xbf16>
    %6 = vector.shape_cast %5 : vector<1x1x272x4xbf16> to vector<272x4xbf16>
    %c1_9 = arith.constant 1 : index
    %c0_10 = arith.constant 0 : index
    %c0_11 = arith.constant 0 : index
    %7 = vector.load %arg2[%c1_9, %c0_10, %c0_11] : memref<9x4x128xbf16, #tpu.memory_space<vmem>>, vector<1x4x128xbf16>
    %8 = vector.shape_cast %7 : vector<1x4x128xbf16> to vector<4x128xbf16>
    %cst_12 = arith.constant dense<0.000000e+00> : vector<272x128xf32>
    %9 = tpu.matmul %6, %8, %cst_12 {dimension_numbers = #tpu.dot_dimension_numbers<[1], [0], [0], [1], [0, 0, 1, 1], [], []>} : vector<272x4xbf16>, vector<4x128xbf16>, vector<272x128xf32> -> vector<272x128xf32>
    %10 = arith.addf %4, %9 : vector<272x128xf32>
    %c0_13 = arith.constant 0 : index
    %c0_14 = arith.constant 0 : index
    %c1_15 = arith.constant 1 : index
    %c0_16 = arith.constant 0 : index
    %11 = vector.load %arg1[%c0_13, %c0_14, %c1_15, %c0_16] : memref<1x4x290x4xbf16, #tpu.memory_space<vmem>>, vector<1x1x272x4xbf16>
    %12 = vector.shape_cast %11 : vector<1x1x272x4xbf16> to vector<272x4xbf16>
    %c2 = arith.constant 2 : index
    %c0_17 = arith.constant 0 : index
    %c0_18 = arith.constant 0 : index
    %13 = vector.load %arg2[%c2, %c0_17, %c0_18] : memref<9x4x128xbf16, #tpu.memory_space<vmem>>, vector<1x4x128xbf16>
    %14 = vector.shape_cast %13 : vector<1x4x128xbf16> to vector<4x128xbf16>
    %cst_19 = arith.constant dense<0.000000e+00> : vector<272x128xf32>
    %15 = tpu.matmul %12, %14, %cst_19 {dimension_numbers = #tpu.dot_dimension_numbers<[1], [0], [0], [1], [0, 0, 1, 1], [], []>} : vector<272x4xbf16>, vector<4x128xbf16>, vector<272x128xf32> -> vector<272x128xf32>
    %16 = arith.addf %10, %15 : vector<272x128xf32>
    %c0_20 = arith.constant 0 : index
    %c2_21 = arith.constant 2 : index
    %c0_22 = arith.constant 0 : index
    %c0_23 = arith.constant 0 : index
    %17 = vector.load %arg1[%c0_20, %c2_21, %c0_22, %c0_23] : memref<1x4x290x4xbf16, #tpu.memory_space<vmem>>, vector<1x1x272x4xbf16>
    %18 = vector.shape_cast %17 : vector<1x1x272x4xbf16> to vector<272x4xbf16>
    %c3 = arith.constant 3 : index
    %c0_24 = arith.constant 0 : index
    %c0_25 = arith.constant 0 : index
    %19 = vector.load %arg2[%c3, %c0_24, %c0_25] : memref<9x4x128xbf16, #tpu.memory_space<vmem>>, vector<1x4x128xbf16>
    %20 = vector.shape_cast %19 : vector<1x4x128xbf16> to vector<4x128xbf16>
    %cst_26 = arith.constant dense<0.000000e+00> : vector<272x128xf32>
    %21 = tpu.matmul %18, %20, %cst_26 {dimension_numbers = #tpu.dot_dimension_numbers<[1], [0], [0], [1], [0, 0, 1, 1], [], []>} : vector<272x4xbf16>, vector<4x128xbf16>, vector<272x128xf32> -> vector<272x128xf32>
    %22 = arith.addf %16, %21 : vector<272x128xf32>
    %c0_27 = arith.constant 0 : index
    %c3_28 = arith.constant 3 : index
    %c0_29 = arith.constant 0 : index
    %c0_30 = arith.constant 0 : index
    %23 = vector.load %arg1[%c0_27, %c3_28, %c0_29, %c0_30] : memref<1x4x290x4xbf16, #tpu.memory_space<vmem>>, vector<1x1x272x4xbf16>
    %24 = vector.shape_cast %23 : vector<1x1x272x4xbf16> to vector<272x4xbf16>
    %c4 = arith.constant 4 : index
    %c0_31 = arith.constant 0 : index
    %c0_32 = arith.constant 0 : index
    %25 = vector.load %arg2[%c4, %c0_31, %c0_32] : memref<9x4x128xbf16, #tpu.memory_space<vmem>>, vector<1x4x128xbf16>
    %26 = vector.shape_cast %25 : vector<1x4x128xbf16> to vector<4x128xbf16>
    %cst_33 = arith.constant dense<0.000000e+00> : vector<272x128xf32>
    %27 = tpu.matmul %24, %26, %cst_33 {dimension_numbers = #tpu.dot_dimension_numbers<[1], [0], [0], [1], [0, 0, 1, 1], [], []>} : vector<272x4xbf16>, vector<4x128xbf16>, vector<272x128xf32> -> vector<272x128xf32>
    %28 = arith.addf %22, %27 : vector<272x128xf32>
    %c0_34 = arith.constant 0 : index
    %c2_35 = arith.constant 2 : index
    %c1_36 = arith.constant 1 : index
    %c0_37 = arith.constant 0 : index
    %29 = vector.load %arg1[%c0_34, %c2_35, %c1_36, %c0_37] : memref<1x4x290x4xbf16, #tpu.memory_space<vmem>>, vector<1x1x272x4xbf16>
    %30 = vector.shape_cast %29 : vector<1x1x272x4xbf16> to vector<272x4xbf16>
    %c5 = arith.constant 5 : index
    %c0_38 = arith.constant 0 : index
    %c0_39 = arith.constant 0 : index
    %31 = vector.load %arg2[%c5, %c0_38, %c0_39] : memref<9x4x128xbf16, #tpu.memory_space<vmem>>, vector<1x4x128xbf16>
    %32 = vector.shape_cast %31 : vector<1x4x128xbf16> to vector<4x128xbf16>
    %cst_40 = arith.constant dense<0.000000e+00> : vector<272x128xf32>
    %33 = tpu.matmul %30, %32, %cst_40 {dimension_numbers = #tpu.dot_dimension_numbers<[1], [0], [0], [1], [0, 0, 1, 1], [], []>} : vector<272x4xbf16>, vector<4x128xbf16>, vector<272x128xf32> -> vector<272x128xf32>
    %34 = arith.addf %28, %33 : vector<272x128xf32>
    %c0_41 = arith.constant 0 : index
    %c0_42 = arith.constant 0 : index
    %c17 = arith.constant 17 : index
    %c0_43 = arith.constant 0 : index
    %35 = vector.load %arg1[%c0_41, %c0_42, %c17, %c0_43] : memref<1x4x290x4xbf16, #tpu.memory_space<vmem>>, vector<1x1x272x4xbf16>
    %36 = vector.shape_cast %35 : vector<1x1x272x4xbf16> to vector<272x4xbf16>
    %c6 = arith.constant 6 : index
    %c0_44 = arith.constant 0 : index
    %c0_45 = arith.constant 0 : index
    %37 = vector.load %arg2[%c6, %c0_44, %c0_45] : memref<9x4x128xbf16, #tpu.memory_space<vmem>>, vector<1x4x128xbf16>
    %38 = vector.shape_cast %37 : vector<1x4x128xbf16> to vector<4x128xbf16>
    %cst_46 = arith.constant dense<0.000000e+00> : vector<272x128xf32>
    %39 = tpu.matmul %36, %38, %cst_46 {dimension_numbers = #tpu.dot_dimension_numbers<[1], [0], [0], [1], [0, 0, 1, 1], [], []>} : vector<272x4xbf16>, vector<4x128xbf16>, vector<272x128xf32> -> vector<272x128xf32>
    %40 = arith.addf %34, %39 : vector<272x128xf32>
    %c0_47 = arith.constant 0 : index
    %c1_48 = arith.constant 1 : index
    %c17_49 = arith.constant 17 : index
    %c0_50 = arith.constant 0 : index
    %41 = vector.load %arg1[%c0_47, %c1_48, %c17_49, %c0_50] : memref<1x4x290x4xbf16, #tpu.memory_space<vmem>>, vector<1x1x272x4xbf16>
    %42 = vector.shape_cast %41 : vector<1x1x272x4xbf16> to vector<272x4xbf16>
    %c7 = arith.constant 7 : index
    %c0_51 = arith.constant 0 : index
    %c0_52 = arith.constant 0 : index
    %43 = vector.load %arg2[%c7, %c0_51, %c0_52] : memref<9x4x128xbf16, #tpu.memory_space<vmem>>, vector<1x4x128xbf16>
    %44 = vector.shape_cast %43 : vector<1x4x128xbf16> to vector<4x128xbf16>
    %cst_53 = arith.constant dense<0.000000e+00> : vector<272x128xf32>
    %45 = tpu.matmul %42, %44, %cst_53 {dimension_numbers = #tpu.dot_dimension_numbers<[1], [0], [0], [1], [0, 0, 1, 1], [], []>} : vector<272x4xbf16>, vector<4x128xbf16>, vector<272x128xf32> -> vector<272x128xf32>
    %46 = arith.addf %40, %45 : vector<272x128xf32>
    %c0_54 = arith.constant 0 : index
    %c0_55 = arith.constant 0 : index
    %c18 = arith.constant 18 : index
    %c0_56 = arith.constant 0 : index
    %47 = vector.load %arg1[%c0_54, %c0_55, %c18, %c0_56] : memref<1x4x290x4xbf16, #tpu.memory_space<vmem>>, vector<1x1x272x4xbf16>
    %48 = vector.shape_cast %47 : vector<1x1x272x4xbf16> to vector<272x4xbf16>
    %c8 = arith.constant 8 : index
    %c0_57 = arith.constant 0 : index
    %c0_58 = arith.constant 0 : index
    %49 = vector.load %arg2[%c8, %c0_57, %c0_58] : memref<9x4x128xbf16, #tpu.memory_space<vmem>>, vector<1x4x128xbf16>
    %50 = vector.shape_cast %49 : vector<1x4x128xbf16> to vector<4x128xbf16>
    %cst_59 = arith.constant dense<0.000000e+00> : vector<272x128xf32>
    %51 = tpu.matmul %48, %50, %cst_59 {dimension_numbers = #tpu.dot_dimension_numbers<[1], [0], [0], [1], [0, 0, 1, 1], [], []>} : vector<272x4xbf16>, vector<4x128xbf16>, vector<272x128xf32> -> vector<272x128xf32>
    %52 = arith.addf %46, %51 : vector<272x128xf32>
    %c0_60 = arith.constant 0 : index
    %c0_61 = arith.constant 0 : index
    %53 = vector.load %arg3[%c0_60, %c0_61] : memref<1x128xf32, #tpu.memory_space<vmem>>, vector<1x128xf32>
    %54 = vector.broadcast %53 : vector<1x128xf32> to vector<272x128xf32>
    %55 = arith.addf %52, %54 : vector<272x128xf32>
    %cst_62 = arith.constant 0.000000e+00 : f32
    %56 = vector.broadcast %cst_62 : f32 to vector<272x128xf32>
    %57 = arith.maximumf %55, %56 : vector<272x128xf32>
    %58 = arith.truncf %57 : vector<272x128xf32> to vector<272x128xbf16>
    %c0_63 = arith.constant 0 : index
    %c0_64 = arith.constant 0 : index
    %c0_65 = arith.constant 0 : index
    %59 = vector.load %arg4[%c0_63, %c0_64, %c0_65] : memref<1x272x128xbf16, #tpu.memory_space<vmem>>, vector<1x272x128xbf16>
    %60 = vector.shape_cast %59 : vector<1x272x128xbf16> to vector<272x128xbf16>
    %61 = vector.shape_cast %58 : vector<272x128xbf16> to vector<1x272x128xbf16>
    tpu.vector_store %arg4[%c0_63, %c0_64, %c0_65], %61 {strides = array<i32>} : memref<1x272x128xbf16, #tpu.memory_space<vmem>>, vector<1x272x128xbf16>,
    return
  }
  func.func @transform_0(%arg0: i32) -> (i32, i32, i32, i32) {
    %c0_i32 = arith.constant 0 : i32
    %c0_i32_0 = arith.constant 0 : i32
    %c0_i32_1 = arith.constant 0 : i32
    %c0_i32_2 = arith.constant 0 : i32
    return %arg0, %c0_i32, %c0_i32_0, %c0_i32_1 : i32, i32, i32, i32
  }
  func.func @transform_1(%arg0: i32) -> (i32, i32, i32) {
    %c0_i32 = arith.constant 0 : i32
    %c0_i32_0 = arith.constant 0 : i32
    %c0_i32_1 = arith.constant 0 : i32
    %c0_i32_2 = arith.constant 0 : i32
    return %c0_i32, %c0_i32_0, %c0_i32_1 : i32, i32, i32
  }
  func.func @transform_2(%arg0: i32) -> (i32, i32) {
    %c0_i32 = arith.constant 0 : i32
    %c0_i32_0 = arith.constant 0 : i32
    %c0_i32_1 = arith.constant 0 : i32
    return %c0_i32, %c0_i32_0 : i32, i32
  }
  func.func @transform_3(%arg0: i32) -> (i32, i32, i32) {
    %c0_i32 = arith.constant 0 : i32
    %c0_i32_0 = arith.constant 0 : i32
    %c0_i32_1 = arith.constant 0 : i32
    return %arg0, %c0_i32, %c0_i32_0 : i32, i32, i32
  }
}

module attributes {stable_mosaic.version = 11 : i64} {
  func.func @_conv_kernel(%arg0: i32, %arg1: memref<1x4x82x128xbf16, #tpu.memory_space<vmem>>, %arg2: memref<9x128x128xbf16, #tpu.memory_space<vmem>>, %arg3: memref<1x128xf32, #tpu.memory_space<vmem>>, %arg4: memref<1x72x1xf32, #tpu.memory_space<vmem>>, %arg5: memref<1x72x128xbf16, #tpu.memory_space<vmem>>) attributes {dimension_semantics = [#tpu.dimension_semantics<parallel>], iteration_bounds = array<i64: 2>, scalar_prefetch = 0 : i64, scratch_operands = 0 : i64, tpu.core_type = #tpu.core_type<tc>, window_params = [{transform_indices = @transform_0, window_bounds = array<i64: 1, 4, 82, 128>}, {pipeline_mode = #tpu.pipeline_mode<synchronous>, transform_indices = @transform_1, window_bounds = array<i64: 9, 128, 128>}, {pipeline_mode = #tpu.pipeline_mode<synchronous>, transform_indices = @transform_2, window_bounds = array<i64: 1, 128>}, {transform_indices = @transform_3, window_bounds = array<i64: 1, 72, 1>}, {transform_indices = @transform_4, window_bounds = array<i64: 1, 72, 128>}]} {
    %c0 = arith.constant 0 : index
    %c0_0 = arith.constant 0 : index
    %c0_1 = arith.constant 0 : index
    %c0_2 = arith.constant 0 : index
    %0 = vector.load %arg1[%c0, %c0_0, %c0_1, %c0_2] : memref<1x4x82x128xbf16, #tpu.memory_space<vmem>>, vector<1x1x72x128xbf16>
    %1 = vector.shape_cast %0 : vector<1x1x72x128xbf16> to vector<72x128xbf16>
    %c0_3 = arith.constant 0 : index
    %c0_4 = arith.constant 0 : index
    %c0_5 = arith.constant 0 : index
    %2 = vector.load %arg2[%c0_3, %c0_4, %c0_5] : memref<9x128x128xbf16, #tpu.memory_space<vmem>>, vector<1x128x128xbf16>
    %3 = vector.shape_cast %2 : vector<1x128x128xbf16> to vector<128x128xbf16>
    %cst = arith.constant dense<0.000000e+00> : vector<72x128xf32>
    %4 = tpu.matmul %1, %3, %cst {dimension_numbers = #tpu.dot_dimension_numbers<[1], [0], [0], [1], [0, 0, 1, 1], [], []>} : vector<72x128xbf16>, vector<128x128xbf16>, vector<72x128xf32> -> vector<72x128xf32>
    %c0_6 = arith.constant 0 : index
    %c1 = arith.constant 1 : index
    %c0_7 = arith.constant 0 : index
    %c0_8 = arith.constant 0 : index
    %5 = vector.load %arg1[%c0_6, %c1, %c0_7, %c0_8] : memref<1x4x82x128xbf16, #tpu.memory_space<vmem>>, vector<1x1x72x128xbf16>
    %6 = vector.shape_cast %5 : vector<1x1x72x128xbf16> to vector<72x128xbf16>
    %c1_9 = arith.constant 1 : index
    %c0_10 = arith.constant 0 : index
    %c0_11 = arith.constant 0 : index
    %7 = vector.load %arg2[%c1_9, %c0_10, %c0_11] : memref<9x128x128xbf16, #tpu.memory_space<vmem>>, vector<1x128x128xbf16>
    %8 = vector.shape_cast %7 : vector<1x128x128xbf16> to vector<128x128xbf16>
    %cst_12 = arith.constant dense<0.000000e+00> : vector<72x128xf32>
    %9 = tpu.matmul %6, %8, %cst_12 {dimension_numbers = #tpu.dot_dimension_numbers<[1], [0], [0], [1], [0, 0, 1, 1], [], []>} : vector<72x128xbf16>, vector<128x128xbf16>, vector<72x128xf32> -> vector<72x128xf32>
    %10 = arith.addf %4, %9 : vector<72x128xf32>
    %c0_13 = arith.constant 0 : index
    %c0_14 = arith.constant 0 : index
    %c1_15 = arith.constant 1 : index
    %c0_16 = arith.constant 0 : index
    %11 = vector.load %arg1[%c0_13, %c0_14, %c1_15, %c0_16] : memref<1x4x82x128xbf16, #tpu.memory_space<vmem>>, vector<1x1x72x128xbf16>
    %12 = vector.shape_cast %11 : vector<1x1x72x128xbf16> to vector<72x128xbf16>
    %c2 = arith.constant 2 : index
    %c0_17 = arith.constant 0 : index
    %c0_18 = arith.constant 0 : index
    %13 = vector.load %arg2[%c2, %c0_17, %c0_18] : memref<9x128x128xbf16, #tpu.memory_space<vmem>>, vector<1x128x128xbf16>
    %14 = vector.shape_cast %13 : vector<1x128x128xbf16> to vector<128x128xbf16>
    %cst_19 = arith.constant dense<0.000000e+00> : vector<72x128xf32>
    %15 = tpu.matmul %12, %14, %cst_19 {dimension_numbers = #tpu.dot_dimension_numbers<[1], [0], [0], [1], [0, 0, 1, 1], [], []>} : vector<72x128xbf16>, vector<128x128xbf16>, vector<72x128xf32> -> vector<72x128xf32>
    %16 = arith.addf %10, %15 : vector<72x128xf32>
    %c0_20 = arith.constant 0 : index
    %c2_21 = arith.constant 2 : index
    %c0_22 = arith.constant 0 : index
    %c0_23 = arith.constant 0 : index
    %17 = vector.load %arg1[%c0_20, %c2_21, %c0_22, %c0_23] : memref<1x4x82x128xbf16, #tpu.memory_space<vmem>>, vector<1x1x72x128xbf16>
    %18 = vector.shape_cast %17 : vector<1x1x72x128xbf16> to vector<72x128xbf16>
    %c3 = arith.constant 3 : index
    %c0_24 = arith.constant 0 : index
    %c0_25 = arith.constant 0 : index
    %19 = vector.load %arg2[%c3, %c0_24, %c0_25] : memref<9x128x128xbf16, #tpu.memory_space<vmem>>, vector<1x128x128xbf16>
    %20 = vector.shape_cast %19 : vector<1x128x128xbf16> to vector<128x128xbf16>
    %cst_26 = arith.constant dense<0.000000e+00> : vector<72x128xf32>
    %21 = tpu.matmul %18, %20, %cst_26 {dimension_numbers = #tpu.dot_dimension_numbers<[1], [0], [0], [1], [0, 0, 1, 1], [], []>} : vector<72x128xbf16>, vector<128x128xbf16>, vector<72x128xf32> -> vector<72x128xf32>
    %22 = arith.addf %16, %21 : vector<72x128xf32>
    %c0_27 = arith.constant 0 : index
    %c3_28 = arith.constant 3 : index
    %c0_29 = arith.constant 0 : index
    %c0_30 = arith.constant 0 : index
    %23 = vector.load %arg1[%c0_27, %c3_28, %c0_29, %c0_30] : memref<1x4x82x128xbf16, #tpu.memory_space<vmem>>, vector<1x1x72x128xbf16>
    %24 = vector.shape_cast %23 : vector<1x1x72x128xbf16> to vector<72x128xbf16>
    %c4 = arith.constant 4 : index
    %c0_31 = arith.constant 0 : index
    %c0_32 = arith.constant 0 : index
    %25 = vector.load %arg2[%c4, %c0_31, %c0_32] : memref<9x128x128xbf16, #tpu.memory_space<vmem>>, vector<1x128x128xbf16>
    %26 = vector.shape_cast %25 : vector<1x128x128xbf16> to vector<128x128xbf16>
    %cst_33 = arith.constant dense<0.000000e+00> : vector<72x128xf32>
    %27 = tpu.matmul %24, %26, %cst_33 {dimension_numbers = #tpu.dot_dimension_numbers<[1], [0], [0], [1], [0, 0, 1, 1], [], []>} : vector<72x128xbf16>, vector<128x128xbf16>, vector<72x128xf32> -> vector<72x128xf32>
    %28 = arith.addf %22, %27 : vector<72x128xf32>
    %c0_34 = arith.constant 0 : index
    %c2_35 = arith.constant 2 : index
    %c1_36 = arith.constant 1 : index
    %c0_37 = arith.constant 0 : index
    %29 = vector.load %arg1[%c0_34, %c2_35, %c1_36, %c0_37] : memref<1x4x82x128xbf16, #tpu.memory_space<vmem>>, vector<1x1x72x128xbf16>
    %30 = vector.shape_cast %29 : vector<1x1x72x128xbf16> to vector<72x128xbf16>
    %c5 = arith.constant 5 : index
    %c0_38 = arith.constant 0 : index
    %c0_39 = arith.constant 0 : index
    %31 = vector.load %arg2[%c5, %c0_38, %c0_39] : memref<9x128x128xbf16, #tpu.memory_space<vmem>>, vector<1x128x128xbf16>
    %32 = vector.shape_cast %31 : vector<1x128x128xbf16> to vector<128x128xbf16>
    %cst_40 = arith.constant dense<0.000000e+00> : vector<72x128xf32>
    %33 = tpu.matmul %30, %32, %cst_40 {dimension_numbers = #tpu.dot_dimension_numbers<[1], [0], [0], [1], [0, 0, 1, 1], [], []>} : vector<72x128xbf16>, vector<128x128xbf16>, vector<72x128xf32> -> vector<72x128xf32>
    %34 = arith.addf %28, %33 : vector<72x128xf32>
    %c0_41 = arith.constant 0 : index
    %c0_42 = arith.constant 0 : index
    %c9 = arith.constant 9 : index
    %c0_43 = arith.constant 0 : index
    %35 = vector.load %arg1[%c0_41, %c0_42, %c9, %c0_43] : memref<1x4x82x128xbf16, #tpu.memory_space<vmem>>, vector<1x1x72x128xbf16>
    %36 = vector.shape_cast %35 : vector<1x1x72x128xbf16> to vector<72x128xbf16>
    %c6 = arith.constant 6 : index
    %c0_44 = arith.constant 0 : index
    %c0_45 = arith.constant 0 : index
    %37 = vector.load %arg2[%c6, %c0_44, %c0_45] : memref<9x128x128xbf16, #tpu.memory_space<vmem>>, vector<1x128x128xbf16>
    %38 = vector.shape_cast %37 : vector<1x128x128xbf16> to vector<128x128xbf16>
    %cst_46 = arith.constant dense<0.000000e+00> : vector<72x128xf32>
    %39 = tpu.matmul %36, %38, %cst_46 {dimension_numbers = #tpu.dot_dimension_numbers<[1], [0], [0], [1], [0, 0, 1, 1], [], []>} : vector<72x128xbf16>, vector<128x128xbf16>, vector<72x128xf32> -> vector<72x128xf32>
    %40 = arith.addf %34, %39 : vector<72x128xf32>
    %c0_47 = arith.constant 0 : index
    %c1_48 = arith.constant 1 : index
    %c9_49 = arith.constant 9 : index
    %c0_50 = arith.constant 0 : index
    %41 = vector.load %arg1[%c0_47, %c1_48, %c9_49, %c0_50] : memref<1x4x82x128xbf16, #tpu.memory_space<vmem>>, vector<1x1x72x128xbf16>
    %42 = vector.shape_cast %41 : vector<1x1x72x128xbf16> to vector<72x128xbf16>
    %c7 = arith.constant 7 : index
    %c0_51 = arith.constant 0 : index
    %c0_52 = arith.constant 0 : index
    %43 = vector.load %arg2[%c7, %c0_51, %c0_52] : memref<9x128x128xbf16, #tpu.memory_space<vmem>>, vector<1x128x128xbf16>
    %44 = vector.shape_cast %43 : vector<1x128x128xbf16> to vector<128x128xbf16>
    %cst_53 = arith.constant dense<0.000000e+00> : vector<72x128xf32>
    %45 = tpu.matmul %42, %44, %cst_53 {dimension_numbers = #tpu.dot_dimension_numbers<[1], [0], [0], [1], [0, 0, 1, 1], [], []>} : vector<72x128xbf16>, vector<128x128xbf16>, vector<72x128xf32> -> vector<72x128xf32>
    %46 = arith.addf %40, %45 : vector<72x128xf32>
    %c0_54 = arith.constant 0 : index
    %c0_55 = arith.constant 0 : index
    %c10 = arith.constant 10 : index
    %c0_56 = arith.constant 0 : index
    %47 = vector.load %arg1[%c0_54, %c0_55, %c10, %c0_56] : memref<1x4x82x128xbf16, #tpu.memory_space<vmem>>, vector<1x1x72x128xbf16>
    %48 = vector.shape_cast %47 : vector<1x1x72x128xbf16> to vector<72x128xbf16>
    %c8 = arith.constant 8 : index
    %c0_57 = arith.constant 0 : index
    %c0_58 = arith.constant 0 : index
    %49 = vector.load %arg2[%c8, %c0_57, %c0_58] : memref<9x128x128xbf16, #tpu.memory_space<vmem>>, vector<1x128x128xbf16>
    %50 = vector.shape_cast %49 : vector<1x128x128xbf16> to vector<128x128xbf16>
    %cst_59 = arith.constant dense<0.000000e+00> : vector<72x128xf32>
    %51 = tpu.matmul %48, %50, %cst_59 {dimension_numbers = #tpu.dot_dimension_numbers<[1], [0], [0], [1], [0, 0, 1, 1], [], []>} : vector<72x128xbf16>, vector<128x128xbf16>, vector<72x128xf32> -> vector<72x128xf32>
    %52 = arith.addf %46, %51 : vector<72x128xf32>
    %c0_60 = arith.constant 0 : index
    %c0_61 = arith.constant 0 : index
    %53 = vector.load %arg3[%c0_60, %c0_61] : memref<1x128xf32, #tpu.memory_space<vmem>>, vector<1x128xf32>
    %54 = vector.broadcast %53 : vector<1x128xf32> to vector<72x128xf32>
    %55 = arith.addf %52, %54 : vector<72x128xf32>
    %cst_62 = arith.constant 0.000000e+00 : f32
    %56 = vector.broadcast %cst_62 : f32 to vector<72x128xf32>
    %57 = arith.maximumf %55, %56 : vector<72x128xf32>
    %c0_63 = arith.constant 0 : index
    %c0_64 = arith.constant 0 : index
    %c0_65 = arith.constant 0 : index
    %58 = vector.load %arg4[%c0_63, %c0_64, %c0_65] : memref<1x72x1xf32, #tpu.memory_space<vmem>>, vector<1x72x1xf32>
    %59 = vector.shape_cast %58 : vector<1x72x1xf32> to vector<72x1xf32>
    %60 = vector.broadcast %59 : vector<72x1xf32> to vector<72x128xf32>
    %61 = arith.mulf %57, %60 : vector<72x128xf32>
    %62 = arith.truncf %61 : vector<72x128xf32> to vector<72x128xbf16>
    %c0_66 = arith.constant 0 : index
    %c0_67 = arith.constant 0 : index
    %c0_68 = arith.constant 0 : index
    %63 = vector.load %arg5[%c0_66, %c0_67, %c0_68] : memref<1x72x128xbf16, #tpu.memory_space<vmem>>, vector<1x72x128xbf16>
    %64 = vector.shape_cast %63 : vector<1x72x128xbf16> to vector<72x128xbf16>
    %65 = vector.shape_cast %62 : vector<72x128xbf16> to vector<1x72x128xbf16>
    tpu.vector_store %arg5[%c0_66, %c0_67, %c0_68], %65 {strides = array<i32>} : memref<1x72x128xbf16, #tpu.memory_space<vmem>>, vector<1x72x128xbf16>,
    return
  }
  func.func @transform_0(%arg0: i32) -> (i32, i32, i32, i32) {
    %c0_i32 = arith.constant 0 : i32
    %c0_i32_0 = arith.constant 0 : i32
    %c0_i32_1 = arith.constant 0 : i32
    %c0_i32_2 = arith.constant 0 : i32
    return %arg0, %c0_i32, %c0_i32_0, %c0_i32_1 : i32, i32, i32, i32
  }
  func.func @transform_1(%arg0: i32) -> (i32, i32, i32) {
    %c0_i32 = arith.constant 0 : i32
    %c0_i32_0 = arith.constant 0 : i32
    %c0_i32_1 = arith.constant 0 : i32
    %c0_i32_2 = arith.constant 0 : i32
    return %c0_i32, %c0_i32_0, %c0_i32_1 : i32, i32, i32
  }
  func.func @transform_2(%arg0: i32) -> (i32, i32) {
    %c0_i32 = arith.constant 0 : i32
    %c0_i32_0 = arith.constant 0 : i32
    %c0_i32_1 = arith.constant 0 : i32
    return %c0_i32, %c0_i32_0 : i32, i32
  }
  func.func @transform_3(%arg0: i32) -> (i32, i32, i32) {
    %c0_i32 = arith.constant 0 : i32
    %c0_i32_0 = arith.constant 0 : i32
    %c0_i32_1 = arith.constant 0 : i32
    return %arg0, %c0_i32, %c0_i32_0 : i32, i32, i32
  }
  func.func @transform_4(%arg0: i32) -> (i32, i32, i32) {
    %c0_i32 = arith.constant 0 : i32
    %c0_i32_0 = arith.constant 0 : i32
    %c0_i32_1 = arith.constant 0 : i32
    return %arg0, %c0_i32, %c0_i32_0 : i32, i32, i32
  }
}

module attributes {stable_mosaic.version = 11 : i64} {
  func.func @_conv_kernel(%arg0: i32, %arg1: memref<1x4x26x128xbf16, #tpu.memory_space<vmem>>, %arg2: memref<9x128x128xbf16, #tpu.memory_space<vmem>>, %arg3: memref<1x128xf32, #tpu.memory_space<vmem>>, %arg4: memref<1x20x128xbf16, #tpu.memory_space<vmem>>) attributes {dimension_semantics = [#tpu.dimension_semantics<parallel>], iteration_bounds = array<i64: 2>, scalar_prefetch = 0 : i64, scratch_operands = 0 : i64, tpu.core_type = #tpu.core_type<tc>, window_params = [{transform_indices = @transform_0, window_bounds = array<i64: 1, 4, 26, 128>}, {pipeline_mode = #tpu.pipeline_mode<synchronous>, transform_indices = @transform_1, window_bounds = array<i64: 9, 128, 128>}, {pipeline_mode = #tpu.pipeline_mode<synchronous>, transform_indices = @transform_2, window_bounds = array<i64: 1, 128>}, {transform_indices = @transform_3, window_bounds = array<i64: 1, 20, 128>}]} {
    %c0 = arith.constant 0 : index
    %c0_0 = arith.constant 0 : index
    %c0_1 = arith.constant 0 : index
    %c0_2 = arith.constant 0 : index
    %0 = vector.load %arg1[%c0, %c0_0, %c0_1, %c0_2] : memref<1x4x26x128xbf16, #tpu.memory_space<vmem>>, vector<1x1x20x128xbf16>
    %1 = vector.shape_cast %0 : vector<1x1x20x128xbf16> to vector<20x128xbf16>
    %c0_3 = arith.constant 0 : index
    %c0_4 = arith.constant 0 : index
    %c0_5 = arith.constant 0 : index
    %2 = vector.load %arg2[%c0_3, %c0_4, %c0_5] : memref<9x128x128xbf16, #tpu.memory_space<vmem>>, vector<1x128x128xbf16>
    %3 = vector.shape_cast %2 : vector<1x128x128xbf16> to vector<128x128xbf16>
    %cst = arith.constant dense<0.000000e+00> : vector<20x128xf32>
    %4 = tpu.matmul %1, %3, %cst {dimension_numbers = #tpu.dot_dimension_numbers<[1], [0], [0], [1], [0, 0, 1, 1], [], []>} : vector<20x128xbf16>, vector<128x128xbf16>, vector<20x128xf32> -> vector<20x128xf32>
    %c0_6 = arith.constant 0 : index
    %c1 = arith.constant 1 : index
    %c0_7 = arith.constant 0 : index
    %c0_8 = arith.constant 0 : index
    %5 = vector.load %arg1[%c0_6, %c1, %c0_7, %c0_8] : memref<1x4x26x128xbf16, #tpu.memory_space<vmem>>, vector<1x1x20x128xbf16>
    %6 = vector.shape_cast %5 : vector<1x1x20x128xbf16> to vector<20x128xbf16>
    %c1_9 = arith.constant 1 : index
    %c0_10 = arith.constant 0 : index
    %c0_11 = arith.constant 0 : index
    %7 = vector.load %arg2[%c1_9, %c0_10, %c0_11] : memref<9x128x128xbf16, #tpu.memory_space<vmem>>, vector<1x128x128xbf16>
    %8 = vector.shape_cast %7 : vector<1x128x128xbf16> to vector<128x128xbf16>
    %cst_12 = arith.constant dense<0.000000e+00> : vector<20x128xf32>
    %9 = tpu.matmul %6, %8, %cst_12 {dimension_numbers = #tpu.dot_dimension_numbers<[1], [0], [0], [1], [0, 0, 1, 1], [], []>} : vector<20x128xbf16>, vector<128x128xbf16>, vector<20x128xf32> -> vector<20x128xf32>
    %10 = arith.addf %4, %9 : vector<20x128xf32>
    %c0_13 = arith.constant 0 : index
    %c0_14 = arith.constant 0 : index
    %c1_15 = arith.constant 1 : index
    %c0_16 = arith.constant 0 : index
    %11 = vector.load %arg1[%c0_13, %c0_14, %c1_15, %c0_16] : memref<1x4x26x128xbf16, #tpu.memory_space<vmem>>, vector<1x1x20x128xbf16>
    %12 = vector.shape_cast %11 : vector<1x1x20x128xbf16> to vector<20x128xbf16>
    %c2 = arith.constant 2 : index
    %c0_17 = arith.constant 0 : index
    %c0_18 = arith.constant 0 : index
    %13 = vector.load %arg2[%c2, %c0_17, %c0_18] : memref<9x128x128xbf16, #tpu.memory_space<vmem>>, vector<1x128x128xbf16>
    %14 = vector.shape_cast %13 : vector<1x128x128xbf16> to vector<128x128xbf16>
    %cst_19 = arith.constant dense<0.000000e+00> : vector<20x128xf32>
    %15 = tpu.matmul %12, %14, %cst_19 {dimension_numbers = #tpu.dot_dimension_numbers<[1], [0], [0], [1], [0, 0, 1, 1], [], []>} : vector<20x128xbf16>, vector<128x128xbf16>, vector<20x128xf32> -> vector<20x128xf32>
    %16 = arith.addf %10, %15 : vector<20x128xf32>
    %c0_20 = arith.constant 0 : index
    %c2_21 = arith.constant 2 : index
    %c0_22 = arith.constant 0 : index
    %c0_23 = arith.constant 0 : index
    %17 = vector.load %arg1[%c0_20, %c2_21, %c0_22, %c0_23] : memref<1x4x26x128xbf16, #tpu.memory_space<vmem>>, vector<1x1x20x128xbf16>
    %18 = vector.shape_cast %17 : vector<1x1x20x128xbf16> to vector<20x128xbf16>
    %c3 = arith.constant 3 : index
    %c0_24 = arith.constant 0 : index
    %c0_25 = arith.constant 0 : index
    %19 = vector.load %arg2[%c3, %c0_24, %c0_25] : memref<9x128x128xbf16, #tpu.memory_space<vmem>>, vector<1x128x128xbf16>
    %20 = vector.shape_cast %19 : vector<1x128x128xbf16> to vector<128x128xbf16>
    %cst_26 = arith.constant dense<0.000000e+00> : vector<20x128xf32>
    %21 = tpu.matmul %18, %20, %cst_26 {dimension_numbers = #tpu.dot_dimension_numbers<[1], [0], [0], [1], [0, 0, 1, 1], [], []>} : vector<20x128xbf16>, vector<128x128xbf16>, vector<20x128xf32> -> vector<20x128xf32>
    %22 = arith.addf %16, %21 : vector<20x128xf32>
    %c0_27 = arith.constant 0 : index
    %c3_28 = arith.constant 3 : index
    %c0_29 = arith.constant 0 : index
    %c0_30 = arith.constant 0 : index
    %23 = vector.load %arg1[%c0_27, %c3_28, %c0_29, %c0_30] : memref<1x4x26x128xbf16, #tpu.memory_space<vmem>>, vector<1x1x20x128xbf16>
    %24 = vector.shape_cast %23 : vector<1x1x20x128xbf16> to vector<20x128xbf16>
    %c4 = arith.constant 4 : index
    %c0_31 = arith.constant 0 : index
    %c0_32 = arith.constant 0 : index
    %25 = vector.load %arg2[%c4, %c0_31, %c0_32] : memref<9x128x128xbf16, #tpu.memory_space<vmem>>, vector<1x128x128xbf16>
    %26 = vector.shape_cast %25 : vector<1x128x128xbf16> to vector<128x128xbf16>
    %cst_33 = arith.constant dense<0.000000e+00> : vector<20x128xf32>
    %27 = tpu.matmul %24, %26, %cst_33 {dimension_numbers = #tpu.dot_dimension_numbers<[1], [0], [0], [1], [0, 0, 1, 1], [], []>} : vector<20x128xbf16>, vector<128x128xbf16>, vector<20x128xf32> -> vector<20x128xf32>
    %28 = arith.addf %22, %27 : vector<20x128xf32>
    %c0_34 = arith.constant 0 : index
    %c2_35 = arith.constant 2 : index
    %c1_36 = arith.constant 1 : index
    %c0_37 = arith.constant 0 : index
    %29 = vector.load %arg1[%c0_34, %c2_35, %c1_36, %c0_37] : memref<1x4x26x128xbf16, #tpu.memory_space<vmem>>, vector<1x1x20x128xbf16>
    %30 = vector.shape_cast %29 : vector<1x1x20x128xbf16> to vector<20x128xbf16>
    %c5 = arith.constant 5 : index
    %c0_38 = arith.constant 0 : index
    %c0_39 = arith.constant 0 : index
    %31 = vector.load %arg2[%c5, %c0_38, %c0_39] : memref<9x128x128xbf16, #tpu.memory_space<vmem>>, vector<1x128x128xbf16>
    %32 = vector.shape_cast %31 : vector<1x128x128xbf16> to vector<128x128xbf16>
    %cst_40 = arith.constant dense<0.000000e+00> : vector<20x128xf32>
    %33 = tpu.matmul %30, %32, %cst_40 {dimension_numbers = #tpu.dot_dimension_numbers<[1], [0], [0], [1], [0, 0, 1, 1], [], []>} : vector<20x128xbf16>, vector<128x128xbf16>, vector<20x128xf32> -> vector<20x128xf32>
    %34 = arith.addf %28, %33 : vector<20x128xf32>
    %c0_41 = arith.constant 0 : index
    %c0_42 = arith.constant 0 : index
    %c5_43 = arith.constant 5 : index
    %c0_44 = arith.constant 0 : index
    %35 = vector.load %arg1[%c0_41, %c0_42, %c5_43, %c0_44] : memref<1x4x26x128xbf16, #tpu.memory_space<vmem>>, vector<1x1x20x128xbf16>
    %36 = vector.shape_cast %35 : vector<1x1x20x128xbf16> to vector<20x128xbf16>
    %c6 = arith.constant 6 : index
    %c0_45 = arith.constant 0 : index
    %c0_46 = arith.constant 0 : index
    %37 = vector.load %arg2[%c6, %c0_45, %c0_46] : memref<9x128x128xbf16, #tpu.memory_space<vmem>>, vector<1x128x128xbf16>
    %38 = vector.shape_cast %37 : vector<1x128x128xbf16> to vector<128x128xbf16>
    %cst_47 = arith.constant dense<0.000000e+00> : vector<20x128xf32>
    %39 = tpu.matmul %36, %38, %cst_47 {dimension_numbers = #tpu.dot_dimension_numbers<[1], [0], [0], [1], [0, 0, 1, 1], [], []>} : vector<20x128xbf16>, vector<128x128xbf16>, vector<20x128xf32> -> vector<20x128xf32>
    %40 = arith.addf %34, %39 : vector<20x128xf32>
    %c0_48 = arith.constant 0 : index
    %c1_49 = arith.constant 1 : index
    %c5_50 = arith.constant 5 : index
    %c0_51 = arith.constant 0 : index
    %41 = vector.load %arg1[%c0_48, %c1_49, %c5_50, %c0_51] : memref<1x4x26x128xbf16, #tpu.memory_space<vmem>>, vector<1x1x20x128xbf16>
    %42 = vector.shape_cast %41 : vector<1x1x20x128xbf16> to vector<20x128xbf16>
    %c7 = arith.constant 7 : index
    %c0_52 = arith.constant 0 : index
    %c0_53 = arith.constant 0 : index
    %43 = vector.load %arg2[%c7, %c0_52, %c0_53] : memref<9x128x128xbf16, #tpu.memory_space<vmem>>, vector<1x128x128xbf16>
    %44 = vector.shape_cast %43 : vector<1x128x128xbf16> to vector<128x128xbf16>
    %cst_54 = arith.constant dense<0.000000e+00> : vector<20x128xf32>
    %45 = tpu.matmul %42, %44, %cst_54 {dimension_numbers = #tpu.dot_dimension_numbers<[1], [0], [0], [1], [0, 0, 1, 1], [], []>} : vector<20x128xbf16>, vector<128x128xbf16>, vector<20x128xf32> -> vector<20x128xf32>
    %46 = arith.addf %40, %45 : vector<20x128xf32>
    %c0_55 = arith.constant 0 : index
    %c0_56 = arith.constant 0 : index
    %c6_57 = arith.constant 6 : index
    %c0_58 = arith.constant 0 : index
    %47 = vector.load %arg1[%c0_55, %c0_56, %c6_57, %c0_58] : memref<1x4x26x128xbf16, #tpu.memory_space<vmem>>, vector<1x1x20x128xbf16>
    %48 = vector.shape_cast %47 : vector<1x1x20x128xbf16> to vector<20x128xbf16>
    %c8 = arith.constant 8 : index
    %c0_59 = arith.constant 0 : index
    %c0_60 = arith.constant 0 : index
    %49 = vector.load %arg2[%c8, %c0_59, %c0_60] : memref<9x128x128xbf16, #tpu.memory_space<vmem>>, vector<1x128x128xbf16>
    %50 = vector.shape_cast %49 : vector<1x128x128xbf16> to vector<128x128xbf16>
    %cst_61 = arith.constant dense<0.000000e+00> : vector<20x128xf32>
    %51 = tpu.matmul %48, %50, %cst_61 {dimension_numbers = #tpu.dot_dimension_numbers<[1], [0], [0], [1], [0, 0, 1, 1], [], []>} : vector<20x128xbf16>, vector<128x128xbf16>, vector<20x128xf32> -> vector<20x128xf32>
    %52 = arith.addf %46, %51 : vector<20x128xf32>
    %c0_62 = arith.constant 0 : index
    %c0_63 = arith.constant 0 : index
    %53 = vector.load %arg3[%c0_62, %c0_63] : memref<1x128xf32, #tpu.memory_space<vmem>>, vector<1x128xf32>
    %54 = vector.broadcast %53 : vector<1x128xf32> to vector<20x128xf32>
    %55 = arith.addf %52, %54 : vector<20x128xf32>
    %cst_64 = arith.constant 0.000000e+00 : f32
    %56 = vector.broadcast %cst_64 : f32 to vector<20x128xf32>
    %57 = arith.maximumf %55, %56 : vector<20x128xf32>
    %58 = arith.truncf %57 : vector<20x128xf32> to vector<20x128xbf16>
    %c0_65 = arith.constant 0 : index
    %c0_66 = arith.constant 0 : index
    %c0_67 = arith.constant 0 : index
    %59 = vector.load %arg4[%c0_65, %c0_66, %c0_67] : memref<1x20x128xbf16, #tpu.memory_space<vmem>>, vector<1x20x128xbf16>
    %60 = vector.shape_cast %59 : vector<1x20x128xbf16> to vector<20x128xbf16>
    %61 = vector.shape_cast %58 : vector<20x128xbf16> to vector<1x20x128xbf16>
    tpu.vector_store %arg4[%c0_65, %c0_66, %c0_67], %61 {strides = array<i32>} : memref<1x20x128xbf16, #tpu.memory_space<vmem>>, vector<1x20x128xbf16>,
    return
  }
  func.func @transform_0(%arg0: i32) -> (i32, i32, i32, i32) {
    %c0_i32 = arith.constant 0 : i32
    %c0_i32_0 = arith.constant 0 : i32
    %c0_i32_1 = arith.constant 0 : i32
    %c0_i32_2 = arith.constant 0 : i32
    return %arg0, %c0_i32, %c0_i32_0, %c0_i32_1 : i32, i32, i32, i32
  }
  func.func @transform_1(%arg0: i32) -> (i32, i32, i32) {
    %c0_i32 = arith.constant 0 : i32
    %c0_i32_0 = arith.constant 0 : i32
    %c0_i32_1 = arith.constant 0 : i32
    %c0_i32_2 = arith.constant 0 : i32
    return %c0_i32, %c0_i32_0, %c0_i32_1 : i32, i32, i32
  }
  func.func @transform_2(%arg0: i32) -> (i32, i32) {
    %c0_i32 = arith.constant 0 : i32
    %c0_i32_0 = arith.constant 0 : i32
    %c0_i32_1 = arith.constant 0 : i32
    return %c0_i32, %c0_i32_0 : i32, i32
  }
  func.func @transform_3(%arg0: i32) -> (i32, i32, i32) {
    %c0_i32 = arith.constant 0 : i32
    %c0_i32_0 = arith.constant 0 : i32
    %c0_i32_1 = arith.constant 0 : i32
    return %arg0, %c0_i32, %c0_i32_0 : i32, i32, i32
  }
}

module attributes {stable_mosaic.version = 11 : i64} {
  func.func @_conv_kernel(%arg0: i32, %arg1: memref<1x4x10x128xbf16, #tpu.memory_space<vmem>>, %arg2: memref<9x128x128xbf16, #tpu.memory_space<vmem>>, %arg3: memref<1x128xf32, #tpu.memory_space<vmem>>, %arg4: memref<1x6x1xf32, #tpu.memory_space<vmem>>, %arg5: memref<1x6x128xbf16, #tpu.memory_space<vmem>>) attributes {dimension_semantics = [#tpu.dimension_semantics<parallel>], iteration_bounds = array<i64: 2>, scalar_prefetch = 0 : i64, scratch_operands = 0 : i64, tpu.core_type = #tpu.core_type<tc>, window_params = [{transform_indices = @transform_0, window_bounds = array<i64: 1, 4, 10, 128>}, {pipeline_mode = #tpu.pipeline_mode<synchronous>, transform_indices = @transform_1, window_bounds = array<i64: 9, 128, 128>}, {pipeline_mode = #tpu.pipeline_mode<synchronous>, transform_indices = @transform_2, window_bounds = array<i64: 1, 128>}, {transform_indices = @transform_3, window_bounds = array<i64: 1, 6, 1>}, {transform_indices = @transform_4, window_bounds = array<i64: 1, 6, 128>}]} {
    %c0 = arith.constant 0 : index
    %c0_0 = arith.constant 0 : index
    %c0_1 = arith.constant 0 : index
    %c0_2 = arith.constant 0 : index
    %0 = vector.load %arg1[%c0, %c0_0, %c0_1, %c0_2] : memref<1x4x10x128xbf16, #tpu.memory_space<vmem>>, vector<1x1x6x128xbf16>
    %1 = vector.shape_cast %0 : vector<1x1x6x128xbf16> to vector<6x128xbf16>
    %c0_3 = arith.constant 0 : index
    %c0_4 = arith.constant 0 : index
    %c0_5 = arith.constant 0 : index
    %2 = vector.load %arg2[%c0_3, %c0_4, %c0_5] : memref<9x128x128xbf16, #tpu.memory_space<vmem>>, vector<1x128x128xbf16>
    %3 = vector.shape_cast %2 : vector<1x128x128xbf16> to vector<128x128xbf16>
    %cst = arith.constant dense<0.000000e+00> : vector<6x128xf32>
    %4 = tpu.matmul %1, %3, %cst {dimension_numbers = #tpu.dot_dimension_numbers<[1], [0], [0], [1], [0, 0, 1, 1], [], []>} : vector<6x128xbf16>, vector<128x128xbf16>, vector<6x128xf32> -> vector<6x128xf32>
    %c0_6 = arith.constant 0 : index
    %c1 = arith.constant 1 : index
    %c0_7 = arith.constant 0 : index
    %c0_8 = arith.constant 0 : index
    %5 = vector.load %arg1[%c0_6, %c1, %c0_7, %c0_8] : memref<1x4x10x128xbf16, #tpu.memory_space<vmem>>, vector<1x1x6x128xbf16>
    %6 = vector.shape_cast %5 : vector<1x1x6x128xbf16> to vector<6x128xbf16>
    %c1_9 = arith.constant 1 : index
    %c0_10 = arith.constant 0 : index
    %c0_11 = arith.constant 0 : index
    %7 = vector.load %arg2[%c1_9, %c0_10, %c0_11] : memref<9x128x128xbf16, #tpu.memory_space<vmem>>, vector<1x128x128xbf16>
    %8 = vector.shape_cast %7 : vector<1x128x128xbf16> to vector<128x128xbf16>
    %cst_12 = arith.constant dense<0.000000e+00> : vector<6x128xf32>
    %9 = tpu.matmul %6, %8, %cst_12 {dimension_numbers = #tpu.dot_dimension_numbers<[1], [0], [0], [1], [0, 0, 1, 1], [], []>} : vector<6x128xbf16>, vector<128x128xbf16>, vector<6x128xf32> -> vector<6x128xf32>
    %10 = arith.addf %4, %9 : vector<6x128xf32>
    %c0_13 = arith.constant 0 : index
    %c0_14 = arith.constant 0 : index
    %c1_15 = arith.constant 1 : index
    %c0_16 = arith.constant 0 : index
    %11 = vector.load %arg1[%c0_13, %c0_14, %c1_15, %c0_16] : memref<1x4x10x128xbf16, #tpu.memory_space<vmem>>, vector<1x1x6x128xbf16>
    %12 = vector.shape_cast %11 : vector<1x1x6x128xbf16> to vector<6x128xbf16>
    %c2 = arith.constant 2 : index
    %c0_17 = arith.constant 0 : index
    %c0_18 = arith.constant 0 : index
    %13 = vector.load %arg2[%c2, %c0_17, %c0_18] : memref<9x128x128xbf16, #tpu.memory_space<vmem>>, vector<1x128x128xbf16>
    %14 = vector.shape_cast %13 : vector<1x128x128xbf16> to vector<128x128xbf16>
    %cst_19 = arith.constant dense<0.000000e+00> : vector<6x128xf32>
    %15 = tpu.matmul %12, %14, %cst_19 {dimension_numbers = #tpu.dot_dimension_numbers<[1], [0], [0], [1], [0, 0, 1, 1], [], []>} : vector<6x128xbf16>, vector<128x128xbf16>, vector<6x128xf32> -> vector<6x128xf32>
    %16 = arith.addf %10, %15 : vector<6x128xf32>
    %c0_20 = arith.constant 0 : index
    %c2_21 = arith.constant 2 : index
    %c0_22 = arith.constant 0 : index
    %c0_23 = arith.constant 0 : index
    %17 = vector.load %arg1[%c0_20, %c2_21, %c0_22, %c0_23] : memref<1x4x10x128xbf16, #tpu.memory_space<vmem>>, vector<1x1x6x128xbf16>
    %18 = vector.shape_cast %17 : vector<1x1x6x128xbf16> to vector<6x128xbf16>
    %c3 = arith.constant 3 : index
    %c0_24 = arith.constant 0 : index
    %c0_25 = arith.constant 0 : index
    %19 = vector.load %arg2[%c3, %c0_24, %c0_25] : memref<9x128x128xbf16, #tpu.memory_space<vmem>>, vector<1x128x128xbf16>
    %20 = vector.shape_cast %19 : vector<1x128x128xbf16> to vector<128x128xbf16>
    %cst_26 = arith.constant dense<0.000000e+00> : vector<6x128xf32>
    %21 = tpu.matmul %18, %20, %cst_26 {dimension_numbers = #tpu.dot_dimension_numbers<[1], [0], [0], [1], [0, 0, 1, 1], [], []>} : vector<6x128xbf16>, vector<128x128xbf16>, vector<6x128xf32> -> vector<6x128xf32>
    %22 = arith.addf %16, %21 : vector<6x128xf32>
    %c0_27 = arith.constant 0 : index
    %c3_28 = arith.constant 3 : index
    %c0_29 = arith.constant 0 : index
    %c0_30 = arith.constant 0 : index
    %23 = vector.load %arg1[%c0_27, %c3_28, %c0_29, %c0_30] : memref<1x4x10x128xbf16, #tpu.memory_space<vmem>>, vector<1x1x6x128xbf16>
    %24 = vector.shape_cast %23 : vector<1x1x6x128xbf16> to vector<6x128xbf16>
    %c4 = arith.constant 4 : index
    %c0_31 = arith.constant 0 : index
    %c0_32 = arith.constant 0 : index
    %25 = vector.load %arg2[%c4, %c0_31, %c0_32] : memref<9x128x128xbf16, #tpu.memory_space<vmem>>, vector<1x128x128xbf16>
    %26 = vector.shape_cast %25 : vector<1x128x128xbf16> to vector<128x128xbf16>
    %cst_33 = arith.constant dense<0.000000e+00> : vector<6x128xf32>
    %27 = tpu.matmul %24, %26, %cst_33 {dimension_numbers = #tpu.dot_dimension_numbers<[1], [0], [0], [1], [0, 0, 1, 1], [], []>} : vector<6x128xbf16>, vector<128x128xbf16>, vector<6x128xf32> -> vector<6x128xf32>
    %28 = arith.addf %22, %27 : vector<6x128xf32>
    %c0_34 = arith.constant 0 : index
    %c2_35 = arith.constant 2 : index
    %c1_36 = arith.constant 1 : index
    %c0_37 = arith.constant 0 : index
    %29 = vector.load %arg1[%c0_34, %c2_35, %c1_36, %c0_37] : memref<1x4x10x128xbf16, #tpu.memory_space<vmem>>, vector<1x1x6x128xbf16>
    %30 = vector.shape_cast %29 : vector<1x1x6x128xbf16> to vector<6x128xbf16>
    %c5 = arith.constant 5 : index
    %c0_38 = arith.constant 0 : index
    %c0_39 = arith.constant 0 : index
    %31 = vector.load %arg2[%c5, %c0_38, %c0_39] : memref<9x128x128xbf16, #tpu.memory_space<vmem>>, vector<1x128x128xbf16>
    %32 = vector.shape_cast %31 : vector<1x128x128xbf16> to vector<128x128xbf16>
    %cst_40 = arith.constant dense<0.000000e+00> : vector<6x128xf32>
    %33 = tpu.matmul %30, %32, %cst_40 {dimension_numbers = #tpu.dot_dimension_numbers<[1], [0], [0], [1], [0, 0, 1, 1], [], []>} : vector<6x128xbf16>, vector<128x128xbf16>, vector<6x128xf32> -> vector<6x128xf32>
    %34 = arith.addf %28, %33 : vector<6x128xf32>
    %c0_41 = arith.constant 0 : index
    %c0_42 = arith.constant 0 : index
    %c3_43 = arith.constant 3 : index
    %c0_44 = arith.constant 0 : index
    %35 = vector.load %arg1[%c0_41, %c0_42, %c3_43, %c0_44] : memref<1x4x10x128xbf16, #tpu.memory_space<vmem>>, vector<1x1x6x128xbf16>
    %36 = vector.shape_cast %35 : vector<1x1x6x128xbf16> to vector<6x128xbf16>
    %c6 = arith.constant 6 : index
    %c0_45 = arith.constant 0 : index
    %c0_46 = arith.constant 0 : index
    %37 = vector.load %arg2[%c6, %c0_45, %c0_46] : memref<9x128x128xbf16, #tpu.memory_space<vmem>>, vector<1x128x128xbf16>
    %38 = vector.shape_cast %37 : vector<1x128x128xbf16> to vector<128x128xbf16>
    %cst_47 = arith.constant dense<0.000000e+00> : vector<6x128xf32>
    %39 = tpu.matmul %36, %38, %cst_47 {dimension_numbers = #tpu.dot_dimension_numbers<[1], [0], [0], [1], [0, 0, 1, 1], [], []>} : vector<6x128xbf16>, vector<128x128xbf16>, vector<6x128xf32> -> vector<6x128xf32>
    %40 = arith.addf %34, %39 : vector<6x128xf32>
    %c0_48 = arith.constant 0 : index
    %c1_49 = arith.constant 1 : index
    %c3_50 = arith.constant 3 : index
    %c0_51 = arith.constant 0 : index
    %41 = vector.load %arg1[%c0_48, %c1_49, %c3_50, %c0_51] : memref<1x4x10x128xbf16, #tpu.memory_space<vmem>>, vector<1x1x6x128xbf16>
    %42 = vector.shape_cast %41 : vector<1x1x6x128xbf16> to vector<6x128xbf16>
    %c7 = arith.constant 7 : index
    %c0_52 = arith.constant 0 : index
    %c0_53 = arith.constant 0 : index
    %43 = vector.load %arg2[%c7, %c0_52, %c0_53] : memref<9x128x128xbf16, #tpu.memory_space<vmem>>, vector<1x128x128xbf16>
    %44 = vector.shape_cast %43 : vector<1x128x128xbf16> to vector<128x128xbf16>
    %cst_54 = arith.constant dense<0.000000e+00> : vector<6x128xf32>
    %45 = tpu.matmul %42, %44, %cst_54 {dimension_numbers = #tpu.dot_dimension_numbers<[1], [0], [0], [1], [0, 0, 1, 1], [], []>} : vector<6x128xbf16>, vector<128x128xbf16>, vector<6x128xf32> -> vector<6x128xf32>
    %46 = arith.addf %40, %45 : vector<6x128xf32>
    %c0_55 = arith.constant 0 : index
    %c0_56 = arith.constant 0 : index
    %c4_57 = arith.constant 4 : index
    %c0_58 = arith.constant 0 : index
    %47 = vector.load %arg1[%c0_55, %c0_56, %c4_57, %c0_58] : memref<1x4x10x128xbf16, #tpu.memory_space<vmem>>, vector<1x1x6x128xbf16>
    %48 = vector.shape_cast %47 : vector<1x1x6x128xbf16> to vector<6x128xbf16>
    %c8 = arith.constant 8 : index
    %c0_59 = arith.constant 0 : index
    %c0_60 = arith.constant 0 : index
    %49 = vector.load %arg2[%c8, %c0_59, %c0_60] : memref<9x128x128xbf16, #tpu.memory_space<vmem>>, vector<1x128x128xbf16>
    %50 = vector.shape_cast %49 : vector<1x128x128xbf16> to vector<128x128xbf16>
    %cst_61 = arith.constant dense<0.000000e+00> : vector<6x128xf32>
    %51 = tpu.matmul %48, %50, %cst_61 {dimension_numbers = #tpu.dot_dimension_numbers<[1], [0], [0], [1], [0, 0, 1, 1], [], []>} : vector<6x128xbf16>, vector<128x128xbf16>, vector<6x128xf32> -> vector<6x128xf32>
    %52 = arith.addf %46, %51 : vector<6x128xf32>
    %c0_62 = arith.constant 0 : index
    %c0_63 = arith.constant 0 : index
    %53 = vector.load %arg3[%c0_62, %c0_63] : memref<1x128xf32, #tpu.memory_space<vmem>>, vector<1x128xf32>
    %54 = vector.broadcast %53 : vector<1x128xf32> to vector<6x128xf32>
    %55 = arith.addf %52, %54 : vector<6x128xf32>
    %cst_64 = arith.constant 0.000000e+00 : f32
    %56 = vector.broadcast %cst_64 : f32 to vector<6x128xf32>
    %57 = arith.maximumf %55, %56 : vector<6x128xf32>
    %c0_65 = arith.constant 0 : index
    %c0_66 = arith.constant 0 : index
    %c0_67 = arith.constant 0 : index
    %58 = vector.load %arg4[%c0_65, %c0_66, %c0_67] : memref<1x6x1xf32, #tpu.memory_space<vmem>>, vector<1x6x1xf32>
    %59 = vector.shape_cast %58 : vector<1x6x1xf32> to vector<6x1xf32>
    %60 = vector.broadcast %59 : vector<6x1xf32> to vector<6x128xf32>
    %61 = arith.mulf %57, %60 : vector<6x128xf32>
    %62 = arith.truncf %61 : vector<6x128xf32> to vector<6x128xbf16>
    %c0_68 = arith.constant 0 : index
    %c0_69 = arith.constant 0 : index
    %c0_70 = arith.constant 0 : index
    %63 = vector.load %arg5[%c0_68, %c0_69, %c0_70] : memref<1x6x128xbf16, #tpu.memory_space<vmem>>, vector<1x6x128xbf16>
    %64 = vector.shape_cast %63 : vector<1x6x128xbf16> to vector<6x128xbf16>
    %65 = vector.shape_cast %62 : vector<6x128xbf16> to vector<1x6x128xbf16>
    tpu.vector_store %arg5[%c0_68, %c0_69, %c0_70], %65 {strides = array<i32>} : memref<1x6x128xbf16, #tpu.memory_space<vmem>>, vector<1x6x128xbf16>,
    return
  }
  func.func @transform_0(%arg0: i32) -> (i32, i32, i32, i32) {
    %c0_i32 = arith.constant 0 : i32
    %c0_i32_0 = arith.constant 0 : i32
    %c0_i32_1 = arith.constant 0 : i32
    %c0_i32_2 = arith.constant 0 : i32
    return %arg0, %c0_i32, %c0_i32_0, %c0_i32_1 : i32, i32, i32, i32
  }
  func.func @transform_1(%arg0: i32) -> (i32, i32, i32) {
    %c0_i32 = arith.constant 0 : i32
    %c0_i32_0 = arith.constant 0 : i32
    %c0_i32_1 = arith.constant 0 : i32
    %c0_i32_2 = arith.constant 0 : i32
    return %c0_i32, %c0_i32_0, %c0_i32_1 : i32, i32, i32
  }
  func.func @transform_2(%arg0: i32) -> (i32, i32) {
    %c0_i32 = arith.constant 0 : i32
    %c0_i32_0 = arith.constant 0 : i32
    %c0_i32_1 = arith.constant 0 : i32
    return %c0_i32, %c0_i32_0 : i32, i32
  }
  func.func @transform_3(%arg0: i32) -> (i32, i32, i32) {
    %c0_i32 = arith.constant 0 : i32
    %c0_i32_0 = arith.constant 0 : i32
    %c0_i32_1 = arith.constant 0 : i32
    return %arg0, %c0_i32, %c0_i32_0 : i32, i32, i32
  }
  func.func @transform_4(%arg0: i32) -> (i32, i32, i32) {
    %c0_i32 = arith.constant 0 : i32
    %c0_i32_0 = arith.constant 0 : i32
    %c0_i32_1 = arith.constant 0 : i32
    return %arg0, %c0_i32, %c0_i32_0 : i32, i32, i32
  }
}

module attributes {stable_mosaic.version = 11 : i64} {
  func.func @_aspp_kernel(%arg0: i32, %arg1: memref<1x40x128xbf16, #tpu.memory_space<vmem>>, %arg2: memref<128x128xbf16, #tpu.memory_space<vmem>>, %arg3: memref<9x128x128xbf16, #tpu.memory_space<vmem>>, %arg4: memref<9x128x128xbf16, #tpu.memory_space<vmem>>, %arg5: memref<128x128xbf16, #tpu.memory_space<vmem>>, %arg6: memref<4x128xf32, #tpu.memory_space<vmem>>, %arg7: memref<4x128x128xbf16, #tpu.memory_space<vmem>>, %arg8: memref<1x128xf32, #tpu.memory_space<vmem>>, %arg9: memref<1x12x128xbf16, #tpu.memory_space<vmem>>) attributes {dimension_semantics = [#tpu.dimension_semantics<parallel>], iteration_bounds = array<i64: 2>, scalar_prefetch = 0 : i64, scratch_operands = 0 : i64, tpu.core_type = #tpu.core_type<tc>, window_params = [{transform_indices = @transform_0, window_bounds = array<i64: 1, 40, 128>}, {pipeline_mode = #tpu.pipeline_mode<synchronous>, transform_indices = @transform_1, window_bounds = array<i64: 128, 128>}, {pipeline_mode = #tpu.pipeline_mode<synchronous>, transform_indices = @transform_2, window_bounds = array<i64: 9, 128, 128>}, {pipeline_mode = #tpu.pipeline_mode<synchronous>, transform_indices = @transform_3, window_bounds = array<i64: 9, 128, 128>}, {pipeline_mode = #tpu.pipeline_mode<synchronous>, transform_indices = @transform_4, window_bounds = array<i64: 128, 128>}, {pipeline_mode = #tpu.pipeline_mode<synchronous>, transform_indices = @transform_5, window_bounds = array<i64: 4, 128>}, {pipeline_mode = #tpu.pipeline_mode<synchronous>, transform_indices = @transform_6, window_bounds = array<i64: 4, 128, 128>}, {pipeline_mode = #tpu.pipeline_mode<synchronous>, transform_indices = @transform_7, window_bounds = array<i64: 1, 128>}, {transform_indices = @transform_8, window_bounds = array<i64: 1, 12, 128>}]} {
    %c0 = arith.constant 0 : index
    %c0_0 = arith.constant 0 : index
    %0 = vector.load %arg2[%c0, %c0_0] : memref<128x128xbf16, #tpu.memory_space<vmem>>, vector<128x128xbf16>
    %c0_1 = arith.constant 0 : index
    %c14 = arith.constant 14 : index
    %c0_2 = arith.constant 0 : index
    %1 = vector.load %arg1[%c0_1, %c14, %c0_2] : memref<1x40x128xbf16, #tpu.memory_space<vmem>>, vector<1x12x128xbf16>
    %2 = vector.shape_cast %1 : vector<1x12x128xbf16> to vector<12x128xbf16>
    %cst = arith.constant dense<0.000000e+00> : vector<12x128xf32>
    %3 = tpu.matmul %2, %0, %cst {dimension_numbers = #tpu.dot_dimension_numbers<[1], [0], [0], [1], [0, 0, 1, 1], [], []>} : vector<12x128xbf16>, vector<128x128xbf16>, vector<12x128xf32> -> vector<12x128xf32>
    %c0_3 = arith.constant 0 : index
    %c0_4 = arith.constant 0 : index
    %4 = vector.load %arg6[%c0_3, %c0_4] : memref<4x128xf32, #tpu.memory_space<vmem>>, vector<1x128xf32>
    %5 = vector.broadcast %4 : vector<1x128xf32> to vector<12x128xf32>
    %6 = arith.addf %3, %5 : vector<12x128xf32>
    %cst_5 = arith.constant 0.000000e+00 : f32
    %7 = vector.broadcast %cst_5 : f32 to vector<12x128xf32>
    %8 = arith.maximumf %6, %7 : vector<12x128xf32>
    %c0_6 = arith.constant 0 : index
    %c0_7 = arith.constant 0 : index
    %c0_8 = arith.constant 0 : index
    %9 = vector.load %arg3[%c0_6, %c0_7, %c0_8] : memref<9x128x128xbf16, #tpu.memory_space<vmem>>, vector<1x128x128xbf16>
    %10 = vector.shape_cast %9 : vector<1x128x128xbf16> to vector<128x128xbf16>
    %c0_9 = arith.constant 0 : index
    %c7 = arith.constant 7 : index
    %c0_10 = arith.constant 0 : index
    %11 = vector.load %arg1[%c0_9, %c7, %c0_10] : memref<1x40x128xbf16, #tpu.memory_space<vmem>>, vector<1x12x128xbf16>
    %12 = vector.shape_cast %11 : vector<1x12x128xbf16> to vector<12x128xbf16>
    %cst_11 = arith.constant dense<0.000000e+00> : vector<12x128xf32>
    %13 = tpu.matmul %12, %10, %cst_11 {dimension_numbers = #tpu.dot_dimension_numbers<[1], [0], [0], [1], [0, 0, 1, 1], [], []>} : vector<12x128xbf16>, vector<128x128xbf16>, vector<12x128xf32> -> vector<12x128xf32>
    %c1 = arith.constant 1 : index
    %c0_12 = arith.constant 0 : index
    %c0_13 = arith.constant 0 : index
    %14 = vector.load %arg3[%c1, %c0_12, %c0_13] : memref<9x128x128xbf16, #tpu.memory_space<vmem>>, vector<1x128x128xbf16>
    %15 = vector.shape_cast %14 : vector<1x128x128xbf16> to vector<128x128xbf16>
    %c0_14 = arith.constant 0 : index
    %c8 = arith.constant 8 : index
    %c0_15 = arith.constant 0 : index
    %16 = vector.load %arg1[%c0_14, %c8, %c0_15] : memref<1x40x128xbf16, #tpu.memory_space<vmem>>, vector<1x12x128xbf16>
    %17 = vector.shape_cast %16 : vector<1x12x128xbf16> to vector<12x128xbf16>
    %cst_16 = arith.constant dense<0.000000e+00> : vector<12x128xf32>
    %18 = tpu.matmul %17, %15, %cst_16 {dimension_numbers = #tpu.dot_dimension_numbers<[1], [0], [0], [1], [0, 0, 1, 1], [], []>} : vector<12x128xbf16>, vector<128x128xbf16>, vector<12x128xf32> -> vector<12x128xf32>
    %19 = arith.addf %13, %18 : vector<12x128xf32>
    %c2 = arith.constant 2 : index
    %c0_17 = arith.constant 0 : index
    %c0_18 = arith.constant 0 : index
    %20 = vector.load %arg3[%c2, %c0_17, %c0_18] : memref<9x128x128xbf16, #tpu.memory_space<vmem>>, vector<1x128x128xbf16>
    %21 = vector.shape_cast %20 : vector<1x128x128xbf16> to vector<128x128xbf16>
    %c0_19 = arith.constant 0 : index
    %c9 = arith.constant 9 : index
    %c0_20 = arith.constant 0 : index
    %22 = vector.load %arg1[%c0_19, %c9, %c0_20] : memref<1x40x128xbf16, #tpu.memory_space<vmem>>, vector<1x12x128xbf16>
    %23 = vector.shape_cast %22 : vector<1x12x128xbf16> to vector<12x128xbf16>
    %cst_21 = arith.constant dense<0.000000e+00> : vector<12x128xf32>
    %24 = tpu.matmul %23, %21, %cst_21 {dimension_numbers = #tpu.dot_dimension_numbers<[1], [0], [0], [1], [0, 0, 1, 1], [], []>} : vector<12x128xbf16>, vector<128x128xbf16>, vector<12x128xf32> -> vector<12x128xf32>
    %25 = arith.addf %19, %24 : vector<12x128xf32>
    %c3 = arith.constant 3 : index
    %c0_22 = arith.constant 0 : index
    %c0_23 = arith.constant 0 : index
    %26 = vector.load %arg3[%c3, %c0_22, %c0_23] : memref<9x128x128xbf16, #tpu.memory_space<vmem>>, vector<1x128x128xbf16>
    %27 = vector.shape_cast %26 : vector<1x128x128xbf16> to vector<128x128xbf16>
    %c0_24 = arith.constant 0 : index
    %c13 = arith.constant 13 : index
    %c0_25 = arith.constant 0 : index
    %28 = vector.load %arg1[%c0_24, %c13, %c0_25] : memref<1x40x128xbf16, #tpu.memory_space<vmem>>, vector<1x12x128xbf16>
    %29 = vector.shape_cast %28 : vector<1x12x128xbf16> to vector<12x128xbf16>
    %cst_26 = arith.constant dense<0.000000e+00> : vector<12x128xf32>
    %30 = tpu.matmul %29, %27, %cst_26 {dimension_numbers = #tpu.dot_dimension_numbers<[1], [0], [0], [1], [0, 0, 1, 1], [], []>} : vector<12x128xbf16>, vector<128x128xbf16>, vector<12x128xf32> -> vector<12x128xf32>
    %31 = arith.addf %25, %30 : vector<12x128xf32>
    %c4 = arith.constant 4 : index
    %c0_27 = arith.constant 0 : index
    %c0_28 = arith.constant 0 : index
    %32 = vector.load %arg3[%c4, %c0_27, %c0_28] : memref<9x128x128xbf16, #tpu.memory_space<vmem>>, vector<1x128x128xbf16>
    %33 = vector.shape_cast %32 : vector<1x128x128xbf16> to vector<128x128xbf16>
    %c0_29 = arith.constant 0 : index
    %c14_30 = arith.constant 14 : index
    %c0_31 = arith.constant 0 : index
    %34 = vector.load %arg1[%c0_29, %c14_30, %c0_31] : memref<1x40x128xbf16, #tpu.memory_space<vmem>>, vector<1x12x128xbf16>
    %35 = vector.shape_cast %34 : vector<1x12x128xbf16> to vector<12x128xbf16>
    %cst_32 = arith.constant dense<0.000000e+00> : vector<12x128xf32>
    %36 = tpu.matmul %35, %33, %cst_32 {dimension_numbers = #tpu.dot_dimension_numbers<[1], [0], [0], [1], [0, 0, 1, 1], [], []>} : vector<12x128xbf16>, vector<128x128xbf16>, vector<12x128xf32> -> vector<12x128xf32>
    %37 = arith.addf %31, %36 : vector<12x128xf32>
    %c5 = arith.constant 5 : index
    %c0_33 = arith.constant 0 : index
    %c0_34 = arith.constant 0 : index
    %38 = vector.load %arg3[%c5, %c0_33, %c0_34] : memref<9x128x128xbf16, #tpu.memory_space<vmem>>, vector<1x128x128xbf16>
    %39 = vector.shape_cast %38 : vector<1x128x128xbf16> to vector<128x128xbf16>
    %c0_35 = arith.constant 0 : index
    %c15 = arith.constant 15 : index
    %c0_36 = arith.constant 0 : index
    %40 = vector.load %arg1[%c0_35, %c15, %c0_36] : memref<1x40x128xbf16, #tpu.memory_space<vmem>>, vector<1x12x128xbf16>
    %41 = vector.shape_cast %40 : vector<1x12x128xbf16> to vector<12x128xbf16>
    %cst_37 = arith.constant dense<0.000000e+00> : vector<12x128xf32>
    %42 = tpu.matmul %41, %39, %cst_37 {dimension_numbers = #tpu.dot_dimension_numbers<[1], [0], [0], [1], [0, 0, 1, 1], [], []>} : vector<12x128xbf16>, vector<128x128xbf16>, vector<12x128xf32> -> vector<12x128xf32>
    %43 = arith.addf %37, %42 : vector<12x128xf32>
    %c6 = arith.constant 6 : index
    %c0_38 = arith.constant 0 : index
    %c0_39 = arith.constant 0 : index
    %44 = vector.load %arg3[%c6, %c0_38, %c0_39] : memref<9x128x128xbf16, #tpu.memory_space<vmem>>, vector<1x128x128xbf16>
    %45 = vector.shape_cast %44 : vector<1x128x128xbf16> to vector<128x128xbf16>
    %c0_40 = arith.constant 0 : index
    %c19 = arith.constant 19 : index
    %c0_41 = arith.constant 0 : index
    %46 = vector.load %arg1[%c0_40, %c19, %c0_41] : memref<1x40x128xbf16, #tpu.memory_space<vmem>>, vector<1x12x128xbf16>
    %47 = vector.shape_cast %46 : vector<1x12x128xbf16> to vector<12x128xbf16>
    %cst_42 = arith.constant dense<0.000000e+00> : vector<12x128xf32>
    %48 = tpu.matmul %47, %45, %cst_42 {dimension_numbers = #tpu.dot_dimension_numbers<[1], [0], [0], [1], [0, 0, 1, 1], [], []>} : vector<12x128xbf16>, vector<128x128xbf16>, vector<12x128xf32> -> vector<12x128xf32>
    %49 = arith.addf %43, %48 : vector<12x128xf32>
    %c7_43 = arith.constant 7 : index
    %c0_44 = arith.constant 0 : index
    %c0_45 = arith.constant 0 : index
    %50 = vector.load %arg3[%c7_43, %c0_44, %c0_45] : memref<9x128x128xbf16, #tpu.memory_space<vmem>>, vector<1x128x128xbf16>
    %51 = vector.shape_cast %50 : vector<1x128x128xbf16> to vector<128x128xbf16>
    %c0_46 = arith.constant 0 : index
    %c20 = arith.constant 20 : index
    %c0_47 = arith.constant 0 : index
    %52 = vector.load %arg1[%c0_46, %c20, %c0_47] : memref<1x40x128xbf16, #tpu.memory_space<vmem>>, vector<1x12x128xbf16>
    %53 = vector.shape_cast %52 : vector<1x12x128xbf16> to vector<12x128xbf16>
    %cst_48 = arith.constant dense<0.000000e+00> : vector<12x128xf32>
    %54 = tpu.matmul %53, %51, %cst_48 {dimension_numbers = #tpu.dot_dimension_numbers<[1], [0], [0], [1], [0, 0, 1, 1], [], []>} : vector<12x128xbf16>, vector<128x128xbf16>, vector<12x128xf32> -> vector<12x128xf32>
    %55 = arith.addf %49, %54 : vector<12x128xf32>
    %c8_49 = arith.constant 8 : index
    %c0_50 = arith.constant 0 : index
    %c0_51 = arith.constant 0 : index
    %56 = vector.load %arg3[%c8_49, %c0_50, %c0_51] : memref<9x128x128xbf16, #tpu.memory_space<vmem>>, vector<1x128x128xbf16>
    %57 = vector.shape_cast %56 : vector<1x128x128xbf16> to vector<128x128xbf16>
    %c0_52 = arith.constant 0 : index
    %c21 = arith.constant 21 : index
    %c0_53 = arith.constant 0 : index
    %58 = vector.load %arg1[%c0_52, %c21, %c0_53] : memref<1x40x128xbf16, #tpu.memory_space<vmem>>, vector<1x12x128xbf16>
    %59 = vector.shape_cast %58 : vector<1x12x128xbf16> to vector<12x128xbf16>
    %cst_54 = arith.constant dense<0.000000e+00> : vector<12x128xf32>
    %60 = tpu.matmul %59, %57, %cst_54 {dimension_numbers = #tpu.dot_dimension_numbers<[1], [0], [0], [1], [0, 0, 1, 1], [], []>} : vector<12x128xbf16>, vector<128x128xbf16>, vector<12x128xf32> -> vector<12x128xf32>
    %61 = arith.addf %55, %60 : vector<12x128xf32>
    %c1_55 = arith.constant 1 : index
    %c0_56 = arith.constant 0 : index
    %62 = vector.load %arg6[%c1_55, %c0_56] : memref<4x128xf32, #tpu.memory_space<vmem>>, vector<1x128xf32>
    %63 = vector.broadcast %62 : vector<1x128xf32> to vector<12x128xf32>
    %64 = arith.addf %61, %63 : vector<12x128xf32>
    %cst_57 = arith.constant 0.000000e+00 : f32
    %65 = vector.broadcast %cst_57 : f32 to vector<12x128xf32>
    %66 = arith.maximumf %64, %65 : vector<12x128xf32>
    %c0_58 = arith.constant 0 : index
    %c0_59 = arith.constant 0 : index
    %c0_60 = arith.constant 0 : index
    %67 = vector.load %arg4[%c0_58, %c0_59, %c0_60] : memref<9x128x128xbf16, #tpu.memory_space<vmem>>, vector<1x128x128xbf16>
    %68 = vector.shape_cast %67 : vector<1x128x128xbf16> to vector<128x128xbf16>
    %c0_61 = arith.constant 0 : index
    %c0_62 = arith.constant 0 : index
    %c0_63 = arith.constant 0 : index
    %69 = vector.load %arg1[%c0_61, %c0_62, %c0_63] : memref<1x40x128xbf16, #tpu.memory_space<vmem>>, vector<1x12x128xbf16>
    %70 = vector.shape_cast %69 : vector<1x12x128xbf16> to vector<12x128xbf16>
    %cst_64 = arith.constant dense<0.000000e+00> : vector<12x128xf32>
    %71 = tpu.matmul %70, %68, %cst_64 {dimension_numbers = #tpu.dot_dimension_numbers<[1], [0], [0], [1], [0, 0, 1, 1], [], []>} : vector<12x128xbf16>, vector<128x128xbf16>, vector<12x128xf32> -> vector<12x128xf32>
    %c1_65 = arith.constant 1 : index
    %c0_66 = arith.constant 0 : index
    %c0_67 = arith.constant 0 : index
    %72 = vector.load %arg4[%c1_65, %c0_66, %c0_67] : memref<9x128x128xbf16, #tpu.memory_space<vmem>>, vector<1x128x128xbf16>
    %73 = vector.shape_cast %72 : vector<1x128x128xbf16> to vector<128x128xbf16>
    %c0_68 = arith.constant 0 : index
    %c2_69 = arith.constant 2 : index
    %c0_70 = arith.constant 0 : index
    %74 = vector.load %arg1[%c0_68, %c2_69, %c0_70] : memref<1x40x128xbf16, #tpu.memory_space<vmem>>, vector<1x12x128xbf16>
    %75 = vector.shape_cast %74 : vector<1x12x128xbf16> to vector<12x128xbf16>
    %cst_71 = arith.constant dense<0.000000e+00> : vector<12x128xf32>
    %76 = tpu.matmul %75, %73, %cst_71 {dimension_numbers = #tpu.dot_dimension_numbers<[1], [0], [0], [1], [0, 0, 1, 1], [], []>} : vector<12x128xbf16>, vector<128x128xbf16>, vector<12x128xf32> -> vector<12x128xf32>
    %77 = arith.addf %71, %76 : vector<12x128xf32>
    %c2_72 = arith.constant 2 : index
    %c0_73 = arith.constant 0 : index
    %c0_74 = arith.constant 0 : index
    %78 = vector.load %arg4[%c2_72, %c0_73, %c0_74] : memref<9x128x128xbf16, #tpu.memory_space<vmem>>, vector<1x128x128xbf16>
    %79 = vector.shape_cast %78 : vector<1x128x128xbf16> to vector<128x128xbf16>
    %c0_75 = arith.constant 0 : index
    %c4_76 = arith.constant 4 : index
    %c0_77 = arith.constant 0 : index
    %80 = vector.load %arg1[%c0_75, %c4_76, %c0_77] : memref<1x40x128xbf16, #tpu.memory_space<vmem>>, vector<1x12x128xbf16>
    %81 = vector.shape_cast %80 : vector<1x12x128xbf16> to vector<12x128xbf16>
    %cst_78 = arith.constant dense<0.000000e+00> : vector<12x128xf32>
    %82 = tpu.matmul %81, %79, %cst_78 {dimension_numbers = #tpu.dot_dimension_numbers<[1], [0], [0], [1], [0, 0, 1, 1], [], []>} : vector<12x128xbf16>, vector<128x128xbf16>, vector<12x128xf32> -> vector<12x128xf32>
    %83 = arith.addf %77, %82 : vector<12x128xf32>
    %c3_79 = arith.constant 3 : index
    %c0_80 = arith.constant 0 : index
    %c0_81 = arith.constant 0 : index
    %84 = vector.load %arg4[%c3_79, %c0_80, %c0_81] : memref<9x128x128xbf16, #tpu.memory_space<vmem>>, vector<1x128x128xbf16>
    %85 = vector.shape_cast %84 : vector<1x128x128xbf16> to vector<128x128xbf16>
    %c0_82 = arith.constant 0 : index
    %c12 = arith.constant 12 : index
    %c0_83 = arith.constant 0 : index
    %86 = vector.load %arg1[%c0_82, %c12, %c0_83] : memref<1x40x128xbf16, #tpu.memory_space<vmem>>, vector<1x12x128xbf16>
    %87 = vector.shape_cast %86 : vector<1x12x128xbf16> to vector<12x128xbf16>
    %cst_84 = arith.constant dense<0.000000e+00> : vector<12x128xf32>
    %88 = tpu.matmul %87, %85, %cst_84 {dimension_numbers = #tpu.dot_dimension_numbers<[1], [0], [0], [1], [0, 0, 1, 1], [], []>} : vector<12x128xbf16>, vector<128x128xbf16>, vector<12x128xf32> -> vector<12x128xf32>
    %89 = arith.addf %83, %88 : vector<12x128xf32>
    %c4_85 = arith.constant 4 : index
    %c0_86 = arith.constant 0 : index
    %c0_87 = arith.constant 0 : index
    %90 = vector.load %arg4[%c4_85, %c0_86, %c0_87] : memref<9x128x128xbf16, #tpu.memory_space<vmem>>, vector<1x128x128xbf16>
    %91 = vector.shape_cast %90 : vector<1x128x128xbf16> to vector<128x128xbf16>
    %c0_88 = arith.constant 0 : index
    %c14_89 = arith.constant 14 : index
    %c0_90 = arith.constant 0 : index
    %92 = vector.load %arg1[%c0_88, %c14_89, %c0_90] : memref<1x40x128xbf16, #tpu.memory_space<vmem>>, vector<1x12x128xbf16>
    %93 = vector.shape_cast %92 : vector<1x12x128xbf16> to vector<12x128xbf16>
    %cst_91 = arith.constant dense<0.000000e+00> : vector<12x128xf32>
    %94 = tpu.matmul %93, %91, %cst_91 {dimension_numbers = #tpu.dot_dimension_numbers<[1], [0], [0], [1], [0, 0, 1, 1], [], []>} : vector<12x128xbf16>, vector<128x128xbf16>, vector<12x128xf32> -> vector<12x128xf32>
    %95 = arith.addf %89, %94 : vector<12x128xf32>
    %c5_92 = arith.constant 5 : index
    %c0_93 = arith.constant 0 : index
    %c0_94 = arith.constant 0 : index
    %96 = vector.load %arg4[%c5_92, %c0_93, %c0_94] : memref<9x128x128xbf16, #tpu.memory_space<vmem>>, vector<1x128x128xbf16>
    %97 = vector.shape_cast %96 : vector<1x128x128xbf16> to vector<128x128xbf16>
    %c0_95 = arith.constant 0 : index
    %c16 = arith.constant 16 : index
    %c0_96 = arith.constant 0 : index
    %98 = vector.load %arg1[%c0_95, %c16, %c0_96] : memref<1x40x128xbf16, #tpu.memory_space<vmem>>, vector<1x12x128xbf16>
    %99 = vector.shape_cast %98 : vector<1x12x128xbf16> to vector<12x128xbf16>
    %cst_97 = arith.constant dense<0.000000e+00> : vector<12x128xf32>
    %100 = tpu.matmul %99, %97, %cst_97 {dimension_numbers = #tpu.dot_dimension_numbers<[1], [0], [0], [1], [0, 0, 1, 1], [], []>} : vector<12x128xbf16>, vector<128x128xbf16>, vector<12x128xf32> -> vector<12x128xf32>
    %101 = arith.addf %95, %100 : vector<12x128xf32>
    %c6_98 = arith.constant 6 : index
    %c0_99 = arith.constant 0 : index
    %c0_100 = arith.constant 0 : index
    %102 = vector.load %arg4[%c6_98, %c0_99, %c0_100] : memref<9x128x128xbf16, #tpu.memory_space<vmem>>, vector<1x128x128xbf16>
    %103 = vector.shape_cast %102 : vector<1x128x128xbf16> to vector<128x128xbf16>
    %c0_101 = arith.constant 0 : index
    %c24 = arith.constant 24 : index
    %c0_102 = arith.constant 0 : index
    %104 = vector.load %arg1[%c0_101, %c24, %c0_102] : memref<1x40x128xbf16, #tpu.memory_space<vmem>>, vector<1x12x128xbf16>
    %105 = vector.shape_cast %104 : vector<1x12x128xbf16> to vector<12x128xbf16>
    %cst_103 = arith.constant dense<0.000000e+00> : vector<12x128xf32>
    %106 = tpu.matmul %105, %103, %cst_103 {dimension_numbers = #tpu.dot_dimension_numbers<[1], [0], [0], [1], [0, 0, 1, 1], [], []>} : vector<12x128xbf16>, vector<128x128xbf16>, vector<12x128xf32> -> vector<12x128xf32>
    %107 = arith.addf %101, %106 : vector<12x128xf32>
    %c7_104 = arith.constant 7 : index
    %c0_105 = arith.constant 0 : index
    %c0_106 = arith.constant 0 : index
    %108 = vector.load %arg4[%c7_104, %c0_105, %c0_106] : memref<9x128x128xbf16, #tpu.memory_space<vmem>>, vector<1x128x128xbf16>
    %109 = vector.shape_cast %108 : vector<1x128x128xbf16> to vector<128x128xbf16>
    %c0_107 = arith.constant 0 : index
    %c26 = arith.constant 26 : index
    %c0_108 = arith.constant 0 : index
    %110 = vector.load %arg1[%c0_107, %c26, %c0_108] : memref<1x40x128xbf16, #tpu.memory_space<vmem>>, vector<1x12x128xbf16>
    %111 = vector.shape_cast %110 : vector<1x12x128xbf16> to vector<12x128xbf16>
    %cst_109 = arith.constant dense<0.000000e+00> : vector<12x128xf32>
    %112 = tpu.matmul %111, %109, %cst_109 {dimension_numbers = #tpu.dot_dimension_numbers<[1], [0], [0], [1], [0, 0, 1, 1], [], []>} : vector<12x128xbf16>, vector<128x128xbf16>, vector<12x128xf32> -> vector<12x128xf32>
    %113 = arith.addf %107, %112 : vector<12x128xf32>
    %c8_110 = arith.constant 8 : index
    %c0_111 = arith.constant 0 : index
    %c0_112 = arith.constant 0 : index
    %114 = vector.load %arg4[%c8_110, %c0_111, %c0_112] : memref<9x128x128xbf16, #tpu.memory_space<vmem>>, vector<1x128x128xbf16>
    %115 = vector.shape_cast %114 : vector<1x128x128xbf16> to vector<128x128xbf16>
    %c0_113 = arith.constant 0 : index
    %c28 = arith.constant 28 : index
    %c0_114 = arith.constant 0 : index
    %116 = vector.load %arg1[%c0_113, %c28, %c0_114] : memref<1x40x128xbf16, #tpu.memory_space<vmem>>, vector<1x12x128xbf16>
    %117 = vector.shape_cast %116 : vector<1x12x128xbf16> to vector<12x128xbf16>
    %cst_115 = arith.constant dense<0.000000e+00> : vector<12x128xf32>
    %118 = tpu.matmul %117, %115, %cst_115 {dimension_numbers = #tpu.dot_dimension_numbers<[1], [0], [0], [1], [0, 0, 1, 1], [], []>} : vector<12x128xbf16>, vector<128x128xbf16>, vector<12x128xf32> -> vector<12x128xf32>
    %119 = arith.addf %113, %118 : vector<12x128xf32>
    %c2_116 = arith.constant 2 : index
    %c0_117 = arith.constant 0 : index
    %120 = vector.load %arg6[%c2_116, %c0_117] : memref<4x128xf32, #tpu.memory_space<vmem>>, vector<1x128xf32>
    %121 = vector.broadcast %120 : vector<1x128xf32> to vector<12x128xf32>
    %122 = arith.addf %119, %121 : vector<12x128xf32>
    %cst_118 = arith.constant 0.000000e+00 : f32
    %123 = vector.broadcast %cst_118 : f32 to vector<12x128xf32>
    %124 = arith.maximumf %122, %123 : vector<12x128xf32>
    %c0_119 = arith.constant 0 : index
    %c0_120 = arith.constant 0 : index
    %c0_121 = arith.constant 0 : index
    %125 = vector.load %arg1[%c0_119, %c0_120, %c0_121] : memref<1x40x128xbf16, #tpu.memory_space<vmem>>, vector<1x40x128xbf16>
    %126 = vector.shape_cast %125 : vector<1x40x128xbf16> to vector<40x128xbf16>
    %127 = arith.extf %126 : vector<40x128xbf16> to vector<40x128xf32>
    %cst_122 = arith.constant dense<0.000000e+00> : vector<128xf32>
    %128 = vector.multi_reduction <add>, %127, %cst_122 [0] : vector<40x128xf32> to vector<128xf32>
    %129 = vector.shape_cast %128 : vector<128xf32> to vector<1x128xf32>
    %cst_123 = arith.constant 2.500000e-01 : f32
    %130 = vector.broadcast %cst_123 : f32 to vector<1x128xf32>
    %131 = arith.mulf %129, %130 : vector<1x128xf32>
    %132 = arith.truncf %131 : vector<1x128xf32> to vector<1x128xbf16>
    %c0_124 = arith.constant 0 : index
    %c0_125 = arith.constant 0 : index
    %133 = vector.load %arg5[%c0_124, %c0_125] : memref<128x128xbf16, #tpu.memory_space<vmem>>, vector<128x128xbf16>
    %cst_126 = arith.constant dense<0.000000e+00> : vector<1x128xf32>
    %134 = tpu.matmul %132, %133, %cst_126 {dimension_numbers = #tpu.dot_dimension_numbers<[1], [0], [0], [1], [0, 0, 1, 1], [], []>} : vector<1x128xbf16>, vector<128x128xbf16>, vector<1x128xf32> -> vector<1x128xf32>
    %c3_127 = arith.constant 3 : index
    %c0_128 = arith.constant 0 : index
    %135 = vector.load %arg6[%c3_127, %c0_128] : memref<4x128xf32, #tpu.memory_space<vmem>>, vector<1x128xf32>
    %136 = arith.addf %134, %135 : vector<1x128xf32>
    %cst_129 = arith.constant 0.000000e+00 : f32
    %137 = vector.broadcast %cst_129 : f32 to vector<1x128xf32>
    %138 = arith.maximumf %136, %137 : vector<1x128xf32>
    %139 = arith.truncf %8 : vector<12x128xf32> to vector<12x128xbf16>
    %c0_130 = arith.constant 0 : index
    %c0_131 = arith.constant 0 : index
    %c0_132 = arith.constant 0 : index
    %140 = vector.load %arg7[%c0_130, %c0_131, %c0_132] : memref<4x128x128xbf16, #tpu.memory_space<vmem>>, vector<1x128x128xbf16>
    %141 = vector.shape_cast %140 : vector<1x128x128xbf16> to vector<128x128xbf16>
    %cst_133 = arith.constant dense<0.000000e+00> : vector<12x128xf32>
    %142 = tpu.matmul %139, %141, %cst_133 {dimension_numbers = #tpu.dot_dimension_numbers<[1], [0], [0], [1], [0, 0, 1, 1], [], []>} : vector<12x128xbf16>, vector<128x128xbf16>, vector<12x128xf32> -> vector<12x128xf32>
    %143 = arith.truncf %66 : vector<12x128xf32> to vector<12x128xbf16>
    %c1_134 = arith.constant 1 : index
    %c0_135 = arith.constant 0 : index
    %c0_136 = arith.constant 0 : index
    %144 = vector.load %arg7[%c1_134, %c0_135, %c0_136] : memref<4x128x128xbf16, #tpu.memory_space<vmem>>, vector<1x128x128xbf16>
    %145 = vector.shape_cast %144 : vector<1x128x128xbf16> to vector<128x128xbf16>
    %cst_137 = arith.constant dense<0.000000e+00> : vector<12x128xf32>
    %146 = tpu.matmul %143, %145, %cst_137 {dimension_numbers = #tpu.dot_dimension_numbers<[1], [0], [0], [1], [0, 0, 1, 1], [], []>} : vector<12x128xbf16>, vector<128x128xbf16>, vector<12x128xf32> -> vector<12x128xf32>
    %147 = arith.addf %142, %146 : vector<12x128xf32>
    %148 = arith.truncf %124 : vector<12x128xf32> to vector<12x128xbf16>
    %c2_138 = arith.constant 2 : index
    %c0_139 = arith.constant 0 : index
    %c0_140 = arith.constant 0 : index
    %149 = vector.load %arg7[%c2_138, %c0_139, %c0_140] : memref<4x128x128xbf16, #tpu.memory_space<vmem>>, vector<1x128x128xbf16>
    %150 = vector.shape_cast %149 : vector<1x128x128xbf16> to vector<128x128xbf16>
    %cst_141 = arith.constant dense<0.000000e+00> : vector<12x128xf32>
    %151 = tpu.matmul %148, %150, %cst_141 {dimension_numbers = #tpu.dot_dimension_numbers<[1], [0], [0], [1], [0, 0, 1, 1], [], []>} : vector<12x128xbf16>, vector<128x128xbf16>, vector<12x128xf32> -> vector<12x128xf32>
    %152 = arith.addf %147, %151 : vector<12x128xf32>
    %c0_142 = arith.constant 0 : index
    %c0_143 = arith.constant 0 : index
    %153 = vector.load %arg8[%c0_142, %c0_143] : memref<1x128xf32, #tpu.memory_space<vmem>>, vector<1x128xf32>
    %154 = vector.broadcast %153 : vector<1x128xf32> to vector<12x128xf32>
    %155 = arith.addf %152, %154 : vector<12x128xf32>
    %156 = arith.truncf %138 : vector<1x128xf32> to vector<1x128xbf16>
    %c3_144 = arith.constant 3 : index
    %c0_145 = arith.constant 0 : index
    %c0_146 = arith.constant 0 : index
    %157 = vector.load %arg7[%c3_144, %c0_145, %c0_146] : memref<4x128x128xbf16, #tpu.memory_space<vmem>>, vector<1x128x128xbf16>
    %158 = vector.shape_cast %157 : vector<1x128x128xbf16> to vector<128x128xbf16>
    %cst_147 = arith.constant dense<0.000000e+00> : vector<1x128xf32>
    %159 = tpu.matmul %156, %158, %cst_147 {dimension_numbers = #tpu.dot_dimension_numbers<[1], [0], [0], [1], [0, 0, 1, 1], [], []>} : vector<1x128xbf16>, vector<128x128xbf16>, vector<1x128xf32> -> vector<1x128xf32>
    %160 = vector.broadcast %159 : vector<1x128xf32> to vector<12x128xf32>
    %161 = arith.addf %155, %160 : vector<12x128xf32>
    %cst_148 = arith.constant 0.000000e+00 : f32
    %162 = vector.broadcast %cst_148 : f32 to vector<12x128xf32>
    %163 = arith.maximumf %161, %162 : vector<12x128xf32>
    %164 = arith.truncf %163 : vector<12x128xf32> to vector<12x128xbf16>
    %c0_149 = arith.constant 0 : index
    %c0_150 = arith.constant 0 : index
    %c0_151 = arith.constant 0 : index
    %165 = vector.load %arg9[%c0_149, %c0_150, %c0_151] : memref<1x12x128xbf16, #tpu.memory_space<vmem>>, vector<1x12x128xbf16>
    %166 = vector.shape_cast %165 : vector<1x12x128xbf16> to vector<12x128xbf16>
    %167 = vector.shape_cast %164 : vector<12x128xbf16> to vector<1x12x128xbf16>
    tpu.vector_store %arg9[%c0_149, %c0_150, %c0_151], %167 {strides = array<i32>} : memref<1x12x128xbf16, #tpu.memory_space<vmem>>, vector<1x12x128xbf16>,
    return
  }
  func.func @transform_0(%arg0: i32) -> (i32, i32, i32) {
    %c0_i32 = arith.constant 0 : i32
    %c0_i32_0 = arith.constant 0 : i32
    %c0_i32_1 = arith.constant 0 : i32
    return %arg0, %c0_i32, %c0_i32_0 : i32, i32, i32
  }
  func.func @transform_1(%arg0: i32) -> (i32, i32) {
    %c0_i32 = arith.constant 0 : i32
    %c0_i32_0 = arith.constant 0 : i32
    %c0_i32_1 = arith.constant 0 : i32
    return %c0_i32, %c0_i32_0 : i32, i32
  }
  func.func @transform_2(%arg0: i32) -> (i32, i32, i32) {
    %c0_i32 = arith.constant 0 : i32
    %c0_i32_0 = arith.constant 0 : i32
    %c0_i32_1 = arith.constant 0 : i32
    %c0_i32_2 = arith.constant 0 : i32
    return %c0_i32, %c0_i32_0, %c0_i32_1 : i32, i32, i32
  }
  func.func @transform_3(%arg0: i32) -> (i32, i32, i32) {
    %c0_i32 = arith.constant 0 : i32
    %c0_i32_0 = arith.constant 0 : i32
    %c0_i32_1 = arith.constant 0 : i32
    %c0_i32_2 = arith.constant 0 : i32
    return %c0_i32, %c0_i32_0, %c0_i32_1 : i32, i32, i32
  }
  func.func @transform_4(%arg0: i32) -> (i32, i32) {
    %c0_i32 = arith.constant 0 : i32
    %c0_i32_0 = arith.constant 0 : i32
    %c0_i32_1 = arith.constant 0 : i32
    return %c0_i32, %c0_i32_0 : i32, i32
  }
  func.func @transform_5(%arg0: i32) -> (i32, i32) {
    %c0_i32 = arith.constant 0 : i32
    %c0_i32_0 = arith.constant 0 : i32
    %c0_i32_1 = arith.constant 0 : i32
    return %c0_i32, %c0_i32_0 : i32, i32
  }
  func.func @transform_6(%arg0: i32) -> (i32, i32, i32) {
    %c0_i32 = arith.constant 0 : i32
    %c0_i32_0 = arith.constant 0 : i32
    %c0_i32_1 = arith.constant 0 : i32
    %c0_i32_2 = arith.constant 0 : i32
    return %c0_i32, %c0_i32_0, %c0_i32_1 : i32, i32, i32
  }
  func.func @transform_7(%arg0: i32) -> (i32, i32) {
    %c0_i32 = arith.constant 0 : i32
    %c0_i32_0 = arith.constant 0 : i32
    %c0_i32_1 = arith.constant 0 : i32
    return %c0_i32, %c0_i32_0 : i32, i32
  }
  func.func @transform_8(%arg0: i32) -> (i32, i32, i32) {
    %c0_i32 = arith.constant 0 : i32
    %c0_i32_0 = arith.constant 0 : i32
    %c0_i32_1 = arith.constant 0 : i32
    return %arg0, %c0_i32, %c0_i32_0 : i32, i32, i32
  }
}

module attributes {stable_mosaic.version = 11 : i64} {
  func.func @_conv_kernel(%arg0: i32, %arg1: memref<1x1x64x128xbf16, #tpu.memory_space<vmem>>, %arg2: memref<1x128x128xbf16, #tpu.memory_space<vmem>>, %arg3: memref<1x128xf32, #tpu.memory_space<vmem>>, %arg4: memref<1x64x128xbf16, #tpu.memory_space<vmem>>) attributes {dimension_semantics = [#tpu.dimension_semantics<parallel>], iteration_bounds = array<i64: 2>, scalar_prefetch = 0 : i64, scratch_operands = 0 : i64, tpu.core_type = #tpu.core_type<tc>, window_params = [{transform_indices = @transform_0, window_bounds = array<i64: 1, 1, 64, 128>}, {pipeline_mode = #tpu.pipeline_mode<synchronous>, transform_indices = @transform_1, window_bounds = array<i64: 1, 128, 128>}, {pipeline_mode = #tpu.pipeline_mode<synchronous>, transform_indices = @transform_2, window_bounds = array<i64: 1, 128>}, {transform_indices = @transform_3, window_bounds = array<i64: 1, 64, 128>}]} {
    %c0 = arith.constant 0 : index
    %c0_0 = arith.constant 0 : index
    %c0_1 = arith.constant 0 : index
    %c0_2 = arith.constant 0 : index
    %0 = vector.load %arg1[%c0, %c0_0, %c0_1, %c0_2] : memref<1x1x64x128xbf16, #tpu.memory_space<vmem>>, vector<1x1x64x128xbf16>
    %1 = vector.shape_cast %0 : vector<1x1x64x128xbf16> to vector<64x128xbf16>
    %c0_3 = arith.constant 0 : index
    %c0_4 = arith.constant 0 : index
    %c0_5 = arith.constant 0 : index
    %2 = vector.load %arg2[%c0_3, %c0_4, %c0_5] : memref<1x128x128xbf16, #tpu.memory_space<vmem>>, vector<1x128x128xbf16>
    %3 = vector.shape_cast %2 : vector<1x128x128xbf16> to vector<128x128xbf16>
    %cst = arith.constant dense<0.000000e+00> : vector<64x128xf32>
    %4 = tpu.matmul %1, %3, %cst {dimension_numbers = #tpu.dot_dimension_numbers<[1], [0], [0], [1], [0, 0, 1, 1], [], []>} : vector<64x128xbf16>, vector<128x128xbf16>, vector<64x128xf32> -> vector<64x128xf32>
    %c0_6 = arith.constant 0 : index
    %c0_7 = arith.constant 0 : index
    %5 = vector.load %arg3[%c0_6, %c0_7] : memref<1x128xf32, #tpu.memory_space<vmem>>, vector<1x128xf32>
    %6 = vector.broadcast %5 : vector<1x128xf32> to vector<64x128xf32>
    %7 = arith.addf %4, %6 : vector<64x128xf32>
    %cst_8 = arith.constant 0.000000e+00 : f32
    %8 = vector.broadcast %cst_8 : f32 to vector<64x128xf32>
    %9 = arith.maximumf %7, %8 : vector<64x128xf32>
    %10 = arith.truncf %9 : vector<64x128xf32> to vector<64x128xbf16>
    %c0_9 = arith.constant 0 : index
    %c0_10 = arith.constant 0 : index
    %c0_11 = arith.constant 0 : index
    %11 = vector.load %arg4[%c0_9, %c0_10, %c0_11] : memref<1x64x128xbf16, #tpu.memory_space<vmem>>, vector<1x64x128xbf16>
    %12 = vector.shape_cast %11 : vector<1x64x128xbf16> to vector<64x128xbf16>
    %13 = vector.shape_cast %10 : vector<64x128xbf16> to vector<1x64x128xbf16>
    tpu.vector_store %arg4[%c0_9, %c0_10, %c0_11], %13 {strides = array<i32>} : memref<1x64x128xbf16, #tpu.memory_space<vmem>>, vector<1x64x128xbf16>,
    return
  }
  func.func @transform_0(%arg0: i32) -> (i32, i32, i32, i32) {
    %c0_i32 = arith.constant 0 : i32
    %c0_i32_0 = arith.constant 0 : i32
    %c0_i32_1 = arith.constant 0 : i32
    %c0_i32_2 = arith.constant 0 : i32
    return %arg0, %c0_i32, %c0_i32_0, %c0_i32_1 : i32, i32, i32, i32
  }
  func.func @transform_1(%arg0: i32) -> (i32, i32, i32) {
    %c0_i32 = arith.constant 0 : i32
    %c0_i32_0 = arith.constant 0 : i32
    %c0_i32_1 = arith.constant 0 : i32
    %c0_i32_2 = arith.constant 0 : i32
    return %c0_i32, %c0_i32_0, %c0_i32_1 : i32, i32, i32
  }
  func.func @transform_2(%arg0: i32) -> (i32, i32) {
    %c0_i32 = arith.constant 0 : i32
    %c0_i32_0 = arith.constant 0 : i32
    %c0_i32_1 = arith.constant 0 : i32
    return %c0_i32, %c0_i32_0 : i32, i32
  }
  func.func @transform_3(%arg0: i32) -> (i32, i32, i32) {
    %c0_i32 = arith.constant 0 : i32
    %c0_i32_0 = arith.constant 0 : i32
    %c0_i32_1 = arith.constant 0 : i32
    return %arg0, %c0_i32, %c0_i32_0 : i32, i32, i32
  }
}

module attributes {stable_mosaic.version = 11 : i64} {
  func.func @_conv_kernel(%arg0: i32, %arg1: memref<1x1x102x256xbf16, #tpu.memory_space<vmem>>, %arg2: memref<9x256x128xbf16, #tpu.memory_space<vmem>>, %arg3: memref<1x128xf32, #tpu.memory_space<vmem>>, %arg4: memref<1x80x128xbf16, #tpu.memory_space<vmem>>) attributes {dimension_semantics = [#tpu.dimension_semantics<parallel>], iteration_bounds = array<i64: 2>, scalar_prefetch = 0 : i64, scratch_operands = 0 : i64, tpu.core_type = #tpu.core_type<tc>, window_params = [{transform_indices = @transform_0, window_bounds = array<i64: 1, 1, 102, 256>}, {pipeline_mode = #tpu.pipeline_mode<synchronous>, transform_indices = @transform_1, window_bounds = array<i64: 9, 256, 128>}, {pipeline_mode = #tpu.pipeline_mode<synchronous>, transform_indices = @transform_2, window_bounds = array<i64: 1, 128>}, {transform_indices = @transform_3, window_bounds = array<i64: 1, 80, 128>}]} {
    %c0 = arith.constant 0 : index
    %c0_0 = arith.constant 0 : index
    %c0_1 = arith.constant 0 : index
    %c0_2 = arith.constant 0 : index
    %0 = vector.load %arg1[%c0, %c0_0, %c0_1, %c0_2] : memref<1x1x102x256xbf16, #tpu.memory_space<vmem>>, vector<1x1x80x256xbf16>
    %1 = vector.shape_cast %0 : vector<1x1x80x256xbf16> to vector<80x256xbf16>
    %c0_3 = arith.constant 0 : index
    %c0_4 = arith.constant 0 : index
    %c0_5 = arith.constant 0 : index
    %2 = vector.load %arg2[%c0_3, %c0_4, %c0_5] : memref<9x256x128xbf16, #tpu.memory_space<vmem>>, vector<1x256x128xbf16>
    %3 = vector.shape_cast %2 : vector<1x256x128xbf16> to vector<256x128xbf16>
    %cst = arith.constant dense<0.000000e+00> : vector<80x128xf32>
    %4 = tpu.matmul %1, %3, %cst {dimension_numbers = #tpu.dot_dimension_numbers<[1], [0], [0], [1], [0, 0, 1, 1], [], []>} : vector<80x256xbf16>, vector<256x128xbf16>, vector<80x128xf32> -> vector<80x128xf32>
    %c0_6 = arith.constant 0 : index
    %c0_7 = arith.constant 0 : index
    %c1 = arith.constant 1 : index
    %c0_8 = arith.constant 0 : index
    %5 = vector.load %arg1[%c0_6, %c0_7, %c1, %c0_8] : memref<1x1x102x256xbf16, #tpu.memory_space<vmem>>, vector<1x1x80x256xbf16>
    %6 = vector.shape_cast %5 : vector<1x1x80x256xbf16> to vector<80x256xbf16>
    %c1_9 = arith.constant 1 : index
    %c0_10 = arith.constant 0 : index
    %c0_11 = arith.constant 0 : index
    %7 = vector.load %arg2[%c1_9, %c0_10, %c0_11] : memref<9x256x128xbf16, #tpu.memory_space<vmem>>, vector<1x256x128xbf16>
    %8 = vector.shape_cast %7 : vector<1x256x128xbf16> to vector<256x128xbf16>
    %cst_12 = arith.constant dense<0.000000e+00> : vector<80x128xf32>
    %9 = tpu.matmul %6, %8, %cst_12 {dimension_numbers = #tpu.dot_dimension_numbers<[1], [0], [0], [1], [0, 0, 1, 1], [], []>} : vector<80x256xbf16>, vector<256x128xbf16>, vector<80x128xf32> -> vector<80x128xf32>
    %10 = arith.addf %4, %9 : vector<80x128xf32>
    %c0_13 = arith.constant 0 : index
    %c0_14 = arith.constant 0 : index
    %c2 = arith.constant 2 : index
    %c0_15 = arith.constant 0 : index
    %11 = vector.load %arg1[%c0_13, %c0_14, %c2, %c0_15] : memref<1x1x102x256xbf16, #tpu.memory_space<vmem>>, vector<1x1x80x256xbf16>
    %12 = vector.shape_cast %11 : vector<1x1x80x256xbf16> to vector<80x256xbf16>
    %c2_16 = arith.constant 2 : index
    %c0_17 = arith.constant 0 : index
    %c0_18 = arith.constant 0 : index
    %13 = vector.load %arg2[%c2_16, %c0_17, %c0_18] : memref<9x256x128xbf16, #tpu.memory_space<vmem>>, vector<1x256x128xbf16>
    %14 = vector.shape_cast %13 : vector<1x256x128xbf16> to vector<256x128xbf16>
    %cst_19 = arith.constant dense<0.000000e+00> : vector<80x128xf32>
    %15 = tpu.matmul %12, %14, %cst_19 {dimension_numbers = #tpu.dot_dimension_numbers<[1], [0], [0], [1], [0, 0, 1, 1], [], []>} : vector<80x256xbf16>, vector<256x128xbf16>, vector<80x128xf32> -> vector<80x128xf32>
    %16 = arith.addf %10, %15 : vector<80x128xf32>
    %c0_20 = arith.constant 0 : index
    %c0_21 = arith.constant 0 : index
    %c10 = arith.constant 10 : index
    %c0_22 = arith.constant 0 : index
    %17 = vector.load %arg1[%c0_20, %c0_21, %c10, %c0_22] : memref<1x1x102x256xbf16, #tpu.memory_space<vmem>>, vector<1x1x80x256xbf16>
    %18 = vector.shape_cast %17 : vector<1x1x80x256xbf16> to vector<80x256xbf16>
    %c3 = arith.constant 3 : index
    %c0_23 = arith.constant 0 : index
    %c0_24 = arith.constant 0 : index
    %19 = vector.load %arg2[%c3, %c0_23, %c0_24] : memref<9x256x128xbf16, #tpu.memory_space<vmem>>, vector<1x256x128xbf16>
    %20 = vector.shape_cast %19 : vector<1x256x128xbf16> to vector<256x128xbf16>
    %cst_25 = arith.constant dense<0.000000e+00> : vector<80x128xf32>
    %21 = tpu.matmul %18, %20, %cst_25 {dimension_numbers = #tpu.dot_dimension_numbers<[1], [0], [0], [1], [0, 0, 1, 1], [], []>} : vector<80x256xbf16>, vector<256x128xbf16>, vector<80x128xf32> -> vector<80x128xf32>
    %22 = arith.addf %16, %21 : vector<80x128xf32>
    %c0_26 = arith.constant 0 : index
    %c0_27 = arith.constant 0 : index
    %c11 = arith.constant 11 : index
    %c0_28 = arith.constant 0 : index
    %23 = vector.load %arg1[%c0_26, %c0_27, %c11, %c0_28] : memref<1x1x102x256xbf16, #tpu.memory_space<vmem>>, vector<1x1x80x256xbf16>
    %24 = vector.shape_cast %23 : vector<1x1x80x256xbf16> to vector<80x256xbf16>
    %c4 = arith.constant 4 : index
    %c0_29 = arith.constant 0 : index
    %c0_30 = arith.constant 0 : index
    %25 = vector.load %arg2[%c4, %c0_29, %c0_30] : memref<9x256x128xbf16, #tpu.memory_space<vmem>>, vector<1x256x128xbf16>
    %26 = vector.shape_cast %25 : vector<1x256x128xbf16> to vector<256x128xbf16>
    %cst_31 = arith.constant dense<0.000000e+00> : vector<80x128xf32>
    %27 = tpu.matmul %24, %26, %cst_31 {dimension_numbers = #tpu.dot_dimension_numbers<[1], [0], [0], [1], [0, 0, 1, 1], [], []>} : vector<80x256xbf16>, vector<256x128xbf16>, vector<80x128xf32> -> vector<80x128xf32>
    %28 = arith.addf %22, %27 : vector<80x128xf32>
    %c0_32 = arith.constant 0 : index
    %c0_33 = arith.constant 0 : index
    %c12 = arith.constant 12 : index
    %c0_34 = arith.constant 0 : index
    %29 = vector.load %arg1[%c0_32, %c0_33, %c12, %c0_34] : memref<1x1x102x256xbf16, #tpu.memory_space<vmem>>, vector<1x1x80x256xbf16>
    %30 = vector.shape_cast %29 : vector<1x1x80x256xbf16> to vector<80x256xbf16>
    %c5 = arith.constant 5 : index
    %c0_35 = arith.constant 0 : index
    %c0_36 = arith.constant 0 : index
    %31 = vector.load %arg2[%c5, %c0_35, %c0_36] : memref<9x256x128xbf16, #tpu.memory_space<vmem>>, vector<1x256x128xbf16>
    %32 = vector.shape_cast %31 : vector<1x256x128xbf16> to vector<256x128xbf16>
    %cst_37 = arith.constant dense<0.000000e+00> : vector<80x128xf32>
    %33 = tpu.matmul %30, %32, %cst_37 {dimension_numbers = #tpu.dot_dimension_numbers<[1], [0], [0], [1], [0, 0, 1, 1], [], []>} : vector<80x256xbf16>, vector<256x128xbf16>, vector<80x128xf32> -> vector<80x128xf32>
    %34 = arith.addf %28, %33 : vector<80x128xf32>
    %c0_38 = arith.constant 0 : index
    %c0_39 = arith.constant 0 : index
    %c20 = arith.constant 20 : index
    %c0_40 = arith.constant 0 : index
    %35 = vector.load %arg1[%c0_38, %c0_39, %c20, %c0_40] : memref<1x1x102x256xbf16, #tpu.memory_space<vmem>>, vector<1x1x80x256xbf16>
    %36 = vector.shape_cast %35 : vector<1x1x80x256xbf16> to vector<80x256xbf16>
    %c6 = arith.constant 6 : index
    %c0_41 = arith.constant 0 : index
    %c0_42 = arith.constant 0 : index
    %37 = vector.load %arg2[%c6, %c0_41, %c0_42] : memref<9x256x128xbf16, #tpu.memory_space<vmem>>, vector<1x256x128xbf16>
    %38 = vector.shape_cast %37 : vector<1x256x128xbf16> to vector<256x128xbf16>
    %cst_43 = arith.constant dense<0.000000e+00> : vector<80x128xf32>
    %39 = tpu.matmul %36, %38, %cst_43 {dimension_numbers = #tpu.dot_dimension_numbers<[1], [0], [0], [1], [0, 0, 1, 1], [], []>} : vector<80x256xbf16>, vector<256x128xbf16>, vector<80x128xf32> -> vector<80x128xf32>
    %40 = arith.addf %34, %39 : vector<80x128xf32>
    %c0_44 = arith.constant 0 : index
    %c0_45 = arith.constant 0 : index
    %c21 = arith.constant 21 : index
    %c0_46 = arith.constant 0 : index
    %41 = vector.load %arg1[%c0_44, %c0_45, %c21, %c0_46] : memref<1x1x102x256xbf16, #tpu.memory_space<vmem>>, vector<1x1x80x256xbf16>
    %42 = vector.shape_cast %41 : vector<1x1x80x256xbf16> to vector<80x256xbf16>
    %c7 = arith.constant 7 : index
    %c0_47 = arith.constant 0 : index
    %c0_48 = arith.constant 0 : index
    %43 = vector.load %arg2[%c7, %c0_47, %c0_48] : memref<9x256x128xbf16, #tpu.memory_space<vmem>>, vector<1x256x128xbf16>
    %44 = vector.shape_cast %43 : vector<1x256x128xbf16> to vector<256x128xbf16>
    %cst_49 = arith.constant dense<0.000000e+00> : vector<80x128xf32>
    %45 = tpu.matmul %42, %44, %cst_49 {dimension_numbers = #tpu.dot_dimension_numbers<[1], [0], [0], [1], [0, 0, 1, 1], [], []>} : vector<80x256xbf16>, vector<256x128xbf16>, vector<80x128xf32> -> vector<80x128xf32>
    %46 = arith.addf %40, %45 : vector<80x128xf32>
    %c0_50 = arith.constant 0 : index
    %c0_51 = arith.constant 0 : index
    %c22 = arith.constant 22 : index
    %c0_52 = arith.constant 0 : index
    %47 = vector.load %arg1[%c0_50, %c0_51, %c22, %c0_52] : memref<1x1x102x256xbf16, #tpu.memory_space<vmem>>, vector<1x1x80x256xbf16>
    %48 = vector.shape_cast %47 : vector<1x1x80x256xbf16> to vector<80x256xbf16>
    %c8 = arith.constant 8 : index
    %c0_53 = arith.constant 0 : index
    %c0_54 = arith.constant 0 : index
    %49 = vector.load %arg2[%c8, %c0_53, %c0_54] : memref<9x256x128xbf16, #tpu.memory_space<vmem>>, vector<1x256x128xbf16>
    %50 = vector.shape_cast %49 : vector<1x256x128xbf16> to vector<256x128xbf16>
    %cst_55 = arith.constant dense<0.000000e+00> : vector<80x128xf32>
    %51 = tpu.matmul %48, %50, %cst_55 {dimension_numbers = #tpu.dot_dimension_numbers<[1], [0], [0], [1], [0, 0, 1, 1], [], []>} : vector<80x256xbf16>, vector<256x128xbf16>, vector<80x128xf32> -> vector<80x128xf32>
    %52 = arith.addf %46, %51 : vector<80x128xf32>
    %c0_56 = arith.constant 0 : index
    %c0_57 = arith.constant 0 : index
    %53 = vector.load %arg3[%c0_56, %c0_57] : memref<1x128xf32, #tpu.memory_space<vmem>>, vector<1x128xf32>
    %54 = vector.broadcast %53 : vector<1x128xf32> to vector<80x128xf32>
    %55 = arith.addf %52, %54 : vector<80x128xf32>
    %cst_58 = arith.constant 0.000000e+00 : f32
    %56 = vector.broadcast %cst_58 : f32 to vector<80x128xf32>
    %57 = arith.maximumf %55, %56 : vector<80x128xf32>
    %58 = arith.truncf %57 : vector<80x128xf32> to vector<80x128xbf16>
    %c0_59 = arith.constant 0 : index
    %c0_60 = arith.constant 0 : index
    %c0_61 = arith.constant 0 : index
    %59 = vector.load %arg4[%c0_59, %c0_60, %c0_61] : memref<1x80x128xbf16, #tpu.memory_space<vmem>>, vector<1x80x128xbf16>
    %60 = vector.shape_cast %59 : vector<1x80x128xbf16> to vector<80x128xbf16>
    %61 = vector.shape_cast %58 : vector<80x128xbf16> to vector<1x80x128xbf16>
    tpu.vector_store %arg4[%c0_59, %c0_60, %c0_61], %61 {strides = array<i32>} : memref<1x80x128xbf16, #tpu.memory_space<vmem>>, vector<1x80x128xbf16>,
    return
  }
  func.func @transform_0(%arg0: i32) -> (i32, i32, i32, i32) {
    %c0_i32 = arith.constant 0 : i32
    %c0_i32_0 = arith.constant 0 : i32
    %c0_i32_1 = arith.constant 0 : i32
    %c0_i32_2 = arith.constant 0 : i32
    return %arg0, %c0_i32, %c0_i32_0, %c0_i32_1 : i32, i32, i32, i32
  }
  func.func @transform_1(%arg0: i32) -> (i32, i32, i32) {
    %c0_i32 = arith.constant 0 : i32
    %c0_i32_0 = arith.constant 0 : i32
    %c0_i32_1 = arith.constant 0 : i32
    %c0_i32_2 = arith.constant 0 : i32
    return %c0_i32, %c0_i32_0, %c0_i32_1 : i32, i32, i32
  }
  func.func @transform_2(%arg0: i32) -> (i32, i32) {
    %c0_i32 = arith.constant 0 : i32
    %c0_i32_0 = arith.constant 0 : i32
    %c0_i32_1 = arith.constant 0 : i32
    return %c0_i32, %c0_i32_0 : i32, i32
  }
  func.func @transform_3(%arg0: i32) -> (i32, i32, i32) {
    %c0_i32 = arith.constant 0 : i32
    %c0_i32_0 = arith.constant 0 : i32
    %c0_i32_1 = arith.constant 0 : i32
    return %arg0, %c0_i32, %c0_i32_0 : i32, i32, i32
  }
}

module attributes {stable_mosaic.version = 11 : i64} {
  func.func @_conv_kernel(%arg0: i32, %arg1: memref<1x1x102x128xbf16, #tpu.memory_space<vmem>>, %arg2: memref<9x128x128xbf16, #tpu.memory_space<vmem>>, %arg3: memref<1x128xf32, #tpu.memory_space<vmem>>, %arg4: memref<1x80x128xbf16, #tpu.memory_space<vmem>>) attributes {dimension_semantics = [#tpu.dimension_semantics<parallel>], iteration_bounds = array<i64: 2>, scalar_prefetch = 0 : i64, scratch_operands = 0 : i64, tpu.core_type = #tpu.core_type<tc>, window_params = [{transform_indices = @transform_0, window_bounds = array<i64: 1, 1, 102, 128>}, {pipeline_mode = #tpu.pipeline_mode<synchronous>, transform_indices = @transform_1, window_bounds = array<i64: 9, 128, 128>}, {pipeline_mode = #tpu.pipeline_mode<synchronous>, transform_indices = @transform_2, window_bounds = array<i64: 1, 128>}, {transform_indices = @transform_3, window_bounds = array<i64: 1, 80, 128>}]} {
    %c0 = arith.constant 0 : index
    %c0_0 = arith.constant 0 : index
    %c0_1 = arith.constant 0 : index
    %c0_2 = arith.constant 0 : index
    %0 = vector.load %arg1[%c0, %c0_0, %c0_1, %c0_2] : memref<1x1x102x128xbf16, #tpu.memory_space<vmem>>, vector<1x1x80x128xbf16>
    %1 = vector.shape_cast %0 : vector<1x1x80x128xbf16> to vector<80x128xbf16>
    %c0_3 = arith.constant 0 : index
    %c0_4 = arith.constant 0 : index
    %c0_5 = arith.constant 0 : index
    %2 = vector.load %arg2[%c0_3, %c0_4, %c0_5] : memref<9x128x128xbf16, #tpu.memory_space<vmem>>, vector<1x128x128xbf16>
    %3 = vector.shape_cast %2 : vector<1x128x128xbf16> to vector<128x128xbf16>
    %cst = arith.constant dense<0.000000e+00> : vector<80x128xf32>
    %4 = tpu.matmul %1, %3, %cst {dimension_numbers = #tpu.dot_dimension_numbers<[1], [0], [0], [1], [0, 0, 1, 1], [], []>} : vector<80x128xbf16>, vector<128x128xbf16>, vector<80x128xf32> -> vector<80x128xf32>
    %c0_6 = arith.constant 0 : index
    %c0_7 = arith.constant 0 : index
    %c1 = arith.constant 1 : index
    %c0_8 = arith.constant 0 : index
    %5 = vector.load %arg1[%c0_6, %c0_7, %c1, %c0_8] : memref<1x1x102x128xbf16, #tpu.memory_space<vmem>>, vector<1x1x80x128xbf16>
    %6 = vector.shape_cast %5 : vector<1x1x80x128xbf16> to vector<80x128xbf16>
    %c1_9 = arith.constant 1 : index
    %c0_10 = arith.constant 0 : index
    %c0_11 = arith.constant 0 : index
    %7 = vector.load %arg2[%c1_9, %c0_10, %c0_11] : memref<9x128x128xbf16, #tpu.memory_space<vmem>>, vector<1x128x128xbf16>
    %8 = vector.shape_cast %7 : vector<1x128x128xbf16> to vector<128x128xbf16>
    %cst_12 = arith.constant dense<0.000000e+00> : vector<80x128xf32>
    %9 = tpu.matmul %6, %8, %cst_12 {dimension_numbers = #tpu.dot_dimension_numbers<[1], [0], [0], [1], [0, 0, 1, 1], [], []>} : vector<80x128xbf16>, vector<128x128xbf16>, vector<80x128xf32> -> vector<80x128xf32>
    %10 = arith.addf %4, %9 : vector<80x128xf32>
    %c0_13 = arith.constant 0 : index
    %c0_14 = arith.constant 0 : index
    %c2 = arith.constant 2 : index
    %c0_15 = arith.constant 0 : index
    %11 = vector.load %arg1[%c0_13, %c0_14, %c2, %c0_15] : memref<1x1x102x128xbf16, #tpu.memory_space<vmem>>, vector<1x1x80x128xbf16>
    %12 = vector.shape_cast %11 : vector<1x1x80x128xbf16> to vector<80x128xbf16>
    %c2_16 = arith.constant 2 : index
    %c0_17 = arith.constant 0 : index
    %c0_18 = arith.constant 0 : index
    %13 = vector.load %arg2[%c2_16, %c0_17, %c0_18] : memref<9x128x128xbf16, #tpu.memory_space<vmem>>, vector<1x128x128xbf16>
    %14 = vector.shape_cast %13 : vector<1x128x128xbf16> to vector<128x128xbf16>
    %cst_19 = arith.constant dense<0.000000e+00> : vector<80x128xf32>
    %15 = tpu.matmul %12, %14, %cst_19 {dimension_numbers = #tpu.dot_dimension_numbers<[1], [0], [0], [1], [0, 0, 1, 1], [], []>} : vector<80x128xbf16>, vector<128x128xbf16>, vector<80x128xf32> -> vector<80x128xf32>
    %16 = arith.addf %10, %15 : vector<80x128xf32>
    %c0_20 = arith.constant 0 : index
    %c0_21 = arith.constant 0 : index
    %c10 = arith.constant 10 : index
    %c0_22 = arith.constant 0 : index
    %17 = vector.load %arg1[%c0_20, %c0_21, %c10, %c0_22] : memref<1x1x102x128xbf16, #tpu.memory_space<vmem>>, vector<1x1x80x128xbf16>
    %18 = vector.shape_cast %17 : vector<1x1x80x128xbf16> to vector<80x128xbf16>
    %c3 = arith.constant 3 : index
    %c0_23 = arith.constant 0 : index
    %c0_24 = arith.constant 0 : index
    %19 = vector.load %arg2[%c3, %c0_23, %c0_24] : memref<9x128x128xbf16, #tpu.memory_space<vmem>>, vector<1x128x128xbf16>
    %20 = vector.shape_cast %19 : vector<1x128x128xbf16> to vector<128x128xbf16>
    %cst_25 = arith.constant dense<0.000000e+00> : vector<80x128xf32>
    %21 = tpu.matmul %18, %20, %cst_25 {dimension_numbers = #tpu.dot_dimension_numbers<[1], [0], [0], [1], [0, 0, 1, 1], [], []>} : vector<80x128xbf16>, vector<128x128xbf16>, vector<80x128xf32> -> vector<80x128xf32>
    %22 = arith.addf %16, %21 : vector<80x128xf32>
    %c0_26 = arith.constant 0 : index
    %c0_27 = arith.constant 0 : index
    %c11 = arith.constant 11 : index
    %c0_28 = arith.constant 0 : index
    %23 = vector.load %arg1[%c0_26, %c0_27, %c11, %c0_28] : memref<1x1x102x128xbf16, #tpu.memory_space<vmem>>, vector<1x1x80x128xbf16>
    %24 = vector.shape_cast %23 : vector<1x1x80x128xbf16> to vector<80x128xbf16>
    %c4 = arith.constant 4 : index
    %c0_29 = arith.constant 0 : index
    %c0_30 = arith.constant 0 : index
    %25 = vector.load %arg2[%c4, %c0_29, %c0_30] : memref<9x128x128xbf16, #tpu.memory_space<vmem>>, vector<1x128x128xbf16>
    %26 = vector.shape_cast %25 : vector<1x128x128xbf16> to vector<128x128xbf16>
    %cst_31 = arith.constant dense<0.000000e+00> : vector<80x128xf32>
    %27 = tpu.matmul %24, %26, %cst_31 {dimension_numbers = #tpu.dot_dimension_numbers<[1], [0], [0], [1], [0, 0, 1, 1], [], []>} : vector<80x128xbf16>, vector<128x128xbf16>, vector<80x128xf32> -> vector<80x128xf32>
    %28 = arith.addf %22, %27 : vector<80x128xf32>
    %c0_32 = arith.constant 0 : index
    %c0_33 = arith.constant 0 : index
    %c12 = arith.constant 12 : index
    %c0_34 = arith.constant 0 : index
    %29 = vector.load %arg1[%c0_32, %c0_33, %c12, %c0_34] : memref<1x1x102x128xbf16, #tpu.memory_space<vmem>>, vector<1x1x80x128xbf16>
    %30 = vector.shape_cast %29 : vector<1x1x80x128xbf16> to vector<80x128xbf16>
    %c5 = arith.constant 5 : index
    %c0_35 = arith.constant 0 : index
    %c0_36 = arith.constant 0 : index
    %31 = vector.load %arg2[%c5, %c0_35, %c0_36] : memref<9x128x128xbf16, #tpu.memory_space<vmem>>, vector<1x128x128xbf16>
    %32 = vector.shape_cast %31 : vector<1x128x128xbf16> to vector<128x128xbf16>
    %cst_37 = arith.constant dense<0.000000e+00> : vector<80x128xf32>
    %33 = tpu.matmul %30, %32, %cst_37 {dimension_numbers = #tpu.dot_dimension_numbers<[1], [0], [0], [1], [0, 0, 1, 1], [], []>} : vector<80x128xbf16>, vector<128x128xbf16>, vector<80x128xf32> -> vector<80x128xf32>
    %34 = arith.addf %28, %33 : vector<80x128xf32>
    %c0_38 = arith.constant 0 : index
    %c0_39 = arith.constant 0 : index
    %c20 = arith.constant 20 : index
    %c0_40 = arith.constant 0 : index
    %35 = vector.load %arg1[%c0_38, %c0_39, %c20, %c0_40] : memref<1x1x102x128xbf16, #tpu.memory_space<vmem>>, vector<1x1x80x128xbf16>
    %36 = vector.shape_cast %35 : vector<1x1x80x128xbf16> to vector<80x128xbf16>
    %c6 = arith.constant 6 : index
    %c0_41 = arith.constant 0 : index
    %c0_42 = arith.constant 0 : index
    %37 = vector.load %arg2[%c6, %c0_41, %c0_42] : memref<9x128x128xbf16, #tpu.memory_space<vmem>>, vector<1x128x128xbf16>
    %38 = vector.shape_cast %37 : vector<1x128x128xbf16> to vector<128x128xbf16>
    %cst_43 = arith.constant dense<0.000000e+00> : vector<80x128xf32>
    %39 = tpu.matmul %36, %38, %cst_43 {dimension_numbers = #tpu.dot_dimension_numbers<[1], [0], [0], [1], [0, 0, 1, 1], [], []>} : vector<80x128xbf16>, vector<128x128xbf16>, vector<80x128xf32> -> vector<80x128xf32>
    %40 = arith.addf %34, %39 : vector<80x128xf32>
    %c0_44 = arith.constant 0 : index
    %c0_45 = arith.constant 0 : index
    %c21 = arith.constant 21 : index
    %c0_46 = arith.constant 0 : index
    %41 = vector.load %arg1[%c0_44, %c0_45, %c21, %c0_46] : memref<1x1x102x128xbf16, #tpu.memory_space<vmem>>, vector<1x1x80x128xbf16>
    %42 = vector.shape_cast %41 : vector<1x1x80x128xbf16> to vector<80x128xbf16>
    %c7 = arith.constant 7 : index
    %c0_47 = arith.constant 0 : index
    %c0_48 = arith.constant 0 : index
    %43 = vector.load %arg2[%c7, %c0_47, %c0_48] : memref<9x128x128xbf16, #tpu.memory_space<vmem>>, vector<1x128x128xbf16>
    %44 = vector.shape_cast %43 : vector<1x128x128xbf16> to vector<128x128xbf16>
    %cst_49 = arith.constant dense<0.000000e+00> : vector<80x128xf32>
    %45 = tpu.matmul %42, %44, %cst_49 {dimension_numbers = #tpu.dot_dimension_numbers<[1], [0], [0], [1], [0, 0, 1, 1], [], []>} : vector<80x128xbf16>, vector<128x128xbf16>, vector<80x128xf32> -> vector<80x128xf32>
    %46 = arith.addf %40, %45 : vector<80x128xf32>
    %c0_50 = arith.constant 0 : index
    %c0_51 = arith.constant 0 : index
    %c22 = arith.constant 22 : index
    %c0_52 = arith.constant 0 : index
    %47 = vector.load %arg1[%c0_50, %c0_51, %c22, %c0_52] : memref<1x1x102x128xbf16, #tpu.memory_space<vmem>>, vector<1x1x80x128xbf16>
    %48 = vector.shape_cast %47 : vector<1x1x80x128xbf16> to vector<80x128xbf16>
    %c8 = arith.constant 8 : index
    %c0_53 = arith.constant 0 : index
    %c0_54 = arith.constant 0 : index
    %49 = vector.load %arg2[%c8, %c0_53, %c0_54] : memref<9x128x128xbf16, #tpu.memory_space<vmem>>, vector<1x128x128xbf16>
    %50 = vector.shape_cast %49 : vector<1x128x128xbf16> to vector<128x128xbf16>
    %cst_55 = arith.constant dense<0.000000e+00> : vector<80x128xf32>
    %51 = tpu.matmul %48, %50, %cst_55 {dimension_numbers = #tpu.dot_dimension_numbers<[1], [0], [0], [1], [0, 0, 1, 1], [], []>} : vector<80x128xbf16>, vector<128x128xbf16>, vector<80x128xf32> -> vector<80x128xf32>
    %52 = arith.addf %46, %51 : vector<80x128xf32>
    %c0_56 = arith.constant 0 : index
    %c0_57 = arith.constant 0 : index
    %53 = vector.load %arg3[%c0_56, %c0_57] : memref<1x128xf32, #tpu.memory_space<vmem>>, vector<1x128xf32>
    %54 = vector.broadcast %53 : vector<1x128xf32> to vector<80x128xf32>
    %55 = arith.addf %52, %54 : vector<80x128xf32>
    %cst_58 = arith.constant 0.000000e+00 : f32
    %56 = vector.broadcast %cst_58 : f32 to vector<80x128xf32>
    %57 = arith.maximumf %55, %56 : vector<80x128xf32>
    %58 = arith.truncf %57 : vector<80x128xf32> to vector<80x128xbf16>
    %c0_59 = arith.constant 0 : index
    %c0_60 = arith.constant 0 : index
    %c0_61 = arith.constant 0 : index
    %59 = vector.load %arg4[%c0_59, %c0_60, %c0_61] : memref<1x80x128xbf16, #tpu.memory_space<vmem>>, vector<1x80x128xbf16>
    %60 = vector.shape_cast %59 : vector<1x80x128xbf16> to vector<80x128xbf16>
    %61 = vector.shape_cast %58 : vector<80x128xbf16> to vector<1x80x128xbf16>
    tpu.vector_store %arg4[%c0_59, %c0_60, %c0_61], %61 {strides = array<i32>} : memref<1x80x128xbf16, #tpu.memory_space<vmem>>, vector<1x80x128xbf16>,
    return
  }
  func.func @transform_0(%arg0: i32) -> (i32, i32, i32, i32) {
    %c0_i32 = arith.constant 0 : i32
    %c0_i32_0 = arith.constant 0 : i32
    %c0_i32_1 = arith.constant 0 : i32
    %c0_i32_2 = arith.constant 0 : i32
    return %arg0, %c0_i32, %c0_i32_0, %c0_i32_1 : i32, i32, i32, i32
  }
  func.func @transform_1(%arg0: i32) -> (i32, i32, i32) {
    %c0_i32 = arith.constant 0 : i32
    %c0_i32_0 = arith.constant 0 : i32
    %c0_i32_1 = arith.constant 0 : i32
    %c0_i32_2 = arith.constant 0 : i32
    return %c0_i32, %c0_i32_0, %c0_i32_1 : i32, i32, i32
  }
  func.func @transform_2(%arg0: i32) -> (i32, i32) {
    %c0_i32 = arith.constant 0 : i32
    %c0_i32_0 = arith.constant 0 : i32
    %c0_i32_1 = arith.constant 0 : i32
    return %c0_i32, %c0_i32_0 : i32, i32
  }
  func.func @transform_3(%arg0: i32) -> (i32, i32, i32) {
    %c0_i32 = arith.constant 0 : i32
    %c0_i32_0 = arith.constant 0 : i32
    %c0_i32_1 = arith.constant 0 : i32
    return %arg0, %c0_i32, %c0_i32_0 : i32, i32, i32
  }
}

module attributes {stable_mosaic.version = 11 : i64} {
  func.func @_conv_kernel(%arg0: i32, %arg1: memref<1x1x64x128xbf16, #tpu.memory_space<vmem>>, %arg2: memref<1x128x128xbf16, #tpu.memory_space<vmem>>, %arg3: memref<1x128xf32, #tpu.memory_space<vmem>>, %arg4: memref<1x64x128xbf16, #tpu.memory_space<vmem>>) attributes {dimension_semantics = [#tpu.dimension_semantics<parallel>], iteration_bounds = array<i64: 2>, scalar_prefetch = 0 : i64, scratch_operands = 0 : i64, tpu.core_type = #tpu.core_type<tc>, window_params = [{transform_indices = @transform_0, window_bounds = array<i64: 1, 1, 64, 128>}, {pipeline_mode = #tpu.pipeline_mode<synchronous>, transform_indices = @transform_1, window_bounds = array<i64: 1, 128, 128>}, {pipeline_mode = #tpu.pipeline_mode<synchronous>, transform_indices = @transform_2, window_bounds = array<i64: 1, 128>}, {transform_indices = @transform_3, window_bounds = array<i64: 1, 64, 128>}]} {
    %c0 = arith.constant 0 : index
    %c0_0 = arith.constant 0 : index
    %c0_1 = arith.constant 0 : index
    %c0_2 = arith.constant 0 : index
    %0 = vector.load %arg1[%c0, %c0_0, %c0_1, %c0_2] : memref<1x1x64x128xbf16, #tpu.memory_space<vmem>>, vector<1x1x64x128xbf16>
    %1 = vector.shape_cast %0 : vector<1x1x64x128xbf16> to vector<64x128xbf16>
    %c0_3 = arith.constant 0 : index
    %c0_4 = arith.constant 0 : index
    %c0_5 = arith.constant 0 : index
    %2 = vector.load %arg2[%c0_3, %c0_4, %c0_5] : memref<1x128x128xbf16, #tpu.memory_space<vmem>>, vector<1x128x128xbf16>
    %3 = vector.shape_cast %2 : vector<1x128x128xbf16> to vector<128x128xbf16>
    %cst = arith.constant dense<0.000000e+00> : vector<64x128xf32>
    %4 = tpu.matmul %1, %3, %cst {dimension_numbers = #tpu.dot_dimension_numbers<[1], [0], [0], [1], [0, 0, 1, 1], [], []>} : vector<64x128xbf16>, vector<128x128xbf16>, vector<64x128xf32> -> vector<64x128xf32>
    %c0_6 = arith.constant 0 : index
    %c0_7 = arith.constant 0 : index
    %5 = vector.load %arg3[%c0_6, %c0_7] : memref<1x128xf32, #tpu.memory_space<vmem>>, vector<1x128xf32>
    %6 = vector.broadcast %5 : vector<1x128xf32> to vector<64x128xf32>
    %7 = arith.addf %4, %6 : vector<64x128xf32>
    %8 = arith.truncf %7 : vector<64x128xf32> to vector<64x128xbf16>
    %c0_8 = arith.constant 0 : index
    %c0_9 = arith.constant 0 : index
    %c0_10 = arith.constant 0 : index
    %9 = vector.load %arg4[%c0_8, %c0_9, %c0_10] : memref<1x64x128xbf16, #tpu.memory_space<vmem>>, vector<1x64x128xbf16>
    %10 = vector.shape_cast %9 : vector<1x64x128xbf16> to vector<64x128xbf16>
    %11 = vector.shape_cast %8 : vector<64x128xbf16> to vector<1x64x128xbf16>
    tpu.vector_store %arg4[%c0_8, %c0_9, %c0_10], %11 {strides = array<i32>} : memref<1x64x128xbf16, #tpu.memory_space<vmem>>, vector<1x64x128xbf16>,
    return
  }
  func.func @transform_0(%arg0: i32) -> (i32, i32, i32, i32) {
    %c0_i32 = arith.constant 0 : i32
    %c0_i32_0 = arith.constant 0 : i32
    %c0_i32_1 = arith.constant 0 : i32
    %c0_i32_2 = arith.constant 0 : i32
    return %arg0, %c0_i32, %c0_i32_0, %c0_i32_1 : i32, i32, i32, i32
  }
  func.func @transform_1(%arg0: i32) -> (i32, i32, i32) {
    %c0_i32 = arith.constant 0 : i32
    %c0_i32_0 = arith.constant 0 : i32
    %c0_i32_1 = arith.constant 0 : i32
    %c0_i32_2 = arith.constant 0 : i32
    return %c0_i32, %c0_i32_0, %c0_i32_1 : i32, i32, i32
  }
  func.func @transform_2(%arg0: i32) -> (i32, i32) {
    %c0_i32 = arith.constant 0 : i32
    %c0_i32_0 = arith.constant 0 : i32
    %c0_i32_1 = arith.constant 0 : i32
    return %c0_i32, %c0_i32_0 : i32, i32
  }
  func.func @transform_3(%arg0: i32) -> (i32, i32, i32) {
    %c0_i32 = arith.constant 0 : i32
    %c0_i32_0 = arith.constant 0 : i32
    %c0_i32_1 = arith.constant 0 : i32
    return %arg0, %c0_i32, %c0_i32_0 : i32, i32, i32
  }
}

</mosaic_0001>

<bundles_post_ra>
// kernel: deeplab_forward.9
= control target key start
LH: loop header
LB: loop body
LE: loop exit
PB: predicated region body
PF: predicated region fallthrough
CT: control target
= control target key end

     0   :  { %s4697_s12 = smov 0   ;;  %s5657_s0 = inlined_call_operand.vmem [shape: bf16[2,4,290,4], index: 0, kind: input, shape index: {}]   ;;  %s5658_s1 = inlined_call_operand.vmem [shape: bf16[9,4,128], index: 1, kind: input, shape index: {}]   ;;  %s5659_s2 = inlined_call_operand.vmem [shape: f32[1,128], index: 2, kind: input, shape index: {}]   ;;  %s5660_s3 = inlined_call_operand.vmem [shape: bf16[2,272,128], index: 3, kind: output, shape index: {}]  }
   0x1 LB: > { %s3528_s13 = sadd.s32 4294967295, %s4675_s12   ;;  %p3532_p0 = scmp.ge.s32.totalorder %s4675_s12, 1  ;;  %s4675_s12 = sphi %s4697_s12, %s13_s12  }
   0x2   : > { %p137_p1 = scmp.lt.s32.totalorder %s4675_s12, 3 }
   0x4   : > { %p138_p2 = pnand %p3532_p0, %p137_p1 }
   0x6   : > { %141 = sbr.rel (%p138_p2) target bundleno = 780 (0x30c), region = 32 }
   0xb   : > { %v3569_v0 = vld [vmem:[%s5658_s1 + $0x2] sm:$0x3]  ;;  %vm381_vm0 = vcmask 1041408   ;;  %p161_p3 = scmp.lt.s32.totalorder %s3528_s13, 1  ;;  %v3740_v2 = vld [vmem:[%s5658_s1 + $0x4] sm:$0x3] }
   0xc   : > { %v383_v1 = vsel %vm381_vm0, %v3569_v0, 0  ;;  %v206_v3 = vld [vmem:[%s5658_s1] sm:$0x3]  ;;  %v1030_v4 = vsel %vm381_vm0, %v3740_v2, 0  ;;  %v3980_v6 = vld [vmem:[%s5658_s1 + $0x8] sm:$0x3] }
   0xd   : > { %4654 = vmatpush.bf16.msra.mxu1 %v383_v1  ;;  %4655 = vmatpush.bf16.msra.mxu2 %v383_v1  ;;  %s5674_s13 = smov (!%p161_p3, %s3528_s13), 1  ;;  %v616_v5 = vsel %vm381_vm0, %v206_v3, 0  ;;  %v1638_v7 = vsel %vm381_vm0, %v3980_v6, 0  ;;  %vm329_vm1 = vcmask 31744   ;;  %v3860_v15 = vld [vmem:[%s5658_s1 + $0x6] sm:$0x3] }
   0xe   : > { %392 = vmatpush.bf16.msra.mxu0 %v383_v1  ;;  %s4657_s22 = smul.u32 592, %s5674_s13  ;;  %4656 = vmatpush.bf16.msra.mxu3 %v383_v1  ;;  %v1334_v17 = vsel %vm381_vm0, %v3860_v15, 0  ;;  %v4187_v25 = vld [vmem:[%s5658_s1 + $0xc] sm:$0x3]  ;;  %v4304_v27 = vld [vmem:[%s5658_s1 + $0xe] sm:$0x3] }
   0xf   : > { %v2532_v26 = vsel %vm381_vm0, %v4187_v25, 0  ;;  %v4101_v28 = vld [vmem:[%s5658_s1 + $0xa] sm:$0x3]  ;;  %v2979_v30 = vsel %vm381_vm0, %v4304_v27, 0  ;;  %v4390_v32 = vld [vmem:[%s5658_s1 + $0x10] sm:$0x3] }
  0x10   : > { %s4727_s25 = scalar_lea.vmem %s5657_s0, %s4657_s22  ;;  %v2085_v31 = vsel %vm381_vm0, %v4101_v28, 0  ;;  %v3203_v33 = vsel %vm381_vm0, %v4390_v32, 0  ;;  %vm837_vm2 = vsmask.f32 7424  ;;  %vm3115_vm3 = vcmask 1046528   ;;  %s4658_s11 = smul.u32 136, %s5674_s13 }
  0x11   : > { %1039 = vmatpush.bf16.msrb.mxu2 %v1030_v4  ;;  %625 = vmatpush.bf16.msrb.mxu1 %v616_v5  ;;  %v4432_v8 = vld [vmem:[%s4727_s25 + $0xbc] sm:$0xff]  ;;  %v4437_v9 = vld [vmem:[%s4727_s25 + $0xe4] sm:$0xff]  ;;  %v4427_v10 = vld [vmem:[%s4727_s25 + $0x94] sm:$0xff] }
  0x12   : > { %1647 = vmatpush.bf16.msrb.mxu0 %v1638_v7  ;;  %3643 = vmatmul.msk.bf16.vlgmr.msra.gmra.mxu1 %vm329_vm1, %v4432_v8  ;;  %v4442_v11 = vld [vmem:[%s4727_s25 + $0x10c] sm:$0xff]  ;;  %v4433_v12 = vld [vmem:[%s4727_s25 + $0xc4] sm:$0xff]  ;;  %v4428_v14 = vld [vmem:[%s4727_s25 + $0x9c] sm:$0xff]  ;;  %s5419_s13 = scalar_lea.vmem %s5660_s3, %s4658_s11 }
  0x13   : > { %3648 = vmatmul.msk.bf16.vlgmr.msra.gmra.mxu2 %vm329_vm1, %v4437_v9  ;;  %3638 = vmatmul.msk.bf16.vlgmr.msra.gmra.mxu0 %vm329_vm1, %v4427_v10  ;;  %v4438_v13 = vld [vmem:[%s4727_s25 + $0xec] sm:$0xff]  ;;  %v4443_v16 = vld [vmem:[%s4727_s25 + $0x114] sm:$0xff]  ;;  %v4429_v20 = vld [vmem:[%s4727_s25 + $0xa4] sm:$0xff] }
  0x14   : > { %3653 = vmatmul.msk.bf16.vlgmr.msra.gmra.mxu3 %vm329_vm1, %v4442_v11  ;;  %v4434_v18 = vld [vmem:[%s4727_s25 + $0xcc] sm:$0xff]  ;;  %v4439_v19 = vld [vmem:[%s4727_s25 + $0xf4] sm:$0xff]  ;;  %v4440_v23 = vld [vmem:[%s4727_s25 + $0xfc] sm:$0xff] }
  0x15   : > { %1343 = vmatpush.bf16.msrb.mxu3 %v1334_v17  ;;  %v4461_v21 = vld [vmem:[%s4727_s25 + $0x128] sm:$0xff]  ;;  %v4435_v22 = vld [vmem:[%s4727_s25 + $0xd4] sm:$0xff]  ;;  %2541 = vmatpush.bf16.msra.mxu2 %v2532_v26  ;;  %v4436_v34 = vld [vmem:[%s4727_s25 + $0xdc] sm:$0xff] }
  0x16   : > { %v4430_v24 = vld [vmem:[%s4727_s25 + $0xac] sm:$0xff]  ;;  %2094 = vmatpush.bf16.msra.mxu1 %v2085_v31  ;;  %3212 = vmatpush.bf16.msra.mxu0 %v3203_v33  ;;  %v4441_v35 = vld [vmem:[%s4727_s25 + $0x104] sm:$0xff]  ;;  %v4431_v36 = vld [vmem:[%s4727_s25 + $0xb4] sm:$0xff] }
  0x17   : > { %v4462_v29 = vld [vmem:[%s4727_s25 + $0x130] sm:$0xff]  ;;  %v4444_v37 = vld [vmem:[%s4727_s25] sm:$0xff]  ;;  %v4445_v38 = vld [vmem:[%s4727_s25 + $0x8] sm:$0xff] }
  0x18   : > { %v841_v39 = vshll.u32 %v4444_v37, 16  ;;  %v4463_v40 = vld [vmem:[%s4727_s25 + $0x138] sm:$0xff]  ;;  %v839_v41 = vshrl.u32 %v4444_v37, 16  ;;  %v846_v43 = vshll.u32 %v4445_v38, 16  ;;  %v4410_v46 = vld [vmem:[%s4727_s25] sm:$0xff]  ;;  %v4446_v49 = vld [vmem:[%s4727_s25 + $0x10] sm:$0xff] }
  0x19   : > { %2988 = vmatpush.bf16.msra.mxu3 %v2979_v30  ;;  %v4478_v48 = vld [vmem:[%s4727_s25 + $0x1bc] sm:$0xff]  ;;  %v850_v51 = vshrl.u32 %v4445_v38, 16  ;;  %v854_v52 = vshll.u32 %v4446_v49, 16  ;;  %v4411_v55 = vld [vmem:[%s4727_s25 + $0x8] sm:$0xff]  ;;  %v858_v59 = vshrl.u32 %v4446_v49, 16  ;;  %v4412_v0 = vld [vmem:[%s4727_s25 + $0x10] sm:$0xff] }
  0x1a   : > { %v843_v42 = vrot.slane %v841_v39, 1  ;;  %v848_v45 = vrot.slane %v846_v43, 1  ;;  %v4464_v50 = vld [vmem:[%s4727_s25 + $0x140] sm:$0xff]  ;;  %v4447_v58 = vld [vmem:[%s4727_s25 + $0x18] sm:$0xff]  ;;  %v4465_v61 = vld [vmem:[%s4727_s25 + $0x148] sm:$0xff] }
  0x1b   : > { %v856_v54 = vrot.slane %v854_v52, 1  ;;  %v4479_v57 = vld [vmem:[%s4727_s25 + $0x1c4] sm:$0xff]  ;;  %v862_v60 = vshll.u32 %v4447_v58, 16  ;;  %v4480_v2 = vld [vmem:[%s4727_s25 + $0x1cc] sm:$0xff]  ;;  %v866_v4 = vshrl.u32 %v4447_v58, 16  ;;  %v4413_v9 = vld [vmem:[%s4727_s25 + $0x18] sm:$0xff] }
  0x1c   : > { %v844_v44 = vor.u32 %v843_v42, %v839_v41  ;;  %v852_v53 = vor.u32 %v850_v51, %v848_v45  ;;  %v4448_v3 = vld [vmem:[%s4727_s25 + $0x20] sm:$0xff]  ;;  %v4466_v6 = vld [vmem:[%s4727_s25 + $0x150] sm:$0xff]  ;;  %v4415_v41 = vld [vmem:[%s4727_s25 + $0x28] sm:$0xff] }
  0x1d   : > { %v860_v62 = vor.u32 %v858_v59, %v856_v54  ;;  %v864_v63 = vrot.slane %v862_v60, 1  ;;  %v870_v5 = vshll.u32 %v4448_v3, 16  ;;  %v874_v17 = vshrl.u32 %v4448_v3, 16  ;;  %v4482_v27 = vld [vmem:[%s4727_s25 + $0x1dc] sm:$0xff]  ;;  %v4450_v30 = vld [vmem:[%s4727_s25 + $0x30] sm:$0xff] }
  0x1e   : > { %v849_v47 = vsel %vm837_vm2, %v844_v44, %v848_v45  ;;  %v857_v56 = vsel %vm837_vm2, %v852_v53, %v856_v54  ;;  %v4468_v37 = vld [vmem:[%s4727_s25 + $0x160] sm:$0xff]  ;;  %v4469_v54 = vld [vmem:[%s4727_s25 + $0x168] sm:$0xff]  ;;  %v4416_v58 = vld [vmem:[%s4727_s25 + $0x30] sm:$0xff] }
  0x1f   : > { %v865_v1 = vsel %vm837_vm2, %v860_v62, %v864_v63  ;;  %v868_v7 = vor.u32 %v866_v4, %v864_v63  ;;  %v872_v8 = vrot.slane %v870_v5, 1  ;;  %v4483_v44 = vld [vmem:[%s4727_s25 + $0x1e4] sm:$0xff] }
  0x21   : > { %v873_v11 = vsel %vm837_vm2, %v868_v7, %v872_v8  ;;  %v4470_v7 = vld [vmem:[%s4727_s25 + $0x170] sm:$0xff] }
  0x22   : > { %3644 = vmatmul.msk.bf16.gmra.mxu1 %vm329_vm1, %v4433_v12  ;;  %v4481_v12 = vld [vmem:[%s4727_s25 + $0x1d4] sm:$0xff] }
  0x23   : > { %3649 = vmatmul.msk.bf16.gmra.mxu2 %vm329_vm1, %v4438_v13  ;;  %3639 = vmatmul.msk.bf16.gmra.mxu0 %vm329_vm1, %v4428_v14  ;;  %v4449_v14 = vld [vmem:[%s4727_s25 + $0x28] sm:$0xff] }
  0x24   : > { %3654 = vmatmul.msk.bf16.gmra.mxu3 %vm329_vm1, %v4443_v16  ;;  %v882_v33 = vshrl.u32 %v4449_v14, 16 }
  0x32   : > { %3645 = vmatmul.msk.bf16.gmra.mxu1 %vm329_vm1, %v4434_v18  ;;  %v878_v18 = vshll.u32 %v4449_v14, 16 }
  0x33   : > { %3650 = vmatmul.msk.bf16.gmra.mxu2 %vm329_vm1, %v4439_v19  ;;  %3640 = vmatmul.msk.bf16.gmra.mxu0 %vm329_vm1, %v4429_v20  ;;  %v4467_v20 = vld [vmem:[%s4727_s25 + $0x158] sm:$0xff] }
  0x34   : > { %3929 = vmatmul.msk.bf16.vlgmr.msrb.gmra.mxu3 %vm329_vm1, %v4461_v21  ;;  %v876_v21 = vor.u32 %v874_v17, %v872_v8 }
  0x42   : > { %3646 = vmatmul.msk.bf16.gmra.mxu1 %vm329_vm1, %v4435_v22  ;;  %v880_v22 = vrot.slane %v878_v18, 1  ;;  %v4485_v18 = vld [vmem:[%s4727_s25 + $0x1f4] sm:$0xff] }
  0x43   : > { %3651 = vmatmul.msk.bf16.gmra.mxu2 %vm329_vm1, %v4440_v23  ;;  %3641 = vmatmul.msk.bf16.gmra.mxu0 %vm329_vm1, %v4430_v24  ;;  %v4414_v24 = vld [vmem:[%s4727_s25 + $0x20] sm:$0xff] }
  0x44   : > { %3930 = vmatmul.msk.bf16.gmra.mxu3 %vm329_vm1, %v4462_v29  ;;  %v881_v26 = vsel %vm837_vm2, %v876_v21, %v880_v22  ;;  %v884_v38 = vor.u32 %v882_v33, %v880_v22  ;;  %v4453_v22 = vld [vmem:[%s4727_s25 + $0x48] sm:$0xff] }
  0x52   : > { %3647 = vmatmul.msk.bf16.gmra.mxu1 %vm329_vm1, %v4436_v34  ;;  %v886_v34 = vshll.u32 %v4450_v30, 16 }
  0x53   : > { %3652 = vmatmul.msk.bf16.gmra.mxu2 %vm329_vm1, %v4441_v35  ;;  %3642 = vmatmul.msk.bf16.gmra.mxu0 %vm329_vm1, %v4431_v36 }
  0x54   : > { %3931 = vmatmul.msk.bf16.gmra.mxu3 %vm329_vm1, %v4463_v40  ;;  %v888_v39 = vrot.slane %v886_v34, 1 }
  0x56   : > { %v889_v43 = vsel %vm837_vm2, %v884_v38, %v888_v39 }
  0x62   : > { %3723 = vmatmul.msk.bf16.vlgmr.msrb.gmra.mxu1 %vm329_vm1, %v4410_v46 }
  0x63   : > { %3809 = vmatmul.msk.bf16.vlgmr.msrb.gmra.mxu2 %vm329_vm1, %v849_v47  ;;  %4049 = vmatmul.msk.bf16.vlgmr.msrb.gmra.mxu0 %vm329_vm1, %v4478_v48  ;;  %v4451_v47 = vld [vmem:[%s4727_s25 + $0x38] sm:$0xff] }
  0x64   : > { %3932 = vmatmul.msk.bf16.gmra.mxu3 %vm329_vm1, %v4464_v50  ;;  %v890_v50 = vshrl.u32 %v4450_v30, 16  ;;  %v894_v51 = vshll.u32 %v4451_v47, 16  ;;  %v898_v3 = vshrl.u32 %v4451_v47, 16  ;;  %v910_v30 = vshll.u32 %v4453_v22, 16 }
  0x72   : > { %3724 = vmatmul.msk.bf16.gmra.mxu1 %vm329_vm1, %v4411_v55  ;;  %v892_v55 = vor.u32 %v890_v50, %v888_v39  ;;  %v912_v39 = vrot.slane %v910_v30, 1  ;;  %v4486_v50 = vld [vmem:[%s4727_s25 + $0x1fc] sm:$0xff] }
  0x73   : > { %3810 = vmatmul.msk.bf16.gmra.mxu2 %vm329_vm1, %v857_v56  ;;  %4050 = vmatmul.msk.bf16.gmra.mxu0 %vm329_vm1, %v4479_v57  ;;  %v896_v56 = vrot.slane %v894_v51, 1 }
  0x74   : > { %3933 = vmatmul.msk.bf16.gmra.mxu3 %vm329_vm1, %v4465_v61  ;;  %v4484_v61 = vld [vmem:[%s4727_s25 + $0x1ec] sm:$0xff] }
  0x75   : > { %v897_v60 = vsel %vm837_vm2, %v892_v55, %v896_v56  ;;  %v900_v8 = vor.u32 %v898_v3, %v896_v56  ;;  %v4454_v55 = vld [vmem:[%s4727_s25 + $0x50] sm:$0xff] }
  0x76   : > { %v918_v3 = vshll.u32 %v4454_v55, 16 }
  0x82   : > { %3725 = vmatmul.msk.bf16.gmra.mxu1 %vm329_vm1, %v4412_v0  ;;  %v4452_v0 = vld [vmem:[%s4727_s25 + $0x40] sm:$0xff] }
  0x83   : > { %3811 = vmatmul.msk.bf16.gmra.mxu2 %vm329_vm1, %v865_v1  ;;  %4051 = vmatmul.msk.bf16.gmra.mxu0 %vm329_vm1, %v4480_v2  ;;  %v902_v4 = vshll.u32 %v4452_v0, 16 }
  0x84   : > { %3934 = vmatmul.msk.bf16.gmra.mxu3 %vm329_vm1, %v4466_v6 }
  0x8f   : > { %v4819_v10 = vpop.f32.mrf.mxu1 }
  0x90   : > { %v4823_v13 = vpop.f32.mrf.mxu0 }
  0x92   : > { %3726 = vmatmul.msk.bf16.gmra.mxu1 %vm329_vm1, %v4413_v9  ;;  %v904_v9 = vrot.slane %v902_v4, 1 }
  0x93   : > { %3812 = vmatmul.msk.bf16.gmra.mxu2 %vm329_vm1, %v873_v11  ;;  %4052 = vmatmul.msk.bf16.gmra.mxu0 %vm329_vm1, %v4481_v12  ;;  %v4417_v12 = vld [vmem:[%s4727_s25 + $0x38] sm:$0xff] }
  0x94   : > { %3935 = vmatmul.msk.bf16.gmra.mxu3 %vm329_vm1, %v4467_v20  ;;  %v905_v17 = vsel %vm837_vm2, %v900_v8, %v904_v9 }
  0x96   : > { %v4829_v15 = vpop.f32.mrf.mxu2 }
  0x97   : > { %v4831_v16 = vpop.f32.mrf.mxu1  ;;  %v4844_v28 = vpop.f32.mrf.mxu3 }
  0x98   : > { %v4833_v19 = vpop.f32.mrf.mxu0 }
  0x9e   : > { %v4837_v23 = vpop.f32.mrf.mxu2 }
  0x9f   : > { %v4840_v25 = vpop.f32.mrf.mxu1  ;;  %v4856_v35 = vpop.f32.mrf.mxu3 }
  0xa0   : > { %v4846_v29 = vpop.f32.mrf.mxu0 }
  0xa2   : > { %3727 = vmatmul.msk.bf16.gmra.mxu1 %vm329_vm1, %v4414_v24 }
  0xa3   : > { %3813 = vmatmul.msk.bf16.gmra.mxu2 %vm329_vm1, %v881_v26  ;;  %4053 = vmatmul.msk.bf16.gmra.mxu0 %vm329_vm1, %v4482_v27  ;;  %v906_v27 = vshrl.u32 %v4452_v0, 16  ;;  %v914_v0 = vshrl.u32 %v4453_v22, 16 }
  0xa4   : > { %3936 = vmatmul.msk.bf16.gmra.mxu3 %vm329_vm1, %v4468_v37  ;;  %v4471_v37 = vld [vmem:[%s4727_s25 + $0x178] sm:$0xff] }
  0xa5   : > { %v908_v38 = vor.u32 %v906_v27, %v904_v9  ;;  %v4472_v9 = vld [vmem:[%s4727_s25 + $0x180] sm:$0xff] }
  0xa6   : > { %v4852_v31 = vpop.f32.mrf.mxu2 }
  0xa7   : > { %v4854_v32 = vpop.f32.mrf.mxu1  ;;  %v4869_v45 = vpop.f32.mrf.mxu3  ;;  %v913_v47 = vsel %vm837_vm2, %v908_v38, %v912_v39 }
  0xa8   : > { %v4858_v36 = vpop.f32.mrf.mxu0 }
  0xae   : > { %v4862_v40 = vpop.f32.mrf.mxu2 }
  0xaf   : > { %v4865_v42 = vpop.f32.mrf.mxu1  ;;  %v4881_v52 = vpop.f32.mrf.mxu3 }
  0xb0   : > { %v4871_v46 = vpop.f32.mrf.mxu0 }
  0xb2   : > { %3728 = vmatmul.msk.bf16.gmra.mxu1 %vm329_vm1, %v4415_v41 }
  0xb3   : > { %3814 = vmatmul.msk.bf16.gmra.mxu2 %vm329_vm1, %v889_v43  ;;  %4054 = vmatmul.msk.bf16.gmra.mxu0 %vm329_vm1, %v4483_v44  ;;  %v4418_v43 = vld [vmem:[%s4727_s25 + $0x40] sm:$0xff] }
  0xb4   : > { %3937 = vmatmul.msk.bf16.gmra.mxu3 %vm329_vm1, %v4469_v54 }
  0xb6   : > { %v4877_v48 = vpop.f32.mrf.mxu2 }
  0xb7   : > { %v4879_v49 = vpop.f32.mrf.mxu1  ;;  %v1345_v62 = vpop.f32.mrf.mxu3 }
  0xb8   : > { %v4883_v53 = vpop.f32.mrf.mxu0 }
  0xbe   : > { %v4887_v57 = vpop.f32.mrf.mxu2 }
  0xbf   : > { %v4890_v59 = vpop.f32.mrf.mxu1  ;;  %v1347_v5 = vpop.f32.mrf.mxu3 }
  0xc0   : > { %v4894_v63 = vpop.f32.mrf.mxu0 }
  0xc2   : > { %3729 = vmatmul.msk.bf16.gmra.mxu1 %vm329_vm1, %v4416_v58 }
  0xc3   : > { %3815 = vmatmul.msk.bf16.gmra.mxu2 %vm329_vm1, %v897_v60  ;;  %4055 = vmatmul.msk.bf16.gmra.mxu0 %vm329_vm1, %v4484_v61 }
  0xc4   : > { %3938 = vmatmul.msk.bf16.gmra.mxu3 %vm329_vm1, %v4470_v7 }
  0xc6   : > { %v4900_v1 = vpop.f32.mrf.mxu2 }
  0xc7   : > { %v4902_v2 = vpop.f32.mrf.mxu1  ;;  %v4915_v20 = vpop.f32.mrf.mxu3 }
  0xc8   : > { %v4904_v6 = vpop.f32.mrf.mxu0 }
  0xce   : > { %v4908_v11 = vpop.f32.mrf.mxu2 }
  0xcf   : > { %v4911_v14 = vpop.f32.mrf.mxu1  ;;  %v4927_v33 = vpop.f32.mrf.mxu3 }
  0xd0   : > { %v4917_v21 = vpop.f32.mrf.mxu0 }
  0xd2   : > { %3730 = vmatmul.msk.bf16.gmra.mxu1 %vm329_vm1, %v4417_v12 }
  0xd3   : > { %3816 = vmatmul.msk.bf16.gmra.mxu2 %vm329_vm1, %v905_v17  ;;  %4056 = vmatmul.msk.bf16.gmra.mxu0 %vm329_vm1, %v4485_v18  ;;  %v916_v17 = vor.u32 %v914_v0, %v912_v39  ;;  %v920_v18 = vrot.slane %v918_v3, 1 }
  0xd4   : > { %3939 = vmatmul.msk.bf16.gmra.mxu3 %vm329_vm1, %v4471_v37  ;;  %v4419_v37 = vld [vmem:[%s4727_s25 + $0x48] sm:$0xff] }
  0xd5   : > { %v921_v38 = vsel %vm837_vm2, %v916_v17, %v920_v18 }
  0xd6   : > { %v4923_v24 = vpop.f32.mrf.mxu2 }
  0xd7   : > { %v4925_v26 = vpop.f32.mrf.mxu1  ;;  %v4938_v51 = vpop.f32.mrf.mxu3 }
  0xd8   : > { %v4929_v34 = vpop.f32.mrf.mxu0 }
  0xde   : > { %v4933_v41 = vpop.f32.mrf.mxu2 }
  0xdf   : > { %v627_v44 = vpop.f32.mrf.mxu1  ;;  %v4945_v4 = vpop.f32.mrf.mxu3 }
  0xe0   : > { %v1649_v54 = vpop.f32.mrf.mxu0  ;;  %v628_v56 = vadd.f32 %v627_v44, %v4823_v13 }
  0xe2   : > { %3731 = vmatmul.msk.bf16.gmra.mxu1 %vm329_vm1, %v4418_v43  ;;  %v4487_v43 = vld [vmem:[%s4727_s25 + $0x204] sm:$0xff] }
  0xe3   : > { %3817 = vmatmul.msk.bf16.gmra.mxu2 %vm329_vm1, %v913_v47  ;;  %4057 = vmatmul.msk.bf16.gmra.mxu0 %vm329_vm1, %v4486_v50 }
  0xe4   : > { %3940 = vmatmul.msk.bf16.gmra.mxu3 %vm329_vm1, %v4472_v9 }
  0xe6   : > { %v1041_v58 = vpop.f32.mrf.mxu2 }
  0xe7   : > { %v1126_v60 = vadd.f32 %v1041_v58, %v628_v56  ;;  %v629_v61 = vpop.f32.mrf.mxu1  ;;  %v4955_v44 = vpop.f32.mrf.mxu3 }
  0xe8   : > { %v1651_v8 = vpop.f32.mrf.mxu0  ;;  %v630_v13 = vadd.f32 %v629_v61, %v4833_v19  ;;  %v4455_v19 = vld [vmem:[%s4727_s25 + $0x58] sm:$0xff] }
  0xe9   : > { %v1430_v7 = vadd.f32 %v1345_v62, %v1126_v60  ;;  %v922_v60 = vshrl.u32 %v4454_v55, 16  ;;  %v4420_v55 = vld [vmem:[%s4727_s25 + $0x50] sm:$0xff] }
  0xeb   : > { %v4949_v12 = vadd.f32 %v1649_v54, %v1430_v7  ;;  %v4473_v7 = vld [vmem:[%s4727_s25 + $0x188] sm:$0xff]  ;;  %v924_v9 = vor.u32 %v922_v60, %v920_v18 }
  0xee   : > { %v1043_v27 = vpop.f32.mrf.mxu2 }
  0xef   : > { %v1127_v30 = vadd.f32 %v1043_v27, %v630_v13  ;;  %v632_v22 = vpop.f32.mrf.mxu1  ;;  %v4964_v61 = vpop.f32.mrf.mxu3 }
  0xf0   : > { %v1654_v47 = vpop.f32.mrf.mxu0  ;;  %v633_v50 = vadd.f32 %v632_v22, %v4846_v29  ;;  %v4488_v22 = vld [vmem:[%s4727_s25 + $0x20c] sm:$0xff] }
  0xf1   : > { %v1431_v62 = vadd.f32 %v1347_v5, %v1127_v30  ;;  %v926_v5 = vshll.u32 %v4455_v19, 16 }
  0xf2   : > { %3732 = vmatmul.msk.bf16.gmra.mxu1 %vm329_vm1, %v4419_v37 }
  0xf3   : > { %3818 = vmatmul.msk.bf16.gmra.mxu2 %vm329_vm1, %v921_v38  ;;  %v4959_v39 = vadd.f32 %v1651_v8, %v1431_v62  ;;  %4058 = vmatmul.msk.bf16.gmra.mxu0 %vm329_vm1, %v4487_v43  ;;  %v928_v29 = vrot.slane %v926_v5, 1 }
  0xf4   : > { %3941 = vmatmul.msk.bf16.gmra.mxu3 %vm329_vm1, %v4473_v7 }
  0xf5   : > { %v929_v37 = vsel %vm837_vm2, %v924_v9, %v928_v29 }
  0xf6   : > { %v1046_v54 = vpop.f32.mrf.mxu2 }
  0xf7   : > { %v1128_v56 = vadd.f32 %v1046_v54, %v633_v50  ;;  %v634_v58 = vpop.f32.mrf.mxu1  ;;  %v4975_v38 = vpop.f32.mrf.mxu3 }
  0xf8   : > { %v1656_v3 = vpop.f32.mrf.mxu0  ;;  %v635_v17 = vadd.f32 %v634_v58, %v4858_v36  ;;  %v4456_v36 = vld [vmem:[%s4727_s25 + $0x60] sm:$0xff] }
  0xf9   : > { %v1432_v0 = vadd.f32 %v4915_v20, %v1128_v56  ;;  %v930_v56 = vshrl.u32 %v4455_v19, 16  ;;  %v4421_v19 = vld [vmem:[%s4727_s25 + $0x58] sm:$0xff] }
  0xfb   : > { %v4969_v8 = vadd.f32 %v1654_v47, %v1432_v0  ;;  %v4474_v0 = vld [vmem:[%s4727_s25 + $0x190] sm:$0xff]  ;;  %v932_v7 = vor.u32 %v930_v56, %v928_v29 }
  0xfe   : > { %v1048_v13 = vpop.f32.mrf.mxu2 }
  0xff   : > { %v1129_v27 = vadd.f32 %v1048_v13, %v635_v17  ;;  %v637_v30 = vpop.f32.mrf.mxu1  ;;  %v4985_v58 = vpop.f32.mrf.mxu3 }
 0x100   : > { %v1659_v43 = vpop.f32.mrf.mxu0  ;;  %v638_v62 = vadd.f32 %v637_v30, %v4871_v46  ;;  %v4489_v30 = vld [vmem:[%s4727_s25 + $0x214] sm:$0xff] }
 0x101   : > { %v1433_v20 = vadd.f32 %v4927_v33, %v1129_v27  ;;  %v934_v33 = vshll.u32 %v4456_v36, 16 }
 0x102   : > { %3733 = vmatmul.msk.bf16.gmra.mxu1 %vm329_vm1, %v4420_v55 }
 0x103   : > { %3819 = vmatmul.msk.bf16.gmra.mxu2 %vm329_vm1, %v929_v37  ;;  %v4980_v18 = vadd.f32 %v1656_v3, %v1433_v20  ;;  %4059 = vmatmul.msk.bf16.gmra.mxu0 %vm329_vm1, %v4488_v22  ;;  %v936_v46 = vrot.slane %v934_v33, 1 }
 0x104   : > { %3942 = vmatmul.msk.bf16.gmra.mxu3 %vm329_vm1, %v4474_v0 }
 0x105   : > { %v937_v55 = vsel %vm837_vm2, %v932_v7, %v936_v46 }
 0x106   : > { %v1051_v47 = vpop.f32.mrf.mxu2 }
 0x107   : > { %v1130_v50 = vadd.f32 %v1051_v47, %v638_v62  ;;  %v639_v54 = vpop.f32.mrf.mxu1  ;;  %v4996_v37 = vpop.f32.mrf.mxu3 }
 0x108   : > { %v1661_v5 = vpop.f32.mrf.mxu0  ;;  %v640_v9 = vadd.f32 %v639_v54, %v4883_v53  ;;  %v4457_v53 = vld [vmem:[%s4727_s25 + $0x68] sm:$0xff] }
 0x109   : > { %v1434_v60 = vadd.f32 %v4938_v51, %v1130_v50  ;;  %v938_v50 = vshrl.u32 %v4456_v36, 16  ;;  %v4422_v36 = vld [vmem:[%s4727_s25 + $0x60] sm:$0xff] }
 0x10b   : > { %v4990_v3 = vadd.f32 %v1659_v43, %v1434_v60  ;;  %v4475_v60 = vld [vmem:[%s4727_s25 + $0x198] sm:$0xff]  ;;  %v940_v0 = vor.u32 %v938_v50, %v936_v46 }
 0x10e   : > { %v1053_v17 = vpop.f32.mrf.mxu2 }
 0x10f   : > { %v1131_v13 = vadd.f32 %v1053_v17, %v640_v9  ;;  %v642_v27 = vpop.f32.mrf.mxu1  ;;  %v5006_v54 = vpop.f32.mrf.mxu3 }
 0x110   : > { %v1664_v22 = vpop.f32.mrf.mxu0  ;;  %v643_v20 = vadd.f32 %v642_v27, %v4894_v63  ;;  %v4490_v27 = vld [vmem:[%s4727_s25 + $0x21c] sm:$0xff] }
 0x111   : > { %v1435_v51 = vadd.f32 %v4945_v4, %v1131_v13  ;;  %v942_v4 = vshll.u32 %v4457_v53, 16 }
 0x112   : > { %3734 = vmatmul.msk.bf16.gmra.mxu1 %vm329_vm1, %v4421_v19 }
 0x113   : > { %3820 = vmatmul.msk.bf16.gmra.mxu2 %vm329_vm1, %v937_v55  ;;  %v5001_v29 = vadd.f32 %v1661_v5, %v1435_v51  ;;  %4060 = vmatmul.msk.bf16.gmra.mxu0 %vm329_vm1, %v4489_v30  ;;  %v944_v63 = vrot.slane %v942_v4, 1 }
 0x114   : > { %3943 = vmatmul.msk.bf16.gmra.mxu3 %vm329_vm1, %v4475_v60 }
 0x115   : > { %v945_v19 = vsel %vm837_vm2, %v940_v0, %v944_v63 }
 0x116   : > { %v1056_v43 = vpop.f32.mrf.mxu2 }
 0x117   : > { %v1132_v62 = vadd.f32 %v1056_v43, %v643_v20  ;;  %v644_v47 = vpop.f32.mrf.mxu1  ;;  %v5017_v55 = vpop.f32.mrf.mxu3 }
 0x118   : > { %v1666_v33 = vpop.f32.mrf.mxu0  ;;  %v645_v7 = vadd.f32 %v644_v47, %v4904_v6  ;;  %v4458_v6 = vld [vmem:[%s4727_s25 + $0x70] sm:$0xff] }
 0x119   : > { %v1436_v56 = vadd.f32 %v4955_v44, %v1132_v62  ;;  %v946_v62 = vshrl.u32 %v4457_v53, 16  ;;  %v4423_v53 = vld [vmem:[%s4727_s25 + $0x68] sm:$0xff] }
 0x11b   : > { %v5011_v5 = vadd.f32 %v1664_v22, %v1436_v56  ;;  %v4476_v56 = vld [vmem:[%s4727_s25 + $0x1a0] sm:$0xff]  ;;  %v948_v60 = vor.u32 %v946_v62, %v944_v63 }
 0x11e   : > { %v1058_v9 = vpop.f32.mrf.mxu2 }
 0x11f   : > { %v1133_v17 = vadd.f32 %v1058_v9, %v645_v7  ;;  %v647_v13 = vpop.f32.mrf.mxu1  ;;  %v5027_v47 = vpop.f32.mrf.mxu3 }
 0x120   : > { %v1669_v30 = vpop.f32.mrf.mxu0  ;;  %v648_v51 = vadd.f32 %v647_v13, %v4917_v21  ;;  %v4491_v13 = vld [vmem:[%s4727_s25 + $0x224] sm:$0xff] }
 0x121   : > { %v1437_v44 = vadd.f32 %v4964_v61, %v1133_v17  ;;  %v950_v61 = vshll.u32 %v4458_v6, 16 }
 0x122   : > { %3735 = vmatmul.msk.bf16.gmra.mxu1 %vm329_vm1, %v4422_v36 }
 0x123   : > { %3821 = vmatmul.msk.bf16.gmra.mxu2 %vm329_vm1, %v945_v19  ;;  %v5022_v46 = vadd.f32 %v1666_v33, %v1437_v44  ;;  %4061 = vmatmul.msk.bf16.gmra.mxu0 %vm329_vm1, %v4490_v27  ;;  %v952_v21 = vrot.slane %v950_v61, 1 }
 0x124   : > { %3944 = vmatmul.msk.bf16.gmra.mxu3 %vm329_vm1, %v4476_v56 }
 0x125   : > { %v953_v36 = vsel %vm837_vm2, %v948_v60, %v952_v21 }
 0x126   : > { %v1061_v22 = vpop.f32.mrf.mxu2 }
 0x127   : > { %v1134_v20 = vadd.f32 %v1061_v22, %v648_v51  ;;  %v649_v43 = vpop.f32.mrf.mxu1  ;;  %v5038_v19 = vpop.f32.mrf.mxu3 }
 0x128   : > { %v1671_v4 = vpop.f32.mrf.mxu0  ;;  %v650_v0 = vadd.f32 %v649_v43, %v4929_v34  ;;  %v4459_v34 = vld [vmem:[%s4727_s25 + $0x78] sm:$0xff] }
 0x129   : > { %v1438_v50 = vadd.f32 %v4975_v38, %v1134_v20  ;;  %v954_v20 = vshrl.u32 %v4458_v6, 16 }
 0x12b   : > { %v5032_v33 = vadd.f32 %v1669_v30, %v1438_v50  ;;  %v4477_v50 = vld [vmem:[%s4727_s25 + $0x1a8] sm:$0xff]  ;;  %v956_v56 = vor.u32 %v954_v20, %v952_v21  ;;  %v962_v20 = vshrl.u32 %v4459_v34, 16 }
 0x12e   : > { %v1063_v7 = vpop.f32.mrf.mxu2 }
 0x12f   : > { %v1135_v9 = vadd.f32 %v1063_v7, %v650_v0  ;;  %v652_v17 = vpop.f32.mrf.mxu1  ;;  %v5048_v43 = vpop.f32.mrf.mxu3  ;;  %v4424_v7 = vld [vmem:[%s4727_s25 + $0x70] sm:$0xff] }
 0x130   : > { %v1674_v27 = vpop.f32.mrf.mxu0  ;;  %v653_v44 = vadd.f32 %v652_v17, %v4819_v10 }
 0x131   : > { %v1439_v38 = vadd.f32 %v4985_v58, %v1135_v9  ;;  %v958_v58 = vshll.u32 %v4459_v34, 16 }
 0x132   : > { %3736 = vmatmul.msk.bf16.gmra.mxu1 %vm329_vm1, %v4423_v53 }
 0x133   : > { %3822 = vmatmul.msk.bf16.gmra.mxu2 %vm329_vm1, %v953_v36  ;;  %v5043_v63 = vadd.f32 %v1671_v4, %v1439_v38  ;;  %4062 = vmatmul.msk.bf16.gmra.mxu0 %vm329_vm1, %v4491_v13  ;;  %v960_v10 = vrot.slane %v958_v58, 1  ;;  %v4528_v38 = vld [vmem:[%s4727_s25 + $0x9c] sm:$0xff] }
 0x134   : > { %3945 = vmatmul.msk.bf16.gmra.mxu3 %vm329_vm1, %v4477_v50  ;;  %v2788_v50 = vshrl.u32 %v4528_v38, 16 }
 0x135   : > { %v961_v53 = vsel %vm837_vm2, %v956_v56, %v960_v10 }
 0x136   : > { %v1066_v30 = vpop.f32.mrf.mxu2 }
 0x137   : > { %v1136_v51 = vadd.f32 %v1066_v30, %v653_v44  ;;  %v654_v22 = vpop.f32.mrf.mxu1  ;;  %v5059_v17 = vpop.f32.mrf.mxu3  ;;  %v4529_v30 = vld [vmem:[%s4727_s25 + $0xa4] sm:$0xff] }
 0x138   : > { %v1676_v61 = vpop.f32.mrf.mxu0  ;;  %v655_v60 = vadd.f32 %v654_v22, %v4831_v16  ;;  %v4460_v16 = vld [vmem:[%s4727_s25 + $0x80] sm:$0xff]  ;;  %v2795_v56 = vshll.u32 %v4529_v30, 16 }
 0x139   : > { %v1440_v62 = vadd.f32 %v4996_v37, %v1136_v51  ;;  %v4492_v37 = vld [vmem:[%s4727_s25 + $0x22c] sm:$0xff]  ;;  %v2790_v51 = vshll.u32 %v4528_v38, 16  ;;  %v966_v58 = vshll.u32 %v4460_v16, 16 }
 0x13b   : > { %v5053_v4 = vadd.f32 %v1674_v27, %v1440_v62 }
 0x13d   : > { %5661 = vst [vmem:[#allocation2_spill] sm:$0xff] %v5053_v4 }
 0x13e   : > { %v1068_v0 = vpop.f32.mrf.mxu2 }
 0x13f   : > { %v1137_v6 = vadd.f32 %v1068_v0, %v655_v60  ;;  %v657_v9 = vpop.f32.mrf.mxu1  ;;  %v5071_v62 = vpop.f32.mrf.mxu3 }
 0x140   : > { %v1679_v13 = vpop.f32.mrf.mxu0  ;;  %v658_v27 = vadd.f32 %v657_v9, %v4840_v25  ;;  %v2797_v25 = vrot.slane %v2795_v56, 1  ;;  %v964_v9 = vor.u32 %v962_v20, %v960_v10  ;;  %v4530_v56 = vld [vmem:[%s4727_s25 + $0xac] sm:$0xff] }
 0x141   : > { %v1441_v36 = vadd.f32 %v5006_v54, %v1137_v6 }
 0x142   : > { %3737 = vmatmul.msk.bf16.gmra.mxu1 %vm329_vm1, %v4424_v7 }
 0x143   : > { %3823 = vmatmul.msk.bf16.gmra.mxu2 %vm329_vm1, %v961_v53  ;;  %v5064_v21 = vadd.f32 %v1676_v61, %v1441_v36  ;;  %4063 = vmatmul.msk.bf16.gmra.mxu0 %vm329_vm1, %v4492_v37  ;;  %v2792_v61 = vrot.slane %v2790_v51, 1  ;;  %v968_v53 = vrot.slane %v966_v58, 1  ;;  %v746_v36 = vld [vmem:[%s4727_s25 + $0x88] sm:$0x1] }
 0x145   : > { %5662 = vst [vmem:[#allocation3_spill] sm:$0xff] %v5064_v21  ;;  %v2793_v6 = vor.u32 %v2792_v61, %v2788_v50  ;;  %v969_v51 = vsel %vm837_vm2, %v964_v9, %v968_v53  ;;  %v818_v50 = vunpack.c.l.b16 %v746_v36  ;;  %v970_v9 = vshrl.u32 %v4460_v16, 16 }
 0x146   : > { %v1071_v44 = vpop.f32.mrf.mxu2  ;;  %v2803_v36 = vshll.u32 %v4530_v56, 16 }
 0x147   : > { %v1138_v22 = vadd.f32 %v1071_v44, %v658_v27  ;;  %v659_v54 = vpop.f32.mrf.mxu1  ;;  %v2798_v34 = vsel %vm837_vm2, %v2793_v6, %v2797_v25  ;;  %v4425_v44 = vld [vmem:[%s4727_s25 + $0x78] sm:$0xff] }
 0x148   : > { %v1681_v0 = vpop.f32.mrf.mxu0  ;;  %v660_v37 = vadd.f32 %v659_v54, %v4854_v32  ;;  %4373 = vmatmul.msk.bf16.vlgmr.msra.gmra.mxu3 %vm329_vm1, %v2798_v34  ;;  %v836_v54 = vpack.c.b16 %v818_v50, %v818_v50 }
 0x149   : > { %v1442_v60 = vadd.f32 %v5017_v55, %v1138_v22  ;;  %v4493_v22 = vld [vmem:[%s4727_s25 + $0x234] sm:$0xff] }
 0x14a   : > { %v974_v34 = vshll.u32 %v836_v54, 16 }
 0x14b   : > { %v5074_v7 = vadd.f32 %v1679_v13, %v1442_v60  ;;  %v5083_v13 = vpop.f32.mrf.mxu3 }
 0x14d   : > { %5663 = vst [vmem:[#allocation4_spill] sm:$0xff] %v5074_v7 }
 0x14e   : > { %v1073_v38 = vpop.f32.mrf.mxu2 }
 0x14f   : > { %v1139_v27 = vadd.f32 %v1073_v38, %v660_v37  ;;  %v662_v55 = vpop.f32.mrf.mxu1  ;;  %v2799_v37 = vshrl.u32 %v4529_v30, 16 }
 0x150   : > { %v1684_v20 = vpop.f32.mrf.mxu0  ;;  %v663_v58 = vadd.f32 %v662_v55, %v4865_v42  ;;  %v972_v42 = vor.u32 %v970_v9, %v968_v53  ;;  %v976_v55 = vrot.slane %v974_v34, 1  ;;  %v5118_v34 = vld [vmem:[%s4727_s25 + $0x10] sm:$0xff] }
 0x151   : > { %v1443_v10 = vadd.f32 %v5027_v47, %v1139_v27  ;;  %v2801_v27 = vor.u32 %v2799_v37, %v2797_v25 }
 0x152   : > { %3738 = vmatmul.msk.bf16.gmra.mxu1 %vm329_vm1, %v4425_v44  ;;  %v2805_v44 = vrot.slane %v2803_v36, 1  ;;  %v977_v25 = vsel %vm837_vm2, %v972_v42, %v976_v55  ;;  %v4636_v42 = vld [vmem:[%s4727_s25 + $0x8] sm:$0xe]  ;;  %v4531_v55 = vld [vmem:[%s4727_s25 + $0xb4] sm:$0xff] }
 0x153   : > { %3824 = vmatmul.msk.bf16.gmra.mxu2 %vm329_vm1, %v969_v51  ;;  %v5088_v32 = vadd.f32 %v1681_v0, %v1443_v10  ;;  %4064 = vmatmul.msk.bf16.gmra.mxu0 %vm329_vm1, %v4493_v22  ;;  %v5093_v47 = vpop.f32.mrf.mxu3  ;;  %v4495_v10 = vld [vmem:[%s4727_s25 + $0x128] sm:$0xff] }
 0x154   : > { %v2806_v16 = vsel %vm837_vm2, %v2801_v27, %v2805_v44  ;;  %v4635_v27 = vld [vmem:[%s4727_s25 + $0x8] sm:$0xf0] }
 0x155   : > { %5664 = vst [vmem:[#allocation5_spill] sm:$0xff] %v5088_v32 }
 0x156   : > { %v1076_v61 = vpop.f32.mrf.mxu2 }
 0x157   : > { %v1140_v60 = vadd.f32 %v1076_v61, %v663_v58  ;;  %v664_v6 = vpop.f32.mrf.mxu1 }
 0x158   : > { %v1686_v38 = vpop.f32.mrf.mxu0  ;;  %v665_v22 = vadd.f32 %v664_v6, %v4879_v49  ;;  %4374 = vmatmul.msk.bf16.gmra.mxu3 %vm329_vm1, %v2806_v16  ;;  %v4634_v49 = vld [vmem:[%s4727_s25 + $0x8] sm:$0xff]   ;;  %v1896_v6 = vshll.u32 %v4495_v10, 16 }
 0x159   : > { %v1444_v0 = vadd.f32 %v5038_v19, %v1140_v60  ;;  %v4426_v19 = vld [vmem:[%s4727_s25 + $0x80] sm:$0xff]  ;;  %v5112_v60 = vld [vmem:[%s4727_s25 + $0x130] sm:$0xff]  ;;  %v2343_v37 = vshll.u32 %v4634_v49, 16 }
 0x15b   : > { %v5096_v51 = vadd.f32 %v1684_v20, %v1444_v0  ;;  %v4494_v20 = vld [vmem:[%s4727_s25 + $0x23c] sm:$0xff]  ;;  %v5105_v58 = vpop.f32.mrf.mxu3  ;;  %v1894_v0 = vshrl.u32 %v4495_v10, 16  ;;  %v4637_v10 = vor.u32 %v4636_v42, %v4635_v27 }
 0x15d   : > { %5665 = vst [vmem:[#allocation6_spill] sm:$0xff] %v5096_v51  ;;  %v3116_v4 = vrot.slane %v4637_v10, 1 }
 0x15e   : > { %v1078_v30 = vpop.f32.mrf.mxu2 }
 0x15f   : > { %v1141_v50 = vadd.f32 %v1078_v30, %v665_v22  ;;  %v667_v54 = vpop.f32.mrf.mxu1  ;;  %v1898_v22 = vrot.slane %v1896_v6, 1  ;;  %v1901_v30 = vshll.u32 %v5112_v60, 16 }
 0x160   : > { %v1689_v61 = vpop.f32.mrf.mxu0  ;;  %v668_v36 = vadd.f32 %v667_v54, %v4890_v59 }
 0x161   : > { %v1445_v53 = vadd.f32 %v5048_v43, %v1141_v50  ;;  %v2341_v50 = vshrl.u32 %v4634_v49, 16  ;;  %v1899_v7 = vor.u32 %v1898_v22, %v1894_v0  ;;  %v1903_v6 = vrot.slane %v1901_v30, 1 }
 0x162   : > { %3739 = vmatmul.msk.bf16.gmra.mxu1 %vm329_vm1, %v4426_v19 }
 0x163   : > { %3825 = vmatmul.msk.bf16.gmra.mxu2 %vm329_vm1, %v977_v25  ;;  %v5114_v9 = vadd.f32 %v1686_v38, %v1445_v53  ;;  %4065 = vmatmul.msk.bf16.gmra.mxu0 %vm329_vm1, %v4494_v20  ;;  %v2345_v38 = vrot.slane %v2343_v37, 1  ;;  %v2348_v25 = vshll.u32 %v5118_v34, 16  ;;  %v5126_v20 = vpop.f32.mrf.mxu3  ;;  %v2807_v53 = vshrl.u32 %v4530_v56, 16 }
 0x164   : > { %v3117_v56 = vrot.slane %v5118_v34, 1 }
 0x165   : > { %5666 = vst [vmem:[#allocation7_spill] sm:$0xff] %v5114_v9  ;;  %v2811_v9 = vshll.u32 %v4531_v55, 16  ;;  %v2809_v51 = vor.u32 %v2807_v53, %v2805_v44  ;;  %v2350_v49 = vrot.slane %v2348_v25, 1  ;;  %v2352_v25 = vshrl.u32 %v5118_v34, 16 }
 0x166   : > { %v1081_v43 = vpop.f32.mrf.mxu2  ;;  %v3118_v42 = vsel %vm3115_vm3, %v3116_v4, %v3117_v56 }
 0x167   : > { %v1142_v16 = vadd.f32 %v1081_v43, %v668_v36  ;;  %v669_v19 = vpop.f32.mrf.mxu1  ;;  %v2813_v32 = vrot.slane %v2811_v9, 1  ;;  %v2346_v43 = vor.u32 %v2345_v38, %v2341_v50  ;;  %v1904_v9 = vsel %vm837_vm2, %v1899_v7, %v1903_v6  ;;  %v4532_v50 = vld [vmem:[%s4727_s25 + $0xbc] sm:$0xff] }
 0x168   : > { %v1691_v54 = vpop.f32.mrf.mxu0  ;;  %v670_v21 = vadd.f32 %v669_v19, %v4902_v2  ;;  %v2819_v10 = vshll.u32 %v4532_v50, 16 }
 0x169   : > { %v1446_v59 = vadd.f32 %v5059_v17, %v1142_v16  ;;  %v2814_v37 = vsel %vm837_vm2, %v2809_v51, %v2813_v32  ;;  %v2351_v0 = vsel %vm837_vm2, %v2346_v43, %v2350_v49  ;;  %v4497_v16 = vld [vmem:[%s4727_s25 + $0x138] sm:$0xff] }
 0x16a   : > { %4375 = vmatmul.msk.bf16.gmra.mxu3 %vm329_vm1, %v2814_v37  ;;  %v1909_v38 = vshll.u32 %v4497_v16, 16 }
 0x16b   : > { %v5129_v36 = vadd.f32 %v1689_v61, %v1446_v59  ;;  %v5137_v27 = vpop.f32.mrf.mxu3 }
 0x16e   : > { %v1083_v17 = vpop.f32.mrf.mxu2 }
 0x16f   : > { %v1143_v44 = vadd.f32 %v1083_v17, %v670_v21  ;;  %v672_v61 = vpop.f32.mrf.mxu1  ;;  %v5148_v21 = vld [vmem:[%s4727_s25 + $0x18] sm:$0xff] }
 0x170   : > { %v1694_v51 = vpop.f32.mrf.mxu0  ;;  %v673_v7 = vadd.f32 %v672_v61, %v4911_v14  ;;  %v2356_v53 = vshll.u32 %v5148_v21, 16  ;;  %v2821_v14 = vrot.slane %v2819_v10, 1 }
 0x171   : > { %v1447_v2 = vadd.f32 %v5071_v62, %v1143_v44  ;;  %v1905_v62 = vshrl.u32 %v5112_v60, 16  ;;  %v2354_v60 = vor.u32 %v2352_v25, %v2350_v49 }
 0x172   : > { %4170 = vmatmul.msk.bf16.vlgmr.msra.gmra.mxu1 %vm329_vm1, %v1904_v9  ;;  %v1911_v9 = vrot.slane %v1909_v38, 1  ;;  %v5177_v38 = vld [vmem:[%s4727_s25 + $0x20] sm:$0xff] }
 0x173   : > { %4252 = vmatmul.msk.bf16.vlgmr.msra.gmra.mxu2 %vm329_vm1, %v2351_v0  ;;  %v5144_v22 = vadd.f32 %v1691_v54, %v1447_v2  ;;  %4391 = vmatmul.msk.bf16.vlgmr.msra.gmra.mxu0 %vm329_vm1, %v3118_v42  ;;  %v5155_v59 = vpop.f32.mrf.mxu3  ;;  %v2815_v54 = vshrl.u32 %v4531_v55, 16  ;;  %v1907_v44 = vor.u32 %v1905_v62, %v1903_v6  ;;  %v2358_v0 = vrot.slane %v2356_v53, 1  ;;  %v4533_v53 = vld [vmem:[%s4727_s25 + $0xc4] sm:$0xff] }
 0x174   : > { %v3119_v42 = vrot.slane %v5148_v21, 1 }
 0x175   : > { %v2817_v17 = vor.u32 %v2815_v54, %v2813_v32  ;;  %v1912_v6 = vsel %vm837_vm2, %v1907_v44, %v1911_v9 }
 0x176   : > { %v1086_v30 = vpop.f32.mrf.mxu2 }
 0x177   : > { %v1144_v19 = vadd.f32 %v1086_v30, %v673_v7  ;;  %v674_v4 = vpop.f32.mrf.mxu1  ;;  %v2822_v34 = vsel %vm837_vm2, %v2817_v17, %v2821_v14  ;;  %v2364_v17 = vshll.u32 %v5177_v38, 16 }
 0x178   : > { %v1696_v37 = vpop.f32.mrf.mxu0  ;;  %v675_v2 = vadd.f32 %v674_v4, %v4925_v26  ;;  %v3120_v26 = vsel %vm3115_vm3, %v3117_v56, %v3119_v42  ;;  %v2360_v56 = vshrl.u32 %v5148_v21, 16 }
 0x179   : > { %v1448_v43 = vadd.f32 %v5083_v13, %v1144_v19  ;;  %v4498_v19 = vld [vmem:[%s4727_s25 + $0x140] sm:$0xff] }
 0x17a   : > { %4376 = vmatmul.msk.bf16.gmra.mxu3 %vm329_vm1, %v2822_v34  ;;  %v1917_v10 = vshll.u32 %v4498_v19, 16 }
 0x17b   : > { %v5158_v61 = vadd.f32 %v1694_v51, %v1448_v43  ;;  %v2359_v51 = vsel %vm837_vm2, %v2354_v60, %v2358_v0  ;;  %v5166_v49 = vpop.f32.mrf.mxu3  ;;  %v2827_v60 = vshll.u32 %v4533_v53, 16 }
 0x17e   : > { %v1088_v13 = vpop.f32.mrf.mxu2 }
 0x17f   : > { %v1145_v55 = vadd.f32 %v1088_v13, %v675_v2  ;;  %v677_v32 = vpop.f32.mrf.mxu1 }
 0x180   : > { %v1699_v30 = vpop.f32.mrf.mxu0  ;;  %v678_v4 = vadd.f32 %v677_v32, %v4829_v15 }
 0x181   : > { %v1449_v7 = vadd.f32 %v5093_v47, %v1145_v55  ;;  %v1913_v47 = vshrl.u32 %v4497_v16, 16  ;;  %v2829_v55 = vrot.slane %v2827_v60, 1  ;;  %v2362_v16 = vor.u32 %v2360_v56, %v2358_v0 }
 0x182   : > { %4171 = vmatmul.msk.bf16.gmra.mxu1 %vm329_vm1, %v1912_v6  ;;  %v1919_v6 = vrot.slane %v1917_v10, 1  ;;  %v5205_v10 = vld [vmem:[%s4727_s25 + $0x28] sm:$0xff] }
 0x183   : > { %4253 = vmatmul.msk.bf16.gmra.mxu2 %vm329_vm1, %v2359_v51  ;;  %v5173_v62 = vadd.f32 %v1696_v37, %v1449_v7  ;;  %4392 = vmatmul.msk.bf16.gmra.mxu0 %vm329_vm1, %v3120_v26  ;;  %v5183_v44 = vpop.f32.mrf.mxu3  ;;  %v2823_v37 = vshrl.u32 %v4532_v50, 16  ;;  %v1915_v15 = vor.u32 %v1913_v47, %v1911_v9  ;;  %v2366_v51 = vrot.slane %v2364_v17, 1  ;;  %v4534_v17 = vld [vmem:[%s4727_s25 + $0xcc] sm:$0xff] }
 0x184   : > { %v3121_v26 = vrot.slane %v5177_v38, 1 }
 0x185   : > { %v2825_v13 = vor.u32 %v2823_v37, %v2821_v14  ;;  %v1920_v9 = vsel %vm837_vm2, %v1915_v15, %v1919_v6 }
 0x186   : > { %v1091_v25 = vpop.f32.mrf.mxu2 }
 0x187   : > { %v1146_v54 = vadd.f32 %v1091_v25, %v678_v4  ;;  %v679_v43 = vpop.f32.mrf.mxu1  ;;  %v2830_v21 = vsel %vm837_vm2, %v2825_v13, %v2829_v55  ;;  %v2372_v13 = vshll.u32 %v5205_v10, 16 }
 0x188   : > { %v1701_v2 = vpop.f32.mrf.mxu0  ;;  %v680_v7 = vadd.f32 %v679_v43, %v4837_v23  ;;  %v3122_v23 = vsel %vm3115_vm3, %v3119_v42, %v3121_v26  ;;  %v2368_v42 = vshrl.u32 %v5177_v38, 16 }
 0x189   : > { %v1450_v34 = vadd.f32 %v5105_v58, %v1146_v54  ;;  %v4499_v54 = vld [vmem:[%s4727_s25 + $0x148] sm:$0xff] }
 0x18a   : > { %4377 = vmatmul.msk.bf16.gmra.mxu3 %vm329_vm1, %v2830_v21  ;;  %v1925_v60 = vshll.u32 %v4499_v54, 16 }
 0x18b   : > { %v5186_v32 = vadd.f32 %v1699_v30, %v1450_v34  ;;  %v2367_v30 = vsel %vm837_vm2, %v2362_v16, %v2366_v51  ;;  %v5194_v0 = vpop.f32.mrf.mxu3  ;;  %v2835_v16 = vshll.u32 %v4534_v17, 16 }
 0x18e   : > { %v1093_v58 = vpop.f32.mrf.mxu2 }
 0x18f   : > { %v1147_v50 = vadd.f32 %v1093_v58, %v680_v7  ;;  %v682_v14 = vpop.f32.mrf.mxu1 }
 0x190   : > { %v1704_v25 = vpop.f32.mrf.mxu0  ;;  %v683_v43 = vadd.f32 %v682_v14, %v4852_v31 }
 0x191   : > { %v1451_v4 = vadd.f32 %v5126_v20, %v1147_v50  ;;  %v1921_v20 = vshrl.u32 %v4498_v19, 16  ;;  %v2837_v50 = vrot.slane %v2835_v16, 1  ;;  %v2370_v19 = vor.u32 %v2368_v42, %v2366_v51 }
 0x192   : > { %4172 = vmatmul.msk.bf16.gmra.mxu1 %vm329_vm1, %v1920_v9  ;;  %v1927_v9 = vrot.slane %v1925_v60, 1  ;;  %v5233_v60 = vld [vmem:[%s4727_s25 + $0x30] sm:$0xff] }
 0x193   : > { %4254 = vmatmul.msk.bf16.gmra.mxu2 %vm329_vm1, %v2367_v30  ;;  %v5201_v47 = vadd.f32 %v1701_v2, %v1451_v4  ;;  %4393 = vmatmul.msk.bf16.gmra.mxu0 %vm329_vm1, %v3122_v23  ;;  %v5211_v15 = vpop.f32.mrf.mxu3  ;;  %v2831_v2 = vshrl.u32 %v4533_v53, 16  ;;  %v1923_v31 = vor.u32 %v1921_v20, %v1919_v6  ;;  %v2374_v30 = vrot.slane %v2372_v13, 1  ;;  %v4535_v13 = vld [vmem:[%s4727_s25 + $0xd4] sm:$0xff] }
 0x194   : > { %v3123_v23 = vrot.slane %v5205_v10, 1 }
 0x195   : > { %v2833_v58 = vor.u32 %v2831_v2, %v2829_v55  ;;  %v1928_v6 = vsel %vm837_vm2, %v1923_v31, %v1927_v9 }
 0x196   : > { %v1096_v56 = vpop.f32.mrf.mxu2 }
 0x197   : > { %v1148_v37 = vadd.f32 %v1096_v56, %v683_v43  ;;  %v684_v34 = vpop.f32.mrf.mxu1  ;;  %v2838_v38 = vsel %vm837_vm2, %v2833_v58, %v2837_v50  ;;  %v2380_v58 = vshll.u32 %v5233_v60, 16 }
 0x198   : > { %v1706_v7 = vpop.f32.mrf.mxu0  ;;  %v685_v4 = vadd.f32 %v684_v34, %v4862_v40  ;;  %v3124_v40 = vsel %vm3115_vm3, %v3121_v26, %v3123_v23  ;;  %v2376_v26 = vshrl.u32 %v5205_v10, 16 }
 0x199   : > { %v1452_v21 = vadd.f32 %v5137_v27, %v1148_v37  ;;  %v4500_v37 = vld [vmem:[%s4727_s25 + $0x150] sm:$0xff] }
 0x19a   : > { %4378 = vmatmul.msk.bf16.gmra.mxu3 %vm329_vm1, %v2838_v38  ;;  %v1933_v16 = vshll.u32 %v4500_v37, 16 }
 0x19b   : > { %v5214_v14 = vadd.f32 %v1704_v25, %v1452_v21  ;;  %v2375_v25 = vsel %vm837_vm2, %v2370_v19, %v2374_v30  ;;  %v5222_v51 = vpop.f32.mrf.mxu3  ;;  %v2843_v19 = vshll.u32 %v4535_v13, 16 }
 0x19e   : > { %v1098_v27 = vpop.f32.mrf.mxu2 }
 0x19f   : > { %v1149_v53 = vadd.f32 %v1098_v27, %v685_v4  ;;  %v687_v55 = vpop.f32.mrf.mxu1 }
 0x1a0   : > { %v1709_v56 = vpop.f32.mrf.mxu0  ;;  %v688_v34 = vadd.f32 %v687_v55, %v4877_v48 }
 0x1a1   : > { %v1453_v43 = vadd.f32 %v5155_v59, %v1149_v53  ;;  %v1929_v59 = vshrl.u32 %v4499_v54, 16  ;;  %v2845_v53 = vrot.slane %v2843_v19, 1  ;;  %v2378_v54 = vor.u32 %v2376_v26, %v2374_v30 }
 0x1a2   : > { %4173 = vmatmul.msk.bf16.gmra.mxu1 %vm329_vm1, %v1928_v6  ;;  %v1935_v6 = vrot.slane %v1933_v16, 1  ;;  %v5261_v16 = vld [vmem:[%s4727_s25 + $0x38] sm:$0xff] }
 0x1a3   : > { %4255 = vmatmul.msk.bf16.gmra.mxu2 %vm329_vm1, %v2375_v25  ;;  %v5229_v20 = vadd.f32 %v1706_v7, %v1453_v43  ;;  %4394 = vmatmul.msk.bf16.gmra.mxu0 %vm329_vm1, %v3124_v40  ;;  %v5239_v31 = vpop.f32.mrf.mxu3  ;;  %v2839_v7 = vshrl.u32 %v4534_v17, 16  ;;  %v1931_v48 = vor.u32 %v1929_v59, %v1927_v9  ;;  %v2382_v25 = vrot.slane %v2380_v58, 1  ;;  %v4536_v58 = vld [vmem:[%s4727_s25 + $0xdc] sm:$0xff] }
 0x1a4   : > { %v3125_v40 = vrot.slane %v5233_v60, 1 }
 0x1a5   : > { %v2841_v27 = vor.u32 %v2839_v7, %v2837_v50  ;;  %v1936_v9 = vsel %vm837_vm2, %v1931_v48, %v1935_v6 }
 0x1a6   : > { %v1101_v42 = vpop.f32.mrf.mxu2 }
 0x1a7   : > { %v1150_v2 = vadd.f32 %v1101_v42, %v688_v34  ;;  %v689_v21 = vpop.f32.mrf.mxu1  ;;  %v2846_v10 = vsel %vm837_vm2, %v2841_v27, %v2845_v53  ;;  %v2388_v27 = vshll.u32 %v5261_v16, 16 }
 0x1a8   : > { %v1711_v4 = vpop.f32.mrf.mxu0  ;;  %v690_v43 = vadd.f32 %v689_v21, %v4887_v57  ;;  %v3126_v57 = vsel %vm3115_vm3, %v3123_v23, %v3125_v40  ;;  %v2384_v23 = vshrl.u32 %v5233_v60, 16 }
 0x1a9   : > { %v1454_v38 = vadd.f32 %v5166_v49, %v1150_v2  ;;  %v4501_v2 = vld [vmem:[%s4727_s25 + $0x158] sm:$0xff] }
 0x1aa   : > { %4379 = vmatmul.msk.bf16.gmra.mxu3 %vm329_vm1, %v2846_v10  ;;  %v1941_v19 = vshll.u32 %v4501_v2, 16 }
 0x1ab   : > { %v5242_v55 = vadd.f32 %v1709_v56, %v1454_v38  ;;  %v2383_v56 = vsel %vm837_vm2, %v2378_v54, %v2382_v25  ;;  %v5250_v30 = vpop.f32.mrf.mxu3  ;;  %v2851_v54 = vshll.u32 %v4536_v58, 16 }
 0x1ae   : > { %v1103_v49 = vpop.f32.mrf.mxu2 }
 0x1af   : > { %v1151_v17 = vadd.f32 %v1103_v49, %v690_v43  ;;  %v692_v50 = vpop.f32.mrf.mxu1 }
 0x1b0   : > { %v1714_v42 = vpop.f32.mrf.mxu0  ;;  %v693_v21 = vadd.f32 %v692_v50, %v4900_v1 }
 0x1b1   : > { %v1455_v34 = vadd.f32 %v5183_v44, %v1151_v17  ;;  %v1937_v44 = vshrl.u32 %v4500_v37, 16  ;;  %v2853_v17 = vrot.slane %v2851_v54, 1  ;;  %v2386_v37 = vor.u32 %v2384_v23, %v2382_v25 }
 0x1b2   : > { %4174 = vmatmul.msk.bf16.gmra.mxu1 %vm329_vm1, %v1936_v9  ;;  %v1943_v9 = vrot.slane %v1941_v19, 1  ;;  %v5289_v19 = vld [vmem:[%s4727_s25 + $0x40] sm:$0xff] }
 0x1b3   : > { %4256 = vmatmul.msk.bf16.gmra.mxu2 %vm329_vm1, %v2383_v56  ;;  %v5257_v59 = vadd.f32 %v1711_v4, %v1455_v34  ;;  %4395 = vmatmul.msk.bf16.gmra.mxu0 %vm329_vm1, %v3126_v57  ;;  %v5267_v48 = vpop.f32.mrf.mxu3  ;;  %v2847_v4 = vshrl.u32 %v4535_v13, 16  ;;  %v1939_v1 = vor.u32 %v1937_v44, %v1935_v6  ;;  %v2390_v56 = vrot.slane %v2388_v27, 1  ;;  %v4537_v27 = vld [vmem:[%s4727_s25 + $0xe4] sm:$0xff] }
 0x1b4   : > { %v3127_v57 = vrot.slane %v5261_v16, 1 }
 0x1b5   : > { %v2849_v49 = vor.u32 %v2847_v4, %v2845_v53  ;;  %v1944_v6 = vsel %vm837_vm2, %v1939_v1, %v1943_v9 }
 0x1b6   : > { %v1106_v26 = vpop.f32.mrf.mxu2 }
 0x1b7   : > { %v1152_v7 = vadd.f32 %v1106_v26, %v693_v21  ;;  %v694_v38 = vpop.f32.mrf.mxu1  ;;  %v2854_v60 = vsel %vm837_vm2, %v2849_v49, %v2853_v17  ;;  %v2396_v49 = vshll.u32 %v5289_v19, 16 }
 0x1b8   : > { %v1716_v43 = vpop.f32.mrf.mxu0  ;;  %v695_v34 = vadd.f32 %v694_v38, %v4908_v11  ;;  %v3128_v11 = vsel %vm3115_vm3, %v3125_v40, %v3127_v57  ;;  %v2392_v40 = vshrl.u32 %v5261_v16, 16 }
 0x1b9   : > { %v1456_v10 = vadd.f32 %v5194_v0, %v1152_v7  ;;  %v4502_v7 = vld [vmem:[%s4727_s25 + $0x160] sm:$0xff] }
 0x1ba   : > { %4380 = vmatmul.msk.bf16.gmra.mxu3 %vm329_vm1, %v2854_v60  ;;  %v1949_v54 = vshll.u32 %v4502_v7, 16 }
 0x1bb   : > { %v5270_v50 = vadd.f32 %v1714_v42, %v1456_v10  ;;  %v2391_v42 = vsel %vm837_vm2, %v2386_v37, %v2390_v56  ;;  %v5278_v25 = vpop.f32.mrf.mxu3  ;;  %v2859_v37 = vshll.u32 %v4537_v27, 16 }
 0x1be   : > { %v1108_v0 = vpop.f32.mrf.mxu2 }
 0x1bf   : > { %v1153_v13 = vadd.f32 %v1108_v0, %v695_v34  ;;  %v697_v53 = vpop.f32.mrf.mxu1 }
 0x1c0   : > { %v1719_v26 = vpop.f32.mrf.mxu0  ;;  %v698_v38 = vadd.f32 %v697_v53, %v4923_v24 }
 0x1c1   : > { %v1457_v21 = vadd.f32 %v5211_v15, %v1153_v13  ;;  %v1945_v15 = vshrl.u32 %v4501_v2, 16  ;;  %v2861_v13 = vrot.slane %v2859_v37, 1  ;;  %v2394_v2 = vor.u32 %v2392_v40, %v2390_v56 }
 0x1c2   : > { %4175 = vmatmul.msk.bf16.gmra.mxu1 %vm329_vm1, %v1944_v6  ;;  %v1951_v6 = vrot.slane %v1949_v54, 1  ;;  %v5317_v54 = vld [vmem:[%s4727_s25 + $0x48] sm:$0xff] }
 0x1c3   : > { %4257 = vmatmul.msk.bf16.gmra.mxu2 %vm329_vm1, %v2391_v42  ;;  %v5285_v44 = vadd.f32 %v1716_v43, %v1457_v21  ;;  %4396 = vmatmul.msk.bf16.gmra.mxu0 %vm329_vm1, %v3128_v11  ;;  %v5295_v1 = vpop.f32.mrf.mxu3  ;;  %v2855_v43 = vshrl.u32 %v4536_v58, 16  ;;  %v1947_v24 = vor.u32 %v1945_v15, %v1943_v9  ;;  %v2398_v42 = vrot.slane %v2396_v49, 1  ;;  %v4538_v49 = vld [vmem:[%s4727_s25 + $0xec] sm:$0xff] }
 0x1c4   : > { %v3129_v11 = vrot.slane %v5289_v19, 1 }
 0x1c5   : > { %v2857_v0 = vor.u32 %v2855_v43, %v2853_v17  ;;  %v1952_v9 = vsel %vm837_vm2, %v1947_v24, %v1951_v6 }
 0x1c6   : > { %v1111_v23 = vpop.f32.mrf.mxu2 }
 0x1c7   : > { %v1154_v4 = vadd.f32 %v1111_v23, %v698_v38  ;;  %v699_v10 = vpop.f32.mrf.mxu1  ;;  %v2862_v16 = vsel %vm837_vm2, %v2857_v0, %v2861_v13  ;;  %v2404_v0 = vshll.u32 %v5317_v54, 16 }
 0x1c8   : > { %v1721_v34 = vpop.f32.mrf.mxu0  ;;  %v700_v21 = vadd.f32 %v699_v10, %v4933_v41  ;;  %v3130_v41 = vsel %vm3115_vm3, %v3127_v57, %v3129_v11  ;;  %v2400_v57 = vshrl.u32 %v5289_v19, 16 }
 0x1c9   : > { %v1458_v60 = vadd.f32 %v5222_v51, %v1154_v4  ;;  %v4503_v4 = vld [vmem:[%s4727_s25 + $0x168] sm:$0xff] }
 0x1ca   : > { %4381 = vmatmul.msk.bf16.gmra.mxu3 %vm329_vm1, %v2862_v16  ;;  %v1957_v37 = vshll.u32 %v4503_v4, 16 }
 0x1cb   : > { %v5298_v53 = vadd.f32 %v1719_v26, %v1458_v60  ;;  %v2399_v26 = vsel %vm837_vm2, %v2394_v2, %v2398_v42  ;;  %v5306_v56 = vpop.f32.mrf.mxu3  ;;  %v2867_v2 = vshll.u32 %v4538_v49, 16 }
 0x1ce   : > { %v1113_v51 = vpop.f32.mrf.mxu2 }
 0x1cf   : > { %v1155_v58 = vadd.f32 %v1113_v51, %v700_v21  ;;  %v702_v17 = vpop.f32.mrf.mxu1 }
 0x1d0   : > { %v1724_v23 = vpop.f32.mrf.mxu0  ;;  %v703_v10 = vadd.f32 %v702_v17, %v4844_v28 }
 0x1d1   : > { %v1459_v38 = vadd.f32 %v5239_v31, %v1155_v58  ;;  %v1953_v31 = vshrl.u32 %v4502_v7, 16  ;;  %v2869_v58 = vrot.slane %v2867_v2, 1  ;;  %v2402_v7 = vor.u32 %v2400_v57, %v2398_v42 }
 0x1d2   : > { %4176 = vmatmul.msk.bf16.gmra.mxu1 %vm329_vm1, %v1952_v9  ;;  %v1959_v9 = vrot.slane %v1957_v37, 1  ;;  %v5345_v37 = vld [vmem:[%s4727_s25 + $0x50] sm:$0xff] }
 0x1d3   : > { %4258 = vmatmul.msk.bf16.gmra.mxu2 %vm329_vm1, %v2399_v26  ;;  %v5313_v15 = vadd.f32 %v1721_v34, %v1459_v38  ;;  %4397 = vmatmul.msk.bf16.gmra.mxu0 %vm329_vm1, %v3130_v41  ;;  %v5323_v24 = vpop.f32.mrf.mxu3  ;;  %v2863_v34 = vshrl.u32 %v4537_v27, 16  ;;  %v1955_v28 = vor.u32 %v1953_v31, %v1951_v6  ;;  %v2406_v26 = vrot.slane %v2404_v0, 1  ;;  %v4539_v0 = vld [vmem:[%s4727_s25 + $0xf4] sm:$0xff] }
 0x1d4   : > { %v3131_v41 = vrot.slane %v5317_v54, 1 }
 0x1d5   : > { %v2865_v51 = vor.u32 %v2863_v34, %v2861_v13  ;;  %v1960_v6 = vsel %vm837_vm2, %v1955_v28, %v1959_v9 }
 0x1d6   : > { %v1116_v40 = vpop.f32.mrf.mxu2 }
 0x1d7   : > { %v1156_v43 = vadd.f32 %v1116_v40, %v703_v10  ;;  %v704_v60 = vpop.f32.mrf.mxu1  ;;  %v2870_v19 = vsel %vm837_vm2, %v2865_v51, %v2869_v58  ;;  %v2412_v51 = vshll.u32 %v5345_v37, 16 }
 0x1d8   : > { %v1726_v21 = vpop.f32.mrf.mxu0  ;;  %v705_v38 = vadd.f32 %v704_v60, %v4856_v35  ;;  %v3132_v35 = vsel %vm3115_vm3, %v3129_v11, %v3131_v41  ;;  %v2408_v11 = vshrl.u32 %v5317_v54, 16 }
 0x1d9   : > { %v1460_v16 = vadd.f32 %v5250_v30, %v1156_v43  ;;  %v4504_v43 = vld [vmem:[%s4727_s25 + $0x170] sm:$0xff] }
 0x1da   : > { %4382 = vmatmul.msk.bf16.gmra.mxu3 %vm329_vm1, %v2870_v19  ;;  %v1965_v2 = vshll.u32 %v4504_v43, 16 }
 0x1db   : > { %v5326_v17 = vadd.f32 %v1724_v23, %v1460_v16  ;;  %v2407_v23 = vsel %vm837_vm2, %v2402_v7, %v2406_v26  ;;  %v5334_v42 = vpop.f32.mrf.mxu3  ;;  %v2875_v7 = vshll.u32 %v4539_v0, 16 }
 0x1de   : > { %v1118_v30 = vpop.f32.mrf.mxu2 }
 0x1df   : > { %v1157_v27 = vadd.f32 %v1118_v30, %v705_v38  ;;  %v707_v13 = vpop.f32.mrf.mxu1 }
 0x1e0   : > { %v1729_v40 = vpop.f32.mrf.mxu0  ;;  %v708_v60 = vadd.f32 %v707_v13, %v4869_v45 }
 0x1e1   : > { %v1461_v10 = vadd.f32 %v5267_v48, %v1157_v27  ;;  %v1961_v48 = vshrl.u32 %v4503_v4, 16  ;;  %v2877_v27 = vrot.slane %v2875_v7, 1  ;;  %v2410_v4 = vor.u32 %v2408_v11, %v2406_v26 }
 0x1e2   : > { %4177 = vmatmul.msk.bf16.gmra.mxu1 %vm329_vm1, %v1960_v6  ;;  %v1967_v6 = vrot.slane %v1965_v2, 1  ;;  %v5375_v2 = vld [vmem:[%s4727_s25 + $0x58] sm:$0xff] }
 0x1e3   : > { %4259 = vmatmul.msk.bf16.gmra.mxu2 %vm329_vm1, %v2407_v23  ;;  %v5341_v31 = vadd.f32 %v1726_v21, %v1461_v10  ;;  %4398 = vmatmul.msk.bf16.gmra.mxu0 %vm329_vm1, %v3132_v35  ;;  %v5351_v28 = vpop.f32.mrf.mxu3  ;;  %v2871_v21 = vshrl.u32 %v4538_v49, 16  ;;  %v1963_v45 = vor.u32 %v1961_v48, %v1959_v9  ;;  %v2414_v23 = vrot.slane %v2412_v51, 1  ;;  %v4540_v51 = vld [vmem:[%s4727_s25 + $0xfc] sm:$0xff] }
 0x1e4   : > { %v3133_v35 = vrot.slane %v5345_v37, 1 }
 0x1e5   : > { %v2873_v30 = vor.u32 %v2871_v21, %v2869_v58  ;;  %v1968_v9 = vsel %vm837_vm2, %v1963_v45, %v1967_v6  ;;  %v1969_v21 = vshrl.u32 %v4504_v43, 16 }
 0x1e6   : > { %v1121_v57 = vpop.f32.mrf.mxu2 }
 0x1e7   : > { %v1158_v34 = vadd.f32 %v1121_v57, %v708_v60  ;;  %v709_v16 = vpop.f32.mrf.mxu1  ;;  %v2878_v54 = vsel %vm837_vm2, %v2873_v30, %v2877_v27  ;;  %v2420_v30 = vshll.u32 %v5375_v2, 16 }
 0x1e8   : > { %v1731_v38 = vpop.f32.mrf.mxu0  ;;  %v710_v10 = vadd.f32 %v709_v16, %v4881_v52  ;;  %v3134_v52 = vsel %vm3115_vm3, %v3131_v41, %v3133_v35 }
 0x1e9   : > { %v1462_v19 = vadd.f32 %v5278_v25, %v1158_v34  ;;  %v5369_v34 = vld [vmem:[%s4727_s25 + $0x178] sm:$0xff]  ;;  %v2422_v43 = vrot.slane %v2420_v30, 1 }
 0x1ea   : > { %4383 = vmatmul.msk.bf16.gmra.mxu3 %vm329_vm1, %v2878_v54  ;;  %v1973_v41 = vshll.u32 %v5369_v34, 16 }
 0x1eb   : > { %v5354_v13 = vadd.f32 %v1729_v40, %v1462_v19  ;;  %v2415_v40 = vsel %vm837_vm2, %v2410_v4, %v2414_v23  ;;  %v2416_v19 = vshrl.u32 %v5345_v37, 16  ;;  %v2883_v4 = vshll.u32 %v4540_v51, 16 }
 0x1ec   : > { %v3135_v37 = vrot.slane %v5375_v2, 1 }
 0x1ed   : > { %v5362_v26 = vpop.f32.mrf.mxu3 }
 0x1ee   : > { %v1123_v25 = vpop.f32.mrf.mxu2 }
 0x1ef   : > { %v1159_v49 = vadd.f32 %v1123_v25, %v710_v10  ;;  %v2096_v58 = vpop.f32.mrf.mxu1  ;;  %v2885_v25 = vrot.slane %v2883_v4, 1  ;;  %v4541_v4 = vld [vmem:[%s4727_s25 + $0x104] sm:$0xff] }
 0x1f0   : > { %v3214_v57 = vpop.f32.mrf.mxu0  ;;  %v2181_v16 = vadd.f32 %v2096_v58, %v4949_v12  ;;  %v1975_v58 = vrot.slane %v1973_v41, 1 }
 0x1f1   : > { %v1463_v60 = vadd.f32 %v5295_v1, %v1159_v49  ;;  %v1971_v49 = vor.u32 %v1969_v21, %v1967_v6 }
 0x1f2   : > { %4178 = vmatmul.msk.bf16.gmra.mxu1 %vm329_vm1, %v1968_v9  ;;  %v2418_v9 = vor.u32 %v2416_v19, %v2414_v23  ;;  %v5409_v19 = vld [vmem:[%s4727_s25 + $0x60] sm:$0xff] }
 0x1f3   : > { %4260 = vmatmul.msk.bf16.gmra.mxu2 %vm329_vm1, %v2415_v40  ;;  %v5371_v48 = vadd.f32 %v1731_v38, %v1463_v60  ;;  %4399 = vmatmul.msk.bf16.gmra.mxu0 %vm329_vm1, %v3134_v52  ;;  %v2879_v38 = vshrl.u32 %v4539_v0, 16  ;;  %v1976_v23 = vsel %vm837_vm2, %v1971_v49, %v1975_v58 }
 0x1f5   : > { %v5382_v45 = vpop.f32.mrf.mxu3  ;;  %v2881_v10 = vor.u32 %v2879_v38, %v2877_v27 }
 0x1f6   : > { %v2543_v11 = vpop.f32.mrf.mxu2 }
 0x1f7   : > { %v2628_v1 = vadd.f32 %v2543_v11, %v2181_v16  ;;  %v2098_v7 = vpop.f32.mrf.mxu1  ;;  %v2886_v40 = vsel %vm837_vm2, %v2881_v10, %v2885_v25 }
 0x1f8   : > { %v3216_v54 = vpop.f32.mrf.mxu0  ;;  %v2182_v60 = vadd.f32 %v2098_v7, %v4959_v39  ;;  %v2423_v39 = vsel %vm837_vm2, %v2418_v9, %v2422_v43  ;;  %v5404_v7 = vld [vmem:[%s4727_s25 + $0x180] sm:$0xff] }
 0x1f9   : > { %v3075_v12 = vadd.f32 %v5306_v56, %v2628_v1  ;;  %v5392_v56 = vld [vmem:[%s5659_s2] ss:$0 sm:$0xff]  ;;  %v1981_v49 = vshll.u32 %v5404_v7, 16 }
 0x1fa   : > { %4384 = vmatmul.msk.bf16.gmra.mxu3 %vm329_vm1, %v2886_v40  ;;  %v2424_v40 = vshrl.u32 %v5375_v2, 16 }
 0x1fb   : > { %v3299_v52 = vadd.f32 %v3214_v57, %v3075_v12  ;;  %v3136_v57 = vsel %vm3115_vm3, %v3133_v35, %v3135_v37  ;;  %v1977_v35 = vshrl.u32 %v5369_v34, 16  ;;  %v2887_v34 = vshrl.u32 %v4540_v51, 16 }
 0x1fd   : > { %v5396_v16 = vpop.f32.mrf.mxu3  ;;  %v3337_v21 = vadd.f32 %v5392_v56, %v3299_v52 }
 0x1fe   : > { %v2545_v0 = vpop.f32.mrf.mxu2 }
 0x1ff   : > { %v2629_v27 = vadd.f32 %v2545_v0, %v2182_v60  ;;  %v2101_v6 = vpop.f32.mrf.mxu1  ;;  %v2891_v0 = vshll.u32 %v4541_v4, 16 }
 0x200   : > { %v3219_v1 = vpop.f32.mrf.mxu0 }
 0x201   : > { %v3076_v11 = vadd.f32 %v5323_v24, %v2629_v27  ;;  %v2183_v24 = vadd.f32 %v2101_v6, %v4969_v8  ;;  %v2428_v8 = vshll.u32 %v5409_v19, 16  ;;  %v2889_v6 = vor.u32 %v2887_v34, %v2885_v25  ;;  %v4542_v34 = vld [vmem:[%s4727_s25 + $0x10c] sm:$0xff] }
 0x202   : > { %4179 = vmatmul.msk.bf16.gmra.mxu1 %vm329_vm1, %v1976_v23  ;;  %v2893_v23 = vrot.slane %v2891_v0, 1 }
 0x203   : > { %v3300_v41 = vadd.f32 %v3216_v54, %v3076_v11  ;;  %4261 = vmatmul.msk.bf16.gmra.mxu2 %vm329_vm1, %v2423_v39  ;;  %4400 = vmatmul.msk.bf16.gmra.mxu0 %vm329_vm1, %v3136_v57  ;;  %v3371_v54 = vmax.f32 %v3337_v21, 0.0  ;;  %v1979_v11 = vor.u32 %v1977_v35, %v1975_v58  ;;  %v1983_v57 = vrot.slane %v1981_v49, 1 }
 0x204   : > { %v2426_v21 = vor.u32 %v2424_v40, %v2422_v43 }
 0x205   : > { %v3338_v30 = vadd.f32 %v5392_v56, %v3300_v41  ;;  %v5423_v60 = vpop.f32.mrf.mxu3  ;;  %v2430_v41 = vrot.slane %v2428_v8, 1 }
 0x206   : > { %v2548_v38 = vpop.f32.mrf.mxu2 }
 0x207   : > { %v3372_v10 = vmax.f32 %v3338_v30, 0.0  ;;  %v2630_v12 = vadd.f32 %v2548_v38, %v2183_v24  ;;  %v2103_v9 = vpop.f32.mrf.mxu1  ;;  %v2894_v30 = vsel %vm837_vm2, %v2889_v6, %v2893_v23  ;;  %v3137_v24 = vrot.slane %v5409_v19, 1 }
 0x208   : > { %v3221_v27 = vpop.f32.mrf.mxu0  ;;  %v2184_v2 = vadd.f32 %v2103_v9, %v4980_v18  ;;  %v2431_v58 = vsel %vm837_vm2, %v2426_v21, %v2430_v41  ;;  %v5445_v9 = vld [vmem:[%s4727_s25 + $0x68] sm:$0xff] }
 0x209   : > { %v4552_v52 = vpack.c.bf16 %v3372_v10, %v3371_v54  ;;  %v3077_v39 = vadd.f32 %v5334_v42, %v2630_v12  ;;  %v1984_v42 = vsel %vm837_vm2, %v1979_v11, %v1983_v57  ;;  %v3138_v10 = vsel %vm3115_vm3, %v3135_v37, %v3137_v24 }
 0x20a   : > { %4385 = vmatmul.msk.bf16.gmra.mxu3 %vm329_vm1, %v2894_v30  ;;  %v1985_v37 = vshrl.u32 %v5404_v7, 16  ;;  %v2432_v11 = vshrl.u32 %v5409_v19, 16  ;;  %v2436_v21 = vshll.u32 %v5445_v9, 16 }
 0x20b   : > { %4553 = vst [vmem:[%s5419_s13] sm:$0xff] %v4552_v52   ;;  %v3301_v25 = vadd.f32 %v3219_v1, %v3077_v39  ;;  %v5441_v1 = vld [vmem:[%s4727_s25 + $0x188] sm:$0xff] }
 0x20c   : > { %v1989_v6 = vshll.u32 %v5441_v1, 16 }
 0x20d   : > { %v5433_v43 = vpop.f32.mrf.mxu3  ;;  %v3339_v12 = vadd.f32 %v5392_v56, %v3301_v25 }
 0x20e   : > { %v2550_v51 = vpop.f32.mrf.mxu2 }
 0x20f   : > { %v2631_v38 = vadd.f32 %v2550_v51, %v2184_v2  ;;  %v2106_v54 = vpop.f32.mrf.mxu1  ;;  %v3373_v0 = vmax.f32 %v3339_v12, 0.0  ;;  %v2895_v2 = vshrl.u32 %v4541_v4, 16  ;;  %v2899_v51 = vshll.u32 %v4542_v34, 16 }
 0x210   : > { %v3224_v18 = vpop.f32.mrf.mxu0 }
 0x211   : > { %v3078_v35 = vadd.f32 %v5351_v28, %v2631_v38  ;;  %v2185_v28 = vadd.f32 %v2106_v54, %v4990_v3  ;;  %v2897_v38 = vor.u32 %v2895_v2, %v2893_v23  ;;  %v2901_v7 = vrot.slane %v2899_v51, 1 }
 0x212   : > { %4180 = vmatmul.msk.bf16.gmra.mxu1 %vm329_vm1, %v1984_v42  ;;  %v1987_v42 = vor.u32 %v1985_v37, %v1983_v57 }
 0x213   : > { %v3302_v49 = vadd.f32 %v3221_v27, %v3078_v35  ;;  %4262 = vmatmul.msk.bf16.gmra.mxu2 %vm329_vm1, %v2431_v58  ;;  %4401 = vmatmul.msk.bf16.gmra.mxu0 %vm329_vm1, %v3138_v10  ;;  %v1991_v58 = vrot.slane %v1989_v6, 1  ;;  %v2434_v35 = vor.u32 %v2432_v11, %v2430_v41  ;;  %v2438_v10 = vrot.slane %v2436_v21, 1  ;;  %v4543_v11 = vld [vmem:[%s4727_s25 + $0x114] sm:$0xff] }
 0x214   : > { %v2902_v12 = vsel %vm837_vm2, %v2897_v38, %v2901_v7  ;;  %v2440_v38 = vshrl.u32 %v5445_v9, 16 }
 0x215   : > { %v3340_v40 = vadd.f32 %v5392_v56, %v3302_v49  ;;  %v5454_v30 = vpop.f32.mrf.mxu3  ;;  %v3139_v49 = vrot.slane %v5445_v9, 1  ;;  %v2439_v57 = vsel %vm837_vm2, %v2434_v35, %v2438_v10  ;;  %v2903_v35 = vshrl.u32 %v4542_v34, 16 }
 0x216   : > { %v2553_v8 = vpop.f32.mrf.mxu2 }
 0x217   : > { %v3374_v52 = vmax.f32 %v3340_v40, 0.0  ;;  %v2632_v27 = vadd.f32 %v2553_v8, %v2185_v28  ;;  %v2108_v39 = vpop.f32.mrf.mxu1  ;;  %v3140_v37 = vsel %vm3115_vm3, %v3137_v24, %v3139_v49  ;;  %v1993_v24 = vshrl.u32 %v5441_v1, 16 }
 0x218   : > { %v3226_v25 = vpop.f32.mrf.mxu0  ;;  %v2186_v19 = vadd.f32 %v2108_v39, %v5001_v29 }
 0x219   : > { %v4557_v3 = vpack.c.bf16 %v3374_v52, %v3373_v0  ;;  %v3079_v54 = vadd.f32 %v5362_v26, %v2632_v27  ;;  %v1992_v26 = vsel %vm837_vm2, %v1987_v42, %v1991_v58  ;;  %v5476_v27 = vld [vmem:[%s4727_s25 + $0x70] sm:$0xff] }
 0x21a   : > { %4386 = vmatmul.msk.bf16.gmra.mxu3 %vm329_vm1, %v2902_v12  ;;  %v2907_v12 = vshll.u32 %v4543_v11, 16 }
 0x21b   : > { %4638 = vst [vmem:[%s5419_s13 + $0x8] sm:$0xff] %v4557_v3   ;;  %v3303_v23 = vadd.f32 %v3224_v18, %v3079_v54  ;;  %v5472_v18 = vld [vmem:[%s4727_s25 + $0x190] sm:$0xff]  ;;  %v2444_v54 = vshll.u32 %v5476_v27, 16 }
 0x21c   : > { %v1997_v3 = vshll.u32 %v5472_v18, 16  ;;  %v2909_v1 = vrot.slane %v2907_v12, 1 }
 0x21d   : > { %v5464_v41 = vpop.f32.mrf.mxu3  ;;  %v3341_v0 = vadd.f32 %v5392_v56, %v3303_v23 }
 0x21e   : > { %v2555_v4 = vpop.f32.mrf.mxu2 }
 0x21f   : > { %v2633_v40 = vadd.f32 %v2555_v4, %v2186_v19  ;;  %v2111_v28 = vpop.f32.mrf.mxu1  ;;  %v3375_v21 = vmax.f32 %v3341_v0, 0.0  ;;  %v2905_v4 = vor.u32 %v2903_v35, %v2901_v7 }
 0x220   : > { %v3229_v29 = vpop.f32.mrf.mxu0 }
 0x221   : > { %v3080_v8 = vadd.f32 %v5382_v45, %v2633_v40  ;;  %v2187_v45 = vadd.f32 %v2111_v28, %v5011_v5  ;;  %v1995_v40 = vor.u32 %v1993_v24, %v1991_v58  ;;  %v1999_v28 = vrot.slane %v1997_v3, 1  ;;  %v4544_v3 = vld [vmem:[%s4727_s25 + $0x11c] sm:$0xff] }
 0x222   : > { %4181 = vmatmul.msk.bf16.gmra.mxu1 %vm329_vm1, %v1992_v26  ;;  %v2442_v26 = vor.u32 %v2440_v38, %v2438_v10 }
 0x223   : > { %v3304_v52 = vadd.f32 %v3226_v25, %v3080_v8  ;;  %4263 = vmatmul.msk.bf16.gmra.mxu2 %vm329_vm1, %v2439_v57  ;;  %4402 = vmatmul.msk.bf16.gmra.mxu0 %vm329_vm1, %v3140_v37  ;;  %v2446_v57 = vrot.slane %v2444_v54, 1  ;;  %v2910_v8 = vsel %vm837_vm2, %v2905_v4, %v2909_v1  ;;  %v3141_v37 = vrot.slane %v5476_v27, 1 }
 0x225   : > { %v3342_v6 = vadd.f32 %v5392_v56, %v3304_v52  ;;  %v5485_v42 = vpop.f32.mrf.mxu3  ;;  %v2447_v58 = vsel %vm837_vm2, %v2442_v26, %v2446_v57 }
 0x226   : > { %v2558_v39 = vpop.f32.mrf.mxu2 }
 0x227   : > { %v3376_v2 = vmax.f32 %v3342_v6, 0.0  ;;  %v2634_v51 = vadd.f32 %v2558_v39, %v2187_v45  ;;  %v2113_v25 = vpop.f32.mrf.mxu1  ;;  %v3142_v45 = vsel %vm3115_vm3, %v3139_v49, %v3141_v37  ;;  %v2001_v49 = vshrl.u32 %v5472_v18, 16 }
 0x228   : > { %v3231_v19 = vpop.f32.mrf.mxu0  ;;  %v2188_v9 = vadd.f32 %v2113_v25, %v5022_v46 }
 0x229   : > { %v4562_v5 = vpack.c.bf16 %v3376_v2, %v3375_v21  ;;  %v3081_v23 = vadd.f32 %v5396_v16, %v2634_v51  ;;  %v2000_v16 = vsel %vm837_vm2, %v1995_v40, %v1999_v28  ;;  %v5507_v21 = vld [vmem:[%s4727_s25 + $0x78] sm:$0xff]  ;;  %v2915_v40 = vshll.u32 %v4544_v3, 16 }
 0x22a   : > { %4387 = vmatmul.msk.bf16.gmra.mxu3 %vm329_vm1, %v2910_v8 }
 0x22b   : > { %4639 = vst [vmem:[%s5419_s13 + $0x10] sm:$0xff] %v4562_v5   ;;  %v3305_v7 = vadd.f32 %v3229_v29, %v3081_v23  ;;  %v5503_v29 = vld [vmem:[%s4727_s25 + $0x198] sm:$0xff]  ;;  %v2448_v5 = vshrl.u32 %v5476_v27, 16  ;;  %v2911_v23 = vshrl.u32 %v4543_v11, 16  ;;  %v2917_v18 = vrot.slane %v2915_v40, 1 }
 0x22c   : > { %v2005_v35 = vshll.u32 %v5503_v29, 16 }
 0x22d   : > { %v5495_v10 = vpop.f32.mrf.mxu3  ;;  %v3343_v39 = vadd.f32 %v5392_v56, %v3305_v7  ;;  %v2913_v8 = vor.u32 %v2911_v23, %v2909_v1 }
 0x22e   : > { %v2560_v34 = vpop.f32.mrf.mxu2  ;;  %v2007_v7 = vrot.slane %v2005_v35, 1  ;;  %v2009_v35 = vshrl.u32 %v5503_v29, 16 }
 0x22f   : > { %v2635_v0 = vadd.f32 %v2560_v34, %v2188_v9  ;;  %v2116_v52 = vpop.f32.mrf.mxu1  ;;  %v3377_v25 = vmax.f32 %v3343_v39, 0.0  ;;  %v2003_v34 = vor.u32 %v2001_v49, %v1999_v28  ;;  %v5539_v49 = vld [vmem:[%s4727_s25 + $0x80] sm:$0xff] }
 0x230   : > { %v3234_v46 = vpop.f32.mrf.mxu0 }
 0x231   : > { %v3082_v6 = vadd.f32 %v5423_v60, %v2635_v0  ;;  %v2189_v60 = vadd.f32 %v2116_v52, %v5032_v33  ;;  %v2450_v0 = vor.u32 %v2448_v5, %v2446_v57 }
 0x232   : > { %4182 = vmatmul.msk.bf16.gmra.mxu1 %vm329_vm1, %v2000_v16  ;;  %v2918_v16 = vsel %vm837_vm2, %v2913_v8, %v2917_v18  ;;  %v2460_v8 = vshll.u32 %v5539_v49, 16 }
 0x233   : > { %v3306_v24 = vadd.f32 %v3231_v19, %v3082_v6  ;;  %4264 = vmatmul.msk.bf16.gmra.mxu2 %vm329_vm1, %v2447_v58  ;;  %4403 = vmatmul.msk.bf16.gmra.mxu0 %vm329_vm1, %v3142_v45  ;;  %v2452_v19 = vshll.u32 %v5507_v21, 16  ;;  %v3143_v58 = vrot.slane %v5507_v21, 1 }
 0x235   : > { %v3344_v2 = vadd.f32 %v5392_v56, %v3306_v24  ;;  %v5516_v4 = vpop.f32.mrf.mxu3  ;;  %v2454_v52 = vrot.slane %v2452_v19, 1 }
 0x236   : > { %v2563_v51 = vpop.f32.mrf.mxu2 }
 0x237   : > { %v3378_v38 = vmax.f32 %v3344_v2, 0.0  ;;  %v2636_v54 = vadd.f32 %v2563_v51, %v2189_v60  ;;  %v2118_v12 = vpop.f32.mrf.mxu1  ;;  %v2455_v28 = vsel %vm837_vm2, %v2450_v0, %v2454_v52  ;;  %v4303_v51 = vld [vmem:[%s4727_s25 + $0x124] sm:$0x1] }
 0x238   : > { %v3236_v26 = vpop.f32.mrf.mxu0  ;;  %v2190_v27 = vadd.f32 %v2118_v12, %v5043_v63  ;;  %v3144_v63 = vsel %vm3115_vm3, %v3141_v37, %v3143_v58  ;;  %v5667_v37 = vld [vmem:[#allocation2_spill] sm:$0xff] }
 0x239   : > { %v4567_v33 = vpack.c.bf16 %v3378_v38, %v3377_v25  ;;  %v3083_v9 = vadd.f32 %v5433_v43, %v2636_v54  ;;  %v2008_v43 = vsel %vm837_vm2, %v2003_v34, %v2007_v7 }
 0x23a   : > { %4388 = vmatmul.msk.bf16.gmra.mxu3 %vm329_vm1, %v2918_v16 }
 0x23b   : > { %4640 = vst [vmem:[%s5419_s13 + $0x18] sm:$0xff] %v4567_v33   ;;  %v3307_v1 = vadd.f32 %v3234_v46, %v3083_v9  ;;  %v5534_v46 = vld [vmem:[%s4727_s25 + $0x1a0] sm:$0xff]  ;;  %v2919_v9 = vshrl.u32 %v4544_v3, 16  ;;  %v3145_v3 = vrot.slane %v5539_v49, 1 }
 0x23c   : > { %v2013_v40 = vshll.u32 %v5534_v46, 16 }
 0x23d   : > { %v5528_v24 = vpop.f32.mrf.mxu3  ;;  %v3345_v2 = vadd.f32 %v5392_v56, %v3307_v1  ;;  %v2011_v1 = vor.u32 %v2009_v35, %v2007_v7 }
 0x23e   : > { %v2565_v11 = vpop.f32.mrf.mxu2 }
 0x23f   : > { %v2637_v6 = vadd.f32 %v2565_v11, %v2190_v27  ;;  %v2121_v45 = vpop.f32.mrf.mxu1  ;;  %v3379_v5 = vmax.f32 %v3345_v2, 0.0  ;;  %v2921_v27 = vor.u32 %v2919_v9, %v2917_v18  ;;  %v2464_v9 = vshrl.u32 %v5539_v49, 16 }
 0x240   : > { %v3239_v39 = vpop.f32.mrf.mxu0  ;;  %v2191_v38 = vadd.f32 %v2121_v45, %v5667_v37 }
 0x241   : > { %v3084_v57 = vadd.f32 %v5454_v30, %v2637_v6  ;;  %v2768_v30 = vunpack.c.l.b16 %v4303_v51  ;;  %v2015_v6 = vrot.slane %v2013_v40, 1 }
 0x242   : > { %4183 = vmatmul.msk.bf16.gmra.mxu1 %vm329_vm1, %v2008_v43  ;;  %v2462_v43 = vrot.slane %v2460_v8, 1 }
 0x243   : > { %v3308_v60 = vadd.f32 %v3236_v26, %v3084_v57  ;;  %4265 = vmatmul.msk.bf16.gmra.mxu2 %vm329_vm1, %v2455_v28  ;;  %4404 = vmatmul.msk.bf16.gmra.mxu0 %vm329_vm1, %v3144_v63  ;;  %v2786_v12 = vpack.c.b16 %v2768_v30, %v2768_v30  ;;  %v2456_v26 = vshrl.u32 %v5507_v21, 16  ;;  %v5668_v21 = vld [vmem:[#allocation3_spill] sm:$0xff]  ;;  %v2016_v7 = vsel %vm837_vm2, %v2011_v1, %v2015_v6 }
 0x244   : > { %v2466_v1 = vor.u32 %v2464_v9, %v2462_v43 }
 0x245   : > { %v3346_v25 = vadd.f32 %v5392_v56, %v3308_v60  ;;  %v2923_v34 = vshll.u32 %v2786_v12, 16  ;;  %v2458_v45 = vor.u32 %v2456_v26, %v2454_v52  ;;  %v5549_v28 = vpop.f32.mrf.mxu3  ;;  %v5669_v12 = vld [vmem:[#allocation4_spill] sm:$0xff]  ;;  %v2017_v26 = vshrl.u32 %v5534_v46, 16 }
 0x246   : > { %v2568_v54 = vpop.f32.mrf.mxu2  ;;  %v2249_v46 = vld [vmem:[%s4727_s25 + $0x90] sm:$0x1] }
 0x247   : > { %v3380_v19 = vmax.f32 %v3346_v25, 0.0  ;;  %v2638_v23 = vadd.f32 %v2568_v54, %v2191_v38  ;;  %v2123_v33 = vpop.f32.mrf.mxu1  ;;  %v2925_v11 = vrot.slane %v2923_v34, 1  ;;  %v2463_v52 = vsel %vm837_vm2, %v2458_v45, %v2462_v43  ;;  %v5565_v54 = vld [vmem:[%s4727_s25 + $0x88] sm:$0xff] }
 0x248   : > { %v3241_v16 = vpop.f32.mrf.mxu0  ;;  %v2192_v63 = vadd.f32 %v2123_v33, %v5668_v21  ;;  %v3146_v25 = vsel %vm3115_vm3, %v3143_v58, %v3145_v3  ;;  %v2468_v34 = vshll.u32 %v5565_v54, 16  ;;  %v2472_v9 = vshrl.u32 %v5565_v54, 16 }
 0x249   : > { %v4572_v0 = vpack.c.bf16 %v3380_v19, %v3379_v5  ;;  %v3085_v29 = vadd.f32 %v5464_v41, %v2638_v23  ;;  %v2926_v57 = vsel %vm837_vm2, %v2921_v27, %v2925_v11  ;;  %v2019_v11 = vor.u32 %v2017_v26, %v2015_v6 }
 0x24a   : > { %4389 = vmatmul.msk.bf16.gmra.mxu3 %vm329_vm1, %v2926_v57  ;;  %v2470_v45 = vrot.slane %v2468_v34, 1  ;;  %v5670_v57 = vld [vmem:[#allocation5_spill] sm:$0xff] }
 0x24b   : > { %4641 = vst [vmem:[%s5419_s13 + $0x20] sm:$0xff] %v4572_v0   ;;  %v3309_v2 = vadd.f32 %v3239_v39, %v3085_v29  ;;  %v4511_v39 = vld [vmem:[%s4727_s25 + $0x1a8] sm:$0xff] }
 0x24c   : > { %v2021_v8 = vshll.u32 %v4511_v39, 16  ;;  %v2025_v26 = vshrl.u32 %v4511_v39, 16 }
 0x24d   : > { %v3347_v37 = vadd.f32 %v5392_v56, %v3309_v2  ;;  %v5569_v19 = vpop.f32.mrf.mxu3 }
 0x24e   : > { %v2570_v18 = vpop.f32.mrf.mxu2  ;;  %v2023_v29 = vrot.slane %v2021_v8, 1 }
 0x24f   : > { %v2639_v60 = vadd.f32 %v2570_v18, %v2192_v63  ;;  %v2126_v41 = vpop.f32.mrf.mxu1  ;;  %v3381_v58 = vmax.f32 %v3347_v37, 0.0  ;;  %v3147_v63 = vrot.slane %v5565_v54, 1  ;;  %v4100_v18 = vld [vmem:[%s4727_s25 + $0x1b0] sm:$0x1] }
 0x250   : > { %v3244_v30 = vpop.f32.mrf.mxu0 }
 0x251   : > { %v3086_v51 = vadd.f32 %v5485_v42, %v2639_v60  ;;  %v2193_v42 = vadd.f32 %v2126_v41, %v5669_v12  ;;  %v3148_v37 = vsel %vm3115_vm3, %v3145_v3, %v3147_v63 }
 0x252   : > { %4184 = vmatmul.msk.bf16.gmra.mxu1 %vm329_vm1, %v2016_v7  ;;  %v2024_v7 = vsel %vm837_vm2, %v2019_v11, %v2023_v29 }
 0x253   : > { %v3310_v38 = vadd.f32 %v3241_v16, %v3086_v51  ;;  %4266 = vmatmul.msk.bf16.gmra.mxu2 %vm329_vm1, %v2463_v52  ;;  %4405 = vmatmul.msk.bf16.gmra.mxu0 %vm329_vm1, %v3146_v25  ;;  %v2471_v52 = vsel %vm837_vm2, %v2466_v1, %v2470_v45  ;;  %v1874_v51 = vunpack.c.l.b16 %v4100_v18  ;;  %v2027_v1 = vor.u32 %v2025_v26, %v2023_v29 }
 0x255   : > { %v3348_v35 = vadd.f32 %v5392_v56, %v3310_v38  ;;  %v5582_v6 = vpop.f32.mrf.mxu3 }
 0x256   : > { %v2573_v5 = vpop.f32.mrf.mxu2 }
 0x257   : > { %v3382_v23 = vmax.f32 %v3348_v35, 0.0  ;;  %v2640_v40 = vadd.f32 %v2573_v5, %v2193_v42  ;;  %v2128_v33 = vpop.f32.mrf.mxu1  ;;  %v5671_v5 = vld [vmem:[#allocation6_spill] sm:$0xff] }
 0x258   : > { %v3246_v16 = vpop.f32.mrf.mxu0  ;;  %v2194_v21 = vadd.f32 %v2128_v33, %v5670_v57 }
 0x259   : > { %v4577_v0 = vpack.c.bf16 %v3382_v23, %v3381_v58  ;;  %v3087_v27 = vadd.f32 %v5495_v10, %v2640_v40  ;;  %v2321_v10 = vunpack.c.l.b16 %v2249_v46  ;;  %v5672_v46 = vld [vmem:[#allocation7_spill] sm:$0xff] }
 0x25b   : > { %4642 = vst [vmem:[%s5419_s13 + $0x28] sm:$0xff] %v4577_v0   ;;  %v3311_v60 = vadd.f32 %v3244_v30, %v3087_v27  ;;  %v1892_v30 = vpack.c.b16 %v1874_v51, %v1874_v51  ;;  %v2339_v12 = vpack.c.b16 %v2321_v10, %v2321_v10 }
 0x25d   : > { %v3349_v38 = vadd.f32 %v5392_v56, %v3311_v60  ;;  %v2029_v8 = vshll.u32 %v1892_v30, 16  ;;  %v2476_v34 = vshll.u32 %v2339_v12, 16  ;;  %v3035_v27 = vpop.f32.mrf.mxu3  ;;  %v3149_v60 = vrot.slane %v2339_v12, 1 }
 0x25e   : > { %v2575_v2 = vpop.f32.mrf.mxu2 }
 0x25f   : > { %v2641_v49 = vadd.f32 %v2575_v2, %v2194_v21  ;;  %v2131_v41 = vpop.f32.mrf.mxu1  ;;  %v3383_v23 = vmax.f32 %v3349_v38, 0.0  ;;  %v2031_v57 = vrot.slane %v2029_v8, 1  ;;  %v2474_v21 = vor.u32 %v2472_v9, %v2470_v45 }
 0x260   : > { %v3249_v25 = vpop.f32.mrf.mxu0  ;;  %v2195_v58 = vadd.f32 %v2131_v41, %v5671_v5  ;;  %v2478_v18 = vrot.slane %v2476_v34, 1 }
 0x261   : > { %v3088_v43 = vadd.f32 %v5516_v4, %v2641_v49  ;;  %v2032_v54 = vsel %vm837_vm2, %v2027_v1, %v2031_v57 }
 0x262   : > { %4185 = vmatmul.msk.bf16.gmra.mxu1 %vm329_vm1, %v2024_v7 }
 0x263   : > { %v3312_v35 = vadd.f32 %v3246_v16, %v3088_v43  ;;  %4267 = vmatmul.msk.bf16.gmra.mxu2 %vm329_vm1, %v2471_v52  ;;  %4406 = vmatmul.msk.bf16.gmra.mxu0 %vm329_vm1, %v3148_v37  ;;  %v2479_v52 = vsel %vm837_vm2, %v2474_v21, %v2478_v18 }
 0x265   : > { %v3350_v42 = vadd.f32 %v5392_v56, %v3312_v35  ;;  %v3037_v43 = vpop.f32.mrf.mxu3 }
 0x266   : > { %v2578_v4 = vpop.f32.mrf.mxu2 }
 0x267   : > { %v3384_v40 = vmax.f32 %v3350_v42, 0.0  ;;  %v2642_v3 = vadd.f32 %v2578_v4, %v2195_v58  ;;  %v2133_v33 = vpop.f32.mrf.mxu1 }
 0x268   : > { %v3251_v16 = vpop.f32.mrf.mxu0  ;;  %v2196_v2 = vadd.f32 %v2133_v33, %v5672_v46 }
 0x269   : > { %v4582_v0 = vpack.c.bf16 %v3384_v40, %v3383_v23  ;;  %v3089_v11 = vadd.f32 %v5528_v24, %v2642_v3  ;;  %v3150_v24 = vsel %vm3115_vm3, %v3147_v63, %v3149_v60 }
 0x26b   : > { %4643 = vst [vmem:[%s5419_s13 + $0x30] sm:$0xff] %v4582_v0   ;;  %v3313_v41 = vadd.f32 %v3249_v25, %v3089_v11 }
 0x26d   : > { %v3351_v29 = vadd.f32 %v5392_v56, %v3313_v41  ;;  %v3040_v23 = vpop.f32.mrf.mxu3 }
 0x26e   : > { %v2580_v49 = vpop.f32.mrf.mxu2 }
 0x26f   : > { %v2643_v39 = vadd.f32 %v2580_v49, %v2196_v2  ;;  %v2136_v7 = vpop.f32.mrf.mxu1 }
 0x270   : > { %v3254_v10 = vpop.f32.mrf.mxu0  ;;  %v2197_v37 = vadd.f32 %v2136_v7, %v5129_v36 }
 0x271   : > { %v3090_v51 = vadd.f32 %v5549_v28, %v2643_v39  ;;  %v3385_v28 = vmax.f32 %v3351_v29, 0.0 }
 0x272   : > { %4186 = vmatmul.msk.bf16.gmra.mxu1 %vm329_vm1, %v2032_v54 }
 0x273   : > { %v3314_v45 = vadd.f32 %v3251_v16, %v3090_v51  ;;  %4268 = vmatmul.msk.bf16.gmra.mxu2 %vm329_vm1, %v2479_v52  ;;  %4407 = vmatmul.msk.bf16.gmra.mxu0 %vm329_vm1, %v3150_v24 }
 0x275   : > { %v3352_v25 = vadd.f32 %v5392_v56, %v3314_v45  ;;  %v3042_v57 = vpop.f32.mrf.mxu3 }
 0x276   : > { %v2583_v38 = vpop.f32.mrf.mxu2 }
 0x277   : > { %v3386_v35 = vmax.f32 %v3352_v25, 0.0  ;;  %v2644_v30 = vadd.f32 %v2583_v38, %v2197_v37  ;;  %v2138_v63 = vpop.f32.mrf.mxu1 }
 0x278   : > { %v3256_v42 = vpop.f32.mrf.mxu0  ;;  %v2198_v58 = vadd.f32 %v2138_v63, %v5144_v22 }
 0x279   : > { %v4587_v12 = vpack.c.bf16 %v3386_v35, %v3385_v28  ;;  %v3091_v5 = vadd.f32 %v5569_v19, %v2644_v30 }
 0x27b   : > { %4644 = vst [vmem:[%s5419_s13 + $0x38] sm:$0xff] %v4587_v12   ;;  %v3315_v40 = vadd.f32 %v3254_v10, %v3091_v5 }
 0x27d   : > { %v3353_v8 = vadd.f32 %v5392_v56, %v3315_v40 }
 0x27e   : > { %v2585_v4 = vpop.f32.mrf.mxu2 }
 0x27f   : > { %v2645_v3 = vadd.f32 %v2585_v4, %v2198_v58  ;;  %v2141_v33 = vpop.f32.mrf.mxu1  ;;  %v3387_v19 = vmax.f32 %v3353_v8, 0.0 }
 0x280   : > { %v3259_v26 = vpop.f32.mrf.mxu0  ;;  %v2199_v0 = vadd.f32 %v2141_v33, %v5158_v61  ;;  %v3045_v61 = vpop.f32.mrf.mxu3 }
 0x281   : > { %v3092_v36 = vadd.f32 %v5582_v6, %v2645_v3 }
 0x283   : > { %v3316_v9 = vadd.f32 %v3256_v42, %v3092_v36 }
 0x285   : > { %v3354_v34 = vadd.f32 %v5392_v56, %v3316_v9 }
 0x286   : > { %v2588_v16 = vpop.f32.mrf.mxu2 }
 0x287   : > { %v3388_v11 = vmax.f32 %v3354_v34, 0.0  ;;  %v2646_v22 = vadd.f32 %v2588_v16, %v2199_v0  ;;  %v2143_v1 = vpop.f32.mrf.mxu1 }
 0x288   : > { %v3261_v18 = vpop.f32.mrf.mxu0  ;;  %v2200_v6 = vadd.f32 %v2143_v1, %v5173_v62  ;;  %v3047_v28 = vpop.f32.mrf.mxu3 }
 0x289   : > { %v4592_v21 = vpack.c.bf16 %v3388_v11, %v3387_v19  ;;  %v3093_v46 = vadd.f32 %v3035_v27, %v2646_v22 }
 0x28b   : > { %4645 = vst [vmem:[%s5419_s13 + $0x40] sm:$0xff] %v4592_v21   ;;  %v3317_v60 = vadd.f32 %v3259_v26, %v3093_v46 }
 0x28d   : > { %v3355_v54 = vadd.f32 %v5392_v56, %v3317_v60 }
 0x28e   : > { %v2590_v2 = vpop.f32.mrf.mxu2 }
 0x28f   : > { %v2647_v49 = vadd.f32 %v2590_v2, %v2200_v6  ;;  %v2146_v41 = vpop.f32.mrf.mxu1  ;;  %v3389_v29 = vmax.f32 %v3355_v54, 0.0 }
 0x290   : > { %v3264_v7 = vpop.f32.mrf.mxu0  ;;  %v2201_v10 = vadd.f32 %v2146_v41, %v5186_v32  ;;  %v3050_v33 = vpop.f32.mrf.mxu3 }
 0x291   : > { %v3094_v39 = vadd.f32 %v3037_v43, %v2647_v49 }
 0x293   : > { %v3318_v52 = vadd.f32 %v3261_v18, %v3094_v39 }
 0x295   : > { %v3356_v51 = vadd.f32 %v5392_v56, %v3318_v52 }
 0x296   : > { %v2593_v24 = vpop.f32.mrf.mxu2 }
 0x297   : > { %v3390_v27 = vmax.f32 %v3356_v51, 0.0  ;;  %v2648_v45 = vadd.f32 %v2593_v24, %v2201_v10  ;;  %v2148_v62 = vpop.f32.mrf.mxu1 }
 0x298   : > { %v3266_v37 = vpop.f32.mrf.mxu0  ;;  %v2202_v43 = vadd.f32 %v2148_v62, %v5201_v47  ;;  %v3052_v1 = vpop.f32.mrf.mxu3 }
 0x299   : > { %v4597_v25 = vpack.c.bf16 %v3390_v27, %v3389_v29  ;;  %v3095_v38 = vadd.f32 %v3040_v23, %v2648_v45 }
 0x29b   : > { %4646 = vst [vmem:[%s5419_s13 + $0x48] sm:$0xff] %v4597_v25   ;;  %v3319_v30 = vadd.f32 %v3264_v7, %v3095_v38 }
 0x29d   : > { %v3357_v32 = vadd.f32 %v5392_v56, %v3319_v30 }
 0x29e   : > { %v2595_v35 = vpop.f32.mrf.mxu2 }
 0x29f   : > { %v2649_v63 = vadd.f32 %v2595_v35, %v2202_v43  ;;  %v2151_v12 = vpop.f32.mrf.mxu1  ;;  %v3391_v23 = vmax.f32 %v3357_v32, 0.0 }
 0x2a0   : > { %v3269_v5 = vpop.f32.mrf.mxu0  ;;  %v2203_v40 = vadd.f32 %v2151_v12, %v5214_v14 }
 0x2a1   : > { %v3096_v42 = vadd.f32 %v3042_v57, %v2649_v63 }
 0x2a3   : > { %v3320_v58 = vadd.f32 %v3266_v37, %v3096_v42 }
 0x2a5   : > { %v3358_v4 = vadd.f32 %v5392_v56, %v3320_v58 }
 0x2a6   : > { %v2598_v3 = vpop.f32.mrf.mxu2 }
 0x2a7   : > { %v3392_v36 = vmax.f32 %v3358_v4, 0.0  ;;  %v2650_v26 = vadd.f32 %v2598_v3, %v2203_v40  ;;  %v2153_v47 = vpop.f32.mrf.mxu1 }
 0x2a8   : > { %v3271_v9 = vpop.f32.mrf.mxu0  ;;  %v2204_v0 = vadd.f32 %v2153_v47, %v5229_v20 }
 0x2a9   : > { %v4602_v8 = vpack.c.bf16 %v3392_v36, %v3391_v23  ;;  %v3097_v34 = vadd.f32 %v3045_v61, %v2650_v26  ;;  %v3055_v61 = vpop.f32.mrf.mxu3 }
 0x2ab   : > { %4647 = vst [vmem:[%s5419_s13 + $0x50] sm:$0xff] %v4602_v8   ;;  %v3321_v19 = vadd.f32 %v3269_v5, %v3097_v34 }
 0x2ad   : > { %v3359_v21 = vadd.f32 %v5392_v56, %v3321_v19 }
 0x2ae   : > { %v2600_v16 = vpop.f32.mrf.mxu2 }
 0x2af   : > { %v2651_v11 = vadd.f32 %v2600_v16, %v2204_v0  ;;  %v2156_v22 = vpop.f32.mrf.mxu1  ;;  %v3393_v60 = vmax.f32 %v3359_v21, 0.0 }
 0x2b0   : > { %v3274_v14 = vpop.f32.mrf.mxu0  ;;  %v2205_v6 = vadd.f32 %v2156_v22, %v5242_v55 }
 0x2b1   : > { %v3098_v57 = vadd.f32 %v3047_v28, %v2651_v11  ;;  %v3057_v25 = vpop.f32.mrf.mxu3 }
 0x2b3   : > { %v3322_v18 = vadd.f32 %v3271_v9, %v3098_v57 }
 0x2b5   : > { %v3360_v46 = vadd.f32 %v5392_v56, %v3322_v18 }
 0x2b6   : > { %v2603_v2 = vpop.f32.mrf.mxu2 }
 0x2b7   : > { %v3394_v49 = vmax.f32 %v3360_v46, 0.0  ;;  %v2652_v41 = vadd.f32 %v2603_v2, %v2205_v6  ;;  %v2158_v20 = vpop.f32.mrf.mxu1 }
 0x2b8   : > { %v3276_v7 = vpop.f32.mrf.mxu0  ;;  %v2206_v52 = vadd.f32 %v2158_v20, %v5257_v59 }
 0x2b9   : > { %v4607_v39 = vpack.c.bf16 %v3394_v49, %v3393_v60  ;;  %v3099_v54 = vadd.f32 %v3050_v33, %v2652_v41  ;;  %v3060_v58 = vpop.f32.mrf.mxu3 }
 0x2bb   : > { %4648 = vst [vmem:[%s5419_s13 + $0x58] sm:$0xff] %v4607_v39   ;;  %v3323_v10 = vadd.f32 %v3274_v14, %v3099_v54 }
 0x2bd   : > { %v3361_v55 = vadd.f32 %v5392_v56, %v3323_v10 }
 0x2be   : > { %v2605_v51 = vpop.f32.mrf.mxu2 }
 0x2bf   : > { %v2653_v24 = vadd.f32 %v2605_v51, %v2206_v52  ;;  %v2161_v29 = vpop.f32.mrf.mxu1  ;;  %v3395_v43 = vmax.f32 %v3361_v55, 0.0 }
 0x2c0   : > { %v3279_v45 = vpop.f32.mrf.mxu0  ;;  %v2207_v38 = vadd.f32 %v2161_v29, %v5270_v50 }
 0x2c1   : > { %v3100_v27 = vadd.f32 %v3052_v1, %v2653_v24  ;;  %v3062_v16 = vpop.f32.mrf.mxu3 }
 0x2c3   : > { %v3324_v62 = vadd.f32 %v3276_v7, %v3100_v27 }
 0x2c5   : > { %v3362_v37 = vadd.f32 %v5392_v56, %v3324_v62 }
 0x2c6   : > { %v2608_v28 = vpop.f32.mrf.mxu2 }
 0x2c7   : > { %v3396_v35 = vmax.f32 %v3362_v37, 0.0  ;;  %v2654_v30 = vadd.f32 %v2608_v28, %v2207_v38  ;;  %v2163_v59 = vpop.f32.mrf.mxu1 }
 0x2c8   : > { %v3281_v12 = vpop.f32.mrf.mxu0  ;;  %v2208_v5 = vadd.f32 %v2163_v59, %v5285_v44 }
 0x2c9   : > { %v4612_v63 = vpack.c.bf16 %v3396_v35, %v3395_v43  ;;  %v3101_v42 = vadd.f32 %v3055_v61, %v2654_v30  ;;  %v3065_v6 = vpop.f32.mrf.mxu3 }
 0x2cb   : > { %4649 = vst [vmem:[%s5419_s13 + $0x60] sm:$0xff] %v4612_v63   ;;  %v3325_v4 = vadd.f32 %v3279_v45, %v3101_v42 }
 0x2cd   : > { %v3363_v50 = vadd.f32 %v5392_v56, %v3325_v4 }
 0x2ce   : > { %v2610_v32 = vpop.f32.mrf.mxu2 }
 0x2cf   : > { %v2655_v40 = vadd.f32 %v2610_v32, %v2208_v5  ;;  %v2166_v3 = vpop.f32.mrf.mxu1  ;;  %v3397_v9 = vmax.f32 %v3363_v50, 0.0 }
 0x2d0   : > { %v3284_v23 = vpop.f32.mrf.mxu0  ;;  %v2209_v47 = vadd.f32 %v2166_v3, %v5298_v53 }
 0x2d1   : > { %v3102_v33 = vadd.f32 %v3057_v25, %v2655_v40  ;;  %v3067_v51 = vpop.f32.mrf.mxu3 }
 0x2d3   : > { %v3326_v36 = vadd.f32 %v3281_v12, %v3102_v33 }
 0x2d5   : > { %v3364_v26 = vadd.f32 %v5392_v56, %v3326_v36 }
 0x2d6   : > { %v2613_v8 = vpop.f32.mrf.mxu2 }
 0x2d7   : > { %v3398_v34 = vmax.f32 %v3364_v26, 0.0  ;;  %v2656_v0 = vadd.f32 %v2613_v8, %v2209_v47  ;;  %v2168_v44 = vpop.f32.mrf.mxu1 }
 0x2d8   : > { %v3286_v11 = vpop.f32.mrf.mxu0  ;;  %v2210_v1 = vadd.f32 %v2168_v44, %v5313_v15 }
 0x2d9   : > { %v4617_v19 = vpack.c.bf16 %v3398_v34, %v3397_v9  ;;  %v3103_v22 = vadd.f32 %v3060_v58, %v2656_v0  ;;  %v3070_v28 = vpop.f32.mrf.mxu3 }
 0x2db   : > { %4650 = vst [vmem:[%s5419_s13 + $0x68] sm:$0xff] %v4617_v19   ;;  %v3327_v14 = vadd.f32 %v3284_v23, %v3103_v22 }
 0x2dd   : > { %v3365_v53 = vadd.f32 %v5392_v56, %v3327_v14 }
 0x2de   : > { %v2615_v57 = vpop.f32.mrf.mxu2 }
 0x2df   : > { %v2657_v21 = vadd.f32 %v2615_v57, %v2210_v1  ;;  %v2171_v18 = vpop.f32.mrf.mxu1  ;;  %v3399_v39 = vmax.f32 %v3365_v53, 0.0 }
 0x2e0   : > { %v3289_v60 = vpop.f32.mrf.mxu0  ;;  %v2211_v41 = vadd.f32 %v2171_v18, %v5326_v17 }
 0x2e1   : > { %v3104_v46 = vadd.f32 %v3062_v16, %v2657_v21  ;;  %v3072_v40 = vpop.f32.mrf.mxu3 }
 0x2e3   : > { %v3328_v2 = vadd.f32 %v3286_v11, %v3104_v46 }
 0x2e5   : > { %v3366_v49 = vadd.f32 %v5392_v56, %v3328_v2 }
 0x2e6   : > { %v2618_v20 = vpop.f32.mrf.mxu2 }
 0x2e7   : > { %v3400_v7 = vmax.f32 %v3366_v49, 0.0  ;;  %v2658_v61 = vadd.f32 %v2618_v20, %v2211_v41  ;;  %v2173_v15 = vpop.f32.mrf.mxu1 }
 0x2e8   : > { %v2212_v10 = vadd.f32 %v2173_v15, %v5341_v31  ;;  %v3291_v24 = vpop.f32.mrf.mxu0 }
 0x2e9   : > { %v4622_v54 = vpack.c.bf16 %v3400_v7, %v3399_v39  ;;  %v3105_v52 = vadd.f32 %v3065_v6, %v2658_v61 }
 0x2eb   : > { %4651 = vst [vmem:[%s5419_s13 + $0x70] sm:$0xff] %v4622_v54   ;;  %v3329_v27 = vadd.f32 %v3289_v60, %v3105_v52 }
 0x2ed   : > { %v3367_v17 = vadd.f32 %v5392_v56, %v3329_v27 }
 0x2ee   : > { %v2620_v29 = vpop.f32.mrf.mxu2 }
 0x2ef   : > { %v2659_v45 = vadd.f32 %v2620_v29, %v2212_v10  ;;  %v2176_v55 = vpop.f32.mrf.mxu1  ;;  %v3401_v35 = vmax.f32 %v3367_v17, 0.0 }
 0x2f0   : > { %v2213_v38 = vadd.f32 %v2176_v55, %v5354_v13  ;;  %v3294_v31 = vpop.f32.mrf.mxu0  ;;  %v4668_v13 = vld [vmem:[%s5659_s2] ss:$0 sm:$0xff] }
 0x2f1   : > { %v3106_v62 = vadd.f32 %v3067_v51, %v2659_v45 }
 0x2f3   : > { %v3330_v25 = vadd.f32 %v3291_v24, %v3106_v62 }
 0x2f5   : > { %v3368_v37 = vadd.f32 %v5392_v56, %v3330_v25 }
 0x2f6   : > { %v2623_v43 = vpop.f32.mrf.mxu2 }
 0x2f7   : > { %v3402_v30 = vmax.f32 %v3368_v37, 0.0  ;;  %v2660_v59 = vadd.f32 %v2623_v43, %v2213_v38  ;;  %v2178_v12 = vpop.f32.mrf.mxu1 }
 0x2f8   : > { %v2214_v5 = vadd.f32 %v2178_v12, %v5371_v48  ;;  %v3296_v3 = vpop.f32.mrf.mxu0 }
 0x2f9   : > { %v4627_v63 = vpack.c.bf16 %v3402_v30, %v3401_v35  ;;  %v3107_v42 = vadd.f32 %v3070_v28, %v2660_v59 }
 0x2fb   : > { %4652 = vst [vmem:[%s5419_s13 + $0x78] sm:$0xff] %v4627_v63   ;;  %v3331_v58 = vadd.f32 %v3294_v31, %v3107_v42 }
 0x2fd   : > { %v3369_v33 = vadd.f32 %v4668_v13, %v3331_v58 }
 0x2fe   : > { %v2625_v32 = vpop.f32.mrf.mxu2 }
 0x2ff   : > { %v2661_v4 = vadd.f32 %v2625_v32, %v2214_v5  ;;  %v3403_v36 = vmax.f32 %v3369_v33, 0.0 }
 0x301   : > { %v3108_v56 = vadd.f32 %v3072_v40, %v2661_v4 }
 0x303   : > { %v3332_v23 = vadd.f32 %v3296_v3, %v3108_v56 }
 0x305   : > { %v3370_v50 = vadd.f32 %v4668_v13, %v3332_v23 }
 0x307   : > { %v3404_v26 = vmax.f32 %v3370_v50, 0.0 }
 0x309   : > { %v4632_v47 = vpack.c.bf16 %v3404_v26, %v3403_v36 }
 0x30b   : > { %4653 = vst [vmem:[%s5419_s13 + $0x80] sm:$0xff] %v4632_v47  }
 0x30c PF: > { %s13_s12 = sadd.s32 1, %s4675_s12  }
 0x30d   : > { %p10_p4 = scmp.ge.s32.totalorder %s13_s12, 4  }
 0x30f   :  { %12 = sbr.rel (!%p10_p4) target bundleno = 1 (0x1), region = 73 }

// kernel: deeplab_forward.10
= control target key start
LH: loop header
LB: loop body
LE: loop exit
PB: predicated region body
PF: predicated region fallthrough
CT: control target
= control target key end

     0   :  { %s2631_s15 = smov 0   ;;  %s3026_s0 = inlined_call_operand.vmem [shape: bf16[2,4,82,128], index: 0, kind: input, shape index: {}]   ;;  %s3027_s1 = inlined_call_operand.vmem [shape: bf16[9,128,128], index: 1, kind: input, shape index: {}]   ;;  %s3028_s2 = inlined_call_operand.vmem [shape: f32[1,128], index: 2, kind: input, shape index: {}]   ;;  %s3029_s3 = inlined_call_operand.vmem [shape: f32[2,72,1], index: 3, kind: input, shape index: {}]   ;;  %s3030_s4 = inlined_call_operand.vmem [shape: bf16[2,72,128], index: 4, kind: output, shape index: {}]  }
   0x1 LB: > { %s1819_s16 = sadd.s32 4294967295, %s2603_s15   ;;  %p1823_p0 = scmp.ge.s32.totalorder %s2603_s15, 1  ;;  %s2603_s15 = sphi %s2631_s15, %s14_s15  }
   0x2   : > { %p172_p1 = scmp.lt.s32.totalorder %s2603_s15, 3 }
   0x4   : > { %p173_p2 = pnand %p1823_p0, %p172_p1 }
   0x5   : > { %p203_p3 = scmp.lt.s32.totalorder (!%p173_p2), %s1819_s16, 1 }
   0x6   : > { %176 = sbr.rel (%p173_p2) target bundleno = 369 (0x171), region = 36 }
   0xb   : > { %v2455_v0 = vld [vmem:[%s3027_s1 + $0x78] sm:$0xff]  ;;  %v2454_v1 = vld [vmem:[%s3027_s1 + $0x70] sm:$0xff]  ;;  %v2453_v4 = vld [vmem:[%s3027_s1 + $0x68] sm:$0xff]  ;;  %s3032_s16 = smov (!%p203_p3, %s1819_s16), 1  ;;  %vm540_vm0 = vsmask.f32 7424 }
   0xc   : > { %346 = vmatpush.bf16.msra.mxu0 %v2455_v0  ;;  %2562 = vmatpush.bf16.msra.mxu1 %v2455_v0  ;;  %v2480_v2 = vld [vmem:[%s3027_s1 + $0xf8] sm:$0xff]  ;;  %v2479_v3 = vld [vmem:[%s3027_s1 + $0xf0] sm:$0xff]  ;;  %v2478_v5 = vld [vmem:[%s3027_s1 + $0xe8] sm:$0xff]  ;;  %s2578_s13 = smul.u32 176, %s3032_s16  ;;  %vm1544_vm1 = vcmask 1046528  }
   0xd   : > { %2563 = vmatpush.bf16.msra.mxu2 %v2455_v0  ;;  %778 = vmatpush.bf16.msra.mxu3 %v2480_v2  ;;  %v2452_v6 = vld [vmem:[%s3027_s1 + $0x60] sm:$0xff]  ;;  %v2451_v8 = vld [vmem:[%s3027_s1 + $0x58] sm:$0xff]  ;;  %v2450_v10 = vld [vmem:[%s3027_s1 + $0x50] sm:$0xff]  ;;  %s2579_s26 = smul.u32 72, %s3032_s16 }
   0xe   : > { %v2477_v7 = vld [vmem:[%s3027_s1 + $0xe0] sm:$0xff]  ;;  %v2476_v9 = vld [vmem:[%s3027_s1 + $0xd8] sm:$0xff]  ;;  %v2475_v11 = vld [vmem:[%s3027_s1 + $0xd0] sm:$0xff]  ;;  %s2684_s22 = scalar_lea.vmem %s3026_s0, %s2578_s13  ;;  %s2580_s5 = smul.u32 36, %s3032_s16 }
   0xf   : > { %v2449_v12 = vld [vmem:[%s3027_s1 + $0x48] sm:$0xff]  ;;  %v2448_v15 = vld [vmem:[%s3027_s1 + $0x40] sm:$0xff]  ;;  %v2443_v17 = vld [vmem:[%s3027_s1 + $0x38] sm:$0xff]  ;;  %s2914_s29 = scalar_lea.vmem %s3029_s3, %s2579_s26 }
  0x10   : > { %347 = vmatpush.bf16.msra.mxu0 %v2454_v1  ;;  %2564 = vmatpush.bf16.msra.mxu1 %v2454_v1  ;;  %v1835_v13 = vld [vmem:[%s2684_s22 + $0x4c] sm:$0xf]  ;;  %v2468_v18 = vld [vmem:[%s3027_s1 + $0xb8] sm:$0xff]  ;;  %v2473_v23 = vld [vmem:[%s3027_s1 + $0xc0] sm:$0xff]  ;;  %s3003_s8 = scalar_lea.vmem %s3030_s4, %s2580_s5 }
  0x11   : > { %2565 = vmatpush.bf16.msra.mxu2 %v2454_v1  ;;  %779 = vmatpush.bf16.msra.mxu3 %v2479_v3  ;;  %v2474_v14 = vld [vmem:[%s3027_s1 + $0xc8] sm:$0xff]  ;;  %v287_v16 = vunpack.c.l.b16 %v1835_v13  ;;  %v2492_v19 = vld [vmem:[%s3027_s1 + $0x138] sm:$0xff]  ;;  %v2442_v24 = vld [vmem:[%s3027_s1 + $0x30] sm:$0xff] }
  0x12   : > { %v2444_v20 = vld [vmem:[%s2684_s22 + $0x2c] sm:$0xff]  ;;  %v2446_v21 = vld [vmem:[%s2684_s22 + $0x3c] sm:$0xff]  ;;  %v2445_v40 = vld [vmem:[%s2684_s22 + $0x34] sm:$0xff] }
  0x13   : > { %v292_v22 = vpack.c.b16 %v287_v16, %v287_v16  ;;  %v2530_v25 = vld [vmem:[%s3027_s1 + $0x1f8] sm:$0xff]  ;;  %v2467_v26 = vld [vmem:[%s3027_s1 + $0xb0] sm:$0xff]  ;;  %v2441_v29 = vld [vmem:[%s3027_s1 + $0x28] sm:$0xff] }
  0x14   : > { %348 = vmatpush.bf16.msra.mxu0 %v2453_v4  ;;  %2566 = vmatpush.bf16.msra.mxu1 %v2453_v4  ;;  %v2491_v27 = vld [vmem:[%s3027_s1 + $0x130] sm:$0xff]  ;;  %v2469_v28 = vld [vmem:[%s2684_s22 + $0x58] sm:$0xff]  ;;  %v2466_v31 = vld [vmem:[%s3027_s1 + $0xa8] sm:$0xff] }
  0x15   : > { %2567 = vmatpush.bf16.msra.mxu2 %v2453_v4  ;;  %780 = vmatpush.bf16.msra.mxu3 %v2478_v5  ;;  %v2529_v30 = vld [vmem:[%s3027_s1 + $0x1f0] sm:$0xff]  ;;  %v2490_v32 = vld [vmem:[%s3027_s1 + $0x128] sm:$0xff]  ;;  %v2440_v33 = vld [vmem:[%s3027_s1 + $0x20] sm:$0xff] }
  0x16   : > { %v2465_v34 = vld [vmem:[%s3027_s1 + $0xa0] sm:$0xff]  ;;  %v2439_v36 = vld [vmem:[%s3027_s1 + $0x18] sm:$0xff]  ;;  %v2438_v42 = vld [vmem:[%s3027_s1 + $0x10] sm:$0xff] }
  0x17   : > { %v2489_v35 = vld [vmem:[%s3027_s1 + $0x120] sm:$0xff]  ;;  %v2464_v37 = vld [vmem:[%s3027_s1 + $0x98] sm:$0xff]  ;;  %v2463_v43 = vld [vmem:[%s3027_s1 + $0x90] sm:$0xff] }
  0x18   : > { %349 = vmatpush.bf16.msra.mxu0 %v2452_v6  ;;  %2568 = vmatpush.bf16.msra.mxu1 %v2452_v6  ;;  %v2488_v38 = vld [vmem:[%s3027_s1 + $0x118] sm:$0xff]  ;;  %v2456_v39 = vld [vmem:[%s2684_s22] sm:$0xff]  ;;  %v2487_v44 = vld [vmem:[%s3027_s1 + $0x110] sm:$0xff] }
  0x19   : > { %2569 = vmatpush.bf16.msra.mxu2 %v2452_v6  ;;  %781 = vmatpush.bf16.msra.mxu3 %v2477_v7  ;;  %v2447_v41 = vld [vmem:[%s2684_s22 + $0x44] sm:$0xff]  ;;  %v544_v46 = vshll.u32 %v2456_v39, 16  ;;  %v542_v52 = vshrl.u32 %v2456_v39, 16  ;;  %v2517_v60 = vld [vmem:[%s3027_s1 + $0x1b8] sm:$0xff]  ;;  %v2516_v2 = vld [vmem:[%s3027_s1 + $0x1b0] sm:$0xff] }
  0x1a   : > { %v2763_v45 = vld [vmem:[%s2684_s22 + $0x8] sm:$0xff]  ;;  %v2470_v47 = vld [vmem:[%s2684_s22 + $0x60] sm:$0xff]  ;;  %v2505_v61 = vld [vmem:[%s3027_s1 + $0x178] sm:$0xff] }
  0x1b   : > { %v2528_v48 = vld [vmem:[%s3027_s1 + $0x1e8] sm:$0xff]  ;;  %v546_v53 = vrot.slane %v544_v46, 1  ;;  %v549_v54 = vshll.u32 %v2763_v45, 16  ;;  %v2436_v55 = vld [vmem:[%s3027_s1] sm:$0xff]  ;;  %v2538_v62 = vld [vmem:[%s3027_s1 + $0x238] sm:$0xff] }
  0x1c   : > { %350 = vmatpush.bf16.msra.mxu0 %v2451_v8  ;;  %2570 = vmatpush.bf16.msra.mxu1 %v2451_v8  ;;  %v2437_v49 = vld [vmem:[%s3027_s1 + $0x8] sm:$0xff]  ;;  %v2461_v56 = vld [vmem:[%s3027_s1 + $0x80] sm:$0xff]  ;;  %v2504_v3 = vld [vmem:[%s3027_s1 + $0x170] sm:$0xff] }
  0x1d   : > { %2571 = vmatpush.bf16.msra.mxu2 %v2451_v8  ;;  %782 = vmatpush.bf16.msra.mxu3 %v2476_v9  ;;  %v2462_v50 = vld [vmem:[%s3027_s1 + $0x88] sm:$0xff]  ;;  %v547_v57 = vor.u32 %v546_v53, %v542_v52  ;;  %v551_v58 = vrot.slane %v549_v54, 1  ;;  %v2485_v59 = vld [vmem:[%s3027_s1 + $0x100] sm:$0xff]  ;;  %v2537_v4 = vld [vmem:[%s3027_s1 + $0x230] sm:$0xff] }
  0x1e   : > { %v2486_v51 = vld [vmem:[%s3027_s1 + $0x108] sm:$0xff]  ;;  %v2432_v0 = vld [vmem:[%s2684_s22] sm:$0xff]  ;;  %v2458_v6 = vld [vmem:[%s2684_s22 + $0x10] sm:$0xff] }
  0x1f   : > { %v552_v63 = vsel %vm540_vm0, %v547_v57, %v551_v58  ;;  %v2481_v1 = vld [vmem:[%s2684_s22 + $0x84] sm:$0xff]  ;;  %v557_v13 = vshll.u32 %v2458_v6, 16  ;;  %v2434_v39 = vld [vmem:[%s2684_s22 + $0x10] sm:$0xff]  ;;  %v2519_v54 = vld [vmem:[%s2684_s22 + $0x38] sm:$0xff] }
  0x20   : > { %351 = vmatpush.bf16.msra.mxu0 %v2450_v10  ;;  %2572 = vmatpush.bf16.msra.mxu1 %v2450_v10  ;;  %v2527_v5 = vld [vmem:[%s3027_s1 + $0x1e0] sm:$0xff]  ;;  %v2471_v7 = vld [vmem:[%s2684_s22 + $0x68] sm:$0xff] }
  0x21   : > { %2573 = vmatpush.bf16.msra.mxu2 %v2450_v10  ;;  %783 = vmatpush.bf16.msra.mxu3 %v2475_v11  ;;  %v2515_v8 = vld [vmem:[%s3027_s1 + $0x1a8] sm:$0xff]  ;;  %v2526_v11 = vld [vmem:[%s3027_s1 + $0x1d8] sm:$0xff]  ;;  %v2535_v16 = vld [vmem:[%s3027_s1 + $0x220] sm:$0xff] }
  0x22   : > { %v2503_v9 = vld [vmem:[%s3027_s1 + $0x168] sm:$0xff] }
  0x23   : > { %v2536_v10 = vld [vmem:[%s3027_s1 + $0x228] sm:$0xff] }
  0x24   : > { %352 = vmatpush.bf16.msra.mxu0 %v2449_v12  ;;  %2574 = vmatpush.bf16.msra.mxu1 %v2449_v12 }
  0x25   : > { %2575 = vmatpush.bf16.msra.mxu2 %v2449_v12  ;;  %784 = vmatpush.bf16.msra.mxu3 %v2474_v14  ;;  %v553_v12 = vshrl.u32 %v2763_v45, 16  ;;  %v2514_v14 = vld [vmem:[%s3027_s1 + $0x1a0] sm:$0xff] }
  0x28   : > { %353 = vmatpush.bf16.msra.mxu0 %v2448_v15  ;;  %2576 = vmatpush.bf16.msra.mxu1 %v2448_v15 }
  0x29   : > { %2577 = vmatpush.bf16.msra.mxu2 %v2448_v15  ;;  %785 = vmatpush.bf16.msra.mxu3 %v2473_v23  ;;  %v2502_v15 = vld [vmem:[%s3027_s1 + $0x160] sm:$0xff]  ;;  %v2482_v23 = vld [vmem:[%s2684_s22 + $0x8c] sm:$0xff] }
  0x2b   : > { %354 = vmatmul.bf16.vlgmr.msra.gmra.mxu0 %v2444_v20  ;;  %364 = vmatmul.bf16.vlgmr.msra.gmra.mxu1 %v2446_v21  ;;  %v2501_v20 = vld [vmem:[%s3027_s1 + $0x158] sm:$0xff] }
  0x2c   : > { %455 = vmatpush.bf16.msrb.mxu1 %v2443_v17  ;;  %923 = vmatpush.bf16.msrb.mxu0 %v2492_v19  ;;  %v555_v17 = vor.u32 %v553_v12, %v551_v58  ;;  %v2513_v19 = vld [vmem:[%s3027_s1 + $0x198] sm:$0xff]  ;;  %v1401_v12 = vshrl.u32 %v2519_v54, 16 }
  0x2d   : > { %633 = vmatpush.bf16.msrb.mxu2 %v2468_v18  ;;  %1481 = vmatpush.bf16.msrb.mxu3 %v2530_v25  ;;  %v559_v18 = vrot.slane %v557_v13, 1  ;;  %v2534_v25 = vld [vmem:[%s3027_s1 + $0x218] sm:$0xff] }
  0x2e   : > { %374 = vmatmul.bf16.vlgmr.msra.gmra.mxu2 %v292_v22  ;;  %786 = vmatmul.bf16.vlgmr.msra.gmra.mxu3 %v2469_v28  ;;  %v2433_v22 = vld [vmem:[%s2684_s22 + $0x8] sm:$0xff]  ;;  %v2525_v28 = vld [vmem:[%s3027_s1 + $0x1d0] sm:$0xff] }
  0x2f   : > { %v560_v21 = vsel %vm540_vm0, %v555_v17, %v559_v18  ;;  %v2493_v17 = vld [vmem:[%s2684_s22 + $0x58] sm:$0xff] }
  0x30   : > { %456 = vmatpush.bf16.msrb.mxu1 %v2442_v24  ;;  %924 = vmatpush.bf16.msrb.mxu0 %v2491_v27  ;;  %v2512_v24 = vld [vmem:[%s3027_s1 + $0x190] sm:$0xff] }
  0x31   : > { %634 = vmatpush.bf16.msrb.mxu2 %v2467_v26  ;;  %1482 = vmatpush.bf16.msrb.mxu3 %v2529_v30  ;;  %v2459_v26 = vld [vmem:[%s2684_s22 + $0x18] sm:$0xff]  ;;  %v2472_v27 = vld [vmem:[%s2684_s22 + $0x70] sm:$0xff]  ;;  %v2511_v30 = vld [vmem:[%s3027_s1 + $0x188] sm:$0xff] }
  0x32   : > { %v569_v52 = vshrl.u32 %v2459_v26, 16 }
  0x34   : > { %457 = vmatpush.bf16.msrb.mxu1 %v2441_v29  ;;  %925 = vmatpush.bf16.msrb.mxu0 %v2490_v32  ;;  %v2500_v29 = vld [vmem:[%s3027_s1 + $0x150] sm:$0xff]  ;;  %v2524_v32 = vld [vmem:[%s3027_s1 + $0x1c8] sm:$0xff] }
  0x35   : > { %635 = vmatpush.bf16.msrb.mxu2 %v2466_v31  ;;  %1483 = vmatpush.bf16.msrb.mxu3 %v2528_v48  ;;  %v2533_v31 = vld [vmem:[%s3027_s1 + $0x210] sm:$0xff]  ;;  %v2532_v48 = vld [vmem:[%s3027_s1 + $0x208] sm:$0xff] }
  0x38   : > { %458 = vmatpush.bf16.msrb.mxu1 %v2440_v33  ;;  %926 = vmatpush.bf16.msrb.mxu0 %v2489_v35  ;;  %v561_v33 = vshrl.u32 %v2458_v6, 16  ;;  %v226_v6 = vld [vmem:[%s2684_s22 + $0x20] sm:$0xf] }
  0x39   : > { %636 = vmatpush.bf16.msrb.mxu2 %v2465_v34  ;;  %1484 = vmatpush.bf16.msrb.mxu3 %v2527_v5  ;;  %v565_v34 = vshll.u32 %v2459_v26, 16  ;;  %v2594_v5 = vld [vmem:[%s2684_s22 + $0x4] sm:$0xf0] }
  0x3a   : > { %v563_v35 = vor.u32 %v561_v33, %v559_v18  ;;  %v2521_v33 = vld [vmem:[%s2684_s22 + $0x48] sm:$0xff] }
  0x3b   : > { %359 = vmatmul.bf16.gmra.mxu0 %v2445_v40  ;;  %369 = vmatmul.bf16.gmra.mxu1 %v2447_v41  ;;  %v2483_v40 = vld [vmem:[%s2684_s22 + $0x94] sm:$0xff]  ;;  %v1982_v41 = vld [vmem:[%s2684_s22 + $0x20] sm:$0xf] }
  0x3c   : > { %459 = vmatpush.bf16.msrb.mxu1 %v2439_v36  ;;  %927 = vmatpush.bf16.msrb.mxu0 %v2488_v38  ;;  %v567_v36 = vrot.slane %v565_v34, 1  ;;  %v1671_v34 = vld [vmem:[%s2914_s29] sm:$0xff] }
  0x3d   : > { %637 = vmatpush.bf16.msrb.mxu2 %v2464_v37  ;;  %1485 = vmatpush.bf16.msrb.mxu3 %v2526_v11  ;;  %v2024_v37 = vld [vmem:[%s2684_s22 + $0x78] sm:$0xf] }
  0x3e   : > { %791 = vmatmul.bf16.gmra.mxu3 %v2470_v47  ;;  %v568_v38 = vsel %vm540_vm0, %v563_v35, %v567_v36  ;;  %v2510_v47 = vld [vmem:[%s3027_s1 + $0x180] sm:$0xff]  ;;  %v2605_v35 = vmov 0  }
  0x3f   : > { %2590 = vset.pattern.permute.xlu0 %v2605_v35  ;;  %2591 = vset.pattern.permute.xlu1 %v2605_v35 }
  0x40   : > { %460 = vmatpush.bf16.msrb.mxu1 %v2438_v42  ;;  %928 = vmatpush.bf16.msrb.mxu0 %v2487_v44  ;;  %v2460_v42 = vld [vmem:[%s2684_s22 + $0x20] sm:$0x10]  ;;  %v2499_v44 = vld [vmem:[%s3027_s1 + $0x148] sm:$0xff] }
  0x41   : > { %638 = vmatpush.bf16.msrb.mxu2 %v2463_v43  ;;  %1486 = vmatpush.bf16.msrb.mxu3 %v2525_v28  ;;  %v719_v43 = vunpack.c.l.b16 %v2024_v37  ;;  %v1983_v45 = vor.u32 %v2460_v42, %v1982_v41 }
  0x42   : > { %1682 = vperm.xlu0 %2590, %v1671_v34   ;;  %2592 = vset.pattern.permute.xlu2 %v2605_v35 }
  0x43   : > { %v724_v46 = vpack.c.b16 %v719_v43, %v719_v43  ;;  %v573_v53 = vshll.u32 %v1983_v45, 16  ;;  %v1413_v43 = vshll.u32 %v2521_v33, 16 }
  0x44   : > { %461 = vmatpush.bf16.msrb.mxu1 %v2437_v49  ;;  %929 = vmatpush.bf16.msrb.mxu0 %v2486_v51  ;;  %v2523_v49 = vld [vmem:[%s3027_s1 + $0x1c0] sm:$0xff]  ;;  %v2518_v51 = vld [vmem:[%s2684_s22 + $0x30] sm:$0xff] }
  0x45   : > { %639 = vmatpush.bf16.msrb.mxu2 %v2462_v50  ;;  %1487 = vmatpush.bf16.msrb.mxu3 %v2524_v32  ;;  %v2498_v50 = vld [vmem:[%s3027_s1 + $0x140] sm:$0xff]  ;;  %v575_v57 = vrot.slane %v573_v53, 1  ;;  %v1390_v58 = vshrl.u32 %v2518_v51, 16  ;;  %v2348_v53 = vld [vmem:[%s2684_s22 + $0x50] sm:$0xf] }
  0x48   : > { %462 = vmatpush.bf16.msrb.mxu1 %v2436_v55  ;;  %930 = vmatpush.bf16.msrb.mxu0 %v2485_v59  ;;  %v1392_v55 = vshll.u32 %v2518_v51, 16  ;;  %v2495_v51 = vld [vmem:[%s2684_s22 + $0x68] sm:$0xff] }
  0x49   : > { %640 = vmatpush.bf16.msrb.mxu2 %v2461_v56  ;;  %1488 = vmatpush.bf16.msrb.mxu3 %v2523_v49  ;;  %v571_v56 = vor.u32 %v569_v52, %v567_v36  ;;  %v1672_v49 = vld [vmem:[%s2914_s29 + $0x8] sm:$0xff] }
  0x4a   : > { %v1394_v59 = vrot.slane %v1392_v55, 1  ;;  %1687 = vperm.xlu0 %2590, %v1672_v49   ;;  %v1678_v49 = vld [vmem:[%s2914_s29 + $0x38] sm:$0xff] }
  0x4b   : > { %463 = vmatmul.bf16.vlgmr.msrb.gmra.mxu1 %v2432_v0  ;;  %931 = vmatmul.bf16.vlgmr.msrb.gmra.mxu0 %v2481_v1  ;;  %v2531_v0 = vld [vmem:[%s3027_s1 + $0x200] sm:$0xff] }
  0x4c   : > { %1109 = vmatpush.bf16.msra.mxu1 %v2505_v61  ;;  %1607 = vmatpush.bf16.msra.mxu0 %v2538_v62  ;;  %v576_v61 = vsel %vm540_vm0, %v571_v56, %v575_v57  ;;  %v2435_v62 = vld [vmem:[%s2684_s22 + $0x18] sm:$0xff]  ;;  %v1395_v1 = vor.u32 %v1394_v59, %v1390_v58  ;;  %v1033_v58 = vshll.u32 %v2495_v51, 16 }
  0x4d   : > { %1295 = vmatpush.bf16.msra.mxu2 %v2517_v60  ;;  %v1397_v60 = vshll.u32 %v2519_v54, 16  ;;  %v2522_v54 = vld [vmem:[%s2684_s22 + $0x50] sm:$0x10] }
  0x4e   : > { %641 = vmatmul.bf16.vlgmr.msrb.gmra.mxu2 %v552_v63  ;;  %796 = vmatmul.bf16.gmra.mxu3 %v2471_v7  ;;  %v2484_v63 = vld [vmem:[%s2684_s22 + $0x9c] sm:$0xff]  ;;  %v2097_v7 = vld [vmem:[%s2684_s22 + $0xa4] sm:$0xf]  ;;  %v2349_v59 = vor.u32 %v2522_v54, %v2348_v53 }
  0x4f   : > { %v864_v11 = vunpack.c.l.b16 %v2097_v7 }
  0x50   : > { %1110 = vmatpush.bf16.msra.mxu1 %v2504_v3  ;;  %1608 = vmatpush.bf16.msra.mxu0 %v2537_v4  ;;  %v1151_v4 = vld [vmem:[%s2684_s22 + $0x4] sm:$0xff]  }
  0x51   : > { %1296 = vmatpush.bf16.msra.mxu2 %v2516_v2  ;;  %v1399_v2 = vrot.slane %v1397_v60, 1  ;;  %v1204_v26 = vshrl.u32 %v1151_v4, 16  ;;  %v1673_v60 = vld [vmem:[%s2914_s29 + $0x10] sm:$0xff] }
  0x52   : > { %1692 = vperm.xlu1 %2591, %v1673_v60  }
  0x53   : > { %v1400_v3 = vsel %vm540_vm0, %v1395_v1, %v1399_v2  ;;  %v1403_v18 = vor.u32 %v1401_v12, %v1399_v2  ;;  %v1417_v2 = vshrl.u32 %v2521_v33, 16  ;;  %v2508_v12 = vld [vmem:[%s2684_s22 + $0x1c] sm:$0xff] }
  0x54   : > { %1111 = vmatpush.bf16.msra.mxu1 %v2503_v9  ;;  %1609 = vmatpush.bf16.msra.mxu0 %v2536_v10  ;;  %v577_v9 = vshrl.u32 %v1983_v45, 16  ;;  %v396_v10 = vunpack.c.l.b16 %v226_v6 }
  0x55   : > { %1297 = vmatpush.bf16.msra.mxu2 %v2515_v8  ;;  %v2520_v8 = vld [vmem:[%s2684_s22 + $0x40] sm:$0xff] }
  0x56   : > { %v1405_v13 = vshll.u32 %v2520_v8, 16  ;;  %v1409_v42 = vshrl.u32 %v2520_v8, 16 }
  0x58   : > { %1112 = vmatpush.bf16.msra.mxu1 %v2502_v15  ;;  %1610 = vmatpush.bf16.msra.mxu0 %v2535_v16  ;;  %v401_v15 = vpack.c.b16 %v396_v10, %v396_v10  ;;  %v869_v16 = vpack.c.b16 %v864_v11, %v864_v11  ;;  %v1674_v11 = vld [vmem:[%s2914_s29 + $0x18] sm:$0xff] }
  0x59   : > { %1298 = vmatpush.bf16.msra.mxu2 %v2514_v14  ;;  %v579_v14 = vor.u32 %v577_v9, %v575_v57 }
  0x5a   : > { %1697 = vperm.xlu1 %2591, %v1674_v11  }
  0x5b   : > { %468 = vmatmul.bf16.gmra.mxu1 %v2433_v22  ;;  %936 = vmatmul.bf16.gmra.mxu0 %v2482_v23  ;;  %v1206_v22 = vshll.u32 %v1151_v4, 16  ;;  %v2494_v23 = vld [vmem:[%s2684_s22 + $0x60] sm:$0xff] }
  0x5c   : > { %1113 = vmatpush.bf16.msra.mxu1 %v2501_v20  ;;  %1611 = vmatpush.bf16.msra.mxu0 %v2534_v25  ;;  %v2595_v20 = vld [vmem:[%s2684_s22 + $0x4] sm:$0xe]  ;;  %v1029_v57 = vshrl.u32 %v2494_v23, 16 }
  0x5d   : > { %1299 = vmatpush.bf16.msra.mxu2 %v2513_v19  ;;  %v1407_v19 = vrot.slane %v1405_v13, 1  ;;  %v2596_v32 = vor.u32 %v2595_v20, %v2594_v5  ;;  %v2496_v13 = vld [vmem:[%s2684_s22 + $0x70] sm:$0xff]  ;;  %v1037_v20 = vshrl.u32 %v2495_v51, 16 }
  0x5e   : > { %646 = vmatmul.bf16.gmra.mxu2 %v560_v21  ;;  %801 = vmatmul.bf16.gmra.mxu3 %v2472_v27  ;;  %v2907_v21 = vld [vmem:[%s2684_s22 + $0xc] sm:$0xff]  ;;  %v1208_v27 = vrot.slane %v1206_v22, 1 }
  0x5f   : > { %v1408_v25 = vsel %vm540_vm0, %v1403_v18, %v1407_v19  ;;  %v1211_v28 = vshll.u32 %v2907_v21, 16  ;;  %v1546_v41 = vrot.slane %v2907_v21, 1  ;;  %v1215_v55 = vshrl.u32 %v2907_v21, 16 }
  0x60   : > { %1114 = vmatpush.bf16.msra.mxu1 %v2500_v29  ;;  %1612 = vmatpush.bf16.msra.mxu0 %v2533_v31  ;;  %v1018_v29 = vshrl.u32 %v2493_v17, 16  ;;  %v1025_v31 = vshll.u32 %v2494_v23, 16  ;;  %v1209_v36 = vor.u32 %v1208_v27, %v1204_v26  ;;  %v1041_v21 = vshll.u32 %v2496_v13, 16 }
  0x61   : > { %1300 = vmatpush.bf16.msra.mxu2 %v2512_v24  ;;  %v1020_v24 = vshll.u32 %v2493_v17, 16  ;;  %v1213_v37 = vrot.slane %v1211_v28, 1  ;;  %v1550_v27 = vrot.slane %v2508_v12, 1 }
  0x62   : > { %v1043_v26 = vrot.slane %v1041_v21, 1  ;;  %1717 = vperm.xlu1 %2591, %v1678_v49  }
  0x64   : > { %1115 = vmatpush.bf16.msra.mxu1 %v2499_v44  ;;  %1613 = vmatpush.bf16.msra.mxu0 %v2532_v48  ;;  %v1214_v44 = vsel %vm540_vm0, %v1209_v36, %v1213_v37  ;;  %v1415_v48 = vrot.slane %v1413_v43, 1  ;;  %v1231_v43 = vshrl.u32 %v2508_v12, 16 }
  0x65   : > { %1301 = vmatpush.bf16.msra.mxu2 %v2511_v30  ;;  %v1022_v30 = vrot.slane %v1020_v24, 1 }
  0x66   : > { %v1419_v9 = vor.u32 %v1417_v2, %v1415_v48 }
  0x68   : > { %1116 = vmatpush.bf16.msra.mxu1 %v2498_v50  ;;  %1614 = vmatpush.bf16.msra.mxu0 %v2531_v0  ;;  %v2507_v50 = vld [vmem:[%s2684_s22 + $0x14] sm:$0xff]  ;;  %v1035_v0 = vrot.slane %v1033_v58, 1 }
  0x69   : > { %1302 = vmatpush.bf16.msra.mxu2 %v2510_v47  ;;  %v1411_v47 = vor.u32 %v1409_v42, %v1407_v19  ;;  %v1219_v56 = vshll.u32 %v2507_v50, 16  ;;  %v1548_v1 = vrot.slane %v2507_v50, 1 }
  0x6b   : > { %473 = vmatmul.bf16.gmra.mxu1 %v2434_v39  ;;  %941 = vmatmul.bf16.gmra.mxu0 %v2483_v40  ;;  %v1027_v39 = vrot.slane %v1025_v31, 1  ;;  %v1545_v40 = vrot.slane %v2596_v32, 1  ;;  %v1416_v52 = vsel %vm540_vm0, %v1411_v47, %v1415_v48  ;;  %v1549_v8 = vsel %vm1544_vm1, %v1546_v41, %v1548_v1  ;;  %v2509_v31 = vld [vmem:[%s2684_s22 + $0x24] sm:$0x10] }
  0x6c   : > { %v1425_v32 = vshrl.u32 %v2349_v59, 16  ;;  %v1551_v36 = vsel %vm1544_vm1, %v1548_v1, %v1550_v27  ;;  %v1045_v47 = vshrl.u32 %v2496_v13, 16 }
  0x6e   : > { %651 = vmatmul.bf16.gmra.mxu2 %v568_v38  ;;  %806 = vmatmul.bf16.gmra.mxu3 %v724_v46  ;;  %v1023_v38 = vor.u32 %v1022_v30, %v1018_v29  ;;  %v1547_v46 = vsel %vm1544_vm1, %v1545_v40, %v1546_v41  ;;  %v2270_v30 = vld [vmem:[%s2684_s22 + $0x24] sm:$0xf]  ;;  %v1047_v54 = vor.u32 %v1045_v47, %v1043_v26 }
  0x70   : > { %v1028_v45 = vsel %vm540_vm0, %v1023_v38, %v1027_v39  ;;  %v2497_v38 = vld [vmem:[%s2684_s22 + $0x78] sm:$0x10] }
  0x7b   : > { %478 = vmatmul.bf16.gmra.mxu1 %v2435_v62  ;;  %946 = vmatmul.bf16.gmra.mxu0 %v2484_v63  ;;  %v1221_v62 = vrot.slane %v1219_v56, 1  ;;  %v1031_v63 = vor.u32 %v1029_v57, %v1027_v39  ;;  %v2271_v39 = vor.u32 %v2509_v31, %v2270_v30 }
  0x7d   : > { %v1036_v7 = vsel %vm540_vm0, %v1031_v63, %v1035_v0  ;;  %v1552_v56 = vrot.slane %v2271_v39, 1  ;;  %v1675_v63 = vld [vmem:[%s2914_s29 + $0x20] sm:$0xff] }
  0x7e   : > { %656 = vmatmul.bf16.gmra.mxu2 %v576_v61  ;;  %1489 = vmatmul.bf16.vlgmr.msrb.gmra.mxu3 %v1400_v3  ;;  %v1217_v61 = vor.u32 %v1215_v55, %v1213_v37  ;;  %v1421_v3 = vshll.u32 %v2349_v59, 16  ;;  %v2206_v37 = vld [vmem:[%s2684_s22 + $0x78] sm:$0xf] }
  0x7f   : > { %v2207_v42 = vor.u32 %v2497_v38, %v2206_v37  ;;  %1702 = vperm.xlu2 %2592, %v1675_v63  }
  0x80   : > { %v1222_v4 = vsel %vm540_vm0, %v1217_v61, %v1221_v62  ;;  %v1423_v10 = vrot.slane %v1421_v3, 1  ;;  %v1553_v61 = vsel %vm1544_vm1, %v1550_v27, %v1552_v56 }
  0x81   : > { %v1049_v48 = vshll.u32 %v2207_v42, 16 }
  0x82   : > { %v1427_v41 = vor.u32 %v1425_v32, %v1423_v10 }
  0x83   : > { %v1051_v55 = vrot.slane %v1049_v48, 1 }
  0x85   : > { %v1052_v60 = vsel %vm540_vm0, %v1047_v54, %v1051_v55 }
  0x8b   : > { %483 = vmatmul.bf16.gmra.mxu1 %v401_v15  ;;  %951 = vmatmul.bf16.gmra.mxu0 %v869_v16  ;;  %v1223_v15 = vshrl.u32 %v2507_v50, 16  ;;  %v1227_v16 = vshll.u32 %v2508_v12, 16  ;;  %v1677_v50 = vld [vmem:[%s2914_s29 + $0x30] sm:$0xff] }
  0x8c   : > { %1712 = vperm.xlu0 %2590, %v1677_v50  }
  0x8d   : > { %v1225_v22 = vor.u32 %v1223_v15, %v1221_v62  ;;  %v1229_v23 = vrot.slane %v1227_v16, 1 }
  0x8e   : > { %661 = vmatmul.bf16.gmra.mxu2 %v579_v14  ;;  %1494 = vmatmul.bf16.gmra.mxu3 %v1408_v25  ;;  %v1424_v14 = vsel %vm540_vm0, %v1419_v9, %v1423_v10  ;;  %v1039_v25 = vor.u32 %v1037_v20, %v1035_v0  ;;  %v1239_v9 = vshrl.u32 %v2271_v39, 16  ;;  %v1676_v10 = vld [vmem:[%s2914_s29 + $0x28] sm:$0xff] }
  0x8f   : > { %v1230_v28 = vsel %vm540_vm0, %v1225_v22, %v1229_v23  ;;  %v1233_v51 = vor.u32 %v1231_v43, %v1229_v23  ;;  %1707 = vperm.xlu2 %2592, %v1676_v10  }
  0x90   : > { %v1044_v35 = vsel %vm540_vm0, %v1039_v25, %v1043_v26 }
  0x9b   : > { %1117 = vmatmul.bf16.vlgmr.msra.gmra.mxu1 %v1028_v45  ;;  %1615 = vmatmul.bf16.vlgmr.msra.gmra.mxu0 %v1547_v46 }
  0x9e   : > { %1303 = vmatmul.bf16.vlgmr.msra.gmra.mxu2 %v1214_v44  ;;  %1499 = vmatmul.bf16.gmra.mxu3 %v1416_v52  ;;  %v1235_v44 = vshll.u32 %v2271_v39, 16 }
  0xa0   : > { %v1237_v52 = vrot.slane %v1235_v44, 1 }
  0xa2   : > { %v1238_v57 = vsel %vm540_vm0, %v1233_v51, %v1237_v52  ;;  %v1241_v15 = vor.u32 %v1239_v9, %v1237_v52 }
  0xa8   : > { %v2932_v5 = vpop.f32.mrf.mxu0  ;;  %v2934_v6 = vpop.f32.mrf.mxu1 }
  0xab   : > { %1122 = vmatmul.bf16.gmra.mxu1 %v1036_v7  ;;  %1620 = vmatmul.bf16.gmra.mxu0 %v1549_v8 }
  0xae   : > { %1308 = vmatmul.bf16.gmra.mxu2 %v1222_v4  ;;  %1504 = vmatmul.bf16.gmra.mxu3 %v1424_v14 }
  0xb0   : > { %v357_v18 = vpop.f32.mrf.mxu0  ;;  %v2944_v19 = vpop.f32.mrf.mxu1 }
  0xb1   : > { %v2942_v17 = vpop.f32.mrf.mxu2  ;;  %v787_v24 = vpop.f32.mrf.mxu3 }
  0xb8   : > { %v360_v33 = vpop.f32.mrf.mxu0  ;;  %v2949_v34 = vpop.f32.mrf.mxu1 }
  0xb9   : > { %v377_v29 = vpop.f32.mrf.mxu2  ;;  %v789_v40 = vpop.f32.mrf.mxu3 }
  0xbb   : > { %1127 = vmatmul.bf16.gmra.mxu1 %v1044_v35  ;;  %1625 = vmatmul.bf16.gmra.mxu0 %v1551_v36 }
  0xbe   : > { %1313 = vmatmul.bf16.gmra.mxu2 %v1230_v28  ;;  %1509 = vmatmul.bf16.gmra.mxu3 %v1427_v41 }
  0xc0   : > { %v362_v45 = vpop.f32.mrf.mxu0  ;;  %v2955_v46 = vpop.f32.mrf.mxu1 }
  0xc1   : > { %v792_v53 = vpop.f32.mrf.mxu3 }
  0xc8   : > { %v464_v58 = vpop.f32.mrf.mxu1  ;;  %v932_v59 = vpop.f32.mrf.mxu0 }
  0xc9   : > { %v465_v62 = vadd.f32 %v464_v58, %v2932_v5  ;;  %v794_v0 = vpop.f32.mrf.mxu3  ;;  %v1053_v5 = vshrl.u32 %v2207_v42, 16 }
  0xcb   : > { %1132 = vmatmul.bf16.gmra.mxu1 %v1052_v60  ;;  %1630 = vmatmul.bf16.gmra.mxu0 %v1553_v61  ;;  %v1055_v20 = vor.u32 %v1053_v5, %v1051_v55 }
  0xce   : > { %1318 = vmatmul.bf16.gmra.mxu2 %v1238_v57 }
  0xd0   : > { %v466_v4 = vpop.f32.mrf.mxu1  ;;  %v934_v7 = vpop.f32.mrf.mxu0 }
  0xd1   : > { %v642_v1 = vpop.f32.mrf.mxu2  ;;  %v467_v8 = vadd.f32 %v466_v4, %v357_v18  ;;  %v797_v12 = vpop.f32.mrf.mxu3 }
  0xd2   : > { %v666_v2 = vadd.f32 %v642_v1, %v465_v62 }
  0xd4   : > { %v811_v3 = vadd.f32 %v787_v24, %v666_v2  ;;  %v1679_v24 = vld [vmem:[%s2914_s29 + $0x40] sm:$0xff] }
  0xd5   : > { %1722 = vperm.xlu2 %2592, %v1679_v24  }
  0xd6   : > { %v2965_v11 = vadd.f32 %v932_v59, %v811_v3 }
  0xd8   : > { %v469_v21 = vpop.f32.mrf.mxu1  ;;  %v937_v22 = vpop.f32.mrf.mxu0 }
  0xd9   : > { %v644_v13 = vpop.f32.mrf.mxu2  ;;  %v470_v23 = vadd.f32 %v469_v21, %v360_v33  ;;  %v799_v18 = vpop.f32.mrf.mxu3 }
  0xda   : > { %v667_v14 = vadd.f32 %v644_v13, %v467_v8 }
  0xdb   : > { %1137 = vmatmul.bf16.gmra.mxu1 %v1055_v20  ;;  %1635 = vmatmul.bf16.gmra.mxu0 %v1552_v56 }
  0xdc   : > { %v812_v16 = vadd.f32 %v789_v40, %v667_v14 }
  0xde   : > { %1323 = vmatmul.bf16.gmra.mxu2 %v1241_v15  ;;  %v2968_v25 = vadd.f32 %v934_v7, %v812_v16 }
  0xe0   : > { %v471_v29 = vpop.f32.mrf.mxu1  ;;  %v939_v30 = vpop.f32.mrf.mxu0 }
  0xe1   : > { %v647_v26 = vpop.f32.mrf.mxu2  ;;  %v472_v31 = vadd.f32 %v471_v29, %v362_v45  ;;  %v802_v35 = vpop.f32.mrf.mxu3 }
  0xe2   : > { %v668_v27 = vadd.f32 %v647_v26, %v470_v23 }
  0xe4   : > { %v813_v28 = vadd.f32 %v792_v53, %v668_v27 }
  0xe6   : > { %v2970_v32 = vadd.f32 %v937_v22, %v813_v28 }
  0xe8   : > { %v474_v38 = vpop.f32.mrf.mxu1  ;;  %v942_v39 = vpop.f32.mrf.mxu0 }
  0xe9   : > { %v649_v36 = vpop.f32.mrf.mxu2  ;;  %v475_v40 = vadd.f32 %v474_v38, %v2934_v6  ;;  %v804_v42 = vpop.f32.mrf.mxu3 }
  0xea   : > { %v669_v37 = vadd.f32 %v649_v36, %v472_v31  ;;  %v2994_v36 = vld [vmem:[%s3028_s2] ss:$0 sm:$0xff] }
  0xec   : > { %v814_v33 = vadd.f32 %v794_v0, %v669_v37 }
  0xee   : > { %v2973_v41 = vadd.f32 %v939_v30, %v814_v33  ;;  %v1683_v30 = vpop.permute.xlu0 %1682 }
  0xf0   : > { %v476_v48 = vpop.f32.mrf.mxu1  ;;  %v944_v49 = vpop.f32.mrf.mxu0 }
  0xf1   : > { %v652_v43 = vpop.f32.mrf.mxu2  ;;  %v477_v45 = vadd.f32 %v476_v48, %v2944_v19  ;;  %v807_v51 = vpop.f32.mrf.mxu3 }
  0xf2   : > { %v670_v44 = vadd.f32 %v652_v43, %v475_v40 }
  0xf4   : > { %v815_v47 = vadd.f32 %v797_v12, %v670_v44 }
  0xf6   : > { %v2976_v50 = vadd.f32 %v942_v39, %v815_v47 }
  0xf8   : > { %v479_v55 = vpop.f32.mrf.mxu1  ;;  %v947_v56 = vpop.f32.mrf.mxu0 }
  0xf9   : > { %v654_v52 = vpop.f32.mrf.mxu2  ;;  %v480_v6 = vadd.f32 %v479_v55, %v2949_v34  ;;  %v809_v58 = vpop.f32.mrf.mxu3 }
  0xfa   : > { %v671_v53 = vadd.f32 %v654_v52, %v477_v45  ;;  %v1693_v58 = vpop.permute.xlu1 %1692 }
  0xfc   : > { %v816_v54 = vadd.f32 %v799_v18, %v671_v53 }
  0xfe   : > { %v2979_v57 = vadd.f32 %v944_v49, %v816_v54  ;;  %v1688_v49 = vpop.permute.xlu0 %1687 }
 0x100   : > { %v481_v62 = vpop.f32.mrf.mxu1  ;;  %v949_v63 = vpop.f32.mrf.mxu0 }
 0x101   : > { %v657_v59 = vpop.f32.mrf.mxu2  ;;  %v482_v19 = vadd.f32 %v481_v62, %v2955_v46  ;;  %v1490_v1 = vpop.f32.mrf.mxu3 }
 0x102   : > { %v672_v60 = vadd.f32 %v657_v59, %v480_v6 }
 0x104   : > { %v817_v61 = vadd.f32 %v802_v35, %v672_v60 }
 0x106   : > { %v2982_v0 = vadd.f32 %v947_v56, %v817_v61 }
 0x108   : > { %v484_v7 = vpop.f32.mrf.mxu1  ;;  %v952_v8 = vpop.f32.mrf.mxu0 }
 0x109   : > { %v659_v2 = vpop.f32.mrf.mxu2  ;;  %v485_v34 = vadd.f32 %v484_v7, %v2942_v17  ;;  %v1492_v10 = vpop.f32.mrf.mxu3 }
 0x10a   : > { %v673_v3 = vadd.f32 %v659_v2, %v482_v19 }
 0x10c   : > { %v818_v4 = vadd.f32 %v804_v42, %v673_v3 }
 0x10e   : > { %v2985_v9 = vadd.f32 %v949_v63, %v818_v4 }
 0x110   : > { %v486_v14 = vpop.f32.mrf.mxu1  ;;  %v954_v15 = vpop.f32.mrf.mxu0 }
 0x111   : > { %v662_v12 = vpop.f32.mrf.mxu2  ;;  %v1495_v46 = vpop.f32.mrf.mxu3 }
 0x112   : > { %v674_v5 = vadd.f32 %v662_v12, %v485_v34 }
 0x114   : > { %v819_v13 = vadd.f32 %v807_v51, %v674_v5 }
 0x116   : > { %v2987_v16 = vadd.f32 %v952_v8, %v819_v13 }
 0x118   : > { %v1118_v21 = vpop.f32.mrf.mxu1  ;;  %v1616_v22 = vpop.f32.mrf.mxu0 }
 0x119   : > { %v664_v20 = vpop.f32.mrf.mxu2  ;;  %v1142_v23 = vadd.f32 %v1118_v21, %v2965_v11  ;;  %v1497_v24 = vpop.f32.mrf.mxu3 }
 0x120   : > { %v1120_v27 = vpop.f32.mrf.mxu1  ;;  %v1618_v28 = vpop.f32.mrf.mxu0 }
 0x121   : > { %v1304_v18 = vpop.f32.mrf.mxu2  ;;  %v1143_v29 = vadd.f32 %v1120_v27, %v2968_v25  ;;  %v1500_v31 = vpop.f32.mrf.mxu3 }
 0x122   : > { %v1328_v26 = vadd.f32 %v1304_v18, %v1142_v23  ;;  %v1703_v23 = vpop.permute.xlu2 %1702 }
 0x124   : > { %v1514_v17 = vadd.f32 %v1490_v1, %v1328_v26 }
 0x126   : > { %v1640_v35 = vadd.f32 %v1616_v22, %v1514_v17 }
 0x128   : > { %v1653_v38 = vadd.f32 %v2994_v36, %v1640_v35  ;;  %v1123_v39 = vpop.f32.mrf.mxu1  ;;  %v1621_v40 = vpop.f32.mrf.mxu0 }
 0x129   : > { %v1306_v37 = vpop.f32.mrf.mxu2  ;;  %v1144_v43 = vadd.f32 %v1123_v39, %v2970_v32  ;;  %v1502_v25 = vpop.f32.mrf.mxu3 }
 0x12a   : > { %v1329_v33 = vadd.f32 %v1306_v37, %v1143_v29  ;;  %v1662_v44 = vmax.f32 %v1653_v38, 0.0 }
 0x12c   : > { %v1515_v11 = vadd.f32 %v1492_v10, %v1329_v33  ;;  %v1725_v52 = vmul.f32 %v1683_v30, %v1662_v44  ;;  %v1698_v10 = vpop.permute.xlu1 %1697 }
 0x12e   : > { %v1641_v42 = vadd.f32 %v1618_v28, %v1515_v11  ;;  %v1708_v11 = vpop.permute.xlu2 %1707 }
 0x130   : > { %v1654_v47 = vadd.f32 %v2994_v36, %v1641_v42  ;;  %v1125_v55 = vpop.f32.mrf.mxu1  ;;  %v1623_v32 = vpop.f32.mrf.mxu0 }
 0x131   : > { %v1309_v48 = vpop.f32.mrf.mxu2  ;;  %v1145_v6 = vadd.f32 %v1125_v55, %v2973_v41  ;;  %v1505_v59 = vpop.f32.mrf.mxu3 }
 0x132   : > { %v1330_v45 = vadd.f32 %v1309_v48, %v1144_v43  ;;  %v1663_v51 = vmax.f32 %v1654_v47, 0.0 }
 0x134   : > { %v1516_v53 = vadd.f32 %v1495_v46, %v1330_v45  ;;  %v1726_v54 = vmul.f32 %v1688_v49, %v1663_v51 }
 0x136   : > { %v2542_v56 = vpack.c.bf16 %v1726_v54, %v1725_v52  ;;  %v1642_v60 = vadd.f32 %v1621_v40, %v1516_v53 }
 0x138   : > { %2543 = vst [vmem:[%s3003_s8] sm:$0xff] %v2542_v56   ;;  %v1655_v19 = vadd.f32 %v2994_v36, %v1642_v60  ;;  %v1128_v1 = vpop.f32.mrf.mxu1  ;;  %v1626_v2 = vpop.f32.mrf.mxu0 }
 0x139   : > { %v1311_v61 = vpop.f32.mrf.mxu2  ;;  %v1146_v4 = vadd.f32 %v1128_v1, %v2976_v50  ;;  %v1507_v7 = vpop.f32.mrf.mxu3 }
 0x13a   : > { %v1331_v62 = vadd.f32 %v1311_v61, %v1145_v6  ;;  %v1664_v8 = vmax.f32 %v1655_v19, 0.0  ;;  %v1718_v61 = vpop.permute.xlu1 %1717 }
 0x13c   : > { %v1517_v63 = vadd.f32 %v1497_v24, %v1331_v62  ;;  %v1727_v13 = vmul.f32 %v1693_v58, %v1664_v8  ;;  %v1713_v58 = vpop.permute.xlu0 %1712 }
 0x13e   : > { %v1643_v3 = vadd.f32 %v1623_v32, %v1517_v63 }
 0x140   : > { %v1656_v34 = vadd.f32 %v2994_v36, %v1643_v3  ;;  %v1130_v46 = vpop.f32.mrf.mxu1  ;;  %v1628_v20 = vpop.f32.mrf.mxu0 }
 0x141   : > { %v1314_v41 = vpop.f32.mrf.mxu2  ;;  %v1147_v22 = vadd.f32 %v1130_v46, %v2979_v57  ;;  %v1510_v24 = vpop.f32.mrf.mxu3 }
 0x142   : > { %v1332_v12 = vadd.f32 %v1314_v41, %v1146_v4  ;;  %v1665_v5 = vmax.f32 %v1656_v34, 0.0  ;;  %v1723_v34 = vpop.permute.xlu2 %1722 }
 0x144   : > { %v1518_v14 = vadd.f32 %v1500_v31, %v1332_v12  ;;  %v1728_v15 = vmul.f32 %v1698_v10, %v1665_v5 }
 0x146   : > { %v2547_v21 = vpack.c.bf16 %v1728_v15, %v1727_v13  ;;  %v1644_v50 = vadd.f32 %v1626_v2, %v1518_v14 }
 0x148   : > { %2559 = vst [vmem:[%s3003_s8 + $0x8] sm:$0xff] %v2547_v21   ;;  %v1657_v27 = vadd.f32 %v2994_v36, %v1644_v50  ;;  %v1133_v28 = vpop.f32.mrf.mxu1  ;;  %v1631_v29 = vpop.f32.mrf.mxu0 }
 0x149   : > { %v1316_v18 = vpop.f32.mrf.mxu2  ;;  %v1148_v31 = vadd.f32 %v1133_v28, %v2982_v0  ;;  %v1512_v35 = vpop.f32.mrf.mxu3 }
 0x14a   : > { %v1333_v26 = vadd.f32 %v1316_v18, %v1147_v22  ;;  %v1666_v37 = vmax.f32 %v1657_v27, 0.0 }
 0x14c   : > { %v1519_v17 = vadd.f32 %v1502_v25, %v1333_v26  ;;  %v1729_v40 = vmul.f32 %v1703_v23, %v1666_v37 }
 0x14e   : > { %v1645_v30 = vadd.f32 %v1628_v20, %v1519_v17 }
 0x150   : > { %v1658_v33 = vadd.f32 %v2994_v36, %v1645_v30  ;;  %v1135_v25 = vpop.f32.mrf.mxu1  ;;  %v1633_v44 = vpop.f32.mrf.mxu0 }
 0x151   : > { %v1319_v57 = vpop.f32.mrf.mxu2  ;;  %v1149_v48 = vadd.f32 %v1135_v25, %v2985_v9 }
 0x152   : > { %v1334_v38 = vadd.f32 %v1319_v57, %v1148_v31  ;;  %v1667_v39 = vmax.f32 %v1658_v33, 0.0 }
 0x154   : > { %v1520_v42 = vadd.f32 %v1505_v59, %v1334_v38  ;;  %v1730_v43 = vmul.f32 %v1708_v11, %v1667_v39 }
 0x156   : > { %v2552_v47 = vpack.c.bf16 %v1730_v43, %v1729_v40  ;;  %v1646_v49 = vadd.f32 %v1631_v29, %v1520_v42 }
 0x158   : > { %2560 = vst [vmem:[%s3003_s8 + $0x10] sm:$0xff] %v2552_v47   ;;  %v1659_v52 = vadd.f32 %v2994_v36, %v1646_v49  ;;  %v1138_v53 = vpop.f32.mrf.mxu1  ;;  %v1636_v54 = vpop.f32.mrf.mxu0 }
 0x159   : > { %v1321_v0 = vpop.f32.mrf.mxu2  ;;  %v1150_v32 = vadd.f32 %v1138_v53, %v2987_v16 }
 0x15a   : > { %v1335_v45 = vadd.f32 %v1321_v0, %v1149_v48  ;;  %v1668_v6 = vmax.f32 %v1659_v52, 0.0 }
 0x15c   : > { %v1521_v51 = vadd.f32 %v1507_v7, %v1335_v45  ;;  %v1731_v63 = vmul.f32 %v1713_v58, %v1668_v6 }
 0x15e   : > { %v1647_v55 = vadd.f32 %v1633_v44, %v1521_v51 }
 0x160   : > { %v1660_v56 = vadd.f32 %v2994_v36, %v1647_v55  ;;  %v1140_v1 = vpop.f32.mrf.mxu1  ;;  %v1638_v2 = vpop.f32.mrf.mxu0 }
 0x161   : > { %v1324_v59 = vpop.f32.mrf.mxu2 }
 0x162   : > { %v1669_v60 = vmax.f32 %v1660_v56, 0.0  ;;  %v1336_v9 = vadd.f32 %v1324_v59, %v1150_v32 }
 0x164   : > { %v1732_v62 = vmul.f32 %v1718_v61, %v1669_v60  ;;  %v1522_v19 = vadd.f32 %v1510_v24, %v1336_v9 }
 0x166   : > { %v2557_v3 = vpack.c.bf16 %v1732_v62, %v1731_v63  ;;  %v1648_v4 = vadd.f32 %v1636_v54, %v1522_v19 }
 0x168   : > { %2561 = vst [vmem:[%s3003_s8 + $0x18] sm:$0xff] %v2557_v3   ;;  %v1661_v7 = vadd.f32 %v2994_v36, %v1648_v4 }
 0x169   : > { %v1326_v16 = vpop.f32.mrf.mxu2 }
 0x16a   : > { %v1670_v8 = vmax.f32 %v1661_v7, 0.0 }
 0x16c   : > { %v1733_v41 = vmul.f32 %v1723_v34, %v1670_v8 }
 0x16e   : > { %v1742_v10 = vpack.c.bf16 %v1733_v41, %v1733_v41 }
 0x170   : > { %1751 = vst [vmem:[%s3003_s8 + $0x20] sm:$0xf] %v1742_v10 }
 0x171 PF: > { %s14_s15 = sadd.s32 1, %s2603_s15  }
 0x172   : > { %p11_p4 = scmp.ge.s32.totalorder %s14_s15, 4  }
 0x174   :  { %13 = sbr.rel (!%p11_p4) target bundleno = 1 (0x1), region = 80 }

// kernel: deeplab_forward.11
= control target key start
LH: loop header
LB: loop body
LE: loop exit
PB: predicated region body
PF: predicated region fallthrough
CT: control target
= control target key end

     0   :  { %s1783_s12 = smov 0   ;;  %s2075_s0 = inlined_call_operand.vmem [shape: bf16[2,4,26,128], index: 0, kind: input, shape index: {}]   ;;  %s2076_s1 = inlined_call_operand.vmem [shape: bf16[9,128,128], index: 1, kind: input, shape index: {}]   ;;  %s2077_s2 = inlined_call_operand.vmem [shape: f32[1,128], index: 2, kind: input, shape index: {}]   ;;  %s2078_s3 = inlined_call_operand.vmem [shape: bf16[2,20,128], index: 3, kind: output, shape index: {}]  }
   0x1 LB: > { %s1184_s13 = sadd.s32 4294967295, %s1761_s12   ;;  %p1188_p0 = scmp.ge.s32.totalorder %s1761_s12, 1  ;;  %s1761_s12 = sphi %s1783_s12, %s13_s12  }
   0x2   : > { %p137_p1 = scmp.lt.s32.totalorder %s1761_s12, 3 }
   0x4   : > { %p138_p2 = pnand %p1188_p0, %p137_p1 }
   0x5   : > { %p161_p3 = scmp.lt.s32.totalorder (!%p138_p2), %s1184_s13, 1 }
   0x6   : > { %141 = sbr.rel (%p138_p2) target bundleno = 250 (0xfa), region = 32 }
   0xb   : > { %v1670_v0 = vld [vmem:[%s2076_s1 + $0x78] sm:$0xff]  ;;  %v1669_v4 = vld [vmem:[%s2076_s1 + $0x70] sm:$0xff]  ;;  %s2080_s13 = smov (!%p161_p3, %s1184_s13), 1  ;;  %v1668_v8 = vld [vmem:[%s2076_s1 + $0x68] sm:$0xff]  ;;  %vm384_vm0 = vsmask.f32 7424 }
   0xc   : > { %v1661_v1 = vld [vmem:[%s2076_s1 + $0x38] sm:$0xff]  ;;  %269 = vmatpush.bf16.msra.mxu0 %v1670_v0  ;;  %v1660_v5 = vld [vmem:[%s2076_s1 + $0x30] sm:$0xff]  ;;  %v1659_v9 = vld [vmem:[%s2076_s1 + $0x28] sm:$0xff]  ;;  %s1652_s7 = sshll.u32 %s2080_s13, 6  ;;  %vm809_vm1 = vsmask.f32 5376 }
   0xd   : > { %v1678_v2 = vld [vmem:[%s2076_s1 + $0xb8] sm:$0xff]  ;;  %345 = vmatpush.bf16.msra.mxu1 %v1661_v1  ;;  %v1677_v6 = vld [vmem:[%s2076_s1 + $0xb0] sm:$0xff]  ;;  %v1676_v10 = vld [vmem:[%s2076_s1 + $0xa8] sm:$0xff]  ;;  %s1833_s16 = scalar_lea.vmem %s2075_s0, %s1652_s7  ;;  %vm1038_vm2 = vcmask 1044480   ;;  %s1745_s18 = smul.u32 12, %s2080_s13 }
   0xe   : > { %v1687_v3 = vld [vmem:[%s2076_s1 + $0xf8] sm:$0xff]  ;;  %450 = vmatpush.bf16.msra.mxu2 %v1678_v2  ;;  %v1686_v7 = vld [vmem:[%s2076_s1 + $0xf0] sm:$0xff]  ;;  %v1685_v11 = vld [vmem:[%s2076_s1 + $0xe8] sm:$0xff] }
   0xf   : > { %550 = vmatpush.bf16.msra.mxu3 %v1687_v3  ;;  %v1667_v12 = vld [vmem:[%s2076_s1 + $0x60] sm:$0xff]  ;;  %v363_v16 = vld [vmem:[%s1833_s16 + $0x8] sm:$0x7]  ;;  %v1666_v17 = vld [vmem:[%s2076_s1 + $0x58] sm:$0xff]  ;;  %s170_s21 = scalar_lea.vmem %s2078_s3, %s1745_s18 }
  0x10   : > { %270 = vmatpush.bf16.msra.mxu0 %v1669_v4  ;;  %v1658_v13 = vld [vmem:[%s2076_s1 + $0x20] sm:$0xff]  ;;  %v1657_v18 = vld [vmem:[%s2076_s1 + $0x18] sm:$0xff]  ;;  %v382_v22 = vunpack.c.l.b16 %v363_v16  ;;  %v1665_v23 = vld [vmem:[%s2076_s1 + $0x50] sm:$0xff] }
  0x11   : > { %346 = vmatpush.bf16.msra.mxu1 %v1660_v5  ;;  %v1675_v14 = vld [vmem:[%s2076_s1 + $0xa0] sm:$0xff]  ;;  %v1674_v19 = vld [vmem:[%s2076_s1 + $0x98] sm:$0xff]  ;;  %v1656_v24 = vld [vmem:[%s2076_s1 + $0x10] sm:$0xff] }
  0x12   : > { %451 = vmatpush.bf16.msra.mxu2 %v1677_v6  ;;  %v1684_v15 = vld [vmem:[%s2076_s1 + $0xe0] sm:$0xff]  ;;  %v1683_v20 = vld [vmem:[%s2076_s1 + $0xd8] sm:$0xff]  ;;  %v1673_v25 = vld [vmem:[%s2076_s1 + $0x90] sm:$0xff]  ;;  %v1873_v27 = vpack.c.b16 %v382_v22, %v382_v22 }
  0x13   : > { %551 = vmatpush.bf16.msra.mxu3 %v1686_v7  ;;  %v1653_v21 = vld [vmem:[%s1833_s16] sm:$0xff]  ;;  %v1682_v26 = vld [vmem:[%s2076_s1 + $0xd0] sm:$0xff]  ;;  %v1664_v29 = vld [vmem:[%s2076_s1 + $0x48] sm:$0xff] }
  0x14   : > { %271 = vmatpush.bf16.msra.mxu0 %v1668_v8  ;;  %v388_v28 = vshll.u32 %v1653_v21, 16  ;;  %v1655_v30 = vld [vmem:[%s2076_s1 + $0x8] sm:$0xff]  ;;  %v386_v33 = vshrl.u32 %v1653_v21, 16  ;;  %v393_v35 = vshll.u32 %v1873_v27, 16  ;;  %v1663_v36 = vld [vmem:[%s2076_s1 + $0x40] sm:$0xff]  ;;  %v1696_v42 = vld [vmem:[%s2076_s1 + $0x138] sm:$0xff] }
  0x15   : > { %347 = vmatpush.bf16.msra.mxu1 %v1659_v9  ;;  %v1672_v31 = vld [vmem:[%s2076_s1 + $0x88] sm:$0xff]  ;;  %v1654_v37 = vld [vmem:[%s2076_s1] sm:$0xff]  ;;  %v1704_v43 = vld [vmem:[%s2076_s1 + $0x178] sm:$0xff]  ;;  %v397_v4 = vshrl.u32 %v1873_v27, 16 }
  0x16   : > { %452 = vmatpush.bf16.msra.mxu2 %v1676_v10  ;;  %v1681_v32 = vld [vmem:[%s2076_s1 + $0xc8] sm:$0xff]  ;;  %v390_v34 = vrot.slane %v388_v28, 1  ;;  %v1671_v38 = vld [vmem:[%s2076_s1 + $0x80] sm:$0xff]  ;;  %v1900_v41 = vrot.slane %v393_v35, 1  ;;  %v1662_v44 = vld [vmem:[%s1833_s16 + $0x10] sm:$0xff] }
  0x17   : > { %552 = vmatpush.bf16.msra.mxu3 %v1685_v11  ;;  %v1680_v39 = vld [vmem:[%s2076_s1 + $0xc0] sm:$0xff]  ;;  %v1713_v47 = vld [vmem:[%s2076_s1 + $0x1b8] sm:$0xff]  ;;  %v1695_v49 = vld [vmem:[%s2076_s1 + $0x130] sm:$0xff] }
  0x18   : > { %272 = vmatpush.bf16.msra.mxu0 %v1667_v12  ;;  %v391_v40 = vor.u32 %v390_v34, %v386_v33  ;;  %v1910_v45 = vld [vmem:[%s1833_s16 + $0x20] sm:$0xff]  ;;  %v1723_v48 = vld [vmem:[%s2076_s1 + $0x1f8] sm:$0xff]  ;;  %v1703_v50 = vld [vmem:[%s2076_s1 + $0x170] sm:$0xff] }
  0x19   : > { %348 = vmatpush.bf16.msra.mxu1 %v1658_v13  ;;  %v1712_v51 = vld [vmem:[%s2076_s1 + $0x1b0] sm:$0xff]  ;;  %v1694_v53 = vld [vmem:[%s2076_s1 + $0x128] sm:$0xff]  ;;  %v1194_v57 = vld [vmem:[%s1833_s16 + $0x18] sm:$0x3] }
  0x1a   : > { %453 = vmatpush.bf16.msra.mxu2 %v1675_v14  ;;  %v396_v46 = vsel %vm384_vm0, %v391_v40, %v1900_v41  ;;  %v1722_v52 = vld [vmem:[%s2076_s1 + $0x1f0] sm:$0xff]  ;;  %v1702_v54 = vld [vmem:[%s2076_s1 + $0x168] sm:$0xff]  ;;  %v778_v60 = vld [vmem:[%s1833_s16] sm:$0xc]  ;;  %v216_v2 = vunpack.c.l.b16 %v1194_v57 }
  0x1b   : > { %553 = vmatpush.bf16.msra.mxu3 %v1684_v15  ;;  %v1711_v55 = vld [vmem:[%s2076_s1 + $0x1a8] sm:$0xff]  ;;  %v1950_v61 = vld [vmem:[%s1833_s16 + $0x4] sm:$0xf]  ;;  %v1692_v5 = vld [vmem:[%s2076_s1 + $0x118] sm:$0xff]  ;;  %v803_v9 = vunpack.c.l.b16 %v778_v60 }
  0x1c   : > { %273 = vmatpush.bf16.msra.mxu0 %v1666_v17  ;;  %v1721_v56 = vld [vmem:[%s2076_s1 + $0x1e8] sm:$0xff]  ;;  %v1693_v62 = vld [vmem:[%s2076_s1 + $0x120] sm:$0xff]  ;;  %v1700_v6 = vld [vmem:[%s2076_s1 + $0x158] sm:$0xff]  ;;  %v804_v10 = vunpack.c.l.b16 %v1950_v61  ;;  %v218_v17 = vpack.c.b16 %v216_v2, %v216_v2 }
  0x1d   : > { %349 = vmatpush.bf16.msra.mxu1 %v1657_v18  ;;  %v173_v58 = vld [vmem:[%s1833_s16 + $0x8] sm:$0x3]  ;;  %v1701_v63 = vld [vmem:[%s2076_s1 + $0x160] sm:$0xff]  ;;  %v1705_v12 = vld [vmem:[%s1833_s16 + $0x8] sm:$0x10] }
  0x1e   : > { %454 = vmatpush.bf16.msra.mxu2 %v1674_v19  ;;  %v1333_v59 = vld [vmem:[%s1833_s16 + $0x28] sm:$0x3]  ;;  %v1710_v0 = vld [vmem:[%s2076_s1 + $0x1a0] sm:$0xff]  ;;  %v292_v3 = vunpack.c.l.b16 %v173_v58  ;;  %v1564_v13 = vld [vmem:[%s1833_s16 + $0x10] sm:$0xc]  ;;  %v807_v22 = vpack.c.b16 %v804_v10, %v803_v9 }
  0x1f   : > { %554 = vmatpush.bf16.msra.mxu3 %v1683_v20  ;;  %v1720_v1 = vld [vmem:[%s2076_s1 + $0x1e0] sm:$0xff]  ;;  %v497_v7 = vunpack.c.l.b16 %v1333_v59  ;;  %v1441_v8 = vld [vmem:[%s1833_s16 + $0x28] sm:$0x7]  ;;  %v1714_v14 = vld [vmem:[%s1833_s16 + $0x10] sm:$0xf0]  ;;  %v399_v20 = vor.u32 %v397_v4, %v1900_v41 }
  0x20   : > { %274 = vmatpush.bf16.msra.mxu0 %v1665_v23  ;;  %v1508_v11 = vld [vmem:[%s1833_s16 + $0x8] sm:$0xf]  ;;  %v1568_v15 = vld [vmem:[%s1833_s16 + $0x18] sm:$0xf]  ;;  %v1715_v16 = vld [vmem:[%s1833_s16 + $0x18] sm:$0x10]  ;;  %v294_v18 = vpack.c.b16 %v292_v3, %v292_v3  ;;  %v690_v19 = vunpack.c.l.b16 %v1441_v8 }
  0x21   : > { %350 = vmatpush.bf16.msra.mxu1 %v1656_v24  ;;  %v1982_v23 = vor.u32 %v1705_v12, %v1508_v11  ;;  %v1709_v24 = vld [vmem:[%s2076_s1 + $0x198] sm:$0xff]  ;;  %v1569_v27 = vor.u32 %v1715_v16, %v1568_v15  ;;  %v1691_v28 = vld [vmem:[%s2076_s1 + $0x110] sm:$0xff]  ;;  %v814_v33 = vshll.u32 %v807_v22, 16  ;;  %v1689_v57 = vld [vmem:[%s2076_s1 + $0x100] sm:$0xff] }
  0x22   : > { %455 = vmatpush.bf16.msra.mxu2 %v1673_v25  ;;  %v1719_v25 = vld [vmem:[%s2076_s1 + $0x1d8] sm:$0xff]  ;;  %v1697_v58 = vld [vmem:[%s2076_s1 + $0x140] sm:$0xff]  ;;  %v1730_v9 = vld [vmem:[%s2076_s1 + $0x230] sm:$0xff] }
  0x23   : > { %555 = vmatpush.bf16.msra.mxu3 %v1682_v26  ;;  %v1565_v26 = vor.u32 %v1714_v14, %v1564_v13  ;;  %v819_v34 = vshrl.u32 %v1982_v23, 16  ;;  %v822_v35 = vshll.u32 %v1982_v23, 16  ;;  %v938_v40 = vshrl.u32 %v1569_v27, 16  ;;  %v1731_v59 = vld [vmem:[%s2076_s1 + $0x238] sm:$0xff]  ;;  %v1729_v11 = vld [vmem:[%s2076_s1 + $0x228] sm:$0xff]  ;;  %v1728_v13 = vld [vmem:[%s2076_s1 + $0x220] sm:$0xff] }
  0x24   : > { %275 = vmatpush.bf16.msra.mxu0 %v1664_v29  ;;  %v1699_v29 = vld [vmem:[%s2076_s1 + $0x150] sm:$0xff]  ;;  %v941_v41 = vshll.u32 %v1569_v27, 16  ;;  %v1388_v12 = vld [vmem:[%s1833_s16 + $0x38] sm:$0x3]  ;;  %v1040_v27 = vrot.slane %v1982_v23, 3 }
  0x25   : > { %351 = vmatpush.bf16.msra.mxu1 %v1655_v30  ;;  %v695_v30 = vshll.u32 %v1910_v45, 16  ;;  %v597_v14 = vunpack.c.l.b16 %v1388_v12  ;;  %v1727_v16 = vld [vmem:[%s2076_s1 + $0x218] sm:$0xff] }
  0x26   : > { %456 = vmatpush.bf16.msra.mxu2 %v1672_v31  ;;  %v1997_v31 = vpack.c.b16 %v690_v19, %v690_v19  ;;  %v1726_v19 = vld [vmem:[%s2076_s1 + $0x210] sm:$0xff] }
  0x27   : > { %556 = vmatpush.bf16.msra.mxu3 %v1681_v32  ;;  %v811_v32 = vshrl.u32 %v807_v22, 16  ;;  %v1725_v22 = vld [vmem:[%s2076_s1 + $0x208] sm:$0xff] }
  0x28   : > { %276 = vmatpush.bf16.msra.mxu0 %v1663_v36  ;;  %v1708_v36 = vld [vmem:[%s2076_s1 + $0x190] sm:$0xff]  ;;  %v704_v15 = vshrl.u32 %v1997_v31, 16 }
  0x29   : > { %352 = vmatpush.bf16.msra.mxu1 %v1654_v37  ;;  %v1718_v37 = vld [vmem:[%s2076_s1 + $0x1d0] sm:$0xff] }
  0x2a   : > { %457 = vmatpush.bf16.msra.mxu2 %v1671_v38  ;;  %v930_v38 = vshrl.u32 %v1565_v26, 16 }
  0x2b   : > { %557 = vmatpush.bf16.msra.mxu3 %v1680_v39  ;;  %277 = vmatmul.bf16.vlgmr.msra.gmra.mxu0 %v1662_v44  ;;  %v933_v39 = vshll.u32 %v1565_v26, 16  ;;  %v693_v44 = vshrl.u32 %v1910_v45, 16 }
  0x2c   : > { %650 = vmatpush.bf16.msrb.mxu0 %v1696_v42  ;;  %353 = vmatmul.bf16.vlgmr.msra.gmra.mxu1 %v1653_v21  ;;  %v499_v21 = vpack.c.b16 %v497_v7, %v497_v7  ;;  %v1690_v42 = vld [vmem:[%s2076_s1 + $0x108] sm:$0xff] }
  0x2d   : > { %757 = vmatpush.bf16.msrb.mxu1 %v1704_v43  ;;  %458 = vmatmul.bf16.vlgmr.msra.gmra.mxu2 %v396_v46  ;;  %v1698_v43 = vld [vmem:[%s2076_s1 + $0x148] sm:$0xff]  ;;  %v697_v46 = vrot.slane %v695_v30, 1 }
  0x2e   : > { %558 = vmatmul.bf16.vlgmr.msra.gmra.mxu3 %v1910_v45  ;;  %877 = vmatpush.bf16.msrb.mxu2 %v1713_v47  ;;  %v700_v47 = vshll.u32 %v1997_v31, 16  ;;  %v940_v45 = vrot.slane %v938_v40, 2 }
  0x2f   : > { %996 = vmatpush.bf16.msrb.mxu3 %v1723_v48  ;;  %v813_v48 = vrot.slane %v811_v32, 2  ;;  %v698_v60 = vor.u32 %v697_v46, %v693_v44 }
  0x30   : > { %651 = vmatpush.bf16.msrb.mxu0 %v1695_v49  ;;  %v816_v49 = vrot.slane %v814_v33, 3 }
  0x31   : > { %758 = vmatpush.bf16.msrb.mxu1 %v1703_v50  ;;  %v821_v50 = vrot.slane %v819_v34, 2 }
  0x32   : > { %878 = vmatpush.bf16.msrb.mxu2 %v1712_v51  ;;  %v824_v51 = vrot.slane %v822_v35, 3 }
  0x33   : > { %997 = vmatpush.bf16.msrb.mxu3 %v1722_v52  ;;  %v1707_v52 = vld [vmem:[%s2076_s1 + $0x188] sm:$0xff] }
  0x34   : > { %652 = vmatpush.bf16.msrb.mxu0 %v1694_v53  ;;  %v1717_v53 = vld [vmem:[%s2076_s1 + $0x1c8] sm:$0xff]  ;;  %v825_v2 = vor.u32 %v824_v51, %v821_v50 }
  0x35   : > { %759 = vmatpush.bf16.msrb.mxu1 %v1702_v54  ;;  %v932_v54 = vrot.slane %v930_v38, 2 }
  0x36   : > { %879 = vmatpush.bf16.msrb.mxu2 %v1711_v55  ;;  %v935_v55 = vrot.slane %v933_v39, 3 }
  0x37   : > { %998 = vmatpush.bf16.msrb.mxu3 %v1721_v56  ;;  %v943_v56 = vrot.slane %v941_v41, 3 }
  0x38   : > { %653 = vmatpush.bf16.msrb.mxu0 %v1693_v62  ;;  %v702_v62 = vrot.slane %v700_v47, 1  ;;  %v936_v3 = vor.u32 %v935_v55, %v932_v54 }
  0x39   : > { %760 = vmatpush.bf16.msrb.mxu1 %v1701_v63  ;;  %v817_v63 = vor.u32 %v816_v49, %v813_v48  ;;  %v944_v4 = vor.u32 %v943_v56, %v940_v45 }
  0x3a   : > { %880 = vmatpush.bf16.msrb.mxu2 %v1710_v0  ;;  %v1706_v0 = vld [vmem:[%s2076_s1 + $0x180] sm:$0xff] }
  0x3b   : > { %999 = vmatpush.bf16.msrb.mxu3 %v1720_v1  ;;  %282 = vmatmul.bf16.gmra.mxu0 %v218_v17  ;;  %v1716_v1 = vld [vmem:[%s2076_s1 + $0x1c0] sm:$0xff]  ;;  %v826_v7 = vsel %vm809_vm1, %v817_v63, %v825_v2  ;;  %v945_v8 = vsel %vm809_vm1, %v936_v3, %v944_v4  ;;  %v599_v17 = vpack.c.b16 %v597_v14, %v597_v14 }
  0x3c   : > { %654 = vmatpush.bf16.msrb.mxu0 %v1692_v5  ;;  %358 = vmatmul.bf16.gmra.mxu1 %v294_v18  ;;  %v1688_v5 = vld [vmem:[%s1833_s16 + $0x30] sm:$0xff]  ;;  %v706_v18 = vor.u32 %v704_v15, %v702_v62 }
  0x3d   : > { %761 = vmatpush.bf16.msrb.mxu1 %v1700_v6  ;;  %463 = vmatmul.bf16.gmra.mxu2 %v399_v20  ;;  %v703_v6 = vsel %vm384_vm0, %v698_v60, %v702_v62  ;;  %v1017_v20 = vld [vmem:[%s1833_s16] sm:$0x8] }
  0x3e   : > { %563 = vmatmul.bf16.gmra.mxu3 %v499_v21  ;;  %881 = vmatpush.bf16.msrb.mxu2 %v1709_v24  ;;  %v1036_v21 = vunpack.c.l.b16 %v1017_v20 }
  0x3f   : > { %1000 = vmatpush.bf16.msrb.mxu3 %v1719_v25  ;;  %v1724_v25 = vld [vmem:[%s2076_s1 + $0x200] sm:$0xff] }
  0x40   : > { %655 = vmatpush.bf16.msrb.mxu0 %v1691_v28  ;;  %v1037_v24 = vpack.c.b16 %v804_v10, %v1036_v21 }
  0x41   : > { %762 = vmatpush.bf16.msrb.mxu1 %v1699_v29 }
  0x42   : > { %882 = vmatpush.bf16.msrb.mxu2 %v1708_v36  ;;  %v1039_v26 = vrot.slane %v1037_v24, 3 }
  0x43   : > { %1001 = vmatpush.bf16.msrb.mxu3 %v1718_v37 }
  0x44   : > { %656 = vmatpush.bf16.msrb.mxu0 %v1690_v42  ;;  %v1041_v28 = vsel %vm1038_vm2, %v1039_v26, %v1040_v27 }
  0x45   : > { %763 = vmatpush.bf16.msrb.mxu1 %v1698_v43 }
  0x46   : > { %883 = vmatpush.bf16.msrb.mxu2 %v1707_v52 }
  0x47   : > { %1002 = vmatpush.bf16.msrb.mxu3 %v1717_v53 }
  0x48   : > { %657 = vmatpush.bf16.msrb.mxu0 %v1689_v57 }
  0x49   : > { %764 = vmatpush.bf16.msrb.mxu1 %v1697_v58 }
  0x4a   : > { %884 = vmatpush.bf16.msrb.mxu2 %v1706_v0 }
  0x4b   : > { %1003 = vmatpush.bf16.msrb.mxu3 %v1716_v1  ;;  %658 = vmatmul.bf16.vlgmr.msrb.gmra.mxu0 %v1688_v5 }
  0x4c   : > { %1092 = vmatpush.bf16.msra.mxu0 %v1731_v59  ;;  %765 = vmatmul.bf16.vlgmr.msrb.gmra.mxu1 %v703_v6 }
  0x4d   : > { %1737 = vmatpush.bf16.msra.mxu1 %v1731_v59  ;;  %885 = vmatmul.bf16.vlgmr.msrb.gmra.mxu2 %v826_v7 }
  0x4e   : > { %1004 = vmatmul.bf16.vlgmr.msrb.gmra.mxu3 %v945_v8 }
  0x50   : > { %1093 = vmatpush.bf16.msra.mxu0 %v1730_v9 }
  0x51   : > { %1738 = vmatpush.bf16.msra.mxu1 %v1730_v9 }
  0x54   : > { %1094 = vmatpush.bf16.msra.mxu0 %v1729_v11 }
  0x55   : > { %1739 = vmatpush.bf16.msra.mxu1 %v1729_v11  ;;  %v1754_v11 = vld [vmem:[%s2077_s2] ss:$0 sm:$0xff] }
  0x58   : > { %1095 = vmatpush.bf16.msra.mxu0 %v1728_v13 }
  0x59   : > { %1740 = vmatpush.bf16.msra.mxu1 %v1728_v13 }
  0x5b   : > { %663 = vmatmul.bf16.gmra.mxu0 %v599_v17 }
  0x5c   : > { %1096 = vmatpush.bf16.msra.mxu0 %v1727_v16  ;;  %770 = vmatmul.bf16.gmra.mxu1 %v706_v18 }
  0x5d   : > { %1741 = vmatpush.bf16.msra.mxu1 %v1727_v16  ;;  %890 = vmatmul.bf16.gmra.mxu2 %v825_v2 }
  0x5e   : > { %1009 = vmatmul.bf16.gmra.mxu3 %v944_v4 }
  0x60   : > { %1097 = vmatpush.bf16.msra.mxu0 %v1726_v19 }
  0x61   : > { %1742 = vmatpush.bf16.msra.mxu1 %v1726_v19 }
  0x64   : > { %1098 = vmatpush.bf16.msra.mxu0 %v1725_v22 }
  0x65   : > { %1743 = vmatpush.bf16.msra.mxu1 %v1725_v22 }
  0x68   : > { %1099 = vmatpush.bf16.msra.mxu0 %v1724_v25 }
  0x69   : > { %1744 = vmatpush.bf16.msra.mxu1 %v1724_v25 }
  0x6b   : > { %1100 = vmatmul.bf16.vlgmr.msra.gmra.mxu0 %v1041_v28 }
  0x6c   : > { %1105 = vmatmul.bf16.vlgmr.msra.gmra.mxu1 %v1040_v27 }
  0xa8   : > { %v278_v29 = vpop.f32.mrf.mxu0 }
  0xa9   : > { %v354_v30 = vpop.f32.mrf.mxu1 }
  0xaa   : > { %v355_v55 = vadd.f32 %v354_v30, %v278_v29 }
  0xb0   : > { %v459_v31 = vpop.f32.mrf.mxu2  ;;  %v280_v10 = vpop.f32.mrf.mxu0 }
  0xb1   : > { %v559_v61 = vpop.f32.mrf.mxu3  ;;  %v356_v32 = vpop.f32.mrf.mxu1  ;;  %v468_v45 = vadd.f32 %v459_v31, %v355_v55 }
  0xb2   : > { %v357_v57 = vadd.f32 %v356_v32, %v280_v10 }
  0xb3   : > { %v568_v59 = vadd.f32 %v559_v61, %v468_v45 }
  0xb8   : > { %v461_v33 = vpop.f32.mrf.mxu2  ;;  %v283_v35 = vpop.f32.mrf.mxu0 }
  0xb9   : > { %v561_v34 = vpop.f32.mrf.mxu3  ;;  %v359_v36 = vpop.f32.mrf.mxu1  ;;  %v469_v60 = vadd.f32 %v461_v33, %v357_v57 }
  0xba   : > { %v360_v49 = vadd.f32 %v359_v36, %v283_v35 }
  0xbb   : > { %v569_v4 = vadd.f32 %v561_v34, %v469_v60 }
  0xc0   : > { %v464_v37 = vpop.f32.mrf.mxu2  ;;  %v285_v39 = vpop.f32.mrf.mxu0 }
  0xc1   : > { %v564_v38 = vpop.f32.mrf.mxu3  ;;  %v361_v23 = vpop.f32.mrf.mxu1  ;;  %v470_v50 = vadd.f32 %v464_v37, %v360_v49 }
  0xc3   : > { %v570_v56 = vadd.f32 %v564_v38, %v470_v50 }
  0xc8   : > { %v466_v40 = vpop.f32.mrf.mxu2  ;;  %v659_v42 = vpop.f32.mrf.mxu0 }
  0xc9   : > { %v566_v41 = vpop.f32.mrf.mxu3  ;;  %v766_v43 = vpop.f32.mrf.mxu1  ;;  %v668_v2 = vadd.f32 %v659_v42, %v568_v59 }
  0xcb   : > { %v775_v6 = vadd.f32 %v766_v43, %v668_v2 }
  0xd0   : > { %v886_v44 = vpop.f32.mrf.mxu2  ;;  %v661_v47 = vpop.f32.mrf.mxu0 }
  0xd1   : > { %v1005_v46 = vpop.f32.mrf.mxu3  ;;  %v768_v48 = vpop.f32.mrf.mxu1  ;;  %v669_v7 = vadd.f32 %v661_v47, %v569_v4  ;;  %v895_v8 = vadd.f32 %v886_v44, %v775_v6 }
  0xd3   : > { %v776_v16 = vadd.f32 %v768_v48, %v669_v7  ;;  %v1014_v18 = vadd.f32 %v1005_v46, %v895_v8 }
  0xd8   : > { %v888_v51 = vpop.f32.mrf.mxu2  ;;  %v664_v53 = vpop.f32.mrf.mxu0 }
  0xd9   : > { %v1007_v52 = vpop.f32.mrf.mxu3  ;;  %v771_v54 = vpop.f32.mrf.mxu1  ;;  %v670_v58 = vadd.f32 %v664_v53, %v570_v56  ;;  %v896_v19 = vadd.f32 %v888_v51, %v776_v16 }
  0xdb   : > { %v777_v3 = vadd.f32 %v771_v54, %v670_v58  ;;  %v1015_v24 = vadd.f32 %v1007_v52, %v896_v19 }
  0xe0   : > { %v891_v62 = vpop.f32.mrf.mxu2  ;;  %v666_v0 = vpop.f32.mrf.mxu0 }
  0xe1   : > { %v1010_v63 = vpop.f32.mrf.mxu3  ;;  %v773_v1 = vpop.f32.mrf.mxu1  ;;  %v897_v5 = vadd.f32 %v891_v62, %v777_v3 }
  0xe3   : > { %v1016_v9 = vadd.f32 %v1010_v63, %v897_v5 }
  0xe8   : > { %v893_v12 = vpop.f32.mrf.mxu2  ;;  %v1101_v14 = vpop.f32.mrf.mxu0 }
  0xe9   : > { %v1012_v13 = vpop.f32.mrf.mxu3  ;;  %v1106_v15 = vpop.f32.mrf.mxu1  ;;  %v1110_v21 = vadd.f32 %v1101_v14, %v1014_v18 }
  0xea   : > { %v1112_v17 = vadd.f32 %v1106_v15, %v1016_v9 }
  0xeb   : > { %v1117_v28 = vadd.f32 %v1754_v11, %v1110_v21 }
  0xec   : > { %v1119_v20 = vadd.f32 %v1754_v11, %v1112_v17 }
  0xed   : > { %v1120_v31 = vmax.f32 %v1117_v28, 0.0 }
  0xee   : > { %v1122_v22 = vmax.f32 %v1119_v20, 0.0 }
  0xf0   : > { %v1125_v25 = vpack.c.bf16 %v1122_v22, %v1122_v22  ;;  %v1103_v26 = vpop.f32.mrf.mxu0 }
  0xf1   : > { %v1108_v27 = vpop.f32.mrf.mxu1  ;;  %v1111_v29 = vadd.f32 %v1103_v26, %v1015_v24 }
  0xf2   : > { %1128 = vst [vmem:[%s170_s21 + $0x8] sm:$0x3] %v1125_v25 }
  0xf3   : > { %v1118_v30 = vadd.f32 %v1754_v11, %v1111_v29 }
  0xf5   : > { %v1121_v61 = vmax.f32 %v1118_v30, 0.0 }
  0xf7   : > { %v1735_v10 = vpack.c.bf16 %v1121_v61, %v1120_v31 }
  0xf9   : > { %1736 = vst [vmem:[%s170_s21] sm:$0xff] %v1735_v10  }
  0xfa PF: > { %s13_s12 = sadd.s32 1, %s1761_s12  }
  0xfb   : > { %p10_p4 = scmp.ge.s32.totalorder %s13_s12, 4  }
  0xfd   :  { %12 = sbr.rel (!%p10_p4) target bundleno = 1 (0x1), region = 73 }

// kernel: deeplab_forward.12
= control target key start
LH: loop header
LB: loop body
LE: loop exit
PB: predicated region body
PF: predicated region fallthrough
CT: control target
= control target key end

     0   :  { %s1626_s15 = smov 0   ;;  %s1890_s0 = inlined_call_operand.vmem [shape: bf16[2,4,10,128], index: 0, kind: input, shape index: {}]   ;;  %s1891_s1 = inlined_call_operand.vmem [shape: bf16[9,128,128], index: 1, kind: input, shape index: {}]   ;;  %s1892_s2 = inlined_call_operand.vmem [shape: f32[1,128], index: 2, kind: input, shape index: {}]   ;;  %s1893_s3 = inlined_call_operand.vmem [shape: f32[2,6,1], index: 3, kind: input, shape index: {}]   ;;  %s1894_s4 = inlined_call_operand.vmem [shape: bf16[2,6,128], index: 4, kind: output, shape index: {}]  }
   0x1 LB: > { %s1070_s16 = sadd.s32 4294967295, %s1598_s15   ;;  %p1074_p0 = scmp.ge.s32.totalorder %s1598_s15, 1  ;;  %s1598_s15 = sphi %s1626_s15, %s14_s15  }
   0x2   : > { %p171_p1 = scmp.lt.s32.totalorder %s1598_s15, 3 }
   0x4   : > { %p172_p2 = pnand %p1074_p0, %p171_p1 }
   0x5   : > { %p200_p3 = scmp.lt.s32.totalorder (!%p172_p2), %s1070_s16, 1 }
   0x6   : > { %175 = sbr.rel (%p172_p2) target bundleno = 244 (0xf4), region = 36 }
   0xb   : > { %v1523_v0 = vld [vmem:[%s1891_s1 + $0x78] sm:$0xff]  ;;  %v1522_v4 = vld [vmem:[%s1891_s1 + $0x70] sm:$0xff]  ;;  %s1896_s16 = smov (!%p200_p3, %s1070_s16), 1  ;;  %v1521_v8 = vld [vmem:[%s1891_s1 + $0x68] sm:$0xff] }
   0xc   : > { %v1531_v1 = vld [vmem:[%s1891_s1 + $0xb8] sm:$0xff]  ;;  %297 = vmatpush.bf16.msra.mxu0 %v1523_v0  ;;  %v1530_v5 = vld [vmem:[%s1891_s1 + $0xb0] sm:$0xff]  ;;  %v1529_v9 = vld [vmem:[%s1891_s1 + $0xa8] sm:$0xff]  ;;  %s1507_s17 = sshll.u32 %s1896_s16, 5  ;;  %s1077_s24 = sshll.u32 %s1896_s16, 3 }
   0xd   : > { %v1539_v2 = vld [vmem:[%s1891_s1 + $0xf8] sm:$0xff]  ;;  %448 = vmatpush.bf16.msra.mxu2 %v1531_v1  ;;  %v1538_v6 = vld [vmem:[%s1891_s1 + $0xf0] sm:$0xff]  ;;  %v1537_v10 = vld [vmem:[%s1891_s1 + $0xe8] sm:$0xff]  ;;  %s1688_s28 = scalar_lea.vmem %s1890_s0, %s1507_s17  ;;  %s208_s12 = scalar_lea.vmem %s1893_s3, %s1077_s24 }
   0xe   : > { %v1515_v3 = vld [vmem:[%s1891_s1 + $0x38] sm:$0xff]  ;;  %529 = vmatpush.bf16.msra.mxu3 %v1539_v2  ;;  %v1514_v7 = vld [vmem:[%s1891_s1 + $0x30] sm:$0xff]  ;;  %v1513_v11 = vld [vmem:[%s1891_s1 + $0x28] sm:$0xff]  ;;  %s1078_s5 = sshll.u32 %s1896_s16, 2 }
   0xf   : > { %358 = vmatpush.bf16.msra.mxu1 %v1515_v3  ;;  %v1520_v12 = vld [vmem:[%s1891_s1 + $0x60] sm:$0xff]  ;;  %v1519_v16 = vld [vmem:[%s1891_s1 + $0x58] sm:$0xff]  ;;  %v1518_v22 = vld [vmem:[%s1891_s1 + $0x50] sm:$0xff]  ;;  %s212_s8 = scalar_lea.vmem %s1894_s4, %s1078_s5 }
  0x10   : > { %298 = vmatpush.bf16.msra.mxu0 %v1522_v4  ;;  %v1528_v13 = vld [vmem:[%s1891_s1 + $0xa0] sm:$0xff]  ;;  %v1527_v17 = vld [vmem:[%s1891_s1 + $0x98] sm:$0xff]  ;;  %v1526_v23 = vld [vmem:[%s1891_s1 + $0x90] sm:$0xff] }
  0x11   : > { %449 = vmatpush.bf16.msra.mxu2 %v1530_v5  ;;  %v1536_v14 = vld [vmem:[%s1891_s1 + $0xe0] sm:$0xff]  ;;  %v1535_v18 = vld [vmem:[%s1891_s1 + $0xd8] sm:$0xff]  ;;  %v1534_v25 = vld [vmem:[%s1891_s1 + $0xd0] sm:$0xff] }
  0x12   : > { %530 = vmatpush.bf16.msra.mxu3 %v1538_v6  ;;  %v1512_v15 = vld [vmem:[%s1891_s1 + $0x20] sm:$0xff]  ;;  %v1511_v19 = vld [vmem:[%s1891_s1 + $0x18] sm:$0xff]  ;;  %v1510_v26 = vld [vmem:[%s1891_s1 + $0x10] sm:$0xff] }
  0x13   : > { %359 = vmatpush.bf16.msra.mxu1 %v1514_v7  ;;  %v371_v20 = vld [vmem:[%s1688_s28] sm:$0xf]  ;;  %v1517_v27 = vld [vmem:[%s1891_s1 + $0x48] sm:$0xff]  ;;  %v1547_v36 = vld [vmem:[%s1891_s1 + $0x138] sm:$0xff] }
  0x14   : > { %299 = vmatpush.bf16.msra.mxu0 %v1521_v8  ;;  %v390_v21 = vunpack.c.l.b16 %v371_v20  ;;  %v1525_v28 = vld [vmem:[%s1891_s1 + $0x88] sm:$0xff]  ;;  %v1516_v32 = vld [vmem:[%s1891_s1 + $0x40] sm:$0xff]  ;;  %v1563_v37 = vld [vmem:[%s1891_s1 + $0x1b8] sm:$0xff] }
  0x15   : > { %450 = vmatpush.bf16.msra.mxu2 %v1529_v9  ;;  %v1533_v30 = vld [vmem:[%s1891_s1 + $0xc8] sm:$0xff]  ;;  %v1524_v33 = vld [vmem:[%s1891_s1 + $0x80] sm:$0xff]  ;;  %v1572_v40 = vld [vmem:[%s1891_s1 + $0x1f8] sm:$0xff] }
  0x16   : > { %531 = vmatpush.bf16.msra.mxu3 %v1537_v10  ;;  %v391_v24 = vpack.c.b16 %v390_v21, %v390_v21  ;;  %v1509_v31 = vld [vmem:[%s1891_s1 + $0x8] sm:$0xff]  ;;  %v1532_v38 = vld [vmem:[%s1891_s1 + $0xc0] sm:$0xff]  ;;  %v1555_v41 = vld [vmem:[%s1891_s1 + $0x178] sm:$0xff] }
  0x17   : > { %360 = vmatpush.bf16.msra.mxu1 %v1513_v11  ;;  %v1508_v39 = vld [vmem:[%s1891_s1] sm:$0xff]  ;;  %v1546_v43 = vld [vmem:[%s1891_s1 + $0x130] sm:$0xff]  ;;  %v1079_v45 = vld [vmem:[%s1688_s28 + $0x8] sm:$0x7] }
  0x18   : > { %300 = vmatpush.bf16.msra.mxu0 %v1520_v12  ;;  %v395_v29 = vshll.u32 %v391_v24, 16  ;;  %v393_v34 = vshrl.u32 %v391_v24, 16  ;;  %v1562_v44 = vld [vmem:[%s1891_s1 + $0x1b0] sm:$0xff]  ;;  %v213_v49 = vld [vmem:[%s1688_s28] sm:$0x7]  ;;  %v1545_v50 = vld [vmem:[%s1891_s1 + $0x128] sm:$0xff] }
  0x19   : > { %451 = vmatpush.bf16.msra.mxu2 %v1528_v13  ;;  %v1571_v46 = vld [vmem:[%s1891_s1 + $0x1f0] sm:$0xff]  ;;  %v1561_v51 = vld [vmem:[%s1891_s1 + $0x1a8] sm:$0xff]  ;;  %v1544_v54 = vld [vmem:[%s1891_s1 + $0x120] sm:$0xff] }
  0x1a   : > { %532 = vmatpush.bf16.msra.mxu3 %v1536_v14  ;;  %v397_v35 = vrot.slane %v395_v29, 1  ;;  %v1554_v47 = vld [vmem:[%s1891_s1 + $0x170] sm:$0xff]  ;;  %v1570_v52 = vld [vmem:[%s1891_s1 + $0x1e8] sm:$0xff]  ;;  %v1560_v55 = vld [vmem:[%s1891_s1 + $0x1a0] sm:$0xff] }
  0x1b   : > { %361 = vmatpush.bf16.msra.mxu1 %v1512_v15  ;;  %v1208_v48 = vld [vmem:[%s1688_s28 + $0x10] sm:$0x7]  ;;  %v1553_v53 = vld [vmem:[%s1891_s1 + $0x168] sm:$0xff]  ;;  %v715_v56 = vld [vmem:[%s1688_s28] sm:$0xe] }
  0x1c   : > { %301 = vmatpush.bf16.msra.mxu0 %v1519_v16  ;;  %v398_v42 = vor.u32 %v397_v35, %v393_v34  ;;  %v1786_v57 = vld [vmem:[%s1688_s28 + $0x4] sm:$0x1]  ;;  %v736_v60 = vunpack.c.l.b16 %v715_v56  ;;  %v1306_v62 = vld [vmem:[%s1688_s28 + $0x10] sm:$0xf]  ;;  %v1543_v63 = vld [vmem:[%s1891_s1 + $0x118] sm:$0xff] }
  0x1d   : > { %452 = vmatpush.bf16.msra.mxu2 %v1527_v17  ;;  %v1569_v58 = vld [vmem:[%s1891_s1 + $0x1e0] sm:$0xff]  ;;  %v737_v61 = vunpack.c.l.b16 %v1786_v57  ;;  %v1559_v0 = vld [vmem:[%s1891_s1 + $0x198] sm:$0xff]  ;;  %v1423_v3 = vld [vmem:[%s1688_s28 + $0x8] sm:$0xe]  ;;  %v643_v5 = vunpack.c.l.b16 %v1306_v62 }
  0x1e   : > { %533 = vmatpush.bf16.msra.mxu3 %v1535_v18  ;;  %v1552_v59 = vld [vmem:[%s1891_s1 + $0x160] sm:$0xff]  ;;  %v1568_v1 = vld [vmem:[%s1891_s1 + $0x1d8] sm:$0xff]  ;;  %v1564_v4 = vld [vmem:[%s1688_s28 + $0x8] sm:$0x10] }
  0x1f   : > { %362 = vmatpush.bf16.msra.mxu1 %v1511_v19  ;;  %v1551_v2 = vld [vmem:[%s1891_s1 + $0x158] sm:$0xff]  ;;  %v738_v6 = vpack.c.b16 %v737_v61, %v736_v60  ;;  %v1542_v7 = vld [vmem:[%s1891_s1 + $0x110] sm:$0xff]  ;;  %v1424_v9 = vor.u32 %v1564_v4, %v1423_v3  ;;  %v644_v12 = vpack.c.b16 %v643_v5, %v643_v5  ;;  %v1541_v15 = vld [vmem:[%s1891_s1 + $0x108] sm:$0xff] }
  0x20   : > { %302 = vmatpush.bf16.msra.mxu0 %v1518_v22  ;;  %v1558_v8 = vld [vmem:[%s1891_s1 + $0x190] sm:$0xff]  ;;  %v1557_v16 = vld [vmem:[%s1891_s1 + $0x188] sm:$0xff]  ;;  %v1540_v24 = vld [vmem:[%s1891_s1 + $0x100] sm:$0xff] }
  0x21   : > { %453 = vmatpush.bf16.msra.mxu2 %v1526_v23  ;;  %v1567_v10 = vld [vmem:[%s1891_s1 + $0x1d0] sm:$0xff]  ;;  %v740_v13 = vshrl.u32 %v738_v6, 16  ;;  %v743_v14 = vshll.u32 %v738_v6, 16  ;;  %v835_v17 = vshrl.u32 %v1424_v9, 16  ;;  %v838_v18 = vshll.u32 %v1424_v9, 16  ;;  %v1566_v19 = vld [vmem:[%s1891_s1 + $0x1c8] sm:$0xff] }
  0x22   : > { %534 = vmatpush.bf16.msra.mxu3 %v1534_v25  ;;  %v1550_v11 = vld [vmem:[%s1891_s1 + $0x150] sm:$0xff]  ;;  %v1549_v20 = vld [vmem:[%s1891_s1 + $0x148] sm:$0xff]  ;;  %v648_v21 = vshll.u32 %v644_v12, 16  ;;  %v1556_v25 = vld [vmem:[%s1891_s1 + $0x180] sm:$0xff] }
  0x23   : > { %363 = vmatpush.bf16.msra.mxu1 %v1510_v26  ;;  %v742_v22 = vrot.slane %v740_v13, 1  ;;  %v745_v23 = vrot.slane %v743_v14, 2  ;;  %v1580_v26 = vld [vmem:[%s1891_s1 + $0x238] sm:$0xff]  ;;  %v1565_v29 = vld [vmem:[%s1891_s1 + $0x1c0] sm:$0xff]  ;;  %v1579_v35 = vld [vmem:[%s1891_s1 + $0x230] sm:$0xff] }
  0x24   : > { %303 = vmatpush.bf16.msra.mxu0 %v1517_v27  ;;  %v837_v27 = vrot.slane %v835_v17, 1  ;;  %v1257_v34 = vld [vmem:[%s1688_s28 + $0x18] sm:$0x7]  ;;  %v1591_v9 = vld [vmem:[%s1892_s2] ss:$0 sm:$0xff] }
  0x25   : > { %454 = vmatpush.bf16.msra.mxu2 %v1525_v28  ;;  %v840_v28 = vrot.slane %v838_v18, 2 }
  0x26   : > { %535 = vmatpush.bf16.msra.mxu3 %v1533_v30  ;;  %v1548_v30 = vld [vmem:[%s1891_s1 + $0x140] sm:$0xff] }
  0x27   : > { %364 = vmatpush.bf16.msra.mxu1 %v1509_v31  ;;  %v646_v31 = vshrl.u32 %v644_v12, 16 }
  0x28   : > { %304 = vmatpush.bf16.msra.mxu0 %v1516_v32  ;;  %v650_v32 = vrot.slane %v648_v21, 1 }
  0x29   : > { %455 = vmatpush.bf16.msra.mxu2 %v1524_v33  ;;  %v746_v33 = vor.u32 %v745_v23, %v742_v22 }
  0x2a   : > { %536 = vmatpush.bf16.msra.mxu3 %v1532_v38  ;;  %v996_v38 = vld [vmem:[%s208_s12] sm:$0x3f] }
  0x2b   : > { %365 = vmatpush.bf16.msra.mxu1 %v1508_v39  ;;  %305 = vmatmul.bf16.vlgmr.msra.gmra.mxu0 %v1079_v45  ;;  %v651_v39 = vor.u32 %v650_v32, %v646_v31 }
  0x2c   : > { %610 = vmatpush.bf16.msrb.mxu0 %v1547_v36  ;;  %456 = vmatmul.bf16.vlgmr.msra.gmra.mxu2 %v398_v42  ;;  %v841_v36 = vor.u32 %v840_v28, %v837_v27  ;;  %v1576_v42 = vld [vmem:[%s1891_s1 + $0x218] sm:$0xff] }
  0x2d   : > { %796 = vmatpush.bf16.msrb.mxu2 %v1563_v37  ;;  %537 = vmatmul.bf16.vlgmr.msra.gmra.mxu3 %v1208_v48  ;;  %v1600_v37 = vmov 0   ;;  %v1573_v48 = vld [vmem:[%s1891_s1 + $0x200] sm:$0xff] }
  0x2e   : > { %891 = vmatpush.bf16.msrb.mxu3 %v1572_v40  ;;  %366 = vmatmul.bf16.vlgmr.msra.gmra.mxu1 %v213_v49  ;;  %v1578_v40 = vld [vmem:[%s1891_s1 + $0x228] sm:$0xff] }
  0x2f   : > { %701 = vmatpush.bf16.msrb.mxu1 %v1555_v41  ;;  %1590 = vset.pattern.permute.xlu0 %v1600_v37  ;;  %v1577_v41 = vld [vmem:[%s1891_s1 + $0x220] sm:$0xff] }
  0x30   : > { %611 = vmatpush.bf16.msrb.mxu0 %v1546_v43  ;;  %999 = vperm.xlu0 %1590, %v996_v38   ;;  %v1575_v43 = vld [vmem:[%s1891_s1 + $0x210] sm:$0xff] }
  0x31   : > { %797 = vmatpush.bf16.msrb.mxu2 %v1562_v44  ;;  %v905_v44 = vld [vmem:[%s1688_s28] sm:$0xc] }
  0x32   : > { %892 = vmatpush.bf16.msrb.mxu3 %v1571_v46  ;;  %v924_v45 = vunpack.c.l.b16 %v905_v44  ;;  %v1574_v46 = vld [vmem:[%s1891_s1 + $0x208] sm:$0xff] }
  0x33   : > { %702 = vmatpush.bf16.msrb.mxu1 %v1554_v47 }
  0x34   : > { %612 = vmatpush.bf16.msrb.mxu0 %v1545_v50  ;;  %v925_v47 = vpack.c.b16 %v737_v61, %v924_v45 }
  0x35   : > { %798 = vmatpush.bf16.msrb.mxu2 %v1561_v51 }
  0x36   : > { %893 = vmatpush.bf16.msrb.mxu3 %v1570_v52  ;;  %v926_v49 = vrot.slane %v925_v47, 2 }
  0x37   : > { %703 = vmatpush.bf16.msrb.mxu1 %v1553_v53 }
  0x38   : > { %613 = vmatpush.bf16.msrb.mxu0 %v1544_v54 }
  0x39   : > { %799 = vmatpush.bf16.msrb.mxu2 %v1560_v55 }
  0x3a   : > { %894 = vmatpush.bf16.msrb.mxu3 %v1569_v58 }
  0x3b   : > { %704 = vmatpush.bf16.msrb.mxu1 %v1552_v59 }
  0x3c   : > { %614 = vmatpush.bf16.msrb.mxu0 %v1543_v63 }
  0x3d   : > { %800 = vmatpush.bf16.msrb.mxu2 %v1559_v0 }
  0x3e   : > { %895 = vmatpush.bf16.msrb.mxu3 %v1568_v1 }
  0x3f   : > { %705 = vmatpush.bf16.msrb.mxu1 %v1551_v2 }
  0x40   : > { %615 = vmatpush.bf16.msrb.mxu0 %v1542_v7 }
  0x41   : > { %801 = vmatpush.bf16.msrb.mxu2 %v1558_v8 }
  0x42   : > { %896 = vmatpush.bf16.msrb.mxu3 %v1567_v10 }
  0x43   : > { %706 = vmatpush.bf16.msrb.mxu1 %v1550_v11 }
  0x44   : > { %616 = vmatpush.bf16.msrb.mxu0 %v1541_v15 }
  0x45   : > { %802 = vmatpush.bf16.msrb.mxu2 %v1557_v16 }
  0x46   : > { %897 = vmatpush.bf16.msrb.mxu3 %v1566_v19 }
  0x47   : > { %707 = vmatpush.bf16.msrb.mxu1 %v1549_v20 }
  0x48   : > { %617 = vmatpush.bf16.msrb.mxu0 %v1540_v24 }
  0x49   : > { %803 = vmatpush.bf16.msrb.mxu2 %v1556_v25 }
  0x4a   : > { %898 = vmatpush.bf16.msrb.mxu3 %v1565_v29 }
  0x4b   : > { %708 = vmatpush.bf16.msrb.mxu1 %v1548_v30  ;;  %618 = vmatmul.bf16.vlgmr.msrb.gmra.mxu0 %v1257_v34 }
  0x4c   : > { %976 = vmatpush.bf16.msra.mxu0 %v1580_v26  ;;  %804 = vmatmul.bf16.vlgmr.msrb.gmra.mxu2 %v746_v33 }
  0x4d   : > { %899 = vmatmul.bf16.vlgmr.msrb.gmra.mxu3 %v841_v36 }
  0x4e   : > { %709 = vmatmul.bf16.vlgmr.msrb.gmra.mxu1 %v651_v39 }
  0x50   : > { %977 = vmatpush.bf16.msra.mxu0 %v1579_v35 }
  0x54   : > { %978 = vmatpush.bf16.msra.mxu0 %v1578_v40 }
  0x58   : > { %979 = vmatpush.bf16.msra.mxu0 %v1577_v41 }
  0x5c   : > { %980 = vmatpush.bf16.msra.mxu0 %v1576_v42 }
  0x60   : > { %981 = vmatpush.bf16.msra.mxu0 %v1575_v43 }
  0x64   : > { %982 = vmatpush.bf16.msra.mxu0 %v1574_v46 }
  0x68   : > { %983 = vmatpush.bf16.msra.mxu0 %v1573_v48 }
  0x6b   : > { %984 = vmatmul.bf16.vlgmr.msra.gmra.mxu0 %v926_v49 }
  0xa2   : > { %v1000_v13 = vpop.permute.xlu0 %999 }
  0xa8   : > { %v306_v50 = vpop.f32.mrf.mxu0 }
  0xab   : > { %v367_v51 = vpop.f32.mrf.mxu1 }
  0xac   : > { %v368_v57 = vadd.f32 %v367_v51, %v306_v50 }
  0xaf   : > { %v457_v52 = vpop.f32.mrf.mxu2 }
  0xb0   : > { %v538_v53 = vpop.f32.mrf.mxu3  ;;  %v308_v54 = vpop.f32.mrf.mxu0  ;;  %v461_v62 = vadd.f32 %v457_v52, %v368_v57 }
  0xb2   : > { %v542_v2 = vadd.f32 %v538_v53, %v461_v62 }
  0xb3   : > { %v369_v55 = vpop.f32.mrf.mxu1 }
  0xb7   : > { %v459_v56 = vpop.f32.mrf.mxu2 }
  0xb8   : > { %v540_v58 = vpop.f32.mrf.mxu3 }
  0xc8   : > { %v619_v59 = vpop.f32.mrf.mxu0 }
  0xc9   : > { %v623_v4 = vadd.f32 %v619_v59, %v542_v2 }
  0xcb   : > { %v710_v60 = vpop.f32.mrf.mxu1 }
  0xcc   : > { %v714_v6 = vadd.f32 %v710_v60, %v623_v4 }
  0xcf   : > { %v805_v61 = vpop.f32.mrf.mxu2 }
  0xd0   : > { %v900_v63 = vpop.f32.mrf.mxu3  ;;  %v621_v0 = vpop.f32.mrf.mxu0  ;;  %v809_v7 = vadd.f32 %v805_v61, %v714_v6 }
  0xd2   : > { %v904_v8 = vadd.f32 %v900_v63, %v809_v7 }
  0xd3   : > { %v712_v1 = vpop.f32.mrf.mxu1 }
  0xd7   : > { %v807_v3 = vpop.f32.mrf.mxu2 }
  0xd8   : > { %v902_v5 = vpop.f32.mrf.mxu3 }
  0xe8   : > { %v985_v10 = vpop.f32.mrf.mxu0 }
  0xe9   : > { %v989_v11 = vadd.f32 %v985_v10, %v904_v8 }
  0xeb   : > { %v994_v12 = vadd.f32 %v1591_v9, %v989_v11 }
  0xed   : > { %v995_v14 = vmax.f32 %v994_v12, 0.0 }
  0xef   : > { %v1002_v15 = vmul.f32 %v1000_v13, %v995_v14 }
  0xf0   : > { %v987_v16 = vpop.f32.mrf.mxu0 }
  0xf1   : > { %v1003_v17 = vpack.c.bf16 %v1002_v15, %v1002_v15 }
  0xf3   : > { %1004 = vst [vmem:[%s212_s8] sm:$0x7] %v1003_v17 }
  0xf4 PF: > { %s14_s15 = sadd.s32 1, %s1598_s15  }
  0xf5   : > { %p11_p4 = scmp.ge.s32.totalorder %s14_s15, 4  }
  0xf7   :  { %13 = sbr.rel (!%p11_p4) target bundleno = 1 (0x1), region = 80 }

// kernel: deeplab_forward.14
= control target key start
LH: loop header
LB: loop body
LE: loop exit
PB: predicated region body
PF: predicated region fallthrough
CT: control target
= control target key end

     0   :  { %s536_s12 = smov 0   ;;  %s591_s0 = inlined_call_operand.vmem [shape: bf16[2,1,64,128], index: 0, kind: input, shape index: {}]   ;;  %s592_s1 = inlined_call_operand.vmem [shape: bf16[1,128,128], index: 1, kind: input, shape index: {}]   ;;  %s593_s2 = inlined_call_operand.vmem [shape: f32[1,128], index: 2, kind: input, shape index: {}]   ;;  %s594_s3 = inlined_call_operand.vmem [shape: bf16[2,64,128], index: 3, kind: output, shape index: {}]  }
   0x1 LB: > { %s379_s13 = sadd.s32 4294967295, %s514_s12   ;;  %p383_p0 = scmp.ge.s32.totalorder %s514_s12, 1  ;;  %s514_s12 = sphi %s536_s12, %s13_s12  }
   0x2   : > { %p137_p1 = scmp.lt.s32.totalorder %s514_s12, 3 }
   0x4   : > { %p138_p2 = pnand %p383_p0, %p137_p1 }
   0x5   : > { %p161_p3 = scmp.lt.s32.totalorder (!%p138_p2), %s379_s13, 1 }
   0x6   : > { %141 = sbr.rel (%p138_p2) target bundleno = 192 (0xc0), region = 32 }
   0xb   : > { %v451_v0 = vld [vmem:[%s592_s1 + $0x38] sm:$0xff]  ;;  %v450_v1 = vld [vmem:[%s592_s1 + $0x30] sm:$0xff]  ;;  %v449_v2 = vld [vmem:[%s592_s1 + $0x28] sm:$0xff]  ;;  %s596_s13 = smov (!%p161_p3, %s379_s13), 1 }
   0xc   : > { %271 = vmatpush.bf16.msra.mxu0 %v451_v0  ;;  %475 = vmatpush.bf16.msra.mxu1 %v451_v0  ;;  %v448_v3 = vld [vmem:[%s592_s1 + $0x20] sm:$0xff]  ;;  %v447_v4 = vld [vmem:[%s592_s1 + $0x18] sm:$0xff]  ;;  %v446_v5 = vld [vmem:[%s592_s1 + $0x10] sm:$0xff]  ;;  %s438_s28 = sshll.u32 %s596_s13, 5 }
   0xd   : > { %476 = vmatpush.bf16.msra.mxu2 %v451_v0  ;;  %477 = vmatpush.bf16.msra.mxu3 %v451_v0  ;;  %v445_v6 = vld [vmem:[%s592_s1 + $0x8] sm:$0xff]  ;;  %v444_v7 = vld [vmem:[%s592_s1] sm:$0xff]  ;;  %s165_s6 = scalar_lea.vmem %s591_s0, %s438_s28  ;;  %s170_s11 = scalar_lea.vmem %s594_s3, %s438_s28 }
   0xe   : > { %v440_v8 = vld [vmem:[%s165_s6] sm:$0xff]  ;;  %v441_v9 = vld [vmem:[%s165_s6 + $0x8] sm:$0xff]  ;;  %v442_v10 = vld [vmem:[%s165_s6 + $0x10] sm:$0xff] }
   0xf   : > { %v443_v11 = vld [vmem:[%s165_s6 + $0x18] sm:$0xff]  ;;  %v507_v14 = vld [vmem:[%s593_s2] ss:$0 sm:$0xff] }
  0x10   : > { %272 = vmatpush.bf16.msra.mxu0 %v450_v1  ;;  %478 = vmatpush.bf16.msra.mxu1 %v450_v1 }
  0x11   : > { %479 = vmatpush.bf16.msra.mxu2 %v450_v1  ;;  %480 = vmatpush.bf16.msra.mxu3 %v450_v1 }
  0x14   : > { %273 = vmatpush.bf16.msra.mxu0 %v449_v2  ;;  %481 = vmatpush.bf16.msra.mxu1 %v449_v2 }
  0x15   : > { %482 = vmatpush.bf16.msra.mxu2 %v449_v2  ;;  %483 = vmatpush.bf16.msra.mxu3 %v449_v2 }
  0x18   : > { %274 = vmatpush.bf16.msra.mxu0 %v448_v3  ;;  %484 = vmatpush.bf16.msra.mxu1 %v448_v3 }
  0x19   : > { %485 = vmatpush.bf16.msra.mxu2 %v448_v3  ;;  %486 = vmatpush.bf16.msra.mxu3 %v448_v3 }
  0x1c   : > { %275 = vmatpush.bf16.msra.mxu0 %v447_v4  ;;  %487 = vmatpush.bf16.msra.mxu1 %v447_v4 }
  0x1d   : > { %488 = vmatpush.bf16.msra.mxu2 %v447_v4  ;;  %489 = vmatpush.bf16.msra.mxu3 %v447_v4 }
  0x20   : > { %276 = vmatpush.bf16.msra.mxu0 %v446_v5  ;;  %490 = vmatpush.bf16.msra.mxu1 %v446_v5 }
  0x21   : > { %491 = vmatpush.bf16.msra.mxu2 %v446_v5  ;;  %492 = vmatpush.bf16.msra.mxu3 %v446_v5 }
  0x24   : > { %277 = vmatpush.bf16.msra.mxu0 %v445_v6  ;;  %493 = vmatpush.bf16.msra.mxu1 %v445_v6 }
  0x25   : > { %494 = vmatpush.bf16.msra.mxu2 %v445_v6  ;;  %495 = vmatpush.bf16.msra.mxu3 %v445_v6 }
  0x28   : > { %278 = vmatpush.bf16.msra.mxu0 %v444_v7  ;;  %496 = vmatpush.bf16.msra.mxu1 %v444_v7 }
  0x29   : > { %497 = vmatpush.bf16.msra.mxu2 %v444_v7  ;;  %498 = vmatpush.bf16.msra.mxu3 %v444_v7 }
  0x2b   : > { %279 = vmatmul.bf16.vlgmr.msra.gmra.mxu0 %v440_v8  ;;  %284 = vmatmul.bf16.vlgmr.msra.gmra.mxu1 %v441_v9 }
  0x2c   : > { %289 = vmatmul.bf16.vlgmr.msra.gmra.mxu2 %v442_v10  ;;  %294 = vmatmul.bf16.vlgmr.msra.gmra.mxu3 %v443_v11 }
  0xa8   : > { %v280_v12 = vpop.f32.mrf.mxu0  ;;  %v285_v13 = vpop.f32.mrf.mxu1 }
  0xa9   : > { %v281_v15 = vadd.f32 %v507_v14, %v280_v12  ;;  %v286_v16 = vadd.f32 %v507_v14, %v285_v13 }
  0xab   : > { %v300_v23 = vmax.f32 %v281_v15, 0.0  ;;  %v302_v24 = vmax.f32 %v286_v16, 0.0 }
  0xaf   : > { %v290_v17 = vpop.f32.mrf.mxu2  ;;  %v295_v18 = vpop.f32.mrf.mxu3 }
  0xb0   : > { %v282_v19 = vpop.f32.mrf.mxu0  ;;  %v287_v20 = vpop.f32.mrf.mxu1  ;;  %v291_v29 = vadd.f32 %v507_v14, %v290_v17  ;;  %v296_v30 = vadd.f32 %v507_v14, %v295_v18 }
  0xb1   : > { %v283_v21 = vadd.f32 %v507_v14, %v282_v19  ;;  %v288_v22 = vadd.f32 %v507_v14, %v287_v20 }
  0xb2   : > { %v304_v35 = vmax.f32 %v291_v29, 0.0  ;;  %v306_v36 = vmax.f32 %v296_v30, 0.0 }
  0xb3   : > { %v301_v25 = vmax.f32 %v283_v21, 0.0  ;;  %v303_v26 = vmax.f32 %v288_v22, 0.0 }
  0xb5   : > { %v455_v27 = vpack.c.bf16 %v301_v25, %v300_v23  ;;  %v460_v28 = vpack.c.bf16 %v303_v26, %v302_v24 }
  0xb7   : > { %456 = vst [vmem:[%s170_s11] sm:$0xff] %v455_v27   ;;  %v292_v31 = vpop.f32.mrf.mxu2  ;;  %v297_v32 = vpop.f32.mrf.mxu3 }
  0xb8   : > { %472 = vst [vmem:[%s170_s11 + $0x8] sm:$0xff] %v460_v28   ;;  %v293_v33 = vadd.f32 %v507_v14, %v292_v31  ;;  %v298_v34 = vadd.f32 %v507_v14, %v297_v32 }
  0xba   : > { %v305_v37 = vmax.f32 %v293_v33, 0.0  ;;  %v307_v38 = vmax.f32 %v298_v34, 0.0 }
  0xbc   : > { %v465_v39 = vpack.c.bf16 %v305_v37, %v304_v35  ;;  %v470_v40 = vpack.c.bf16 %v307_v38, %v306_v36 }
  0xbe   : > { %473 = vst [vmem:[%s170_s11 + $0x10] sm:$0xff] %v465_v39  }
  0xbf   : > { %474 = vst [vmem:[%s170_s11 + $0x18] sm:$0xff] %v470_v40  }
  0xc0 PF: > { %s13_s12 = sadd.s32 1, %s514_s12  }
  0xc1   : > { %p10_p4 = scmp.ge.s32.totalorder %s13_s12, 4  }
  0xc3   :  { %12 = sbr.rel (!%p10_p4) target bundleno = 1 (0x1), region = 62 }

// kernel: deeplab_forward.17
= control target key start
LH: loop header
LB: loop body
LE: loop exit
PB: predicated region body
PF: predicated region fallthrough
CT: control target
= control target key end

     0   :  { %s528_s12 = smov 0   ;;  %s583_s0 = inlined_call_operand.vmem [shape: bf16[2,1,64,128], index: 0, kind: input, shape index: {}]   ;;  %s584_s1 = inlined_call_operand.vmem [shape: bf16[1,128,128], index: 1, kind: input, shape index: {}]   ;;  %s585_s2 = inlined_call_operand.vmem [shape: f32[1,128], index: 2, kind: input, shape index: {}]   ;;  %s586_s3 = inlined_call_operand.vmem [shape: bf16[2,64,128], index: 3, kind: output, shape index: {}]  }
   0x1 LB: > { %s371_s13 = sadd.s32 4294967295, %s506_s12   ;;  %p375_p0 = scmp.ge.s32.totalorder %s506_s12, 1  ;;  %s506_s12 = sphi %s528_s12, %s13_s12  }
   0x2   : > { %p137_p1 = scmp.lt.s32.totalorder %s506_s12, 3 }
   0x4   : > { %p138_p2 = pnand %p375_p0, %p137_p1 }
   0x5   : > { %p161_p3 = scmp.lt.s32.totalorder (!%p138_p2), %s371_s13, 1 }
   0x6   : > { %141 = sbr.rel (%p138_p2) target bundleno = 190 (0xbe), region = 32 }
   0xb   : > { %v443_v0 = vld [vmem:[%s584_s1 + $0x38] sm:$0xff]  ;;  %v442_v1 = vld [vmem:[%s584_s1 + $0x30] sm:$0xff]  ;;  %v441_v2 = vld [vmem:[%s584_s1 + $0x28] sm:$0xff]  ;;  %s588_s13 = smov (!%p161_p3, %s371_s13), 1 }
   0xc   : > { %271 = vmatpush.bf16.msra.mxu0 %v443_v0  ;;  %467 = vmatpush.bf16.msra.mxu1 %v443_v0  ;;  %v440_v3 = vld [vmem:[%s584_s1 + $0x20] sm:$0xff]  ;;  %v439_v4 = vld [vmem:[%s584_s1 + $0x18] sm:$0xff]  ;;  %v438_v5 = vld [vmem:[%s584_s1 + $0x10] sm:$0xff]  ;;  %s430_s28 = sshll.u32 %s588_s13, 5 }
   0xd   : > { %468 = vmatpush.bf16.msra.mxu2 %v443_v0  ;;  %469 = vmatpush.bf16.msra.mxu3 %v443_v0  ;;  %v437_v6 = vld [vmem:[%s584_s1 + $0x8] sm:$0xff]  ;;  %v436_v7 = vld [vmem:[%s584_s1] sm:$0xff]  ;;  %s165_s6 = scalar_lea.vmem %s583_s0, %s430_s28  ;;  %s170_s11 = scalar_lea.vmem %s586_s3, %s430_s28 }
   0xe   : > { %v432_v8 = vld [vmem:[%s165_s6] sm:$0xff]  ;;  %v433_v9 = vld [vmem:[%s165_s6 + $0x8] sm:$0xff]  ;;  %v434_v10 = vld [vmem:[%s165_s6 + $0x10] sm:$0xff] }
   0xf   : > { %v435_v11 = vld [vmem:[%s165_s6 + $0x18] sm:$0xff]  ;;  %v499_v14 = vld [vmem:[%s585_s2] ss:$0 sm:$0xff] }
  0x10   : > { %272 = vmatpush.bf16.msra.mxu0 %v442_v1  ;;  %470 = vmatpush.bf16.msra.mxu1 %v442_v1 }
  0x11   : > { %471 = vmatpush.bf16.msra.mxu2 %v442_v1  ;;  %472 = vmatpush.bf16.msra.mxu3 %v442_v1 }
  0x14   : > { %273 = vmatpush.bf16.msra.mxu0 %v441_v2  ;;  %473 = vmatpush.bf16.msra.mxu1 %v441_v2 }
  0x15   : > { %474 = vmatpush.bf16.msra.mxu2 %v441_v2  ;;  %475 = vmatpush.bf16.msra.mxu3 %v441_v2 }
  0x18   : > { %274 = vmatpush.bf16.msra.mxu0 %v440_v3  ;;  %476 = vmatpush.bf16.msra.mxu1 %v440_v3 }
  0x19   : > { %477 = vmatpush.bf16.msra.mxu2 %v440_v3  ;;  %478 = vmatpush.bf16.msra.mxu3 %v440_v3 }
  0x1c   : > { %275 = vmatpush.bf16.msra.mxu0 %v439_v4  ;;  %479 = vmatpush.bf16.msra.mxu1 %v439_v4 }
  0x1d   : > { %480 = vmatpush.bf16.msra.mxu2 %v439_v4  ;;  %481 = vmatpush.bf16.msra.mxu3 %v439_v4 }
  0x20   : > { %276 = vmatpush.bf16.msra.mxu0 %v438_v5  ;;  %482 = vmatpush.bf16.msra.mxu1 %v438_v5 }
  0x21   : > { %483 = vmatpush.bf16.msra.mxu2 %v438_v5  ;;  %484 = vmatpush.bf16.msra.mxu3 %v438_v5 }
  0x24   : > { %277 = vmatpush.bf16.msra.mxu0 %v437_v6  ;;  %485 = vmatpush.bf16.msra.mxu1 %v437_v6 }
  0x25   : > { %486 = vmatpush.bf16.msra.mxu2 %v437_v6  ;;  %487 = vmatpush.bf16.msra.mxu3 %v437_v6 }
  0x28   : > { %278 = vmatpush.bf16.msra.mxu0 %v436_v7  ;;  %488 = vmatpush.bf16.msra.mxu1 %v436_v7 }
  0x29   : > { %489 = vmatpush.bf16.msra.mxu2 %v436_v7  ;;  %490 = vmatpush.bf16.msra.mxu3 %v436_v7 }
  0x2b   : > { %279 = vmatmul.bf16.vlgmr.msra.gmra.mxu0 %v432_v8  ;;  %284 = vmatmul.bf16.vlgmr.msra.gmra.mxu1 %v433_v9 }
  0x2c   : > { %289 = vmatmul.bf16.vlgmr.msra.gmra.mxu2 %v434_v10  ;;  %294 = vmatmul.bf16.vlgmr.msra.gmra.mxu3 %v435_v11 }
  0xa8   : > { %v280_v12 = vpop.f32.mrf.mxu0  ;;  %v285_v13 = vpop.f32.mrf.mxu1 }
  0xa9   : > { %v281_v19 = vadd.f32 %v499_v14, %v280_v12  ;;  %v286_v20 = vadd.f32 %v499_v14, %v285_v13 }
  0xaf   : > { %v290_v15 = vpop.f32.mrf.mxu2  ;;  %v295_v16 = vpop.f32.mrf.mxu3 }
  0xb0   : > { %v282_v17 = vpop.f32.mrf.mxu0  ;;  %v287_v18 = vpop.f32.mrf.mxu1  ;;  %v291_v27 = vadd.f32 %v499_v14, %v290_v15  ;;  %v296_v28 = vadd.f32 %v499_v14, %v295_v16 }
  0xb1   : > { %v283_v21 = vadd.f32 %v499_v14, %v282_v17  ;;  %v288_v22 = vadd.f32 %v499_v14, %v287_v18 }
  0xb3   : > { %v447_v23 = vpack.c.bf16 %v283_v21, %v281_v19  ;;  %v452_v24 = vpack.c.bf16 %v288_v22, %v286_v20 }
  0xb5   : > { %448 = vst [vmem:[%s170_s11] sm:$0xff] %v447_v23  }
  0xb6   : > { %464 = vst [vmem:[%s170_s11 + $0x8] sm:$0xff] %v452_v24  }
  0xb7   : > { %v292_v25 = vpop.f32.mrf.mxu2  ;;  %v297_v26 = vpop.f32.mrf.mxu3 }
  0xb8   : > { %v293_v29 = vadd.f32 %v499_v14, %v292_v25  ;;  %v298_v30 = vadd.f32 %v499_v14, %v297_v26 }
  0xba   : > { %v457_v31 = vpack.c.bf16 %v293_v29, %v291_v27  ;;  %v462_v32 = vpack.c.bf16 %v298_v30, %v296_v28 }
  0xbc   : > { %465 = vst [vmem:[%s170_s11 + $0x10] sm:$0xff] %v457_v31  }
  0xbd   : > { %466 = vst [vmem:[%s170_s11 + $0x18] sm:$0xff] %v462_v32  }
  0xbe PF: > { %s13_s12 = sadd.s32 1, %s506_s12  }
  0xbf   : > { %p10_p4 = scmp.ge.s32.totalorder %s13_s12, 4  }
  0xc1   :  { %12 = sbr.rel (!%p10_p4) target bundleno = 1 (0x1), region = 62 }

// kernel: deeplab_forward.13
= control target key start
LH: loop header
LB: loop body
LE: loop exit
PB: predicated region body
PF: predicated region fallthrough
CT: control target
= control target key end

     0   :  { %s3920_s27 = smov 0   ;;  %s4618_s0 = inlined_call_operand.vmem [shape: bf16[2,40,128], index: 0, kind: input, shape index: {}]   ;;  %s4619_s1 = inlined_call_operand.vmem [shape: bf16[128,128], index: 1, kind: input, shape index: {}]   ;;  %s4620_s2 = inlined_call_operand.vmem [shape: bf16[9,128,128], index: 2, kind: input, shape index: {}]   ;;  %s4621_s3 = inlined_call_operand.vmem [shape: bf16[9,128,128], index: 3, kind: input, shape index: {}]   ;;  %s4622_s4 = inlined_call_operand.vmem [shape: bf16[128,128], index: 4, kind: input, shape index: {}]   ;;  %s4623_s5 = inlined_call_operand.vmem [shape: f32[4,128], index: 5, kind: input, shape index: {}]   ;;  %s4624_s6 = inlined_call_operand.vmem [shape: bf16[4,128,128], index: 6, kind: input, shape index: {}]   ;;  %s4625_s7 = inlined_call_operand.vmem [shape: f32[1,128], index: 7, kind: input, shape index: {}]   ;;  %s4626_s8 = inlined_call_operand.vmem [shape: bf16[2,12,128], index: 8, kind: output, shape index: {}]  }
   0x1 LB: > { %s2545_s28 = sadd.s32 4294967295, %s3873_s27   ;;  %p2549_p0 = scmp.ge.s32.totalorder %s3873_s27, 1  ;;  %s3873_s27 = sphi %s3920_s27, %s18_s27  }
   0x2   : > { %p262_p1 = scmp.lt.s32.totalorder %s3873_s27, 3 }
   0x4   : > { %p263_p2 = pnand %p2549_p0, %p262_p1 }
   0x5   : > { %p296_p3 = scmp.lt.s32.totalorder (!%p263_p2), %s2545_s28, 1 }
   0x6   : > { %266 = sbr.rel (%p263_p2) target bundleno = 472 (0x1d8), region = 52 }
   0xb   : > { %v3659_v0 = vld [vmem:[%s4619_s1 + $0x38] sm:$0xff]  ;;  %v3658_v4 = vld [vmem:[%s4619_s1 + $0x30] sm:$0xff]  ;;  %v3657_v8 = vld [vmem:[%s4619_s1 + $0x28] sm:$0xff]  ;;  %s4628_s28 = smov (!%p296_p3, %s2545_s28), 1  ;;  %vm335_vm0 = vcmask 1044480  }
   0xc   : > { %v3675_v1 = vld [vmem:[%s4620_s2 + $0x78] sm:$0xff]  ;;  %388 = vmatpush.bf16.msra.mxu0 %v3659_v0  ;;  %v3674_v5 = vld [vmem:[%s4620_s2 + $0x70] sm:$0xff]  ;;  %v3673_v9 = vld [vmem:[%s4620_s2 + $0x68] sm:$0xff]  ;;  %s3854_s15 = smul.u32 20, %s4628_s28  ;;  %vm512_vm1 = vsmask.f32 4352 }
   0xd   : > { %v3667_v2 = vld [vmem:[%s4620_s2 + $0x38] sm:$0xff]  ;;  %494 = vmatpush.bf16.msra.mxu1 %v3675_v1  ;;  %v3666_v6 = vld [vmem:[%s4620_s2 + $0x30] sm:$0xff]  ;;  %v3665_v10 = vld [vmem:[%s4620_s2 + $0x28] sm:$0xff]  ;;  %vm707_vm2 = vsmask.f32 5376  ;;  %s3651_s19 = sshll.u32 %s4628_s28, 3 }
   0xe   : > { %v3683_v3 = vld [vmem:[%s4620_s2 + $0xb8] sm:$0xff]  ;;  %579 = vmatpush.bf16.msra.mxu2 %v3667_v2  ;;  %v3682_v7 = vld [vmem:[%s4620_s2 + $0xb0] sm:$0xff]  ;;  %v3681_v11 = vld [vmem:[%s4620_s2 + $0xa8] sm:$0xff]  ;;  %s3988_s26 = scalar_lea.vmem %s4618_s0, %s3854_s15  ;;  %s305_s21 = scalar_lea.vmem %s4626_s8, %s3651_s19 }
   0xf   : > { %670 = vmatpush.bf16.msra.mxu3 %v3683_v3  ;;  %v3656_v12 = vld [vmem:[%s4619_s1 + $0x20] sm:$0xff]  ;;  %v3655_v16 = vld [vmem:[%s4619_s1 + $0x18] sm:$0xff]  ;;  %v3998_v21 = vld [vmem:[%s3988_s26 + $0x8] sm:$0xff]  }
  0x10   : > { %389 = vmatpush.bf16.msra.mxu0 %v3658_v4  ;;  %v3672_v13 = vld [vmem:[%s4620_s2 + $0x60] sm:$0xff]  ;;  %v3671_v17 = vld [vmem:[%s4620_s2 + $0x58] sm:$0xff]  ;;  %v324_v22 = vld [vmem:[%s3988_s26 + $0xc] sm:$0x1]  ;;  %v4002_v24 = vunpack.c.l.b16 %v3998_v21 }
  0x11   : > { %495 = vmatpush.bf16.msra.mxu1 %v3674_v5  ;;  %v3664_v14 = vld [vmem:[%s4620_s2 + $0x20] sm:$0xff]  ;;  %v3663_v18 = vld [vmem:[%s4620_s2 + $0x18] sm:$0xff]  ;;  %v332_v25 = vunpack.c.l.b16 %v324_v22  ;;  %v422_v28 = vld [vmem:[%s3988_s26 + $0x8] sm:$0x3] }
  0x12   : > { %580 = vmatpush.bf16.msra.mxu2 %v3666_v6  ;;  %v3680_v15 = vld [vmem:[%s4620_s2 + $0xa0] sm:$0xff]  ;;  %v3679_v19 = vld [vmem:[%s4620_s2 + $0x98] sm:$0xff]  ;;  %v3654_v29 = vld [vmem:[%s4619_s1 + $0x10] sm:$0xff]  ;;  %v4015_v32 = vunpack.c.l.b16 %v422_v28 }
  0x13   : > { %671 = vmatpush.bf16.msra.mxu3 %v3682_v7  ;;  %v322_v20 = vld [vmem:[%s3988_s26 + $0x4] sm:$0x8]  ;;  %v420_v26 = vld [vmem:[%s3988_s26] sm:$0x8]  ;;  %v3670_v30 = vld [vmem:[%s4620_s2 + $0x50] sm:$0xff]  ;;  %v4030_v41 = vpack.c.b16 %v332_v25, %v332_v25 }
  0x14   : > { %390 = vmatpush.bf16.msra.mxu0 %v3657_v8  ;;  %v330_v23 = vunpack.c.l.b16 %v322_v20  ;;  %v421_v27 = vld [vmem:[%s3988_s26 + $0x4] sm:$0xf]  ;;  %v509_v33 = vunpack.c.l.b16 %v420_v26  ;;  %v3662_v34 = vld [vmem:[%s4620_s2 + $0x10] sm:$0xff]  ;;  %v610_v36 = vld [vmem:[%s3988_s26 + $0x8] sm:$0x7]  ;;  %v511_v38 = vpack.c.b16 %v4015_v32, %v4015_v32 }
  0x15   : > { %496 = vmatpush.bf16.msra.mxu1 %v3673_v9  ;;  %v4013_v31 = vunpack.c.l.b16 %v421_v27  ;;  %v3678_v35 = vld [vmem:[%s4620_s2 + $0x90] sm:$0xff]  ;;  %v612_v39 = vunpack.c.l.b16 %v610_v36  ;;  %v3653_v42 = vld [vmem:[%s4619_s1 + $0x8] sm:$0xff]  ;;  %v3652_v56 = vld [vmem:[%s4619_s1] sm:$0xff]  ;;  %v337_v59 = vrot.slane %v4030_v41, 3 }
  0x16   : > { %581 = vmatpush.bf16.msra.mxu2 %v3665_v10  ;;  %v4028_v40 = vpack.c.b16 %v4002_v24, %v330_v23  ;;  %v3669_v43 = vld [vmem:[%s4620_s2 + $0x48] sm:$0xff]  ;;  %v522_v46 = vshrl.u32 %v511_v38, 16  ;;  %v525_v47 = vshll.u32 %v511_v38, 16  ;;  %v3668_v57 = vld [vmem:[%s4620_s2 + $0x40] sm:$0xff]  ;;  %v3691_v61 = vld [vmem:[%s4620_s2 + $0xf8] sm:$0xff] }
  0x17   : > { %672 = vmatpush.bf16.msra.mxu3 %v3681_v11  ;;  %v510_v37 = vpack.c.b16 %v4013_v31, %v509_v33  ;;  %v3661_v48 = vld [vmem:[%s4620_s2 + $0x8] sm:$0xff]  ;;  %v613_v50 = vpack.c.b16 %v612_v39, %v4013_v31  ;;  %v3660_v60 = vld [vmem:[%s4620_s2] sm:$0xff]  ;;  %v3699_v0 = vld [vmem:[%s4620_s2 + $0x138] sm:$0xff]  ;;  %v444_v9 = vpack.c.b16 %v4015_v32, %v4013_v31 }
  0x18   : > { %391 = vmatpush.bf16.msra.mxu0 %v3656_v12  ;;  %v3677_v49 = vld [vmem:[%s4620_s2 + $0x88] sm:$0xff]  ;;  %v524_v53 = vrot.slane %v522_v46, 3  ;;  %v527_v54 = vrot.slane %v525_v47, 4  ;;  %v336_v58 = vrot.slane %v4028_v40, 3  ;;  %v3707_v1 = vld [vmem:[%s4620_s2 + $0x178] sm:$0xff]  ;;  %v3676_v2 = vld [vmem:[%s4620_s2 + $0x80] sm:$0xff] }
  0x19   : > { %497 = vmatpush.bf16.msra.mxu1 %v3672_v13  ;;  %v514_v44 = vshrl.u32 %v510_v37, 16  ;;  %v517_v45 = vshll.u32 %v510_v37, 16  ;;  %v617_v55 = vshll.u32 %v613_v50, 16  ;;  %v615_v3 = vshrl.u32 %v613_v50, 16  ;;  %v3715_v5 = vld [vmem:[%s4620_s2 + $0x1b8] sm:$0xff]  ;;  %v3690_v7 = vld [vmem:[%s4620_s2 + $0xf0] sm:$0xff] }
  0x1a   : > { %582 = vmatpush.bf16.msra.mxu2 %v3664_v14  ;;  %v528_v63 = vor.u32 %v527_v54, %v524_v53  ;;  %v4071_v6 = vsel %vm335_vm0, %v336_v58, %v337_v59  ;;  %v3698_v10 = vld [vmem:[%s4620_s2 + $0x130] sm:$0xff]  ;;  %v3689_v14 = vld [vmem:[%s4620_s2 + $0xe8] sm:$0xff]  ;;  %v3688_v20 = vld [vmem:[%s4620_s2 + $0xe0] sm:$0xff]  ;;  %v889_v38 = vshrl.u32 %v4028_v40, 16  ;;  %v892_v39 = vshll.u32 %v4028_v40, 16 }
  0x1b   : > { %673 = vmatpush.bf16.msra.mxu3 %v3680_v15  ;;  %v516_v51 = vrot.slane %v514_v44, 3  ;;  %v519_v52 = vrot.slane %v517_v45, 4  ;;  %v619_v4 = vrot.slane %v617_v55, 1  ;;  %v3706_v11 = vld [vmem:[%s4620_s2 + $0x170] sm:$0xff]  ;;  %v3697_v15 = vld [vmem:[%s4620_s2 + $0x128] sm:$0xff]  ;;  %v3696_v22 = vld [vmem:[%s4620_s2 + $0x120] sm:$0xff] }
  0x1c   : > { %392 = vmatpush.bf16.msra.mxu0 %v3655_v16  ;;  %v3714_v13 = vld [vmem:[%s4620_s2 + $0x1b0] sm:$0xff]  ;;  %v3705_v16 = vld [vmem:[%s4620_s2 + $0x168] sm:$0xff]  ;;  %v3704_v23 = vld [vmem:[%s4620_s2 + $0x160] sm:$0xff]  ;;  %v717_v50 = vshll.u32 %v4030_v41, 16 }
  0x1d   : > { %498 = vmatpush.bf16.msra.mxu1 %v3671_v17  ;;  %v520_v62 = vor.u32 %v519_v52, %v516_v51  ;;  %v620_v12 = vor.u32 %v619_v4, %v615_v3  ;;  %v703_v17 = vld [vmem:[%s3988_s26 + $0x4] sm:$0xc]  ;;  %v987_v28 = vld [vmem:[%s3988_s26 + $0x8] sm:$0xe]  ;;  %v3703_v31 = vld [vmem:[%s4620_s2 + $0x158] sm:$0xff]  ;;  %v891_v51 = vrot.slane %v889_v38, 3 }
  0x1e   : > { %583 = vmatpush.bf16.msra.mxu2 %v3663_v18  ;;  %v884_v18 = vld [vmem:[%s3988_s26 + $0xc] sm:$0x3]  ;;  %v705_v25 = vunpack.c.l.b16 %v703_v17  ;;  %v3712_v27 = vld [vmem:[%s4620_s2 + $0x1a0] sm:$0xff]  ;;  %v3711_v36 = vld [vmem:[%s4620_s2 + $0x198] sm:$0xff]  ;;  %v894_v52 = vrot.slane %v892_v39, 4 }
  0x1f   : > { %674 = vmatpush.bf16.msra.mxu3 %v3679_v19  ;;  %v529_v8 = vsel %vm512_vm1, %v520_v62, %v528_v63  ;;  %v3713_v19 = vld [vmem:[%s4620_s2 + $0x1a8] sm:$0xff]  ;;  %v4112_v26 = vunpack.c.l.b16 %v884_v18  ;;  %v3686_v37 = vld [vmem:[%s4620_s2 + $0xd0] sm:$0xff]  ;;  %v3692_v62 = vld [vmem:[%s4620_s2 + $0x100] sm:$0xff] }
  0x20   : > { %393 = vmatpush.bf16.msra.mxu0 %v3654_v29  ;;  %v3687_v29 = vld [vmem:[%s4620_s2 + $0xd8] sm:$0xff]  ;;  %v706_v32 = vpack.c.b16 %v4002_v24, %v705_v25  ;;  %v3710_v40 = vld [vmem:[%s4620_s2 + $0x190] sm:$0xff]  ;;  %v3693_v53 = vld [vmem:[%s4620_s2 + $0x108] sm:$0xff] }
  0x21   : > { %499 = vmatpush.bf16.msra.mxu1 %v3670_v30  ;;  %v3695_v30 = vld [vmem:[%s4620_s2 + $0x118] sm:$0xff]  ;;  %v887_v33 = vpack.c.b16 %v4112_v26, %v4112_v26  ;;  %v3701_v54 = vld [vmem:[%s4620_s2 + $0x148] sm:$0xff]  ;;  %v3700_v63 = vld [vmem:[%s4620_s2 + $0x140] sm:$0xff] }
  0x22   : > { %584 = vmatpush.bf16.msra.mxu2 %v3662_v34  ;;  %v991_v34 = vunpack.c.l.b16 %v987_v28  ;;  %v709_v44 = vshrl.u32 %v706_v32, 16  ;;  %v712_v45 = vshll.u32 %v706_v32, 16  ;;  %v3709_v41 = vld [vmem:[%s4620_s2 + $0x188] sm:$0xff]  ;;  %v3723_v4 = vld [vmem:[%s4620_s2 + $0x1f8] sm:$0xff]  ;;  %v3747_v17 = vld [vmem:[%s4621_s3 + $0x70] sm:$0xff] }
  0x23   : > { %675 = vmatpush.bf16.msra.mxu3 %v3678_v35  ;;  %v992_v35 = vunpack.c.h.b16 %v3998_v21  ;;  %v897_v46 = vshrl.u32 %v887_v33, 16  ;;  %v900_v47 = vshll.u32 %v887_v33, 16  ;;  %v3738_v18 = vld [vmem:[%s4621_s3 + $0x30] sm:$0xff]  ;;  %v1171_v25 = vld [vmem:[%s3988_s26 + $0x8] sm:$0xc]  ;;  %v3720_v28 = vld [vmem:[%s4620_s2 + $0x1e0] sm:$0xff] }
  0x24   : > { %394 = vmatpush.bf16.msra.mxu0 %v3653_v42  ;;  %v3694_v42 = vld [vmem:[%s4620_s2 + $0x110] sm:$0xff]  ;;  %v711_v55 = vrot.slane %v709_v44, 2  ;;  %v1177_v32 = vunpack.c.l.b16 %v1171_v25  ;;  %v3744_v38 = vld [vmem:[%s4621_s3 + $0x58] sm:$0xff]  ;;  %v3772_v25 = vld [vmem:[%s4621_s3 + $0x120] sm:$0xff] }
  0x25   : > { %500 = vmatpush.bf16.msra.mxu1 %v3669_v43  ;;  %v3702_v43 = vld [vmem:[%s4620_s2 + $0x150] sm:$0xff]  ;;  %v902_v58 = vrot.slane %v900_v47, 4  ;;  %v1084_v47 = vld [vmem:[%s3988_s26 + $0x8] sm:$0xc]  ;;  %v3766_v21 = vld [vmem:[%s4621_s3 + $0xf8] sm:$0xff] }
  0x26   : > { %585 = vmatpush.bf16.msra.mxu2 %v3661_v48  ;;  %v993_v48 = vpack.c.b16 %v992_v35, %v991_v34  ;;  %v3736_v34 = vld [vmem:[%s4621_s3 + $0x20] sm:$0xff]  ;;  %v3718_v44 = vld [vmem:[%s4620_s2 + $0x1d0] sm:$0xff] }
  0x27   : > { %676 = vmatpush.bf16.msra.mxu3 %v3677_v49  ;;  %v3685_v49 = vld [vmem:[%s4620_s2 + $0xc8] sm:$0xff] }
  0x28   : > { %395 = vmatpush.bf16.msra.mxu0 %v3652_v56  ;;  %v714_v56 = vrot.slane %v712_v45, 3  ;;  %v995_v59 = vshrl.u32 %v993_v48, 16  ;;  %v3726_v45 = vld [vmem:[%s4620_s2 + $0x210] sm:$0xff] }
  0x29   : > { %501 = vmatpush.bf16.msra.mxu1 %v3668_v57  ;;  %v899_v57 = vrot.slane %v897_v46, 3  ;;  %v3743_v46 = vld [vmem:[%s4621_s3 + $0x50] sm:$0xff] }
  0x2a   : > { %586 = vmatpush.bf16.msra.mxu2 %v3660_v60  ;;  %v998_v60 = vshll.u32 %v993_v48, 16 }
  0x2b   : > { %677 = vmatpush.bf16.msra.mxu3 %v3676_v2  ;;  %396 = vmatmul.bf16.vlgmr.msra.gmra.mxu0 %v4071_v6  ;;  %v895_v2 = vor.u32 %v894_v52, %v891_v51  ;;  %v903_v3 = vor.u32 %v902_v58, %v899_v57  ;;  %v3717_v51 = vld [vmem:[%s4620_s2 + $0x1c8] sm:$0xff]  ;;  %v1086_v52 = vunpack.c.l.b16 %v1084_v47  ;;  %v3019_v58 = vld [vmem:[%s3988_s26] sm:$0xe] }
  0x2c   : > { %770 = vmatpush.bf16.msrb.mxu0 %v3691_v61  ;;  %502 = vmatmul.bf16.vlgmr.msra.gmra.mxu1 %v444_v9  ;;  %v3684_v61 = vld [vmem:[%s4620_s2 + $0xc0] sm:$0xff]  ;;  %v3748_v9 = vld [vmem:[%s4621_s3 + $0x78] sm:$0xff] }
  0x2d   : > { %851 = vmatpush.bf16.msrb.mxu1 %v3699_v0  ;;  %587 = vmatmul.bf16.vlgmr.msra.gmra.mxu2 %v529_v8  ;;  %v715_v0 = vor.u32 %v714_v56, %v711_v55  ;;  %v1000_v8 = vrot.slane %v998_v60, 2  ;;  %v3733_v60 = vld [vmem:[%s4621_s3 + $0x8] sm:$0xff] }
  0x2e   : > { %954 = vmatpush.bf16.msrb.mxu2 %v3707_v1  ;;  %678 = vmatmul.bf16.vlgmr.msra.gmra.mxu3 %v620_v12  ;;  %v719_v1 = vrot.slane %v717_v50, 3  ;;  %v904_v12 = vsel %vm512_vm1, %v895_v2, %v903_v3  ;;  %v3734_v50 = vld [vmem:[%s4621_s3 + $0x10] sm:$0xff]  ;;  %v3775_v3 = vld [vmem:[%s4621_s3 + $0x138] sm:$0xff] }
  0x2f   : > { %1051 = vmatpush.bf16.msrb.mxu3 %v3715_v5  ;;  %v3731_v5 = vld [vmem:[%s4620_s2 + $0x238] sm:$0xff] }
  0x30   : > { %771 = vmatpush.bf16.msrb.mxu0 %v3690_v7  ;;  %v997_v7 = vrot.slane %v995_v59, 1  ;;  %v3749_v59 = vld [vmem:[%s3988_s26] sm:$0x70] }
  0x31   : > { %852 = vmatpush.bf16.msrb.mxu1 %v3698_v10  ;;  %v3708_v10 = vld [vmem:[%s4620_s2 + $0x180] sm:$0xff] }
  0x32   : > { %955 = vmatpush.bf16.msrb.mxu2 %v3706_v11  ;;  %v720_v11 = vsel %vm707_vm2, %v715_v0, %v719_v1  ;;  %v3020_v0 = vor.u32 %v3749_v59, %v3019_v58  ;;  %v3757_v1 = vld [vmem:[%s4621_s3 + $0xb8] sm:$0xff]  ;;  %v3750_v58 = vld [vmem:[%s4621_s3 + $0x80] sm:$0xff] }
  0x33   : > { %1052 = vmatpush.bf16.msrb.mxu3 %v3714_v13  ;;  %v3739_v13 = vld [vmem:[%s4621_s3 + $0x38] sm:$0xff]  ;;  %v3759_v59 = vld [vmem:[%s4621_s3 + $0xc0] sm:$0xff] }
  0x34   : > { %772 = vmatpush.bf16.msrb.mxu0 %v3689_v14  ;;  %v1001_v14 = vor.u32 %v1000_v8, %v997_v7  ;;  %v3783_v7 = vld [vmem:[%s4621_s3 + $0x178] sm:$0xff]  ;;  %v3055_v8 = vld [vmem:[%s3988_s26] sm:$0xf] }
  0x35   : > { %853 = vmatpush.bf16.msrb.mxu1 %v3697_v15  ;;  %v3722_v15 = vld [vmem:[%s4620_s2 + $0x1f0] sm:$0xff] }
  0x36   : > { %956 = vmatpush.bf16.msrb.mxu2 %v3705_v16  ;;  %v3730_v16 = vld [vmem:[%s4620_s2 + $0x230] sm:$0xff] }
  0x37   : > { %1053 = vmatpush.bf16.msrb.mxu3 %v3713_v19  ;;  %v3721_v19 = vld [vmem:[%s4620_s2 + $0x1e8] sm:$0xff] }
  0x38   : > { %773 = vmatpush.bf16.msrb.mxu0 %v3688_v20  ;;  %v3729_v20 = vld [vmem:[%s4620_s2 + $0x228] sm:$0xff] }
  0x39   : > { %854 = vmatpush.bf16.msrb.mxu1 %v3696_v22  ;;  %v3746_v22 = vld [vmem:[%s4621_s3 + $0x68] sm:$0xff] }
  0x3a   : > { %957 = vmatpush.bf16.msrb.mxu2 %v3704_v23  ;;  %v3737_v23 = vld [vmem:[%s4621_s3 + $0x28] sm:$0xff] }
  0x3b   : > { %1054 = vmatpush.bf16.msrb.mxu3 %v3712_v27  ;;  %v4216_v27 = vld [vmem:[%s3988_s26 + $0xc] sm:$0xf] }
  0x3c   : > { %774 = vmatpush.bf16.msrb.mxu0 %v3687_v29  ;;  %v3728_v29 = vld [vmem:[%s4620_s2 + $0x220] sm:$0xff]  ;;  %v1178_v33 = vunpack.c.l.b16 %v4216_v27 }
  0x3d   : > { %855 = vmatpush.bf16.msrb.mxu1 %v3695_v30  ;;  %v3745_v30 = vld [vmem:[%s4621_s3 + $0x60] sm:$0xff] }
  0x3e   : > { %958 = vmatpush.bf16.msrb.mxu2 %v3703_v31  ;;  %v1173_v31 = vld [vmem:[%s3988_s26 + $0x10] sm:$0x1] }
  0x3f   : > { %1055 = vmatpush.bf16.msrb.mxu3 %v3711_v36  ;;  %v3719_v36 = vld [vmem:[%s4620_s2 + $0x1d8] sm:$0xff]  ;;  %v1179_v39 = vunpack.c.l.b16 %v1173_v31 }
  0x40   : > { %775 = vmatpush.bf16.msrb.mxu0 %v3686_v37  ;;  %v3727_v37 = vld [vmem:[%s4620_s2 + $0x218] sm:$0xff] }
  0x41   : > { %856 = vmatpush.bf16.msrb.mxu1 %v3694_v42  ;;  %v1180_v42 = vpack.c.b16 %v1178_v33, %v1177_v32  ;;  %v1181_v48 = vpack.c.b16 %v1179_v39, %v1179_v39  ;;  %v3771_v31 = vld [vmem:[%s4621_s3 + $0x118] sm:$0xff] }
  0x42   : > { %959 = vmatpush.bf16.msrb.mxu2 %v3702_v43  ;;  %v3735_v43 = vld [vmem:[%s4621_s3 + $0x18] sm:$0xff] }
  0x43   : > { %1056 = vmatpush.bf16.msrb.mxu3 %v3710_v40  ;;  %v1183_v40 = vshrl.u32 %v1180_v42, 16  ;;  %v1191_v55 = vshll.u32 %v1181_v48, 16  ;;  %v3779_v32 = vld [vmem:[%s4621_s3 + $0x158] sm:$0xff]  ;;  %v2062_v48 = vunpack.c.l.bf16 %v4216_v27  ;;  %v3823_v27 = vld [vmem:[%s4624_s6 + $0x28] sm:$0xff] }
  0x44   : > { %776 = vmatpush.bf16.msrb.mxu0 %v3685_v49  ;;  %v1186_v49 = vshll.u32 %v1180_v42, 16  ;;  %v3770_v42 = vld [vmem:[%s4621_s3 + $0x110] sm:$0xff] }
  0x45   : > { %857 = vmatpush.bf16.msrb.mxu1 %v3693_v53  ;;  %v3725_v53 = vld [vmem:[%s4620_s2 + $0x208] sm:$0xff]  ;;  %v1185_v56 = vrot.slane %v1183_v40, 2  ;;  %v1193_v2 = vrot.slane %v1191_v55, 3 }
  0x46   : > { %960 = vmatpush.bf16.msrb.mxu2 %v3701_v54  ;;  %v3742_v54 = vld [vmem:[%s4621_s3 + $0x48] sm:$0xff]  ;;  %v1188_v57 = vrot.slane %v1186_v49, 3  ;;  %v3107_v49 = vld [vmem:[%s3988_s26] sm:$0xc] }
  0x47   : > { %1057 = vmatpush.bf16.msrb.mxu3 %v3709_v41  ;;  %v3716_v41 = vld [vmem:[%s4620_s2 + $0x1c0] sm:$0xff]  ;;  %v3760_v40 = vld [vmem:[%s4621_s3 + $0xc8] sm:$0xff] }
  0x48   : > { %777 = vmatpush.bf16.msrb.mxu0 %v3684_v61  ;;  %v1087_v61 = vpack.c.b16 %v992_v35, %v1086_v52  ;;  %v1189_v35 = vor.u32 %v1188_v57, %v1185_v56  ;;  %v3159_v52 = vld [vmem:[%s3988_s26 + $0x4] sm:$0xc]  ;;  %v3777_v55 = vld [vmem:[%s4621_s3 + $0x148] sm:$0xff]  ;;  %v1978_v56 = vld [vmem:[%s3988_s26 + $0x10] sm:$0xf] }
  0x49   : > { %858 = vmatpush.bf16.msrb.mxu1 %v3692_v62  ;;  %v3724_v62 = vld [vmem:[%s4620_s2 + $0x200] sm:$0xff] }
  0x4a   : > { %961 = vmatpush.bf16.msrb.mxu2 %v3700_v63  ;;  %v3741_v63 = vld [vmem:[%s4621_s3 + $0x40] sm:$0xff] }
  0x4b   : > { %1058 = vmatpush.bf16.msrb.mxu3 %v3708_v10  ;;  %778 = vmatmul.bf16.vlgmr.msrb.gmra.mxu0 %v720_v11  ;;  %v1308_v10 = vrot.slane %v3020_v0, 1  ;;  %v1194_v11 = vsel %vm707_vm2, %v1189_v35, %v1193_v2  ;;  %v3799_v0 = vld [vmem:[%s4621_s3 + $0x1f8] sm:$0xff] }
  0x4c   : > { %1138 = vmatpush.bf16.msra.mxu0 %v3723_v4  ;;  %859 = vmatmul.bf16.vlgmr.msrb.gmra.mxu1 %v4071_v6  ;;  %v3732_v4 = vld [vmem:[%s4621_s3] sm:$0xff] }
  0x4d   : > { %1244 = vmatpush.bf16.msra.mxu1 %v3731_v5  ;;  %962 = vmatmul.bf16.vlgmr.msrb.gmra.mxu2 %v904_v12  ;;  %v1088_v5 = vrot.slane %v1087_v61, 2  ;;  %v3756_v12 = vld [vmem:[%s4621_s3 + $0xb0] sm:$0xff] }
  0x4e   : > { %1358 = vmatpush.bf16.msra.mxu2 %v3748_v9  ;;  %1059 = vmatmul.bf16.vlgmr.msrb.gmra.mxu3 %v1001_v14  ;;  %v3740_v9 = vld [vmem:[%s3988_s26] sm:$0x30]  ;;  %v3774_v14 = vld [vmem:[%s4621_s3 + $0x130] sm:$0xff] }
  0x4f   : > { %1426 = vmatpush.bf16.msra.mxu3 %v3739_v13  ;;  %v3765_v13 = vld [vmem:[%s4621_s3 + $0xf0] sm:$0xff] }
  0x50   : > { %1139 = vmatpush.bf16.msra.mxu0 %v3722_v15  ;;  %v3056_v15 = vor.u32 %v3740_v9, %v3055_v8  ;;  %v3798_v8 = vld [vmem:[%s4621_s3 + $0x1f0] sm:$0xff] }
  0x51   : > { %1245 = vmatpush.bf16.msra.mxu1 %v3730_v16  ;;  %v3782_v16 = vld [vmem:[%s4621_s3 + $0x170] sm:$0xff] }
  0x52   : > { %1359 = vmatpush.bf16.msra.mxu2 %v3747_v17  ;;  %v3755_v17 = vld [vmem:[%s4621_s3 + $0xa8] sm:$0xff]  ;;  %v3807_v9 = vld [vmem:[%s4621_s3 + $0x230] sm:$0xff] }
  0x53   : > { %1427 = vmatpush.bf16.msra.mxu3 %v3738_v18  ;;  %v3764_v18 = vld [vmem:[%s4621_s3 + $0xe8] sm:$0xff] }
  0x54   : > { %1140 = vmatpush.bf16.msra.mxu0 %v3721_v19  ;;  %v3773_v19 = vld [vmem:[%s4621_s3 + $0x128] sm:$0xff] }
  0x55   : > { %1246 = vmatpush.bf16.msra.mxu1 %v3729_v20  ;;  %v3781_v20 = vld [vmem:[%s4621_s3 + $0x168] sm:$0xff] }
  0x56   : > { %1360 = vmatpush.bf16.msra.mxu2 %v3746_v22  ;;  %v3754_v22 = vld [vmem:[%s4621_s3 + $0xa0] sm:$0xff] }
  0x57   : > { %1428 = vmatpush.bf16.msra.mxu3 %v3737_v23  ;;  %v3763_v23 = vld [vmem:[%s4621_s3 + $0xe0] sm:$0xff] }
  0x58   : > { %1141 = vmatpush.bf16.msra.mxu0 %v3720_v28  ;;  %v3780_v28 = vld [vmem:[%s4621_s3 + $0x160] sm:$0xff] }
  0x59   : > { %1247 = vmatpush.bf16.msra.mxu1 %v3728_v29  ;;  %v3753_v29 = vld [vmem:[%s4621_s3 + $0x98] sm:$0xff] }
  0x5a   : > { %1361 = vmatpush.bf16.msra.mxu2 %v3745_v30  ;;  %v3762_v30 = vld [vmem:[%s4621_s3 + $0xd8] sm:$0xff] }
  0x5b   : > { %1429 = vmatpush.bf16.msra.mxu3 %v3736_v34  ;;  %v3851_v34 = vld [vmem:[%s3988_s26] sm:$0xff]  }
  0x5c   : > { %1142 = vmatpush.bf16.msra.mxu0 %v3719_v36  ;;  %v3752_v36 = vld [vmem:[%s4621_s3 + $0x90] sm:$0xff]  ;;  %v3853_v39 = vunpack.c.h.bf16 %v3851_v34 }
  0x5d   : > { %1248 = vmatpush.bf16.msra.mxu1 %v3727_v37  ;;  %v3761_v37 = vld [vmem:[%s4621_s3 + $0xd0] sm:$0xff] }
  0x5e   : > { %1362 = vmatpush.bf16.msra.mxu2 %v3744_v38  ;;  %v3852_v38 = vunpack.c.l.bf16 %v3851_v34  ;;  %v1801_v34 = vld [vmem:[%s3988_s26 + $0x10] sm:$0x3] }
  0x5f   : > { %1430 = vmatpush.bf16.msra.mxu3 %v3735_v43  ;;  %v3778_v43 = vld [vmem:[%s4621_s3 + $0x150] sm:$0xff] }
  0x60   : > { %1143 = vmatpush.bf16.msra.mxu0 %v3718_v44  ;;  %v2058_v44 = vld [vmem:[%s3988_s26 + $0x8] sm:$0xf] }
  0x61   : > { %1249 = vmatpush.bf16.msra.mxu1 %v3726_v45  ;;  %v2064_v45 = vadd.f32 %v3853_v39, %v3852_v38  ;;  %v2061_v47 = vunpack.c.l.bf16 %v2058_v44  ;;  %v3355_v38 = vld [vmem:[%s3988_s26 + $0xc] sm:$0xe]  ;;  %v3800_v39 = vld [vmem:[%s3988_s26 + $0xc] sm:$0x70] }
  0x62   : > { %1363 = vmatpush.bf16.msra.mxu2 %v3743_v46  ;;  %v3751_v46 = vld [vmem:[%s4621_s3 + $0x88] sm:$0xff]  ;;  %v3809_v44 = vld [vmem:[%s3988_s26 + $0xc] sm:$0xf0] }
  0x63   : > { %1431 = vmatpush.bf16.msra.mxu3 %v3734_v50  ;;  %v3758_v50 = vld [vmem:[%s3988_s26] sm:$0xf0] }
  0x64   : > { %1144 = vmatpush.bf16.msra.mxu0 %v3717_v51  ;;  %v3769_v51 = vld [vmem:[%s4621_s3 + $0x108] sm:$0xff]  ;;  %v3108_v57 = vor.u32 %v3758_v50, %v3107_v49  ;;  %v3792_v49 = vld [vmem:[%s4621_s3 + $0x1c0] sm:$0xff] }
  0x65   : > { %1250 = vmatpush.bf16.msra.mxu1 %v3725_v53  ;;  %v3767_v53 = vld [vmem:[%s3988_s26 + $0x4] sm:$0xf0] }
  0x66   : > { %1364 = vmatpush.bf16.msra.mxu2 %v3742_v54  ;;  %v2065_v54 = vadd.f32 %v2064_v45, %v2061_v47  ;;  %v1464_v35 = vrot.slane %v3108_v57, 2  ;;  %v1803_v45 = vunpack.c.l.b16 %v1801_v34  ;;  %v3784_v47 = vld [vmem:[%s4621_s3 + $0x180] sm:$0xff] }
  0x67   : > { %1432 = vmatpush.bf16.msra.mxu3 %v3733_v60  ;;  %v3160_v60 = vor.u32 %v3767_v53, %v3159_v52  ;;  %v3825_v52 = vld [vmem:[%s4624_s6 + $0x38] sm:$0xff] }
  0x68   : > { %1145 = vmatpush.bf16.msra.mxu0 %v3716_v41  ;;  %v2063_v41 = vunpack.c.l.bf16 %v1978_v56  ;;  %v2066_v61 = vadd.f32 %v2065_v54, %v2062_v48  ;;  %v3356_v48 = vor.u32 %v3800_v39, %v3355_v38  ;;  %v1804_v53 = vpack.c.b16 %v1803_v45, %v1178_v33  ;;  %v3810_v56 = vld [vmem:[%s4622_s4] sm:$0xff] }
  0x69   : > { %1251 = vmatpush.bf16.msra.mxu1 %v3724_v62  ;;  %v3768_v62 = vld [vmem:[%s4621_s3 + $0x100] sm:$0xff]  ;;  %v1554_v2 = vrot.slane %v3160_v60, 2 }
  0x6a   : > { %1365 = vmatpush.bf16.msra.mxu2 %v3741_v63  ;;  %v3791_v63 = vld [vmem:[%s4621_s3 + $0x1b8] sm:$0xff]  ;;  %v3822_v33 = vld [vmem:[%s4624_s6 + $0x20] sm:$0xff] }
  0x6b   : > { %1433 = vmatpush.bf16.msra.mxu3 %v3732_v4  ;;  %1146 = vmatmul.bf16.vlgmr.msra.gmra.mxu0 %v1088_v5  ;;  %v3790_v4 = vld [vmem:[%s4621_s3 + $0x1b0] sm:$0xff]  ;;  %v3817_v5 = vld [vmem:[%s4622_s4 + $0x38] sm:$0xff] }
  0x6c   : > { %1514 = vmatpush.bf16.msrb.mxu0 %v3757_v1  ;;  %1252 = vmatmul.bf16.vlgmr.msra.gmra.mxu1 %v1194_v11  ;;  %v3808_v1 = vld [vmem:[%s4621_s3 + $0x238] sm:$0xff]  ;;  %v3789_v11 = vld [vmem:[%s4621_s3 + $0x1a8] sm:$0xff] }
  0x6d   : > { %1604 = vmatpush.bf16.msrb.mxu1 %v3766_v21  ;;  %1366 = vmatmul.bf16.vlgmr.msra.gmra.mxu2 %v1308_v10  ;;  %v3776_v21 = vld [vmem:[%s4621_s3 + $0x140] sm:$0xff] }
  0x6e   : > { %1685 = vmatpush.bf16.msrb.mxu2 %v3775_v3  ;;  %1434 = vmatmul.bf16.vlgmr.msra.gmra.mxu3 %v3056_v15  ;;  %v2067_v3 = vadd.f32 %v2066_v61, %v2063_v41  ;;  %v3796_v15 = vld [vmem:[%s4621_s3 + $0x1e0] sm:$0xff]  ;;  %v3821_v41 = vld [vmem:[%s4624_s6 + $0x18] sm:$0xff] }
  0x6f   : > { %1768 = vmatpush.bf16.msrb.mxu3 %v3783_v7  ;;  %v1718_v7 = vpack.c.b16 %v4112_v26, %v4002_v24  ;;  %v3816_v24 = vld [vmem:[%s4622_s4 + $0x30] sm:$0xff]  ;;  %v3797_v26 = vld [vmem:[%s4621_s3 + $0x1e8] sm:$0xff]  ;;  %v3863_v61 = vld [vmem:[%s4623_s5] ss:$0 sm:$0xff] }
  0x70   : > { %1515 = vmatpush.bf16.msrb.mxu0 %v3756_v12  ;;  %v2068_v10 = vrot.slane %v2067_v3, 4 }
  0x71   : > { %1605 = vmatpush.bf16.msrb.mxu1 %v3765_v13  ;;  %v3788_v13 = vld [vmem:[%s4621_s3 + $0x1a0] sm:$0xff] }
  0x72   : > { %1686 = vmatpush.bf16.msrb.mxu2 %v3774_v14  ;;  %v2069_v12 = vadd.f32 %v2068_v10, %v2067_v3  ;;  %v3815_v14 = vld [vmem:[%s4622_s4 + $0x28] sm:$0xff]  ;;  %v3833_v3 = vld [vmem:[%s4624_s6 + $0x78] sm:$0xff]  ;;  %v3830_v10 = vld [vmem:[%s4624_s6 + $0x60] sm:$0xff] }
  0x73   : > { %1769 = vmatpush.bf16.msrb.mxu3 %v3782_v16  ;;  %v3805_v16 = vld [vmem:[%s4621_s3 + $0x220] sm:$0xff] }
  0x74   : > { %1516 = vmatpush.bf16.msrb.mxu0 %v3755_v17  ;;  %v2070_v17 = vrot.slane %v2069_v12, 2 }
  0x75   : > { %1606 = vmatpush.bf16.msrb.mxu1 %v3764_v18  ;;  %v3787_v18 = vld [vmem:[%s4621_s3 + $0x198] sm:$0xff] }
  0x76   : > { %1687 = vmatpush.bf16.msrb.mxu2 %v3773_v19  ;;  %v3814_v19 = vld [vmem:[%s4622_s4 + $0x20] sm:$0xff] }
  0x77   : > { %1770 = vmatpush.bf16.msrb.mxu3 %v3781_v20  ;;  %v3795_v20 = vld [vmem:[%s4621_s3 + $0x1d8] sm:$0xff] }
  0x78   : > { %1517 = vmatpush.bf16.msrb.mxu0 %v3754_v22  ;;  %v3804_v22 = vld [vmem:[%s4621_s3 + $0x218] sm:$0xff] }
  0x79   : > { %1607 = vmatpush.bf16.msrb.mxu1 %v3763_v23  ;;  %v2071_v23 = vadd.f32 %v2070_v17, %v2069_v12  ;;  %v3828_v12 = vld [vmem:[%s4624_s6 + $0x50] sm:$0xff] }
  0x7a   : > { %1688 = vmatpush.bf16.msrb.mxu2 %v3772_v25  ;;  %v3786_v25 = vld [vmem:[%s4621_s3 + $0x190] sm:$0xff] }
  0x7b   : > { %1771 = vmatpush.bf16.msrb.mxu3 %v3780_v28  ;;  %v3813_v28 = vld [vmem:[%s4622_s4 + $0x18] sm:$0xff] }
  0x7c   : > { %1518 = vmatpush.bf16.msrb.mxu0 %v3753_v29  ;;  %v3794_v29 = vld [vmem:[%s4621_s3 + $0x1d0] sm:$0xff] }
  0x7d   : > { %1608 = vmatpush.bf16.msrb.mxu1 %v3762_v30  ;;  %v3803_v30 = vld [vmem:[%s4621_s3 + $0x210] sm:$0xff] }
  0x7e   : > { %1689 = vmatpush.bf16.msrb.mxu2 %v3771_v31  ;;  %v2072_v31 = vrot.slane %v2071_v23, 1 }
  0x7f   : > { %1772 = vmatpush.bf16.msrb.mxu3 %v3779_v32  ;;  %v3785_v32 = vld [vmem:[%s4621_s3 + $0x188] sm:$0xff] }
  0x80   : > { %1519 = vmatpush.bf16.msrb.mxu0 %v3752_v36  ;;  %v3812_v36 = vld [vmem:[%s4622_s4 + $0x10] sm:$0xff] }
  0x81   : > { %1609 = vmatpush.bf16.msrb.mxu1 %v3761_v37  ;;  %v3793_v37 = vld [vmem:[%s4621_s3 + $0x1c8] sm:$0xff] }
  0x82   : > { %1690 = vmatpush.bf16.msrb.mxu2 %v3770_v42  ;;  %v3802_v42 = vld [vmem:[%s4621_s3 + $0x208] sm:$0xff] }
  0x83   : > { %1773 = vmatpush.bf16.msrb.mxu3 %v3778_v43  ;;  %v3407_v43 = vld [vmem:[%s3988_s26 + $0xc] sm:$0xc] }
  0x84   : > { %1520 = vmatpush.bf16.msrb.mxu0 %v3751_v46  ;;  %v2073_v46 = vadd.f32 %v2072_v31, %v2071_v23  ;;  %v3408_v50 = vor.u32 %v3809_v44, %v3407_v43 }
  0x85   : > { %1610 = vmatpush.bf16.msrb.mxu1 %v3760_v40  ;;  %v3811_v40 = vld [vmem:[%s4622_s4 + $0x8] sm:$0xff] }
  0x86   : > { %1691 = vmatpush.bf16.msrb.mxu2 %v3769_v51  ;;  %v3801_v51 = vld [vmem:[%s4621_s3 + $0x200] sm:$0xff]  ;;  %v2074_v54 = vmul.f32 0.25, %v2073_v46  ;;  %v1984_v57 = vrot.slane %v3408_v50, 2 }
  0x87   : > { %1774 = vmatpush.bf16.msrb.mxu3 %v3777_v55  ;;  %v1894_v55 = vrot.slane %v3356_v48, 1 }
  0x88   : > { %1521 = vmatpush.bf16.msrb.mxu0 %v3750_v58  ;;  %v3824_v58 = vld [vmem:[%s4624_s6 + $0x30] sm:$0xff] }
  0x89   : > { %1611 = vmatpush.bf16.msrb.mxu1 %v3759_v59  ;;  %v2075_v59 = vpack.c.bf16 %v2074_v54, %v2074_v54 }
  0x8a   : > { %1692 = vmatpush.bf16.msrb.mxu2 %v3768_v62  ;;  %v3820_v62 = vld [vmem:[%s4624_s6 + $0x10] sm:$0xff] }
  0x8b   : > { %1775 = vmatpush.bf16.msrb.mxu3 %v3776_v21  ;;  %1522 = vmatmul.bf16.vlgmr.msrb.gmra.mxu0 %v1464_v35  ;;  %v3819_v21 = vld [vmem:[%s4624_s6 + $0x8] sm:$0xff] }
  0x8c   : > { %1854 = vmatpush.bf16.msra.mxu0 %v3791_v63  ;;  %1612 = vmatmul.bf16.vlgmr.msrb.gmra.mxu1 %v1554_v2 }
  0x8d   : > { %1944 = vmatpush.bf16.msra.mxu1 %v3799_v0  ;;  %1693 = vmatmul.bf16.vlgmr.msrb.gmra.mxu2 %v4071_v6  ;;  %v3806_v6 = vld [vmem:[%s4621_s3 + $0x228] sm:$0xff] }
  0x8e   : > { %2034 = vmatpush.bf16.msra.mxu2 %v3808_v1  ;;  %1776 = vmatmul.bf16.vlgmr.msrb.gmra.mxu3 %v1718_v7 }
  0x8f   : > { %2141 = vmatpush.bf16.msra.mxu3 %v3817_v5  ;;  %v3832_v5 = vld [vmem:[%s4624_s6 + $0x70] sm:$0xff] }
  0x90   : > { %1855 = vmatpush.bf16.msra.mxu0 %v3790_v4  ;;  %v3818_v4 = vld [vmem:[%s4624_s6] sm:$0xff] }
  0x91   : > { %1945 = vmatpush.bf16.msra.mxu1 %v3798_v8  ;;  %v3831_v8 = vld [vmem:[%s4624_s6 + $0x68] sm:$0xff] }
  0x92   : > { %2035 = vmatpush.bf16.msra.mxu2 %v3807_v9 }
  0x93   : > { %2142 = vmatpush.bf16.msra.mxu3 %v3816_v24  ;;  %v3829_v24 = vld [vmem:[%s4624_s6 + $0x58] sm:$0xff] }
  0x94   : > { %1856 = vmatpush.bf16.msra.mxu0 %v3789_v11 }
  0x95   : > { %1946 = vmatpush.bf16.msra.mxu1 %v3797_v26 }
  0x96   : > { %2036 = vmatpush.bf16.msra.mxu2 %v3806_v6 }
  0x97   : > { %2143 = vmatpush.bf16.msra.mxu3 %v3815_v14  ;;  %v3827_v14 = vld [vmem:[%s4624_s6 + $0x48] sm:$0xff] }
  0x98   : > { %1857 = vmatpush.bf16.msra.mxu0 %v3788_v13 }
  0x99   : > { %1947 = vmatpush.bf16.msra.mxu1 %v3796_v15 }
  0x9a   : > { %2037 = vmatpush.bf16.msra.mxu2 %v3805_v16 }
  0x9b   : > { %2144 = vmatpush.bf16.msra.mxu3 %v3814_v19  ;;  %v3826_v19 = vld [vmem:[%s4624_s6 + $0x40] sm:$0xff] }
  0x9c   : > { %1858 = vmatpush.bf16.msra.mxu0 %v3787_v18 }
  0x9d   : > { %1948 = vmatpush.bf16.msra.mxu1 %v3795_v20 }
  0x9e   : > { %2038 = vmatpush.bf16.msra.mxu2 %v3804_v22 }
  0x9f   : > { %2145 = vmatpush.bf16.msra.mxu3 %v3813_v28 }
  0xa0   : > { %1859 = vmatpush.bf16.msra.mxu0 %v3786_v25 }
  0xa1   : > { %1949 = vmatpush.bf16.msra.mxu1 %v3794_v29 }
  0xa2   : > { %2039 = vmatpush.bf16.msra.mxu2 %v3803_v30 }
  0xa3   : > { %2146 = vmatpush.bf16.msra.mxu3 %v3812_v36 }
  0xa4   : > { %1860 = vmatpush.bf16.msra.mxu0 %v3785_v32 }
  0xa5   : > { %1950 = vmatpush.bf16.msra.mxu1 %v3793_v37 }
  0xa6   : > { %2040 = vmatpush.bf16.msra.mxu2 %v3802_v42 }
  0xa7   : > { %2147 = vmatpush.bf16.msra.mxu3 %v3811_v40  ;;  %v3864_v40 = vld [vmem:[%s4623_s5 + $0x1] ss:$0 sm:$0xff] }
  0xa8   : > { %1861 = vmatpush.bf16.msra.mxu0 %v3784_v47  ;;  %v397_v60 = vpop.f32.mrf.mxu0 }
  0xa9   : > { %1951 = vmatpush.bf16.msra.mxu1 %v3792_v49  ;;  %v398_v0 = vadd.f32 %v3863_v61, %v397_v60  ;;  %v503_v9 = vpop.f32.mrf.mxu1  ;;  %v3839_v60 = vld [vmem:[%s4624_s6 + $0xa8] sm:$0xff] }
  0xaa   : > { %2041 = vmatpush.bf16.msra.mxu2 %v3801_v51 }
  0xab   : > { %1862 = vmatmul.bf16.vlgmr.msra.gmra.mxu0 %v1804_v53  ;;  %2148 = vmatpush.bf16.msra.mxu3 %v3810_v56  ;;  %v402_v35 = vmax.f32 %v398_v0, 0.0  ;;  %v3846_v0 = vld [vmem:[%s4624_s6 + $0xe0] sm:$0xff] }
  0xac   : > { %1952 = vmatmul.bf16.vlgmr.msra.gmra.mxu1 %v1894_v55  ;;  %2238 = vmatpush.bf16.msrb.mxu0 %v3833_v3 }
  0xad   : > { %2300 = vmatpush.bf16.msrb.mxu1 %v3825_v52  ;;  %2042 = vmatmul.bf16.vlgmr.msra.gmra.mxu2 %v1984_v57  ;;  %v3841_v57 = vld [vmem:[%s4624_s6 + $0xb8] sm:$0xff] }
  0xae   : > { %2149 = vmatmul.bf16.vlgmr.msra.gmra.mxu3 %v2075_v59  ;;  %2380 = vmatpush.bf16.msrb.mxu2 %v3841_v57 }
  0xb0   : > { %v399_v63 = vpop.f32.mrf.mxu0  ;;  %2239 = vmatpush.bf16.msrb.mxu0 %v3832_v5  ;;  %v588_v11 = vpop.f32.mrf.mxu2  ;;  %v3844_v5 = vld [vmem:[%s4624_s6 + $0xd0] sm:$0xff] }
  0xb1   : > { %2301 = vmatpush.bf16.msrb.mxu1 %v3824_v58  ;;  %v400_v1 = vadd.f32 %v3863_v61, %v399_v63  ;;  %v505_v26 = vpop.f32.mrf.mxu1  ;;  %v679_v6 = vpop.f32.mrf.mxu3  ;;  %v589_v15 = vadd.f32 %v588_v11, %v503_v9  ;;  %v3849_v58 = vld [vmem:[%s4624_s6 + $0xf8] sm:$0xff]  ;;  %v3847_v61 = vld [vmem:[%s4624_s6 + $0xe8] sm:$0xff] }
  0xb2   : > { %2468 = vmatpush.bf16.msrb.mxu3 %v3849_v58  ;;  %v3843_v9 = vld [vmem:[%s4624_s6 + $0xc8] sm:$0xff] }
  0xb3   : > { %v403_v2 = vmax.f32 %v400_v1, 0.0  ;;  %v684_v20 = vadd.f32 %v679_v6, %v589_v15  ;;  %v3837_v1 = vld [vmem:[%s4624_s6 + $0x98] sm:$0xff] }
  0xb4   : > { %2240 = vmatpush.bf16.msrb.mxu0 %v3831_v8 }
  0xb5   : > { %2302 = vmatpush.bf16.msrb.mxu1 %v3823_v27  ;;  %v2155_v7 = vpack.c.bf16 %v403_v2, %v402_v35  ;;  %v3840_v27 = vld [vmem:[%s4624_s6 + $0xb0] sm:$0xff] }
  0xb6   : > { %2381 = vmatpush.bf16.msrb.mxu2 %v3840_v27  ;;  %v3836_v2 = vld [vmem:[%s4624_s6 + $0x90] sm:$0xff]  ;;  %v3866_v27 = vld [vmem:[%s4625_s7] ss:$0 sm:$0xff] }
  0xb8   : > { %2241 = vmatpush.bf16.msrb.mxu0 %v3830_v10  ;;  %v590_v13 = vpop.f32.mrf.mxu2  ;;  %v3834_v10 = vld [vmem:[%s4624_s6 + $0x80] sm:$0xff] }
  0xb9   : > { %2303 = vmatpush.bf16.msrb.mxu1 %v3822_v33  ;;  %v681_v18 = vpop.f32.mrf.mxu3  ;;  %v591_v25 = vadd.f32 %v590_v13, %v505_v26  ;;  %v3848_v33 = vld [vmem:[%s4624_s6 + $0xf0] sm:$0xff]  ;;  %v3842_v26 = vld [vmem:[%s4624_s6 + $0xc0] sm:$0xff] }
  0xba   : > { %2469 = vmatpush.bf16.msrb.mxu3 %v3848_v33  ;;  %2382 = vmatpush.bf16.msrb.mxu2 %v3839_v60 }
  0xbb   : > { %v685_v32 = vadd.f32 %v681_v18, %v591_v25 }
  0xbc   : > { %2242 = vmatpush.bf16.msrb.mxu0 %v3829_v24 }
  0xbd   : > { %2304 = vmatpush.bf16.msrb.mxu1 %v3821_v41 }
  0xbe   : > { %2470 = vmatpush.bf16.msrb.mxu3 %v3847_v61 }
  0xc0   : > { %2243 = vmatpush.bf16.msrb.mxu0 %v3828_v12 }
  0xc1   : > { %2305 = vmatpush.bf16.msrb.mxu1 %v3820_v62  ;;  %v3838_v62 = vld [vmem:[%s4624_s6 + $0xa0] sm:$0xff] }
  0xc2   : > { %2383 = vmatpush.bf16.msrb.mxu2 %v3838_v62  ;;  %2471 = vmatpush.bf16.msrb.mxu3 %v3846_v0 }
  0xc4   : > { %2244 = vmatpush.bf16.msrb.mxu0 %v3827_v14 }
  0xc5   : > { %2306 = vmatpush.bf16.msrb.mxu1 %v3819_v21  ;;  %v3845_v21 = vld [vmem:[%s4624_s6 + $0xd8] sm:$0xff] }
  0xc6   : > { %2384 = vmatpush.bf16.msrb.mxu2 %v3837_v1  ;;  %2472 = vmatpush.bf16.msrb.mxu3 %v3845_v21 }
  0xc8   : > { %v779_v16 = vpop.f32.mrf.mxu0  ;;  %2245 = vmatpush.bf16.msrb.mxu0 %v3826_v19 }
  0xc9   : > { %2307 = vmatpush.bf16.msrb.mxu1 %v3818_v4  ;;  %v860_v17 = vpop.f32.mrf.mxu1  ;;  %v784_v22 = vadd.f32 %v779_v16, %v684_v20 }
  0xca   : > { %2385 = vmatpush.bf16.msrb.mxu2 %v3836_v2  ;;  %2473 = vmatpush.bf16.msrb.mxu3 %v3844_v5 }
  0xcb   : > { %v865_v29 = vadd.f32 %v860_v17, %v784_v22 }
  0xcc   : > { %2308 = vmatmul.bf16.vlgmr.msrb.gmra.mxu1 %v2155_v7  ;;  %v3835_v7 = vld [vmem:[%s4624_s6 + $0x88] sm:$0xff] }
  0xce   : > { %2386 = vmatpush.bf16.msrb.mxu2 %v3835_v7  ;;  %2474 = vmatpush.bf16.msrb.mxu3 %v3843_v9 }
  0xd0   : > { %v963_v23 = vpop.f32.mrf.mxu2  ;;  %v781_v28 = vpop.f32.mrf.mxu0 }
  0xd1   : > { %v862_v30 = vpop.f32.mrf.mxu1  ;;  %v1060_v31 = vpop.f32.mrf.mxu3  ;;  %v968_v34 = vadd.f32 %v963_v23, %v865_v29  ;;  %v785_v36 = vadd.f32 %v781_v28, %v685_v32 }
  0xd2   : > { %2387 = vmatpush.bf16.msrb.mxu2 %v3834_v10  ;;  %2475 = vmatpush.bf16.msrb.mxu3 %v3842_v26 }
  0xd3   : > { %v1065_v39 = vadd.f32 %v1060_v31, %v968_v34  ;;  %v866_v42 = vadd.f32 %v862_v30, %v785_v36  ;;  %v2092_v34 = vld [vmem:[%s4623_s5 + $0x3] sm:$0x1] }
  0xd8   : > { %v965_v37 = vpop.f32.mrf.mxu2 }
  0xd9   : > { %v969_v44 = vadd.f32 %v965_v37, %v866_v42  ;;  %v1062_v46 = vpop.f32.mrf.mxu3 }
  0xdb   : > { %v1066_v47 = vadd.f32 %v1062_v46, %v969_v44  ;;  %v3865_v44 = vld [vmem:[%s4623_s5 + $0x2] ss:$0 sm:$0xff] }
  0xe8   : > { %v1147_v38 = vpop.f32.mrf.mxu0 }
  0xe9   : > { %v1253_v43 = vpop.f32.mrf.mxu1  ;;  %v1152_v45 = vadd.f32 %v1147_v38, %v1065_v39 }
  0xeb   : > { %v1258_v48 = vadd.f32 %v1253_v43, %v1152_v45 }
  0xed   : > { %v1262_v52 = vadd.f32 %v3864_v40, %v1258_v48 }
  0xef   : > { %v1264_v55 = vmax.f32 %v1262_v52, 0.0 }
  0xf0   : > { %v1149_v49 = vpop.f32.mrf.mxu0  ;;  %v1367_v41 = vpop.f32.mrf.mxu2 }
  0xf1   : > { %v1153_v50 = vadd.f32 %v1149_v49, %v1066_v47  ;;  %v1255_v51 = vpop.f32.mrf.mxu1  ;;  %v1435_v63 = vpop.f32.mrf.mxu3 }
  0xf2   : > { %v1436_v11 = vadd.f32 %v1435_v63, %v1367_v41 }
  0xf3   : > { %v1259_v53 = vadd.f32 %v1255_v51, %v1153_v50 }
  0xf5   : > { %v1263_v54 = vadd.f32 %v3864_v40, %v1259_v53 }
  0xf7   : > { %v1265_v56 = vmax.f32 %v1263_v54, 0.0 }
  0xf8   : > { %v1369_v35 = vpop.f32.mrf.mxu2 }
  0xf9   : > { %v2172_v59 = vpack.c.bf16 %v1265_v56, %v1264_v55  ;;  %v1437_v3 = vpop.f32.mrf.mxu3 }
  0xfa   : > { %v1438_v15 = vadd.f32 %v1437_v3, %v1369_v35 }
  0xfb   : > { %2246 = vmatmul.bf16.vlgmr.msrb.gmra.mxu0 %v2172_v59 }
 0x108   : > { %v1523_v4 = vpop.f32.mrf.mxu0 }
 0x109   : > { %v1613_v8 = vpop.f32.mrf.mxu1  ;;  %v1528_v13 = vadd.f32 %v1523_v4, %v1436_v11 }
 0x10b   : > { %v1618_v16 = vadd.f32 %v1613_v8, %v1528_v13 }
 0x110   : > { %v1694_v24 = vpop.f32.mrf.mxu2  ;;  %v1525_v6 = vpop.f32.mrf.mxu0 }
 0x111   : > { %v1777_v12 = vpop.f32.mrf.mxu3  ;;  %v1615_v14 = vpop.f32.mrf.mxu1  ;;  %v1529_v17 = vadd.f32 %v1525_v6, %v1438_v15  ;;  %v1699_v20 = vadd.f32 %v1694_v24, %v1618_v16 }
 0x113   : > { %v1619_v23 = vadd.f32 %v1615_v14, %v1529_v17  ;;  %v1782_v28 = vadd.f32 %v1777_v12, %v1699_v20 }
 0x118   : > { %v1696_v18 = vpop.f32.mrf.mxu2 }
 0x119   : > { %v1779_v22 = vpop.f32.mrf.mxu3  ;;  %v1700_v29 = vadd.f32 %v1696_v18, %v1619_v23 }
 0x11b   : > { %v1783_v36 = vadd.f32 %v1779_v22, %v1700_v29 }
 0x128   : > { %v1863_v19 = vpop.f32.mrf.mxu0 }
 0x129   : > { %v1953_v25 = vpop.f32.mrf.mxu1  ;;  %v1868_v30 = vadd.f32 %v1863_v19, %v1782_v28 }
 0x12b   : > { %v1958_v38 = vadd.f32 %v1953_v25, %v1868_v30 }
 0x130   : > { %v2043_v31 = vpop.f32.mrf.mxu2  ;;  %v1865_v32 = vpop.f32.mrf.mxu0 }
 0x131   : > { %v2150_v37 = vpop.f32.mrf.mxu3  ;;  %v1869_v39 = vadd.f32 %v1865_v32, %v1783_v36  ;;  %v2048_v43 = vadd.f32 %v2043_v31, %v1958_v38  ;;  %v1955_v46 = vpop.f32.mrf.mxu1 }
 0x132   : > { %v2151_v42 = vadd.f32 %v2150_v37, %v2092_v34 }
 0x133   : > { %v1959_v47 = vadd.f32 %v1955_v46, %v1869_v39  ;;  %v2052_v49 = vadd.f32 %v3865_v44, %v2048_v43 }
 0x134   : > { %v2154_v45 = vmax.f32 %v2151_v42, 0.0 }
 0x135   : > { %v2054_v53 = vmax.f32 %v2052_v49, 0.0 }
 0x136   : > { %v2402_v48 = vpack.c.bf16 %v2154_v45, %v2154_v45 }
 0x138   : > { %v2045_v40 = vpop.f32.mrf.mxu2  ;;  %2476 = vmatmul.bf16.vlgmr.msrb.gmra.mxu3 %v2402_v48 }
 0x139   : > { %v2049_v50 = vadd.f32 %v2045_v40, %v1959_v47  ;;  %v2152_v51 = vpop.f32.mrf.mxu3 }
 0x13b   : > { %v2053_v52 = vadd.f32 %v3865_v44, %v2049_v50 }
 0x13d   : > { %v2055_v54 = vmax.f32 %v2053_v52, 0.0 }
 0x13f   : > { %v2314_v55 = vpack.c.bf16 %v2055_v54, %v2054_v53 }
 0x141   : > { %2388 = vmatmul.bf16.vlgmr.msrb.gmra.mxu2 %v2314_v55 }
 0x149   : > { %v2309_v58 = vpop.f32.mrf.mxu1 }
 0x151   : > { %v2311_v1 = vpop.f32.mrf.mxu1 }
 0x178   : > { %v2247_v57 = vpop.f32.mrf.mxu0 }
 0x179   : > { %v2310_v59 = vadd.f32 %v2309_v58, %v2247_v57 }
 0x180   : > { %v2249_v63 = vpop.f32.mrf.mxu0 }
 0x181   : > { %v2312_v21 = vadd.f32 %v2311_v1, %v2249_v63 }
 0x1bb   : > { %v2477_v56 = vpop.f32.mrf.mxu3 }
 0x1bc   : > { %v2481_v61 = vperm.slane %v2477_v56, 0 }
 0x1c3   : > { %v2479_v60 = vpop.f32.mrf.mxu3 }
 0x1c4   : > { %v2389_v33 = vpop.f32.mrf.mxu2 }
 0x1c5   : > { %v2394_v41 = vadd.f32 %v2389_v33, %v2310_v59 }
 0x1c7   : > { %v2400_v62 = vadd.f32 %v3866_v27, %v2394_v41 }
 0x1c9   : > { %v2482_v0 = vadd.f32 %v2481_v61, %v2400_v62 }
 0x1cb   : > { %v2484_v35 = vmax.f32 %v2482_v0, 0.0 }
 0x1cc   : > { %v2391_v2 = vpop.f32.mrf.mxu2 }
 0x1cd   : > { %v2486_v3 = vpack.c.bf16 %v2484_v35, %v2484_v35  ;;  %v2395_v4 = vadd.f32 %v2391_v2, %v2312_v21 }
 0x1cf   : > { %2488 = vst [vmem:[%s305_s21] sm:$0xf] %v2486_v3  ;;  %v2401_v5 = vadd.f32 %v3866_v27, %v2395_v4 }
 0x1d1   : > { %v2483_v7 = vadd.f32 %v2481_v61, %v2401_v5 }
 0x1d3   : > { %v2485_v8 = vmax.f32 %v2483_v7, 0.0 }
 0x1d5   : > { %v2487_v9 = vpack.c.bf16 %v2485_v8, %v2485_v8 }
 0x1d7   : > { %2489 = vst [vmem:[%s305_s21 + $0x4] sm:$0x3] %v2487_v9 }
 0x1d8 PF: > { %s18_s27 = sadd.s32 1, %s3873_s27  }
 0x1d9   : > { %p15_p4 = scmp.ge.s32.totalorder %s18_s27, 4  }
 0x1db   :  { %17 = sbr.rel (!%p15_p4) target bundleno = 1 (0x1), region = 101 }

// kernel: deeplab_forward.15
= control target key start
LH: loop header
LB: loop body
LE: loop exit
PB: predicated region body
PF: predicated region fallthrough
CT: control target
= control target key end

     0   :  { %s4005_s12 = smov 0   ;;  %s5028_s0 = inlined_call_operand.vmem [shape: bf16[2,1,102,256], index: 0, kind: input, shape index: {}]   ;;  %s5029_s1 = inlined_call_operand.vmem [shape: bf16[9,256,128], index: 1, kind: input, shape index: {}]   ;;  %s5030_s2 = inlined_call_operand.vmem [shape: f32[1,128], index: 2, kind: input, shape index: {}]   ;;  %s5031_s3 = inlined_call_operand.vmem [shape: bf16[2,80,128], index: 3, kind: output, shape index: {}]  }
   0x1 LB: > { %s2816_s13 = sadd.s32 4294967295, %s3983_s12   ;;  %p2820_p0 = scmp.ge.s32.totalorder %s3983_s12, 1  ;;  %s3983_s12 = sphi %s4005_s12, %s13_s12  }
   0x2   : > { %p137_p1 = scmp.lt.s32.totalorder %s3983_s12, 3 }
   0x4   : > { %p138_p2 = pnand %p2820_p0, %p137_p1 }
   0x5   : > { %p161_p3 = scmp.lt.s32.totalorder (!%p138_p2), %s2816_s13, 1 }
   0x6   : > { %141 = sbr.rel (%p138_p2) target bundleno = 549 (0x225), region = 32 }
   0xb   : > { %v3784_v0 = vld [vmem:[%s5029_s1 + $0xb8] sm:$0xff]  ;;  %v3783_v2 = vld [vmem:[%s5029_s1 + $0xb0] sm:$0xff]  ;;  %s5033_s13 = smov (!%p161_p3, %s2816_s13), 1  ;;  %v3782_v4 = vld [vmem:[%s5029_s1 + $0xa8] sm:$0xff]  ;;  %vm292_vm0 = vsmask.f32 7424 }
   0xc   : > { %v3792_v1 = vld [vmem:[%s5029_s1 + $0xf8] sm:$0xff]  ;;  %3950 = vmatpush.bf16.msra.mxu2 %v3784_v0  ;;  %v3791_v3 = vld [vmem:[%s5029_s1 + $0xf0] sm:$0xff]  ;;  %487 = vmatpush.bf16.msra.mxu0 %v3784_v0  ;;  %s3966_s22 = smul.u32 104, %s5033_s13  ;;  %v3790_v5 = vld [vmem:[%s5029_s1 + $0xe8] sm:$0xff]  ;;  %vm768_vm1 = vcmask 1046528   ;;  %vm1639_vm3 = vcmask 1045504  }
   0xd   : > { %3958 = vmatpush.bf16.msra.mxu3 %v3792_v1  ;;  %521 = vmatpush.bf16.msra.mxu1 %v3792_v1  ;;  %v3781_v6 = vld [vmem:[%s5029_s1 + $0xa0] sm:$0xff]  ;;  %v3780_v14 = vld [vmem:[%s5029_s1 + $0x98] sm:$0xff]  ;;  %v3779_v25 = vld [vmem:[%s5029_s1 + $0x90] sm:$0xff]  ;;  %vm1309_vm2 = vsmask.f32 6400  ;;  %vm2510_vm4 = vcmask 1044480  }
   0xe   : > { %s4037_s29 = scalar_lea.vmem %s5028_s0, %s3966_s22  ;;  %v3789_v7 = vld [vmem:[%s5029_s1 + $0xe0] sm:$0xff]  ;;  %v3788_v17 = vld [vmem:[%s5029_s1 + $0xd8] sm:$0xff]  ;;  %v3787_v26 = vld [vmem:[%s5029_s1 + $0xd0] sm:$0xff]  ;;  %vm2180_vm5 = vsmask.f32 5376  ;;  %s3967_s18 = smul.u32 40, %s5033_s13 }
   0xf   : > { %v2865_v8 = vld [vmem:[%s4037_s29 + $0x20] sm:$0xf]  ;;  %v4048_v10 = vld [vmem:[%s4037_s29 + $0x8] sm:$0xff]  ;;  %v3755_v12 = vld [vmem:[%s4037_s29 + $0x24] sm:$0xf] }
  0x10   : > { %3951 = vmatpush.bf16.msra.mxu2 %v3783_v2  ;;  %488 = vmatpush.bf16.msra.mxu0 %v3783_v2  ;;  %v171_v9 = vld [vmem:[%s4037_s29] sm:$0xff]  ;;  %v3756_v11 = vld [vmem:[%s4037_s29 + $0x24] sm:$0xf0]  ;;  %v2867_v13 = vld [vmem:[%s4037_s29 + $0x28] sm:$0xf0]  ;;  %v260_v16 = vunpack.c.l.b16 %v4048_v10  ;;  %v261_v31 = vunpack.c.h.b16 %v4048_v10  ;;  %s5002_s21 = scalar_lea.vmem %s5031_s3, %s3967_s18 }
  0x11   : > { %3959 = vmatpush.bf16.msra.mxu3 %v3791_v3  ;;  %522 = vmatpush.bf16.msra.mxu1 %v3791_v3  ;;  %v258_v15 = vunpack.c.l.b16 %v171_v9  ;;  %v2873_v18 = vld [vmem:[%s4037_s29 + $0x30] sm:$0xf]  ;;  %v3758_v19 = vld [vmem:[%s4037_s29 + $0x34] sm:$0xf0]  ;;  %v4062_v20 = vor.u32 %v3756_v11, %v2865_v8  ;;  %v4064_v21 = vor.u32 %v3755_v12, %v2867_v13  ;;  %v3757_v22 = vld [vmem:[%s4037_s29 + $0x34] sm:$0xf]  ;;  %v259_v24 = vunpack.c.h.b16 %v171_v9 }
  0x12   : > { %v2875_v23 = vld [vmem:[%s4037_s29 + $0x38] sm:$0xf0]  ;;  %v4074_v27 = vor.u32 %v3758_v19, %v2873_v18  ;;  %v2857_v28 = vld [vmem:[%s4037_s29 + $0x10] sm:$0xf]  ;;  %v3754_v29 = vld [vmem:[%s4037_s29 + $0x14] sm:$0xf0] }
  0x13   : > { %v4080_v30 = vpack.c.b16 %v260_v16, %v258_v15  ;;  %v321_v32 = vshll.u32 %v4062_v20, 16  ;;  %v4084_v33 = vor.u32 %v3757_v22, %v2875_v23  ;;  %v329_v34 = vshll.u32 %v4064_v21, 16  ;;  %v3753_v35 = vld [vmem:[%s4037_s29 + $0x14] sm:$0xf]  ;;  %v2859_v36 = vld [vmem:[%s4037_s29 + $0x18] sm:$0xf0] }
  0x14   : > { %3952 = vmatpush.bf16.msra.mxu2 %v3782_v4  ;;  %489 = vmatpush.bf16.msra.mxu0 %v3782_v4  ;;  %v4091_v37 = vpack.c.b16 %v261_v31, %v259_v24  ;;  %v333_v38 = vshrl.u32 %v4062_v20, 16  ;;  %v4094_v39 = vor.u32 %v3754_v29, %v2857_v28  ;;  %v337_v40 = vshll.u32 %v4074_v27, 16  ;;  %v3778_v44 = vld [vmem:[%s5029_s1 + $0x88] sm:$0xff]  ;;  %v3777_v56 = vld [vmem:[%s5029_s1 + $0x80] sm:$0xff]  ;;  %v3768_v62 = vld [vmem:[%s5029_s1 + $0x38] sm:$0xff] }
  0x15   : > { %3960 = vmatpush.bf16.msra.mxu3 %v3790_v5  ;;  %523 = vmatpush.bf16.msra.mxu1 %v3790_v5  ;;  %v296_v41 = vshll.u32 %v4080_v30, 16  ;;  %v4098_v42 = vor.u32 %v3753_v35, %v2859_v36  ;;  %v3786_v45 = vld [vmem:[%s5029_s1 + $0xc8] sm:$0xff]  ;;  %v4107_v46 = vrot.slane %v321_v32, 1  ;;  %v4109_v47 = vrot.slane %v329_v34, 1  ;;  %v3785_v57 = vld [vmem:[%s5029_s1 + $0xc0] sm:$0xff]  ;;  %v3776_v63 = vld [vmem:[%s5029_s1 + $0x78] sm:$0xff] }
  0x16   : > { %v308_v43 = vshll.u32 %v4091_v37, 16  ;;  %v341_v48 = vshrl.u32 %v4064_v21, 16  ;;  %v345_v49 = vshll.u32 %v4084_v33, 16  ;;  %v294_v50 = vshrl.u32 %v4080_v30, 16  ;;  %v3767_v0 = vld [vmem:[%s5029_s1 + $0x30] sm:$0xff]  ;;  %v3800_v9 = vld [vmem:[%s5029_s1 + $0x138] sm:$0xff] }
  0x17   : > { %v301_v51 = vshll.u32 %v4094_v39, 16  ;;  %v298_v52 = vrot.slane %v296_v41, 1  ;;  %v306_v53 = vshrl.u32 %v4091_v37, 16  ;;  %v313_v55 = vshll.u32 %v4098_v42, 16  ;;  %v3775_v1 = vld [vmem:[%s5029_s1 + $0x70] sm:$0xff]  ;;  %v3808_v11 = vld [vmem:[%s5029_s1 + $0x178] sm:$0xff] }
  0x18   : > { %3953 = vmatpush.bf16.msra.mxu2 %v3781_v6  ;;  %490 = vmatpush.bf16.msra.mxu0 %v3781_v6  ;;  %v310_v54 = vrot.slane %v308_v43, 1  ;;  %v335_v58 = vor.u32 %v333_v38, %v4107_v46  ;;  %v339_v59 = vrot.slane %v337_v40, 1  ;;  %v343_v60 = vor.u32 %v341_v48, %v4109_v47  ;;  %v2881_v8 = vld [vmem:[%s4037_s29 + $0x40] sm:$0xf]  ;;  %v3760_v12 = vld [vmem:[%s4037_s29 + $0x44] sm:$0xf0] }
  0x19   : > { %3961 = vmatpush.bf16.msra.mxu3 %v3789_v7  ;;  %524 = vmatpush.bf16.msra.mxu1 %v3789_v7  ;;  %v347_v61 = vrot.slane %v345_v49, 1  ;;  %v299_v2 = vor.u32 %v298_v52, %v294_v50  ;;  %v303_v3 = vrot.slane %v301_v51, 1  ;;  %v315_v5 = vrot.slane %v313_v55, 1  ;;  %v3759_v13 = vld [vmem:[%s4037_s29 + $0x44] sm:$0xf]  ;;  %v3799_v22 = vld [vmem:[%s5029_s1 + $0x130] sm:$0xff] }
  0x1a   : > { %v311_v4 = vor.u32 %v310_v54, %v306_v53  ;;  %v340_v6 = vsel %vm292_vm0, %v335_v58, %v339_v59  ;;  %v4151_v18 = vor.u32 %v3760_v12, %v2881_v8  ;;  %v3807_v23 = vld [vmem:[%s5029_s1 + $0x170] sm:$0xff]  ;;  %v3766_v24 = vld [vmem:[%s5029_s1 + $0x28] sm:$0xff]  ;;  %v357_v29 = vshrl.u32 %v4084_v33, 16  ;;  %v3765_v36 = vld [vmem:[%s5029_s1 + $0x20] sm:$0xff] }
  0x1b   : > { %v348_v7 = vsel %vm292_vm0, %v343_v60, %v347_v61  ;;  %v304_v15 = vsel %vm292_vm0, %v299_v2, %v303_v3  ;;  %v3798_v34 = vld [vmem:[%s5029_s1 + $0x128] sm:$0xff]  ;;  %v3773_v38 = vld [vmem:[%s5029_s1 + $0x60] sm:$0xff]  ;;  %v317_v40 = vshrl.u32 %v4094_v39, 16  ;;  %v325_v41 = vshrl.u32 %v4098_v42, 16  ;;  %v3764_v51 = vld [vmem:[%s5029_s1 + $0x18] sm:$0xff] }
  0x1c   : > { %3954 = vmatpush.bf16.msra.mxu2 %v3780_v14  ;;  %491 = vmatpush.bf16.msra.mxu0 %v3780_v14  ;;  %v2883_v14 = vld [vmem:[%s4037_s29 + $0x48] sm:$0xf0]  ;;  %v353_v28 = vshll.u32 %v4151_v18, 16  ;;  %v3797_v49 = vld [vmem:[%s5029_s1 + $0x120] sm:$0xff]  ;;  %v3772_v52 = vld [vmem:[%s5029_s1 + $0x58] sm:$0xff] }
  0x1d   : > { %3962 = vmatpush.bf16.msra.mxu3 %v3788_v17  ;;  %525 = vmatpush.bf16.msra.mxu1 %v3788_v17  ;;  %v316_v17 = vsel %vm292_vm0, %v311_v4, %v315_v5  ;;  %v4153_v19 = vor.u32 %v3759_v13, %v2883_v14  ;;  %v3806_v35 = vld [vmem:[%s5029_s1 + $0x168] sm:$0xff]  ;;  %v3805_v50 = vld [vmem:[%s5029_s1 + $0x160] sm:$0xff]  ;;  %v213_v53 = vld [vmem:[%s4037_s29 + $0x50] sm:$0x11]  ;;  %v319_v54 = vor.u32 %v317_v40, %v303_v3 }
  0x1e   : > { %v327_v55 = vor.u32 %v325_v41, %v315_v5  ;;  %v278_v58 = vunpack.c.l.b16 %v213_v53  ;;  %v3796_v60 = vld [vmem:[%s5029_s1 + $0x118] sm:$0xff]  ;;  %v3795_v4 = vld [vmem:[%s5029_s1 + $0x110] sm:$0xff]  ;;  %v3794_v14 = vld [vmem:[%s5029_s1 + $0x108] sm:$0xff]  ;;  %v770_v41 = vrot.slane %v4094_v39, 1 }
  0x1f   : > { %v361_v32 = vshll.u32 %v4153_v19, 16  ;;  %v3803_v5 = vld [vmem:[%s5029_s1 + $0x150] sm:$0xff]  ;;  %v373_v12 = vshrl.u32 %v4153_v19, 16  ;;  %v3840_v10 = vld [vmem:[%s5029_s1 + $0x238] sm:$0xff] }
  0x20   : > { %3955 = vmatpush.bf16.msra.mxu2 %v3779_v25  ;;  %492 = vmatpush.bf16.msra.mxu0 %v3779_v25  ;;  %v3774_v25 = vld [vmem:[%s5029_s1 + $0x68] sm:$0xff]  ;;  %v4216_v2 = vpack.c.b16 %v278_v58, %v278_v58  ;;  %v3829_v58 = vld [vmem:[%s5029_s1 + $0x1e0] sm:$0xff] }
  0x21   : > { %3963 = vmatpush.bf16.msra.mxu3 %v3787_v26  ;;  %526 = vmatpush.bf16.msra.mxu1 %v3787_v26  ;;  %v349_v26 = vshrl.u32 %v4074_v27, 16  ;;  %v363_v48 = vrot.slane %v361_v32, 1 }
  0x23   : > { %v351_v43 = vor.u32 %v349_v26, %v339_v59  ;;  %v279_v59 = vunpack.c.h.b16 %v213_v53  ;;  %v375_v32 = vor.u32 %v373_v12, %v363_v48  ;;  %v3822_v53 = vld [vmem:[%s5029_s1 + $0x1a8] sm:$0xff]  ;;  %v783_v12 = vrot.slane %v4151_v18, 1 }
  0x24   : > { %3956 = vmatpush.bf16.msra.mxu2 %v3778_v44  ;;  %493 = vmatpush.bf16.msra.mxu0 %v3778_v44  ;;  %v355_v44 = vrot.slane %v353_v28, 1 }
  0x25   : > { %3964 = vmatpush.bf16.msra.mxu3 %v3786_v45  ;;  %527 = vmatpush.bf16.msra.mxu1 %v3786_v45  ;;  %v359_v45 = vor.u32 %v357_v29, %v347_v61  ;;  %v3804_v61 = vld [vmem:[%s5029_s1 + $0x158] sm:$0xff]  ;;  %v4218_v3 = vpack.c.b16 %v279_v59, %v279_v59  ;;  %v775_v59 = vrot.slane %v4062_v20, 1 }
  0x27   : > { %v377_v13 = vshll.u32 %v4218_v3, 16 }
  0x28   : > { %3957 = vmatpush.bf16.msra.mxu2 %v3777_v56  ;;  %494 = vmatpush.bf16.msra.mxu0 %v3777_v56  ;;  %v356_v56 = vsel %vm292_vm0, %v351_v43, %v355_v44 }
  0x29   : > { %3965 = vmatpush.bf16.msra.mxu3 %v3785_v57  ;;  %528 = vmatpush.bf16.msra.mxu1 %v3785_v57  ;;  %v364_v57 = vsel %vm292_vm0, %v359_v45, %v363_v48 }
  0x2b   : > { %505 = vmatmul.bf16.vlgmr.msra.gmra.mxu2 %v340_v6  ;;  %495 = vmatmul.bf16.vlgmr.msra.gmra.mxu0 %v304_v15  ;;  %v729_v6 = vld [vmem:[%s4037_s29] sm:$0xee]  ;;  %v3802_v15 = vld [vmem:[%s5029_s1 + $0x148] sm:$0xff] }
  0x2c   : > { %661 = vmatpush.bf16.msrb.mxu2 %v3768_v62  ;;  %539 = vmatmul.bf16.vlgmr.msra.gmra.mxu3 %v348_v7  ;;  %v3763_v62 = vld [vmem:[%s5029_s1 + $0x10] sm:$0xff]  ;;  %v764_v7 = vunpack.c.l.b16 %v729_v6  ;;  %v765_v8 = vunpack.c.h.b16 %v729_v6 }
  0x2d   : > { %695 = vmatpush.bf16.msrb.mxu3 %v3776_v63  ;;  %897 = vmatpush.bf16.msrb.mxu0 %v3800_v9  ;;  %v3771_v63 = vld [vmem:[%s5029_s1 + $0x50] sm:$0xff]  ;;  %v365_v9 = vshrl.u32 %v4151_v18, 16 }
  0x2e   : > { %931 = vmatpush.bf16.msrb.mxu1 %v3808_v11  ;;  %v369_v11 = vshll.u32 %v4216_v2, 16  ;;  %v767_v26 = vpack.c.b16 %v261_v31, %v765_v8  ;;  %v3823_v31 = vld [vmem:[%s5029_s1 + $0x1b0] sm:$0xff] }
  0x2f   : > { %529 = vmatmul.bf16.vlgmr.msra.gmra.mxu1 %v316_v17  ;;  %v3761_v17 = vld [vmem:[%s5029_s1] sm:$0xff]  ;;  %v367_v28 = vor.u32 %v365_v9, %v355_v44  ;;  %v773_v44 = vrot.slane %v4098_v42, 1  ;;  %v3843_v8 = vld [vmem:[%s5029_s1 + $0x250] sm:$0xff]  ;;  %v3818_v9 = vld [vmem:[%s5029_s1 + $0x188] sm:$0xff] }
  0x30   : > { %662 = vmatpush.bf16.msrb.mxu2 %v3767_v0  ;;  %v324_v0 = vsel %vm292_vm0, %v319_v54, %v4107_v46  ;;  %v3762_v46 = vld [vmem:[%s5029_s1 + $0x8] sm:$0xff]  ;;  %v371_v29 = vrot.slane %v369_v11, 1  ;;  %v772_v43 = vrot.slane %v767_v26, 1  ;;  %v4381_v26 = vld [vmem:[%s4037_s29 + $0x10] sm:$0xff] }
  0x31   : > { %696 = vmatpush.bf16.msrb.mxu3 %v3775_v1  ;;  %898 = vmatpush.bf16.msrb.mxu0 %v3799_v22  ;;  %v332_v1 = vsel %vm292_vm0, %v327_v55, %v4109_v47  ;;  %v3770_v47 = vld [vmem:[%s5029_s1 + $0x48] sm:$0xff]  ;;  %v3769_v22 = vld [vmem:[%s5029_s1 + $0x40] sm:$0xff] }
  0x32   : > { %932 = vmatpush.bf16.msrb.mxu1 %v3807_v23  ;;  %v3824_v23 = vld [vmem:[%s5029_s1 + $0x1b8] sm:$0xff]  ;;  %v372_v45 = vsel %vm292_vm0, %v367_v28, %v371_v29  ;;  %v3830_v54 = vld [vmem:[%s5029_s1 + $0x1e8] sm:$0xff]  ;;  %v1032_v29 = vunpack.c.l.b16 %v4381_v26 }
  0x33   : > { %v3838_v55 = vld [vmem:[%s5029_s1 + $0x228] sm:$0xff] }
  0x34   : > { %663 = vmatpush.bf16.msrb.mxu2 %v3766_v24  ;;  %v3832_v24 = vld [vmem:[%s5029_s1 + $0x1f8] sm:$0xff]  ;;  %v3826_v11 = vld [vmem:[%s5029_s1 + $0x1c8] sm:$0xff] }
  0x35   : > { %697 = vmatpush.bf16.msrb.mxu3 %v3774_v25  ;;  %899 = vmatpush.bf16.msrb.mxu0 %v3798_v34  ;;  %v766_v25 = vpack.c.b16 %v260_v16, %v764_v7  ;;  %v379_v34 = vrot.slane %v377_v13, 1  ;;  %v3848_v16 = vld [vmem:[%s5029_s1 + $0x278] sm:$0xff]  ;;  %v3819_v7 = vld [vmem:[%s5029_s1 + $0x190] sm:$0xff]  ;;  %v785_v13 = vrot.slane %v4153_v19, 1 }
  0x36   : > { %933 = vmatpush.bf16.msrb.mxu1 %v3806_v35  ;;  %v3793_v35 = vld [vmem:[%s5029_s1 + $0x100] sm:$0xff] }
  0x37   : > { %v769_v40 = vrot.slane %v766_v25, 1  ;;  %v380_v48 = vsel %vm292_vm0, %v375_v32, %v379_v34  ;;  %v975_v25 = vld [vmem:[%s4037_s29 + $0x8] sm:$0xee]  ;;  %v1033_v34 = vunpack.c.h.b16 %v4381_v26 }
  0x38   : > { %664 = vmatpush.bf16.msrb.mxu2 %v3765_v36  ;;  %v3801_v36 = vld [vmem:[%s5029_s1 + $0x140] sm:$0xff]  ;;  %v1030_v28 = vunpack.c.l.b16 %v975_v25  ;;  %v1031_v32 = vunpack.c.h.b16 %v975_v25  ;;  %v3902_v26 = vld [vmem:[%s5029_s1 + $0x3e8] sm:$0xff] }
  0x39   : > { %698 = vmatpush.bf16.msrb.mxu3 %v3773_v38  ;;  %900 = vmatpush.bf16.msrb.mxu0 %v3797_v49  ;;  %v3831_v38 = vld [vmem:[%s5029_s1 + $0x1f0] sm:$0xff]  ;;  %v771_v49 = vsel %vm768_vm1, %v769_v40, %v770_v41 }
  0x3a   : > { %934 = vmatpush.bf16.msrb.mxu1 %v3805_v50  ;;  %v774_v50 = vsel %vm768_vm1, %v772_v43, %v773_v44  ;;  %v4393_v40 = vpack.c.b16 %v1032_v29, %v1030_v28  ;;  %v4399_v43 = vpack.c.b16 %v1033_v34, %v1031_v32 }
  0x3b   : > { %510 = vmatmul.bf16.gmra.mxu2 %v356_v56  ;;  %500 = vmatmul.bf16.gmra.mxu0 %v324_v0  ;;  %v3846_v56 = vld [vmem:[%s5029_s1 + $0x268] sm:$0xff]  ;;  %v3845_v0 = vld [vmem:[%s5029_s1 + $0x260] sm:$0xff] }
  0x3c   : > { %665 = vmatpush.bf16.msrb.mxu2 %v3764_v51  ;;  %544 = vmatmul.bf16.gmra.mxu3 %v364_v57  ;;  %v3839_v51 = vld [vmem:[%s5029_s1 + $0x230] sm:$0xff]  ;;  %v3821_v57 = vld [vmem:[%s5029_s1 + $0x1a0] sm:$0xff]  ;;  %v1064_v25 = vrot.slane %v4393_v40, 1  ;;  %v1067_v32 = vrot.slane %v4399_v43, 1 }
  0x3d   : > { %699 = vmatpush.bf16.msrb.mxu3 %v3772_v52  ;;  %901 = vmatpush.bf16.msrb.mxu0 %v3796_v60  ;;  %v3847_v52 = vld [vmem:[%s5029_s1 + $0x270] sm:$0xff]  ;;  %v777_v60 = vrot.slane %v4064_v21, 1 }
  0x3e   : > { %935 = vmatpush.bf16.msrb.mxu1 %v3804_v61  ;;  %v776_v61 = vsel %vm768_vm1, %v770_v41, %v775_v59 }
  0x3f   : > { %534 = vmatmul.bf16.gmra.mxu1 %v332_v1  ;;  %v3820_v1 = vld [vmem:[%s5029_s1 + $0x198] sm:$0xff] }
  0x40   : > { %666 = vmatpush.bf16.msrb.mxu2 %v3763_v62  ;;  %v778_v62 = vsel %vm768_vm1, %v773_v44, %v777_v60 }
  0x41   : > { %700 = vmatpush.bf16.msrb.mxu3 %v3771_v63  ;;  %902 = vmatpush.bf16.msrb.mxu0 %v3795_v4  ;;  %v3837_v63 = vld [vmem:[%s5029_s1 + $0x220] sm:$0xff]  ;;  %v781_v4 = vrot.slane %v4084_v33, 1 }
  0x42   : > { %936 = vmatpush.bf16.msrb.mxu1 %v3803_v5 }
  0x43   : > { %v782_v6 = vsel %vm768_vm1, %v777_v60, %v781_v4 }
  0x44   : > { %667 = vmatpush.bf16.msrb.mxu2 %v3762_v46  ;;  %v3836_v46 = vld [vmem:[%s5029_s1 + $0x218] sm:$0xff] }
  0x45   : > { %701 = vmatpush.bf16.msrb.mxu3 %v3770_v47  ;;  %903 = vmatpush.bf16.msrb.mxu0 %v3794_v14  ;;  %v3844_v47 = vld [vmem:[%s5029_s1 + $0x258] sm:$0xff] }
  0x46   : > { %937 = vmatpush.bf16.msrb.mxu1 %v3802_v15  ;;  %v786_v15 = vsel %vm768_vm1, %v781_v4, %v785_v13 }
  0x48   : > { %668 = vmatpush.bf16.msrb.mxu2 %v3761_v17  ;;  %v3834_v17 = vld [vmem:[%s5029_s1 + $0x208] sm:$0xff] }
  0x49   : > { %702 = vmatpush.bf16.msrb.mxu3 %v3769_v22  ;;  %904 = vmatpush.bf16.msrb.mxu0 %v3793_v35  ;;  %v3842_v22 = vld [vmem:[%s5029_s1 + $0x248] sm:$0xff]  ;;  %v787_v35 = vrot.slane %v4216_v2, 1 }
  0x4a   : > { %938 = vmatpush.bf16.msrb.mxu1 %v3801_v36  ;;  %v789_v36 = vrot.slane %v4218_v3, 1 }
  0x4b   : > { %515 = vmatmul.bf16.gmra.mxu2 %v372_v45  ;;  %v788_v2 = vsel %vm768_vm1, %v783_v12, %v787_v35  ;;  %v3856_v45 = vld [vmem:[%s5029_s1 + $0x2b8] sm:$0xff] }
  0x4c   : > { %1192 = vmatpush.bf16.msra.mxu2 %v3824_v23  ;;  %549 = vmatmul.bf16.gmra.mxu3 %v380_v48  ;;  %v3833_v23 = vld [vmem:[%s5029_s1 + $0x200] sm:$0xff]  ;;  %v790_v3 = vsel %vm768_vm1, %v785_v13, %v789_v36  ;;  %v3864_v48 = vld [vmem:[%s5029_s1 + $0x2f8] sm:$0xff]  ;;  %v3887_v13 = vld [vmem:[%s5029_s1 + $0x370] sm:$0xff] }
  0x4d   : > { %1226 = vmatpush.bf16.msra.mxu3 %v3832_v24  ;;  %1522 = vmatpush.bf16.msra.mxu0 %v3840_v10  ;;  %v3841_v24 = vld [vmem:[%s5029_s1 + $0x240] sm:$0xff]  ;;  %v3145_v10 = vld [vmem:[%s4037_s29 + $0x18] sm:$0xf] }
  0x4e   : > { %1556 = vmatpush.bf16.msra.mxu1 %v3848_v16  ;;  %905 = vmatmul.bf16.vlgmr.msrb.gmra.mxu0 %v771_v49  ;;  %v3810_v16 = vld [vmem:[%s4037_s29 + $0x1c] sm:$0xf0]  ;;  %v1311_v49 = vshrl.u32 %v4393_v40, 16  ;;  %v3161_v36 = vld [vmem:[%s4037_s29 + $0x38] sm:$0xf] }
  0x4f   : > { %939 = vmatmul.bf16.vlgmr.msrb.gmra.mxu1 %v774_v50  ;;  %v4395_v41 = vor.u32 %v3810_v16, %v3145_v10  ;;  %v3814_v10 = vld [vmem:[%s4037_s29 + $0x3c] sm:$0xf0] }
  0x50   : > { %1193 = vmatpush.bf16.msra.mxu2 %v3823_v31  ;;  %v3809_v31 = vld [vmem:[%s4037_s29 + $0x1c] sm:$0xf] }
  0x51   : > { %1227 = vmatpush.bf16.msra.mxu3 %v3831_v38  ;;  %1523 = vmatpush.bf16.msra.mxu0 %v3839_v51  ;;  %v3147_v38 = vld [vmem:[%s4037_s29 + $0x20] sm:$0xf0]  ;;  %v1322_v50 = vshll.u32 %v4395_v41, 16  ;;  %v1328_v51 = vshrl.u32 %v4399_v43, 16  ;;  %v1065_v28 = vrot.slane %v4395_v41, 1 }
  0x52   : > { %1557 = vmatpush.bf16.msra.mxu1 %v3847_v52  ;;  %v4405_v44 = vor.u32 %v3809_v31, %v3147_v38  ;;  %v1331_v52 = vshll.u32 %v4399_v43, 16  ;;  %v3878_v38 = vld [vmem:[%s5029_s1 + $0x328] sm:$0xff]  ;;  %v3853_v43 = vld [vmem:[%s5029_s1 + $0x2a0] sm:$0xff] }
  0x54   : > { %1194 = vmatpush.bf16.msra.mxu2 %v3822_v53  ;;  %v1336_v53 = vshrl.u32 %v4405_v44, 16  ;;  %v1068_v35 = vrot.slane %v4405_v44, 1 }
  0x55   : > { %1228 = vmatpush.bf16.msra.mxu3 %v3830_v54  ;;  %1524 = vmatpush.bf16.msra.mxu0 %v3838_v55  ;;  %v1339_v54 = vshll.u32 %v4405_v44, 16  ;;  %v3880_v55 = vld [vmem:[%s5029_s1 + $0x338] sm:$0xff] }
  0x56   : > { %1558 = vmatpush.bf16.msra.mxu1 %v3846_v56  ;;  %v3888_v56 = vld [vmem:[%s5029_s1 + $0x378] sm:$0xff] }
  0x58   : > { %1195 = vmatpush.bf16.msra.mxu2 %v3821_v57  ;;  %v3855_v57 = vld [vmem:[%s5029_s1 + $0x2b0] sm:$0xff] }
  0x59   : > { %1229 = vmatpush.bf16.msra.mxu3 %v3829_v58  ;;  %1525 = vmatpush.bf16.msra.mxu0 %v3837_v63  ;;  %v3863_v58 = vld [vmem:[%s5029_s1 + $0x2f0] sm:$0xff]  ;;  %v1330_v63 = vrot.slane %v1328_v51, 1 }
  0x5a   : > { %1559 = vmatpush.bf16.msra.mxu1 %v3845_v0  ;;  %v1333_v0 = vrot.slane %v1331_v52, 2 }
  0x5b   : > { %669 = vmatmul.bf16.vlgmr.msrb.gmra.mxu2 %v4080_v30  ;;  %v3828_v30 = vld [vmem:[%s5029_s1 + $0x1d8] sm:$0xff] }
  0x5c   : > { %703 = vmatmul.bf16.vlgmr.msrb.gmra.mxu3 %v4091_v37  ;;  %1196 = vmatpush.bf16.msra.mxu2 %v3820_v1  ;;  %v779_v37 = vrot.slane %v4074_v27, 1  ;;  %v1338_v1 = vrot.slane %v1336_v53, 1 }
  0x5d   : > { %1230 = vmatpush.bf16.msra.mxu3 %v3828_v30  ;;  %1526 = vmatpush.bf16.msra.mxu0 %v3836_v46  ;;  %v1341_v30 = vrot.slane %v1339_v54, 2  ;;  %v3153_v46 = vld [vmem:[%s4037_s29 + $0x28] sm:$0xf] }
  0x5e   : > { %910 = vmatmul.bf16.gmra.mxu0 %v776_v61  ;;  %v780_v5 = vsel %vm768_vm1, %v775_v59, %v779_v37  ;;  %1560 = vmatpush.bf16.msra.mxu1 %v3844_v47  ;;  %v784_v14 = vsel %vm768_vm1, %v779_v37, %v783_v12  ;;  %v1313_v59 = vrot.slane %v1311_v49, 1  ;;  %v3812_v47 = vld [vmem:[%s4037_s29 + $0x2c] sm:$0xf0]  ;;  %v3163_v49 = vld [vmem:[%s4037_s29 + $0x40] sm:$0xf0] }
  0x5f   : > { %944 = vmatmul.bf16.gmra.mxu1 %v778_v62  ;;  %v1324_v62 = vrot.slane %v1322_v50, 2  ;;  %v3879_v12 = vld [vmem:[%s5029_s1 + $0x330] sm:$0xff] }
  0x60   : > { %1197 = vmatpush.bf16.msra.mxu2 %v3819_v7  ;;  %v3811_v7 = vld [vmem:[%s4037_s29 + $0x2c] sm:$0xf] }
  0x62   : > { %1561 = vmatpush.bf16.msra.mxu1 %v3843_v8 }
  0x64   : > { %1198 = vmatpush.bf16.msra.mxu2 %v3818_v9  ;;  %v4441_v9 = vor.u32 %v3812_v47, %v3153_v46 }
  0x66   : > { %1562 = vmatpush.bf16.msra.mxu1 %v3842_v22  ;;  %v3862_v22 = vld [vmem:[%s5029_s1 + $0x2e8] sm:$0xff]  ;;  %v1070_v47 = vrot.slane %v4441_v9, 1 }
  0x6a   : > { %1563 = vmatpush.bf16.msra.mxu1 %v3841_v24 }
  0x6b   : > { %674 = vmatmul.bf16.gmra.mxu2 %v4094_v39  ;;  %v3827_v39 = vld [vmem:[%s5029_s1 + $0x1d0] sm:$0xff] }
  0x6c   : > { %708 = vmatmul.bf16.gmra.mxu3 %v4098_v42  ;;  %v3835_v42 = vld [vmem:[%s5029_s1 + $0x210] sm:$0xff] }
  0x6d   : > { %1231 = vmatpush.bf16.msra.mxu3 %v3827_v39  ;;  %1527 = vmatpush.bf16.msra.mxu0 %v3835_v42  ;;  %v3155_v39 = vld [vmem:[%s4037_s29 + $0x30] sm:$0xf0] }
  0x6e   : > { %915 = vmatmul.bf16.gmra.mxu0 %v780_v5  ;;  %2097 = vmatpush.bf16.msrb.mxu1 %v3888_v56  ;;  %v1334_v5 = vor.u32 %v1333_v0, %v1330_v63  ;;  %v3885_v63 = vld [vmem:[%s5029_s1 + $0x360] sm:$0xff]  ;;  %v3852_v0 = vld [vmem:[%s5029_s1 + $0x298] sm:$0xff] }
  0x6f   : > { %949 = vmatmul.bf16.gmra.mxu1 %v782_v6  ;;  %v1342_v6 = vor.u32 %v1341_v30, %v1338_v1  ;;  %v3860_v1 = vld [vmem:[%s5029_s1 + $0x2d8] sm:$0xff] }
  0x71   : > { %1232 = vmatpush.bf16.msra.mxu3 %v3826_v11  ;;  %1528 = vmatpush.bf16.msra.mxu0 %v3834_v17  ;;  %v1343_v8 = vsel %vm1309_vm2, %v1334_v5, %v1342_v6  ;;  %v4443_v11 = vor.u32 %v3811_v7, %v3155_v39  ;;  %v3854_v17 = vld [vmem:[%s5029_s1 + $0x2a8] sm:$0xff] }
  0x72   : > { %2098 = vmatpush.bf16.msrb.mxu1 %v3887_v13 }
  0x73   : > { %v1072_v7 = vrot.slane %v4443_v11, 1 }
  0x75   : > { %1529 = vmatpush.bf16.msra.mxu0 %v3833_v23 }
  0x79   : > { %2063 = vmatpush.bf16.msrb.mxu0 %v3880_v55 }
  0x7b   : > { %679 = vmatmul.bf16.gmra.mxu2 %v4062_v20  ;;  %v3817_v20 = vld [vmem:[%s5029_s1 + $0x180] sm:$0xff] }
  0x7c   : > { %713 = vmatmul.bf16.gmra.mxu3 %v4064_v21  ;;  %v3825_v21 = vld [vmem:[%s5029_s1 + $0x1c0] sm:$0xff]  ;;  %1199 = vmatpush.bf16.msra.mxu2 %v3817_v20 }
  0x7d   : > { %1233 = vmatpush.bf16.msra.mxu3 %v3825_v21  ;;  %2064 = vmatpush.bf16.msrb.mxu0 %v3879_v12 }
  0x7e   : > { %920 = vmatmul.bf16.gmra.mxu0 %v784_v14  ;;  %v1354_v14 = vshrl.u32 %v4443_v11, 16 }
  0x7f   : > { %954 = vmatmul.bf16.gmra.mxu1 %v786_v15  ;;  %v1357_v15 = vshll.u32 %v4443_v11, 16 }
  0x80   : > { %1768 = vmatpush.bf16.msrb.mxu2 %v3856_v45  ;;  %v1356_v23 = vrot.slane %v1354_v14, 1  ;;  %v3861_v45 = vld [vmem:[%s5029_s1 + $0x2e0] sm:$0xff]  ;;  %v3816_v14 = vld [vmem:[%s4037_s29 + $0x4c] sm:$0xf0] }
  0x81   : > { %1802 = vmatpush.bf16.msrb.mxu3 %v3864_v48  ;;  %v1359_v24 = vrot.slane %v1357_v15, 2  ;;  %v3813_v48 = vld [vmem:[%s4037_s29 + $0x3c] sm:$0xf]  ;;  %2065 = vmatpush.bf16.msrb.mxu0 %v3878_v38  ;;  %v1071_v15 = vsel %vm768_vm1, %v1065_v28, %v1070_v47 }
  0x82   : > { %v4493_v53 = vor.u32 %v3813_v48, %v3163_v49 }
  0x83   : > { %v4469_v31 = vor.u32 %v1359_v24, %v1356_v23 }
  0x84   : > { %1769 = vmatpush.bf16.msrb.mxu2 %v3855_v57 }
  0x85   : > { %1803 = vmatpush.bf16.msrb.mxu3 %v3863_v58  ;;  %v1361_v52 = vsel %vm1309_vm2, %v1342_v6, %v4469_v31 }
  0x88   : > { %1770 = vmatpush.bf16.msrb.mxu2 %v3854_v17  ;;  %v1073_v17 = vsel %vm768_vm1, %v1068_v35, %v1072_v7 }
  0x89   : > { %1804 = vmatpush.bf16.msrb.mxu3 %v3862_v22  ;;  %v3815_v22 = vld [vmem:[%s4037_s29 + $0x4c] sm:$0xf] }
  0x8b   : > { %684 = vmatmul.bf16.gmra.mxu2 %v4074_v27  ;;  %v1314_v27 = vshll.u32 %v4393_v40, 16  ;;  %v3886_v40 = vld [vmem:[%s5029_s1 + $0x368] sm:$0xff] }
  0x8c   : > { %718 = vmatmul.bf16.gmra.mxu3 %v4084_v33  ;;  %v1319_v33 = vshrl.u32 %v4395_v41, 16  ;;  %2099 = vmatpush.bf16.msrb.mxu1 %v3886_v40 }
  0x8d   : > { %v1316_v60 = vrot.slane %v1314_v27, 2  ;;  %1771 = vmatpush.bf16.msrb.mxu2 %v3853_v43  ;;  %1805 = vmatpush.bf16.msrb.mxu3 %v3861_v45  ;;  %v4487_v27 = vor.u32 %v3814_v10, %v3161_v36  ;;  %v3851_v10 = vld [vmem:[%s5029_s1 + $0x290] sm:$0xff] }
  0x8e   : > { %925 = vmatmul.bf16.gmra.mxu0 %v788_v2  ;;  %v1321_v61 = vrot.slane %v1319_v33, 1  ;;  %v1066_v2 = vsel %vm768_vm1, %v1064_v25, %v1065_v28  ;;  %v3876_v28 = vld [vmem:[%s5029_s1 + $0x318] sm:$0xff] }
  0x8f   : > { %959 = vmatmul.bf16.gmra.mxu1 %v790_v3  ;;  %v1317_v37 = vor.u32 %v1316_v60, %v1313_v59  ;;  %v1069_v3 = vsel %vm768_vm1, %v1067_v32, %v1068_v35  ;;  %v1363_v57 = vshrl.u32 %v4487_v27, 16  ;;  %v1366_v59 = vshll.u32 %v4487_v27, 16  ;;  %v3884_v35 = vld [vmem:[%s5029_s1 + $0x358] sm:$0xff] }
  0x90   : > { %v1325_v4 = vor.u32 %v1324_v62, %v1321_v61  ;;  %v1372_v60 = vshrl.u32 %v4493_v53, 16  ;;  %v1375_v61 = vshll.u32 %v4493_v53, 16  ;;  %v3877_v62 = vld [vmem:[%s5029_s1 + $0x320] sm:$0xff]  ;;  %2100 = vmatpush.bf16.msrb.mxu1 %v3885_v63 }
  0x91   : > { %2066 = vmatpush.bf16.msrb.mxu0 %v3877_v62  ;;  %1772 = vmatpush.bf16.msrb.mxu2 %v3852_v0  ;;  %v1368_v5 = vrot.slane %v1366_v59, 2  ;;  %v1270_v59 = vld [vmem:[%s4037_s29 + $0x58] sm:$0x33] }
  0x92   : > { %v1326_v42 = vsel %vm1309_vm2, %v1317_v37, %v1325_v4  ;;  %1806 = vmatpush.bf16.msrb.mxu3 %v3860_v1  ;;  %v1374_v6 = vrot.slane %v1372_v60, 1  ;;  %v1377_v46 = vrot.slane %v1375_v61, 2  ;;  %v1074_v60 = vrot.slane %v4487_v27, 1 }
  0x93   : > { %v1076_v61 = vrot.slane %v4493_v53, 1  ;;  %v1305_v1 = vunpack.c.l.b16 %v1270_v59 }
  0x94   : > { %2101 = vmatpush.bf16.msrb.mxu1 %v3884_v35  ;;  %v3882_v35 = vld [vmem:[%s5029_s1 + $0x348] sm:$0xff] }
  0x95   : > { %2067 = vmatpush.bf16.msrb.mxu0 %v3876_v28  ;;  %1773 = vmatpush.bf16.msrb.mxu2 %v3851_v10  ;;  %v3874_v28 = vld [vmem:[%s5029_s1 + $0x308] sm:$0xff] }
  0x9b   : > { %689 = vmatmul.bf16.gmra.mxu2 %v4151_v18  ;;  %v1345_v18 = vshrl.u32 %v4441_v9, 16 }
  0x9c   : > { %723 = vmatmul.bf16.gmra.mxu3 %v4153_v19  ;;  %v1348_v19 = vshll.u32 %v4441_v9, 16 }
  0x9d   : > { %v1347_v20 = vrot.slane %v1345_v18, 1  ;;  %v4523_v18 = vor.u32 %v1377_v46, %v1374_v6  ;;  %v1075_v6 = vsel %vm768_vm1, %v1070_v47, %v1074_v60  ;;  %v1077_v46 = vsel %vm768_vm1, %v1072_v7, %v1076_v61  ;;  %v3858_v47 = vld [vmem:[%s5029_s1 + $0x2c8] sm:$0xff] }
  0x9e   : > { %1530 = vmatmul.bf16.vlgmr.msra.gmra.mxu0 %v1326_v42  ;;  %v1350_v21 = vrot.slane %v1348_v19, 2  ;;  %v3169_v19 = vld [vmem:[%s4037_s29 + $0x48] sm:$0xf] }
  0x9f   : > { %1564 = vmatmul.bf16.vlgmr.msra.gmra.mxu1 %v1343_v8  ;;  %v1379_v32 = vsel %vm1309_vm2, %v4469_v31, %v4523_v18 }
  0xa0   : > { %v4467_v16 = vor.u32 %v1350_v21, %v1347_v20  ;;  %v3171_v20 = vld [vmem:[%s4037_s29 + $0x50] sm:$0xf0]  ;;  %v4531_v21 = vor.u32 %v3816_v14, %v3169_v19 }
  0xa1   : > { %v4539_v36 = vor.u32 %v3815_v22, %v3171_v20 }
  0xa2   : > { %v1352_v51 = vsel %vm1309_vm2, %v1325_v4, %v4467_v16  ;;  %v1365_v4 = vrot.slane %v1363_v57, 1  ;;  %v1381_v43 = vshrl.u32 %v4531_v21, 16  ;;  %v3883_v57 = vld [vmem:[%s5029_s1 + $0x350] sm:$0xff] }
  0xa3   : > { %v1390_v45 = vshrl.u32 %v4539_v36, 16  ;;  %v1393_v48 = vshll.u32 %v4539_v36, 16  ;;  %2102 = vmatpush.bf16.msrb.mxu1 %v3883_v57 }
  0xa4   : > { %v4521_v13 = vor.u32 %v1368_v5, %v1365_v4  ;;  %v1383_v49 = vrot.slane %v1381_v43, 1  ;;  %v1306_v5 = vunpack.c.h.b16 %v1270_v59 }
  0xa6   : > { %v1370_v25 = vsel %vm1309_vm2, %v4467_v16, %v4521_v13  ;;  %v3859_v16 = vld [vmem:[%s5029_s1 + $0x2d0] sm:$0xff]  ;;  %v4588_v7 = vpack.c.b16 %v1306_v5, %v1306_v5  ;;  %v985_v5 = vld [vmem:[%s4037_s29 + $0x58] sm:$0x11] }
  0xa7   : > { %1807 = vmatpush.bf16.msrb.mxu3 %v3859_v16  ;;  %2103 = vmatpush.bf16.msrb.mxu1 %v3882_v35 }
  0xa8   : > { %v496_v33 = vpop.f32.mrf.mxu0 }
  0xab   : > { %1200 = vmatmul.bf16.vlgmr.msra.gmra.mxu2 %v1066_v2  ;;  %v1384_v2 = vshll.u32 %v4531_v21, 16  ;;  %1808 = vmatpush.bf16.msrb.mxu3 %v3858_v47  ;;  %v1050_v47 = vunpack.c.l.b16 %v985_v5 }
  0xac   : > { %1234 = vmatmul.bf16.vlgmr.msra.gmra.mxu3 %v1069_v3  ;;  %v530_v50 = vpop.f32.mrf.mxu1 }
  0xad   : > { %v4495_v54 = vadd.f32 %v530_v50, %v496_v33  ;;  %v1386_v33 = vrot.slane %v1384_v2, 2  ;;  %v1062_v35 = vpack.c.b16 %v1050_v47, %v1050_v47 }
  0xae   : > { %v506_v55 = vpop.f32.mrf.mxu2  ;;  %1535 = vmatmul.bf16.gmra.mxu0 %v1352_v51 }
  0xaf   : > { %v540_v56 = vpop.f32.mrf.mxu3  ;;  %1569 = vmatmul.bf16.gmra.mxu1 %v1361_v52  ;;  %v1392_v52 = vrot.slane %v1390_v45, 1  ;;  %v3849_v45 = vld [vmem:[%s5029_s1 + $0x280] sm:$0xff] }
  0xb0   : > { %v4498_v58 = vadd.f32 %v540_v56, %v506_v55  ;;  %v498_v30 = vpop.f32.mrf.mxu0  ;;  %v1395_v55 = vrot.slane %v1393_v48, 2  ;;  %v3875_v56 = vld [vmem:[%s5029_s1 + $0x310] sm:$0xff]  ;;  %v3857_v48 = vld [vmem:[%s5029_s1 + $0x2c0] sm:$0xff] }
  0xb1   : > { %2068 = vmatpush.bf16.msrb.mxu0 %v3875_v56  ;;  %1809 = vmatpush.bf16.msrb.mxu3 %v3857_v48  ;;  %v3881_v56 = vld [vmem:[%s5029_s1 + $0x340] sm:$0xff] }
  0xb2   : > { %v1396_v4 = vor.u32 %v1395_v55, %v1392_v52  ;;  %v3873_v55 = vld [vmem:[%s5029_s1 + $0x300] sm:$0xff]  ;;  %2104 = vmatpush.bf16.msrb.mxu1 %v3881_v56  ;;  %v3912_v56 = vld [vmem:[%s5029_s1 + $0x438] sm:$0xff] }
  0xb4   : > { %v532_v37 = vpop.f32.mrf.mxu1 }
  0xb5   : > { %v4517_v39 = vadd.f32 %v532_v37, %v498_v30  ;;  %v1387_v37 = vor.u32 %v1386_v33, %v1383_v49  ;;  %v1078_v49 = vrot.slane %v4531_v21, 1  ;;  %v1080_v33 = vrot.slane %v4539_v36, 1  ;;  %2069 = vmatpush.bf16.msrb.mxu0 %v3874_v28 }
  0xb6   : > { %v508_v42 = vpop.f32.mrf.mxu2 }
  0xb7   : > { %v542_v8 = vpop.f32.mrf.mxu3  ;;  %v1388_v14 = vsel %vm1309_vm2, %v4521_v13, %v1387_v37 }
  0xb8   : > { %v4519_v12 = vadd.f32 %v542_v8, %v508_v42  ;;  %v501_v23 = vpop.f32.mrf.mxu0  ;;  %v4576_v42 = vpack.c.b16 %v1305_v1, %v1305_v1  ;;  %v1081_v1 = vsel %vm768_vm1, %v1076_v61, %v1080_v33  ;;  %v3904_v61 = vld [vmem:[%s5029_s1 + $0x3f8] sm:$0xff] }
  0xb9   : > { %2070 = vmatpush.bf16.msrb.mxu0 %v3873_v55  ;;  %2427 = vmatpush.bf16.msra.mxu3 %v3904_v61 }
  0xba   : > { %v1399_v13 = vshrl.u32 %v4576_v42, 16 }
  0xbb   : > { %1205 = vmatmul.bf16.gmra.mxu2 %v1071_v15  ;;  %v1397_v15 = vsel %vm1309_vm2, %v4523_v18, %v1396_v4 }
  0xbc   : > { %1239 = vmatmul.bf16.gmra.mxu3 %v1073_v17  ;;  %v535_v24 = vpop.f32.mrf.mxu1  ;;  %v3850_v17 = vld [vmem:[%s5029_s1 + $0x288] sm:$0xff] }
  0xbd   : > { %v4550_v38 = vadd.f32 %v535_v24, %v501_v23  ;;  %1774 = vmatpush.bf16.msrb.mxu2 %v3850_v17  ;;  %v1402_v24 = vshll.u32 %v4576_v42, 16  ;;  %2639 = vmatpush.bf16.msra.mxu0 %v3912_v56  ;;  %v3868_v56 = vld [vmem:[%s4037_s29 + $0x34] sm:$0xf0] }
  0xbe   : > { %v511_v31 = vpop.f32.mrf.mxu2  ;;  %1540 = vmatmul.bf16.gmra.mxu0 %v1370_v25  ;;  %v1408_v25 = vshrl.u32 %v4588_v7, 16 }
  0xbf   : > { %v545_v40 = vpop.f32.mrf.mxu3  ;;  %1574 = vmatmul.bf16.gmra.mxu1 %v1379_v32  ;;  %v1411_v32 = vshll.u32 %v4588_v7, 16 }
  0xc0   : > { %v4557_v3 = vadd.f32 %v545_v40, %v511_v31  ;;  %v503_v50 = vpop.f32.mrf.mxu0  ;;  %v1401_v31 = vrot.slane %v1399_v13, 1  ;;  %v1404_v40 = vrot.slane %v1402_v24, 2  ;;  %v1410_v43 = vrot.slane %v1408_v25, 1  ;;  %v3465_v25 = vld [vmem:[%s4037_s29 + $0x20] sm:$0xf] }
  0xc1   : > { %v1413_v2 = vrot.slane %v1411_v32, 2  ;;  %1775 = vmatpush.bf16.msrb.mxu2 %v3849_v45 }
  0xc2   : > { %v1405_v59 = vor.u32 %v1404_v40, %v1401_v31  ;;  %v3865_v31 = vld [vmem:[%s4037_s29 + $0x24] sm:$0xf]  ;;  %v3467_v40 = vld [vmem:[%s4037_s29 + $0x28] sm:$0xf0] }
  0xc3   : > { %v4663_v55 = vor.u32 %v3865_v31, %v3467_v40 }
  0xc4   : > { %v537_v51 = vpop.f32.mrf.mxu1 }
  0xc5   : > { %v4570_v62 = vadd.f32 %v537_v51, %v503_v50  ;;  %v1939_v61 = vrot.slane %v4663_v55, 2 }
  0xc6   : > { %v513_v63 = vpop.f32.mrf.mxu2 }
  0xc7   : > { %v547_v0 = vpop.f32.mrf.mxu3 }
  0xc8   : > { %v4572_v30 = vadd.f32 %v547_v0, %v513_v63  ;;  %v1414_v63 = vor.u32 %v1413_v2, %v1410_v43  ;;  %v1079_v0 = vsel %vm768_vm1, %v1074_v60, %v1078_v49  ;;  %v3896_v60 = vld [vmem:[%s5029_s1 + $0x3b8] sm:$0xff] }
  0xc9   : > { %2393 = vmatpush.bf16.msra.mxu2 %v3896_v60 }
  0xcb   : > { %1210 = vmatmul.bf16.gmra.mxu2 %v1075_v6  ;;  %v906_v8 = vpop.f32.mrf.mxu0  ;;  %v1846_v6 = vld [vmem:[%s4037_s29 + $0x10] sm:$0xcc] }
  0xcc   : > { %1244 = vmatmul.bf16.gmra.mxu3 %v1077_v46  ;;  %v940_v19 = vpop.f32.mrf.mxu1  ;;  %v1902_v32 = vunpack.c.h.b16 %v1846_v6 }
  0xcd   : > { %v4590_v22 = vadd.f32 %v940_v19, %v906_v8  ;;  %v1406_v19 = vsel %vm1309_vm2, %v1387_v37, %v1405_v59  ;;  %v3920_v59 = vld [vmem:[%s5029_s1 + $0x478] sm:$0xff] }
  0xce   : > { %v516_v20 = vpop.f32.mrf.mxu2  ;;  %1545 = vmatmul.bf16.gmra.mxu0 %v1388_v14  ;;  %v1415_v14 = vsel %vm1309_vm2, %v1396_v4, %v1414_v63  ;;  %v1082_v63 = vrot.slane %v1062_v35, 1  ;;  %2673 = vmatpush.bf16.msra.mxu1 %v3920_v59  ;;  %v3867_v59 = vld [vmem:[%s4037_s29 + $0x34] sm:$0xf] }
  0xcf   : > { %v550_v23 = vpop.f32.mrf.mxu3  ;;  %1579 = vmatmul.bf16.gmra.mxu1 %v1397_v15  ;;  %v4633_v15 = vld [vmem:[%s4037_s29 + $0x18] sm:$0xff] }
  0xd0   : > { %v4593_v18 = vadd.f32 %v550_v23, %v516_v20  ;;  %v1051_v20 = vunpack.c.h.b16 %v985_v5  ;;  %v1901_v23 = vunpack.c.l.b16 %v1846_v6  ;;  %v1903_v13 = vunpack.c.l.b16 %v4633_v15  ;;  %v3903_v5 = vld [vmem:[%s5029_s1 + $0x3f0] sm:$0xff] }
  0xd1   : > { %v1904_v28 = vunpack.c.h.b16 %v4633_v15  ;;  %2428 = vmatpush.bf16.msra.mxu3 %v3903_v5  ;;  %v1083_v47 = vsel %vm768_vm1, %v1078_v49, %v1082_v63 }
  0xd2   : > { %v4652_v2 = vpack.c.b16 %v1903_v13, %v1901_v23 }
  0xd3   : > { %v908_v10 = vpop.f32.mrf.mxu0 }
  0xd4   : > { %v942_v16 = vpop.f32.mrf.mxu1 }
  0xd5   : > { %v4612_v50 = vadd.f32 %v942_v16, %v908_v10  ;;  %v1063_v10 = vpack.c.b16 %v1051_v20, %v1051_v20  ;;  %v3866_v16 = vld [vmem:[%s4037_s29 + $0x24] sm:$0xf0]  ;;  %2429 = vmatpush.bf16.msra.mxu3 %v3902_v26  ;;  %v3892_v26 = vld [vmem:[%s5029_s1 + $0x398] sm:$0xff] }
  0xd6   : > { %v518_v51 = vpop.f32.mrf.mxu2 }
  0xd7   : > { %v552_v52 = vpop.f32.mrf.mxu3 }
  0xd8   : > { %v4620_v57 = vadd.f32 %v552_v52, %v518_v51  ;;  %v4661_v52 = vpack.c.b16 %v1904_v28, %v1902_v32 }
  0xda   : > { %v1938_v60 = vrot.slane %v4661_v52, 2 }
  0xdb   : > { %1215 = vmatmul.bf16.gmra.mxu2 %v1079_v0  ;;  %v911_v46 = vpop.f32.mrf.mxu0  ;;  %v1084_v0 = vrot.slane %v1063_v10, 1 }
  0xdc   : > { %1249 = vmatmul.bf16.gmra.mxu3 %v1081_v1  ;;  %v945_v8 = vpop.f32.mrf.mxu1  ;;  %v1940_v49 = vsel %vm1639_vm3, %v1938_v60, %v1939_v61 }
  0xdd   : > { %v4641_v17 = vadd.f32 %v945_v8, %v911_v46  ;;  %v1935_v8 = vrot.slane %v4652_v2, 2  ;;  %v1085_v20 = vsel %vm768_vm1, %v1080_v33, %v1084_v0  ;;  %v3911_v33 = vld [vmem:[%s5029_s1 + $0x430] sm:$0xff] }
  0xde   : > { %v670_v37 = vpop.f32.mrf.mxu2  ;;  %1550 = vmatmul.bf16.gmra.mxu0 %v1406_v19 }
  0xdf   : > { %v704_v4 = vpop.f32.mrf.mxu3  ;;  %1584 = vmatmul.bf16.gmra.mxu1 %v1415_v14  ;;  %v671_v24 = vadd.f32 %v670_v37, %v4495_v54  ;;  %v4657_v54 = vor.u32 %v3866_v16, %v3465_v25  ;;  %v1600_v37 = vld [vmem:[%s4037_s29 + $0x8] sm:$0xcc]  ;;  %2640 = vmatpush.bf16.msra.mxu0 %v3911_v33 }
  0xe0   : > { %v1635_v25 = vunpack.c.l.b16 %v1600_v37  ;;  %v1636_v10 = vunpack.c.h.b16 %v1600_v37 }
  0xe1   : > { %v705_v43 = vadd.f32 %v704_v4, %v671_v24  ;;  %v1936_v14 = vrot.slane %v4657_v54, 2 }
  0xe3   : > { %v4655_v45 = vadd.f32 %v4590_v22, %v705_v43  ;;  %v913_v48 = vpop.f32.mrf.mxu0  ;;  %v3895_v22 = vld [vmem:[%s5029_s1 + $0x3b0] sm:$0xff]  ;;  %v1937_v32 = vsel %vm1639_vm3, %v1935_v8, %v1936_v14  ;;  %v1637_v43 = vpack.c.b16 %v1032_v29, %v1635_v25  ;;  %v3894_v29 = vld [vmem:[%s5029_s1 + $0x3a8] sm:$0xff] }
  0xe4   : > { %v947_v51 = vpop.f32.mrf.mxu1  ;;  %2394 = vmatpush.bf16.msra.mxu2 %v3895_v22  ;;  %v3475_v22 = vld [vmem:[%s4037_s29 + $0x38] sm:$0xf0] }
  0xe5   : > { %v4674_v1 = vadd.f32 %v947_v51, %v913_v48  ;;  %v3473_v48 = vld [vmem:[%s4037_s29 + $0x30] sm:$0xf]  ;;  %v1638_v51 = vpack.c.b16 %v1033_v34, %v1636_v10  ;;  %v1640_v5 = vrot.slane %v1637_v43, 2  ;;  %v1641_v34 = vrot.slane %v4395_v41, 2  ;;  %v3893_v10 = vld [vmem:[%s5029_s1 + $0x3a0] sm:$0xff] }
  0xe6   : > { %v672_v6 = vpop.f32.mrf.mxu2  ;;  %v4716_v8 = vor.u32 %v3868_v56, %v3473_v48  ;;  %v3481_v43 = vld [vmem:[%s4037_s29 + $0x40] sm:$0xf]  ;;  %v3870_v48 = vld [vmem:[%s4037_s29 + $0x44] sm:$0xf0]  ;;  %v3483_v56 = vld [vmem:[%s4037_s29 + $0x48] sm:$0xf0] }
  0xe7   : > { %v706_v46 = vpop.f32.mrf.mxu3  ;;  %v673_v19 = vadd.f32 %v672_v6, %v4517_v39 }
  0xe8   : > { %2395 = vmatpush.bf16.msra.mxu2 %v3894_v29  ;;  %v3917_v29 = vld [vmem:[%s5029_s1 + $0x460] sm:$0xff] }
  0xe9   : > { %v707_v4 = vadd.f32 %v706_v46, %v673_v19  ;;  %v1643_v19 = vrot.slane %v1638_v51, 2  ;;  %v3869_v51 = vld [vmem:[%s4037_s29 + $0x44] sm:$0xf] }
  0xeb   : > { %v4692_v23 = vadd.f32 %v4612_v50, %v707_v4  ;;  %1220 = vmatmul.bf16.gmra.mxu2 %v1083_v47  ;;  %v916_v39 = vpop.f32.mrf.mxu0  ;;  %v3919_v50 = vld [vmem:[%s5029_s1 + $0x470] sm:$0xff]  ;;  %v1941_v4 = vrot.slane %v4716_v8, 2 }
  0xec   : > { %1254 = vmatmul.bf16.gmra.mxu3 %v1085_v20  ;;  %v950_v24 = vpop.f32.mrf.mxu1  ;;  %2674 = vmatpush.bf16.msra.mxu1 %v3919_v50  ;;  %v3910_v50 = vld [vmem:[%s5029_s1 + $0x428] sm:$0xff] }
  0xed   : > { %v4702_v35 = vadd.f32 %v950_v24, %v916_v39  ;;  %v1642_v24 = vsel %vm1639_vm3, %v1640_v5, %v1641_v34  ;;  %v1942_v33 = vsel %vm1639_vm3, %v1936_v14, %v1941_v4  ;;  %v3901_v14 = vld [vmem:[%s5029_s1 + $0x3e0] sm:$0xff]  ;;  %2641 = vmatpush.bf16.msra.mxu0 %v3910_v50  ;;  %2396 = vmatpush.bf16.msra.mxu2 %v3893_v10  ;;  %v3908_v10 = vld [vmem:[%s5029_s1 + $0x418] sm:$0xff] }
  0xee   : > { %v675_v16 = vpop.f32.mrf.mxu2  ;;  %2071 = vmatmul.bf16.vlgmr.msrb.gmra.mxu0 %v1937_v32  ;;  %2430 = vmatpush.bf16.msra.mxu3 %v3901_v14 }
  0xef   : > { %v709_v31 = vpop.f32.mrf.mxu3  ;;  %2105 = vmatmul.bf16.vlgmr.msrb.gmra.mxu1 %v1940_v49  ;;  %v676_v40 = vadd.f32 %v675_v16, %v4550_v38  ;;  %v4718_v38 = vor.u32 %v3867_v59, %v3475_v22 }
  0xf1   : > { %v710_v63 = vadd.f32 %v709_v31, %v676_v40  ;;  %v1943_v39 = vrot.slane %v4718_v38, 2  ;;  %2397 = vmatpush.bf16.msra.mxu2 %v3892_v26  ;;  %v1650_v26 = vrot.slane %v4487_v27, 2  ;;  %v3890_v27 = vld [vmem:[%s5029_s1 + $0x388] sm:$0xff] }
  0xf3   : > { %v4714_v0 = vadd.f32 %v4641_v17, %v710_v63  ;;  %v918_v6 = vpop.f32.mrf.mxu0  ;;  %v1644_v17 = vrot.slane %v4405_v44, 2 }
  0xf4   : > { %v952_v46 = vpop.f32.mrf.mxu1 }
  0xf5   : > { %v953_v60 = vadd.f32 %v952_v46, %v918_v6  ;;  %v1645_v25 = vsel %vm1639_vm3, %v1643_v19, %v1644_v17  ;;  %v4760_v6 = vor.u32 %v3870_v48, %v3481_v43  ;;  %v4762_v46 = vor.u32 %v3869_v51, %v3483_v56  ;;  %v3871_v43 = vld [vmem:[%s4037_s29 + $0x54] sm:$0xf]  ;;  %v3491_v48 = vld [vmem:[%s4037_s29 + $0x58] sm:$0xf0] }
  0xf6   : > { %v677_v47 = vpop.f32.mrf.mxu2  ;;  %v1648_v19 = vrot.slane %v4443_v11, 2  ;;  %v3907_v56 = vld [vmem:[%s5029_s1 + $0x410] sm:$0xff] }
  0xf7   : > { %v711_v20 = vpop.f32.mrf.mxu3  ;;  %v678_v37 = vadd.f32 %v677_v47, %v4570_v62  ;;  %v1944_v62 = vsel %vm1639_vm3, %v1939_v61, %v1943_v39 }
  0xf8   : > { %v1649_v11 = vsel %vm1639_vm3, %v1644_v17, %v1648_v19  ;;  %v3891_v17 = vld [vmem:[%s5029_s1 + $0x390] sm:$0xff] }
  0xf9   : > { %v712_v32 = vadd.f32 %v711_v20, %v678_v37  ;;  %v3900_v20 = vld [vmem:[%s5029_s1 + $0x3d8] sm:$0xff]  ;;  %2398 = vmatpush.bf16.msra.mxu2 %v3891_v17 }
  0xfa   : > { %2431 = vmatpush.bf16.msra.mxu3 %v3900_v20  ;;  %v1652_v20 = vrot.slane %v4493_v53, 2  ;;  %v3898_v53 = vld [vmem:[%s5029_s1 + $0x3c8] sm:$0xff] }
  0xfb   : > { %v4734_v41 = vadd.f32 %v4674_v1, %v712_v32  ;;  %1776 = vmatmul.bf16.vlgmr.msrb.gmra.mxu2 %v1642_v24  ;;  %v921_v44 = vpop.f32.mrf.mxu0  ;;  %v3918_v1 = vld [vmem:[%s5029_s1 + $0x468] sm:$0xff]  ;;  %v1945_v32 = vrot.slane %v4760_v6, 2 }
  0xfc   : > { %1810 = vmatmul.bf16.vlgmr.msrb.gmra.mxu3 %v1645_v25  ;;  %v955_v49 = vpop.f32.mrf.mxu1  ;;  %2675 = vmatpush.bf16.msra.mxu1 %v3918_v1 }
  0xfd   : > { %v4747_v16 = vadd.f32 %v955_v49, %v921_v44  ;;  %v1947_v44 = vrot.slane %v4762_v46, 2  ;;  %v1946_v1 = vsel %vm1639_vm3, %v1941_v4, %v1945_v32  ;;  %v3899_v4 = vld [vmem:[%s5029_s1 + $0x3d0] sm:$0xff]  ;;  %2399 = vmatpush.bf16.msra.mxu2 %v3890_v27 }
  0xfe   : > { %v680_v61 = vpop.f32.mrf.mxu2  ;;  %2076 = vmatmul.bf16.gmra.mxu0 %v1942_v33  ;;  %2432 = vmatpush.bf16.msra.mxu3 %v3899_v4 }
  0xff   : > { %v714_v31 = vpop.f32.mrf.mxu3  ;;  %2110 = vmatmul.bf16.gmra.mxu1 %v1944_v62  ;;  %v681_v40 = vadd.f32 %v680_v61, %v4498_v58  ;;  %v3909_v58 = vld [vmem:[%s5029_s1 + $0x420] sm:$0xff] }
 0x100   : > { %2642 = vmatpush.bf16.msra.mxu0 %v3909_v58  ;;  %2676 = vmatpush.bf16.msra.mxu1 %v3917_v29  ;;  %v4815_v29 = vor.u32 %v3871_v43, %v3491_v48 }
 0x101   : > { %v715_v59 = vadd.f32 %v714_v31, %v681_v40  ;;  %v3489_v31 = vld [vmem:[%s4037_s29 + $0x50] sm:$0xf]  ;;  %v3872_v40 = vld [vmem:[%s4037_s29 + $0x54] sm:$0xf0] }
 0x102   : > { %v4813_v58 = vor.u32 %v3872_v40, %v3489_v31  ;;  %2433 = vmatpush.bf16.msra.mxu3 %v3898_v53  ;;  %v3906_v31 = vld [vmem:[%s5029_s1 + $0x408] sm:$0xff]  ;;  %v3897_v40 = vld [vmem:[%s5029_s1 + $0x3c0] sm:$0xff] }
 0x103   : > { %v4758_v22 = vadd.f32 %v4702_v35, %v715_v59  ;;  %v923_v63 = vpop.f32.mrf.mxu0  ;;  %v1646_v35 = vrot.slane %v4441_v9, 2  ;;  %v3915_v59 = vld [vmem:[%s5029_s1 + $0x450] sm:$0xff] }
 0x104   : > { %v957_v5 = vpop.f32.mrf.mxu1  ;;  %2643 = vmatpush.bf16.msra.mxu0 %v3908_v10 }
 0x105   : > { %v958_v47 = vadd.f32 %v957_v5, %v923_v63  ;;  %v1647_v9 = vsel %vm1639_vm3, %v1641_v34, %v1646_v35  ;;  %v3916_v34 = vld [vmem:[%s5029_s1 + $0x458] sm:$0xff] }
 0x106   : > { %v682_v37 = vpop.f32.mrf.mxu2  ;;  %2677 = vmatpush.bf16.msra.mxu1 %v3916_v34  ;;  %v1856_v34 = vld [vmem:[%s4037_s29 + $0x60] sm:$0x33]  ;;  %2434 = vmatpush.bf16.msra.mxu3 %v3897_v40 }
 0x107   : > { %v716_v24 = vpop.f32.mrf.mxu3  ;;  %v683_v25 = vadd.f32 %v682_v37, %v4519_v12  ;;  %v1948_v12 = vsel %vm1639_vm3, %v1943_v39, %v1947_v44 }
 0x108   : > { %2644 = vmatpush.bf16.msra.mxu0 %v3907_v56 }
 0x109   : > { %v717_v49 = vadd.f32 %v716_v24, %v683_v25 }
 0x10a   : > { %2678 = vmatpush.bf16.msra.mxu1 %v3915_v59  ;;  %v1654_v59 = vrot.slane %v4531_v21, 2 }
 0x10b   : > { %v4783_v33 = vadd.f32 %v953_v60, %v717_v49  ;;  %1781 = vmatmul.bf16.gmra.mxu2 %v1647_v9  ;;  %v926_v62 = vpop.f32.mrf.mxu0  ;;  %v1651_v49 = vsel %vm1639_vm3, %v1646_v35, %v1650_v26 }
 0x10c   : > { %1815 = vmatmul.bf16.gmra.mxu3 %v1649_v11  ;;  %v960_v50 = vpop.f32.mrf.mxu1  ;;  %v1951_v11 = vrot.slane %v4815_v29, 2  ;;  %2645 = vmatpush.bf16.msra.mxu0 %v3906_v31  ;;  %v1658_v31 = vrot.slane %v4576_v42, 2 }
 0x10d   : > { %v961_v60 = vadd.f32 %v960_v50, %v926_v62  ;;  %v1653_v62 = vsel %vm1639_vm3, %v1648_v19, %v1652_v20 }
 0x10e   : > { %v685_v39 = vpop.f32.mrf.mxu2  ;;  %2081 = vmatmul.bf16.gmra.mxu0 %v1946_v1  ;;  %v1952_v35 = vsel %vm1639_vm3, %v1947_v44, %v1951_v11  ;;  %v3889_v44 = vld [vmem:[%s5029_s1 + $0x380] sm:$0xff]  ;;  %v1659_v15 = vsel %vm1639_vm3, %v1654_v59, %v1658_v31 }
 0x10f   : > { %v719_v14 = vpop.f32.mrf.mxu3  ;;  %2115 = vmatmul.bf16.gmra.mxu1 %v1948_v12  ;;  %v686_v61 = vadd.f32 %v685_v39, %v4557_v3  ;;  %2400 = vmatpush.bf16.msra.mxu2 %v3889_v44 }
 0x111   : > { %v720_v51 = vadd.f32 %v719_v14, %v686_v61  ;;  %v1922_v14 = vunpack.c.h.b16 %v1856_v34 }
 0x113   : > { %v4811_v63 = vadd.f32 %v4747_v16, %v720_v51  ;;  %v928_v5 = vpop.f32.mrf.mxu0  ;;  %v1949_v16 = vrot.slane %v4813_v58, 2  ;;  %v1934_v56 = vpack.c.b16 %v1922_v14, %v1922_v14 }
 0x114   : > { %v962_v3 = vpop.f32.mrf.mxu1 }
 0x115   : > { %v963_v37 = vadd.f32 %v962_v3, %v928_v5  ;;  %v1950_v10 = vsel %vm1639_vm3, %v1945_v32, %v1949_v16  ;;  %v3914_v32 = vld [vmem:[%s5029_s1 + $0x448] sm:$0xff]  ;;  %v1656_v5 = vrot.slane %v4539_v36, 2  ;;  %v1655_v36 = vsel %vm1639_vm3, %v1650_v26, %v1654_v59 }
 0x116   : > { %v687_v24 = vpop.f32.mrf.mxu2  ;;  %2679 = vmatpush.bf16.msra.mxu1 %v3914_v32  ;;  %v1660_v32 = vrot.slane %v4588_v7, 2  ;;  %v2182_v7 = vshrl.u32 %v4652_v2, 16 }
 0x117   : > { %v721_v25 = vpop.f32.mrf.mxu3  ;;  %v688_v9 = vadd.f32 %v687_v24, %v4572_v30 }
 0x119   : > { %v722_v50 = vadd.f32 %v721_v25, %v688_v9  ;;  %v3913_v9 = vld [vmem:[%s5029_s1 + $0x440] sm:$0xff] }
 0x11a   : > { %2680 = vmatpush.bf16.msra.mxu1 %v3913_v9 }
 0x11b   : > { %v4830_v1 = vadd.f32 %v958_v47, %v722_v50  ;;  %1786 = vmatmul.bf16.gmra.mxu2 %v1651_v49  ;;  %v1531_v30 = vpop.f32.mrf.mxu0  ;;  %v1921_v47 = vunpack.c.l.b16 %v1856_v34  ;;  %v1657_v50 = vsel %vm1639_vm3, %v1652_v20, %v1656_v5  ;;  %v2471_v34 = vld [vmem:[%s4037_s29 + $0x10] sm:$0x88] }
 0x11c   : > { %1820 = vmatmul.bf16.gmra.mxu3 %v1653_v62  ;;  %v1565_v12 = vpop.f32.mrf.mxu1  ;;  %v1955_v62 = vrot.slane %v1934_v56, 2  ;;  %v2506_v20 = vunpack.c.l.b16 %v2471_v34 }
 0x11d   : > { %v1566_v19 = vadd.f32 %v1565_v12, %v1531_v30  ;;  %v1933_v51 = vpack.c.b16 %v1921_v47, %v1921_v47 }
 0x11e   : > { %v690_v17 = vpop.f32.mrf.mxu2  ;;  %2086 = vmatmul.bf16.gmra.mxu0 %v1950_v10 }
 0x11f   : > { %v724_v4 = vpop.f32.mrf.mxu3  ;;  %2120 = vmatmul.bf16.gmra.mxu1 %v1952_v35  ;;  %v691_v39 = vadd.f32 %v690_v17, %v4593_v18  ;;  %v1953_v21 = vrot.slane %v1933_v51, 2 }
 0x121   : > { %v725_v61 = vadd.f32 %v724_v4, %v691_v39  ;;  %v1954_v10 = vsel %vm1639_vm3, %v1949_v16, %v1953_v21  ;;  %v2507_v39 = vunpack.c.h.b16 %v2471_v34 }
 0x123   : > { %v4848_v18 = vadd.f32 %v961_v60, %v725_v61  ;;  %v1533_v43 = vpop.f32.mrf.mxu0  ;;  %v3905_v60 = vld [vmem:[%s5029_s1 + $0x400] sm:$0xff]  ;;  %v2508_v61 = vpack.c.b16 %v1903_v13, %v2506_v20  ;;  %v2509_v16 = vpack.c.b16 %v1904_v28, %v2507_v39  ;;  %v2515_v13 = vrot.slane %v4663_v55, 3 }
 0x124   : > { %v1567_v48 = vpop.f32.mrf.mxu1  ;;  %2646 = vmatpush.bf16.msra.mxu0 %v3905_v60  ;;  %v1661_v28 = vsel %vm1639_vm3, %v1656_v5, %v1660_v32 }
 0x125   : > { %v4852_v3 = vadd.f32 %v1567_v48, %v1533_v43  ;;  %v2511_v51 = vrot.slane %v2508_v61, 3  ;;  %v2514_v56 = vrot.slane %v2509_v16, 3 }
 0x126   : > { %v692_v24 = vpop.f32.mrf.mxu2 }
 0x127   : > { %v726_v25 = vpop.f32.mrf.mxu3  ;;  %v693_v49 = vadd.f32 %v692_v24, %v4620_v57  ;;  %v1956_v57 = vsel %vm1639_vm3, %v1951_v11, %v1955_v62  ;;  %v2190_v24 = vshrl.u32 %v4657_v54, 16  ;;  %v2516_v5 = vsel %vm2510_vm4, %v2514_v56, %v2515_v13 }
 0x128   : > { %v2207_v62 = vshrl.u32 %v4663_v55, 16 }
 0x129   : > { %v727_v27 = vadd.f32 %v726_v25, %v693_v49  ;;  %v2193_v25 = vshll.u32 %v4657_v54, 16  ;;  %v2199_v49 = vshrl.u32 %v4661_v52, 16 }
 0x12b   : > { %v4863_v53 = vadd.f32 %v963_v37, %v727_v27  ;;  %1791 = vmatmul.bf16.gmra.mxu2 %v1655_v36  ;;  %v1536_v30 = vpop.f32.mrf.mxu0  ;;  %v2184_v27 = vrot.slane %v2182_v7, 2  ;;  %v2201_v34 = vrot.slane %v2199_v49, 2 }
 0x12c   : > { %1825 = vmatmul.bf16.gmra.mxu3 %v1657_v50  ;;  %v1570_v12 = vpop.f32.mrf.mxu1 }
 0x12d   : > { %v1571_v35 = vadd.f32 %v1570_v12, %v1536_v30 }
 0x12e   : > { %v1201_v17 = vpop.f32.mrf.mxu2  ;;  %2091 = vmatmul.bf16.gmra.mxu0 %v1954_v10  ;;  %v2192_v10 = vrot.slane %v2190_v24, 2  ;;  %v2219_v24 = vshll.u32 %v4716_v8, 16 }
 0x12f   : > { %v1235_v4 = vpop.f32.mrf.mxu3  ;;  %2125 = vmatmul.bf16.gmra.mxu1 %v1956_v57  ;;  %v2195_v57 = vrot.slane %v2193_v25, 3  ;;  %v2225_v25 = vshrl.u32 %v4718_v38, 16 }
 0x130   : > { %v1236_v26 = vadd.f32 %v1235_v4, %v1201_v17 }
 0x132   : > { %v1260_v37 = vadd.f32 %v1236_v26, %v4655_v45  ;;  %v2512_v45 = vrot.slane %v4657_v54, 3  ;;  %v2210_v54 = vshll.u32 %v4663_v55, 16  ;;  %v2196_v55 = vor.u32 %v2195_v57, %v2192_v10 }
 0x133   : > { %v1538_v47 = vpop.f32.mrf.mxu0  ;;  %v2523_v10 = vrot.slane %v4762_v46, 3 }
 0x134   : > { %v1572_v14 = vpop.f32.mrf.mxu1  ;;  %v4873_v11 = vadd.f32 %v1566_v19, %v1260_v37  ;;  %v2185_v19 = vshll.u32 %v4652_v2, 16  ;;  %v2513_v59 = vsel %vm2510_vm4, %v2511_v51, %v2512_v45  ;;  %v2202_v2 = vshll.u32 %v4661_v52, 16 }
 0x135   : > { %v4877_v44 = vadd.f32 %v1572_v14, %v1538_v47  ;;  %v2212_v4 = vrot.slane %v2210_v54, 3 }
 0x136   : > { %v1203_v40 = vpop.f32.mrf.mxu2  ;;  %v2187_v12 = vrot.slane %v2185_v19, 3  ;;  %v2204_v17 = vrot.slane %v2202_v2, 3 }
 0x137   : > { %v1237_v43 = vpop.f32.mrf.mxu3 }
 0x138   : > { %v1238_v48 = vadd.f32 %v1237_v43, %v1203_v40  ;;  %v2188_v52 = vor.u32 %v2187_v12, %v2184_v27  ;;  %v2205_v47 = vor.u32 %v2204_v17, %v2201_v34  ;;  %v2517_v40 = vrot.slane %v4716_v8, 3 }
 0x139   : > { %v2519_v43 = vrot.slane %v4718_v38, 3  ;;  %v2521_v12 = vrot.slane %v4760_v6, 3 }
 0x13a   : > { %v1261_v42 = vadd.f32 %v1238_v48, %v4692_v23  ;;  %v2197_v48 = vsel %vm2180_vm5, %v2188_v52, %v2196_v55 }
 0x13b   : > { %1796 = vmatmul.bf16.gmra.mxu2 %v1659_v15  ;;  %v1541_v60 = vpop.f32.mrf.mxu0  ;;  %v2216_v15 = vshrl.u32 %v4716_v8, 16 }
 0x13c   : > { %1830 = vmatmul.bf16.gmra.mxu3 %v1661_v28  ;;  %v1575_v9 = vpop.f32.mrf.mxu1  ;;  %v4892_v23 = vadd.f32 %v4852_v3, %v1261_v42  ;;  %v2209_v3 = vrot.slane %v2207_v62, 2  ;;  %v2518_v28 = vsel %vm2510_vm4, %v2512_v45, %v2517_v40  ;;  %v2520_v42 = vsel %vm2510_vm4, %v2515_v13, %v2519_v43 }
 0x13d   : > { %v1576_v21 = vadd.f32 %v1575_v9, %v1541_v60  ;;  %v2227_v45 = vrot.slane %v2225_v25, 2 }
 0x13e   : > { %v1206_v36 = vpop.f32.mrf.mxu2  ;;  %2647 = vmatmul.bf16.vlgmr.msra.gmra.mxu0 %v2513_v59  ;;  %v2213_v14 = vor.u32 %v2212_v4, %v2209_v3  ;;  %v2218_v59 = vrot.slane %v2216_v15, 2  ;;  %v2234_v3 = vshrl.u32 %v4760_v6, 16  ;;  %v2522_v4 = vsel %vm2510_vm4, %v2517_v40, %v2521_v12 }
 0x13f   : > { %v1240_v50 = vpop.f32.mrf.mxu3  ;;  %2681 = vmatmul.bf16.vlgmr.msra.gmra.mxu1 %v2516_v5  ;;  %v2221_v5 = vrot.slane %v2219_v24, 3  ;;  %v2527_v24 = vrot.slane %v4815_v29, 3 }
 0x140   : > { %v1241_v30 = vadd.f32 %v1240_v50, %v1206_v36 }
 0x141   : > { %v2222_v8 = vor.u32 %v2221_v5, %v2218_v59  ;;  %v2528_v59 = vsel %vm2510_vm4, %v2523_v10, %v2527_v24 }
 0x142   : > { %v1262_v26 = vadd.f32 %v1241_v30, %v4714_v0  ;;  %v2214_v0 = vsel %vm2180_vm5, %v2205_v47, %v2213_v14  ;;  %v2246_v47 = vshll.u32 %v4762_v46, 16 }
 0x143   : > { %v1543_v20 = vpop.f32.mrf.mxu0  ;;  %v2223_v57 = vsel %vm2180_vm5, %v2196_v55, %v2222_v8  ;;  %v2243_v55 = vshrl.u32 %v4762_v46, 16 }
 0x144   : > { %v1577_v39 = vpop.f32.mrf.mxu1  ;;  %v4898_v37 = vadd.f32 %v1571_v35, %v1262_v26  ;;  %v2524_v26 = vsel %vm2510_vm4, %v2519_v43, %v2523_v10  ;;  %v2248_v40 = vrot.slane %v2246_v47, 3 }
 0x145   : > { %v1578_v61 = vadd.f32 %v1577_v39, %v1543_v20  ;;  %v2237_v39 = vshll.u32 %v4760_v6, 16 }
 0x146   : > { %v1208_v16 = vpop.f32.mrf.mxu2 }
 0x147   : > { %v1242_v31 = vpop.f32.mrf.mxu3 }
 0x148   : > { %v1243_v32 = vadd.f32 %v1242_v31, %v1208_v16  ;;  %v2236_v31 = vrot.slane %v2234_v3, 2 }
 0x14a   : > { %v1263_v51 = vadd.f32 %v1243_v32, %v4734_v41  ;;  %v2228_v41 = vshll.u32 %v4718_v38, 16  ;;  %v2239_v32 = vrot.slane %v2237_v39, 3 }
 0x14b   : > { %2401 = vmatmul.bf16.vlgmr.msra.gmra.mxu2 %v2197_v48  ;;  %v1546_v35 = vpop.f32.mrf.mxu0  ;;  %v2245_v48 = vrot.slane %v2243_v55, 2 }
 0x14c   : > { %2435 = vmatmul.bf16.vlgmr.msra.gmra.mxu3 %v2214_v0  ;;  %v1580_v56 = vpop.f32.mrf.mxu1  ;;  %v4909_v7 = vadd.f32 %v4877_v44, %v1263_v51  ;;  %v2230_v2 = vrot.slane %v2228_v41, 3  ;;  %v2240_v6 = vor.u32 %v2239_v32, %v2236_v31 }
 0x14d   : > { %v1581_v19 = vadd.f32 %v1580_v56, %v1546_v35  ;;  %v2249_v35 = vor.u32 %v2248_v40, %v2245_v48 }
 0x14e   : > { %v1211_v60 = vpop.f32.mrf.mxu2  ;;  %2652 = vmatmul.bf16.gmra.mxu0 %v2518_v28  ;;  %v2231_v36 = vor.u32 %v2230_v2, %v2227_v45  ;;  %v2241_v25 = vsel %vm2180_vm5, %v2222_v8, %v2240_v6  ;;  %v2255_v2 = vshll.u32 %v4813_v58, 16  ;;  %v2141_v8 = vld [vmem:[%s4037_s29 + $0x60] sm:$0x77] }
 0x14f   : > { %v1245_v9 = vpop.f32.mrf.mxu3  ;;  %2686 = vmatmul.bf16.gmra.mxu1 %v2520_v42  ;;  %v2525_v42 = vrot.slane %v4813_v58, 3  ;;  %v2176_v10 = vunpack.c.l.b16 %v2141_v8 }
 0x150   : > { %v1246_v49 = vadd.f32 %v1245_v9, %v1211_v60  ;;  %v2232_v34 = vsel %vm2180_vm5, %v2213_v14, %v2231_v36  ;;  %v2250_v41 = vsel %vm2180_vm5, %v2231_v36, %v2249_v35  ;;  %v2252_v9 = vshrl.u32 %v4813_v58, 16 }
 0x151   : > { %v2178_v3 = vpack.c.b16 %v2176_v10, %v2176_v10 }
 0x152   : > { %v1264_v13 = vadd.f32 %v1246_v49, %v4758_v22  ;;  %v2526_v49 = vsel %vm2510_vm4, %v2521_v12, %v2525_v42 }
 0x153   : > { %v1548_v44 = vpop.f32.mrf.mxu0  ;;  %v2529_v47 = vrot.slane %v2178_v3, 3  ;;  %v2270_v32 = vshrl.u32 %v2178_v3, 16 }
 0x154   : > { %v1582_v62 = vpop.f32.mrf.mxu1  ;;  %v4915_v54 = vadd.f32 %v1576_v21, %v1264_v13  ;;  %v2261_v13 = vshrl.u32 %v4815_v29, 16 }
 0x155   : > { %v1583_v50 = vadd.f32 %v1582_v62, %v1548_v44  ;;  %v2530_v48 = vsel %vm2510_vm4, %v2525_v42, %v2529_v47 }
 0x156   : > { %v1213_v27 = vpop.f32.mrf.mxu2 }
 0x157   : > { %v1247_v38 = vpop.f32.mrf.mxu3 }
 0x158   : > { %v1248_v30 = vadd.f32 %v1247_v38, %v1213_v27  ;;  %v2254_v27 = vrot.slane %v2252_v9, 2  ;;  %v2257_v38 = vrot.slane %v2255_v2, 3 }
 0x15a   : > { %v1265_v22 = vadd.f32 %v1248_v30, %v4783_v33  ;;  %v2263_v30 = vrot.slane %v2261_v13, 2 }
 0x15b   : > { %2406 = vmatmul.bf16.gmra.mxu2 %v2223_v57  ;;  %v1551_v21 = vpop.f32.mrf.mxu0  ;;  %v2177_v57 = vunpack.c.h.b16 %v2141_v8 }
 0x15c   : > { %2440 = vmatmul.bf16.gmra.mxu3 %v2232_v34  ;;  %v1585_v17 = vpop.f32.mrf.mxu1  ;;  %v4925_v52 = vadd.f32 %v1578_v61, %v1265_v22 }
 0x15d   : > { %v1586_v20 = vadd.f32 %v1585_v17, %v1551_v21  ;;  %v2258_v21 = vor.u32 %v2257_v38, %v2254_v27 }
 0x15e   : > { %v1216_v33 = vpop.f32.mrf.mxu2  ;;  %2657 = vmatmul.bf16.gmra.mxu0 %v2522_v4  ;;  %v2179_v4 = vpack.c.b16 %v2177_v57, %v2177_v57 }
 0x15f   : > { %v1250_v14 = vpop.f32.mrf.mxu3  ;;  %2691 = vmatmul.bf16.gmra.mxu1 %v2524_v26 }
 0x160   : > { %v1251_v16 = vadd.f32 %v1250_v14, %v1216_v33  ;;  %v2531_v33 = vrot.slane %v2179_v4, 3  ;;  %v2259_v14 = vsel %vm2180_vm5, %v2240_v6, %v2258_v21 }
 0x162   : > { %v1266_v43 = vadd.f32 %v1251_v16, %v4811_v63  ;;  %v2532_v40 = vsel %vm2510_vm4, %v2527_v24, %v2531_v33 }
 0x163   : > { %v1553_v61 = vpop.f32.mrf.mxu0 }
 0x164   : > { %v1587_v0 = vpop.f32.mrf.mxu1  ;;  %v4931_v51 = vadd.f32 %v1581_v19, %v1266_v43 }
 0x165   : > { %v1588_v56 = vadd.f32 %v1587_v0, %v1553_v61  ;;  %v2273_v0 = vshll.u32 %v2178_v3, 16 }
 0x166   : > { %v1218_v15 = vpop.f32.mrf.mxu2 }
 0x167   : > { %v1252_v46 = vpop.f32.mrf.mxu3 }
 0x168   : > { %v1253_v28 = vadd.f32 %v1252_v46, %v1218_v15  ;;  %v2279_v15 = vshrl.u32 %v2179_v4, 16  ;;  %v2282_v46 = vshll.u32 %v2179_v4, 16 }
 0x16a   : > { %v1267_v63 = vadd.f32 %v1253_v28, %v4830_v1  ;;  %v2264_v1 = vshll.u32 %v4815_v29, 16 }
 0x16b   : > { %2411 = vmatmul.bf16.gmra.mxu2 %v2241_v25  ;;  %v2072_v19 = vpop.f32.mrf.mxu0  ;;  %v2275_v25 = vrot.slane %v2273_v0, 3 }
 0x16c   : > { %2445 = vmatmul.bf16.gmra.mxu3 %v2250_v41  ;;  %v2106_v60 = vpop.f32.mrf.mxu1  ;;  %v4941_v5 = vadd.f32 %v1583_v50, %v1267_v63  ;;  %v2266_v12 = vrot.slane %v2264_v1, 3  ;;  %v2281_v41 = vrot.slane %v2279_v15, 2  ;;  %v2284_v63 = vrot.slane %v2282_v46, 3 }
 0x16d   : > { %v2107_v45 = vadd.f32 %v2106_v60, %v2072_v19 }
 0x16e   : > { %v1221_v44 = vpop.f32.mrf.mxu2  ;;  %2662 = vmatmul.bf16.gmra.mxu0 %v2526_v49  ;;  %v2267_v29 = vor.u32 %v2266_v12, %v2263_v30  ;;  %v2285_v9 = vor.u32 %v2284_v63, %v2281_v41 }
 0x16f   : > { %v1255_v62 = vpop.f32.mrf.mxu3  ;;  %2696 = vmatmul.bf16.gmra.mxu1 %v2528_v59 }
 0x170   : > { %v1256_v36 = vadd.f32 %v1255_v62, %v1221_v44  ;;  %v2286_v44 = vsel %vm2180_vm5, %v2267_v29, %v2285_v9 }
 0x172   : > { %v1268_v50 = vadd.f32 %v1256_v36, %v4848_v18  ;;  %v2268_v18 = vsel %vm2180_vm5, %v2249_v35, %v2267_v29  ;;  %v2272_v35 = vrot.slane %v2270_v32, 2 }
 0x173   : > { %v2074_v34 = vpop.f32.mrf.mxu0 }
 0x174   : > { %v2108_v58 = vpop.f32.mrf.mxu1  ;;  %v4948_v22 = vadd.f32 %v1586_v20, %v1268_v50 }
 0x175   : > { %v2109_v17 = vadd.f32 %v2108_v58, %v2074_v34 }
 0x176   : > { %v1223_v26 = vpop.f32.mrf.mxu2 }
 0x177   : > { %v1257_v39 = vpop.f32.mrf.mxu3 }
 0x178   : > { %v1258_v55 = vadd.f32 %v1257_v39, %v1223_v26 }
 0x17a   : > { %v1269_v16 = vadd.f32 %v1258_v55, %v4863_v53 }
 0x17b   : > { %2416 = vmatmul.bf16.gmra.mxu2 %v2259_v14  ;;  %v2077_v20 = vpop.f32.mrf.mxu0 }
 0x17c   : > { %2450 = vmatmul.bf16.gmra.mxu3 %v2268_v18  ;;  %v2111_v31 = vpop.f32.mrf.mxu1  ;;  %v4955_v43 = vadd.f32 %v1588_v56, %v1269_v16  ;;  %v2276_v56 = vor.u32 %v2275_v25, %v2272_v35 }
 0x17d   : > { %v2112_v61 = vadd.f32 %v2111_v31, %v2077_v20 }
 0x17e   : > { %v1777_v6 = vpop.f32.mrf.mxu2  ;;  %2667 = vmatmul.bf16.gmra.mxu0 %v2530_v48  ;;  %v2277_v1 = vsel %vm2180_vm5, %v2258_v21, %v2276_v56 }
 0x17f   : > { %v1811_v28 = vpop.f32.mrf.mxu3  ;;  %2701 = vmatmul.bf16.gmra.mxu1 %v2532_v40 }
 0x180   : > { %v1812_v53 = vadd.f32 %v1811_v28, %v1777_v6 }
 0x182   : > { %v1836_v19 = vadd.f32 %v1812_v53, %v4873_v11 }
 0x183   : > { %v2079_v42 = vpop.f32.mrf.mxu0 }
 0x184   : > { %v2113_v60 = vpop.f32.mrf.mxu1  ;;  %v4958_v24 = vadd.f32 %v2107_v45, %v1836_v19 }
 0x185   : > { %v2114_v49 = vadd.f32 %v2113_v60, %v2079_v42 }
 0x186   : > { %v1779_v59 = vpop.f32.mrf.mxu2 }
 0x187   : > { %v1813_v2 = vpop.f32.mrf.mxu3 }
 0x188   : > { %v1814_v13 = vadd.f32 %v1813_v2, %v1779_v59 }
 0x18a   : > { %v1837_v62 = vadd.f32 %v1814_v13, %v4892_v23 }
 0x18b   : > { %2421 = vmatmul.bf16.gmra.mxu2 %v2277_v1  ;;  %v2082_v8 = vpop.f32.mrf.mxu0 }
 0x18c   : > { %2455 = vmatmul.bf16.gmra.mxu3 %v2286_v44  ;;  %v2116_v11 = vpop.f32.mrf.mxu1  ;;  %v4963_v36 = vadd.f32 %v2109_v17, %v1837_v62 }
 0x18d   : > { %v2117_v45 = vadd.f32 %v2116_v11, %v2082_v8 }
 0x18e   : > { %v1782_v27 = vpop.f32.mrf.mxu2 }
 0x18f   : > { %v1816_v38 = vpop.f32.mrf.mxu3 }
 0x190   : > { %v1817_v30 = vadd.f32 %v1816_v38, %v1782_v27 }
 0x192   : > { %v1838_v12 = vadd.f32 %v1817_v30, %v4898_v37 }
 0x193   : > { %v2084_v50 = vpop.f32.mrf.mxu0 }
 0x194   : > { %v2118_v10 = vpop.f32.mrf.mxu1  ;;  %v4966_v57 = vadd.f32 %v2112_v61, %v1838_v12 }
 0x195   : > { %v2119_v34 = vadd.f32 %v2118_v10, %v2084_v50 }
 0x196   : > { %v1784_v58 = vpop.f32.mrf.mxu2 }
 0x197   : > { %v1818_v21 = vpop.f32.mrf.mxu3 }
 0x198   : > { %v1819_v23 = vadd.f32 %v1818_v21, %v1784_v58  ;;  %v4993_v21 = vld [vmem:[%s5030_s2] ss:$0 sm:$0xff] }
 0x19a   : > { %v1839_v29 = vadd.f32 %v1819_v23, %v4909_v7 }
 0x19b   : > { %v2087_v3 = vpop.f32.mrf.mxu0 }
 0x19c   : > { %v2121_v4 = vpop.f32.mrf.mxu1  ;;  %v4969_v17 = vadd.f32 %v2114_v49, %v1839_v29 }
 0x19d   : > { %v2122_v26 = vadd.f32 %v2121_v4, %v2087_v3 }
 0x19e   : > { %v1787_v39 = vpop.f32.mrf.mxu2 }
 0x19f   : > { %v1821_v55 = vpop.f32.mrf.mxu3 }
 0x1a0   : > { %v1822_v47 = vadd.f32 %v1821_v55, %v1787_v39 }
 0x1a2   : > { %v1840_v37 = vadd.f32 %v1822_v47, %v4915_v54 }
 0x1a3   : > { %v2089_v33 = vpop.f32.mrf.mxu0 }
 0x1a4   : > { %v2123_v14 = vpop.f32.mrf.mxu1  ;;  %v4972_v18 = vadd.f32 %v2117_v45, %v1840_v37 }
 0x1a5   : > { %v2124_v16 = vadd.f32 %v2123_v14, %v2089_v33 }
 0x1a6   : > { %v1789_v20 = vpop.f32.mrf.mxu2 }
 0x1a7   : > { %v1823_v31 = vpop.f32.mrf.mxu3 }
 0x1a8   : > { %v1824_v32 = vadd.f32 %v1823_v31, %v1789_v20 }
 0x1aa   : > { %v1841_v7 = vadd.f32 %v1824_v32, %v4925_v52 }
 0x1ab   : > { %v2092_v48 = vpop.f32.mrf.mxu0 }
 0x1ac   : > { %v2126_v40 = vpop.f32.mrf.mxu1  ;;  %v4975_v61 = vadd.f32 %v2119_v34, %v1841_v7 }
 0x1ad   : > { %v2127_v0 = vadd.f32 %v2126_v40, %v2092_v48 }
 0x1ae   : > { %v1792_v15 = vpop.f32.mrf.mxu2 }
 0x1af   : > { %v1826_v46 = vpop.f32.mrf.mxu3 }
 0x1b0   : > { %v1827_v6 = vadd.f32 %v1826_v46, %v1792_v15 }
 0x1b2   : > { %v1842_v54 = vadd.f32 %v1827_v6, %v4931_v51 }
 0x1b3   : > { %v2094_v28 = vpop.f32.mrf.mxu0 }
 0x1b4   : > { %v2128_v53 = vpop.f32.mrf.mxu1  ;;  %v4978_v35 = vadd.f32 %v2122_v26, %v1842_v54 }
 0x1b5   : > { %v2129_v25 = vadd.f32 %v2128_v53, %v2094_v28 }
 0x1b6   : > { %v1794_v41 = vpop.f32.mrf.mxu2 }
 0x1b7   : > { %v1828_v63 = vpop.f32.mrf.mxu3 }
 0x1b8   : > { %v1829_v19 = vadd.f32 %v1828_v63, %v1794_v41 }
 0x1ba   : > { %v1843_v52 = vadd.f32 %v1829_v19, %v4941_v5 }
 0x1bb   : > { %v2648_v42 = vpop.f32.mrf.mxu0 }
 0x1bc   : > { %v2682_v60 = vpop.f32.mrf.mxu1  ;;  %v4981_v56 = vadd.f32 %v2124_v16, %v1843_v52 }
 0x1bd   : > { %v2683_v50 = vadd.f32 %v2682_v60, %v2648_v42 }
 0x1be   : > { %v1797_v9 = vpop.f32.mrf.mxu2 }
 0x1bf   : > { %v1831_v49 = vpop.f32.mrf.mxu3 }
 0x1c0   : > { %v1832_v59 = vadd.f32 %v1831_v49, %v1797_v9 }
 0x1c2   : > { %v1844_v2 = vadd.f32 %v1832_v59, %v4948_v22 }
 0x1c3   : > { %v2650_v13 = vpop.f32.mrf.mxu0 }
 0x1c4   : > { %v4984_v51 = vadd.f32 %v2127_v0, %v1844_v2  ;;  %v2684_v1 = vpop.f32.mrf.mxu1 }
 0x1c5   : > { %v2685_v23 = vadd.f32 %v2684_v1, %v2650_v13 }
 0x1c6   : > { %v1799_v44 = vpop.f32.mrf.mxu2 }
 0x1c7   : > { %v1833_v62 = vpop.f32.mrf.mxu3 }
 0x1c8   : > { %v1834_v8 = vadd.f32 %v1833_v62, %v1799_v44 }
 0x1ca   : > { %v1845_v11 = vadd.f32 %v1834_v8, %v4955_v43 }
 0x1cb   : > { %v2653_v30 = vpop.f32.mrf.mxu0 }
 0x1cc   : > { %v4987_v45 = vadd.f32 %v2129_v25, %v1845_v11  ;;  %v2687_v12 = vpop.f32.mrf.mxu1 }
 0x1cd   : > { %v2688_v16 = vadd.f32 %v2687_v12, %v2653_v30 }
 0x1ce   : > { %v2402_v5 = vpop.f32.mrf.mxu2 }
 0x1cf   : > { %v2436_v27 = vpop.f32.mrf.mxu3 }
 0x1d0   : > { %v2437_v38 = vadd.f32 %v2436_v27, %v2402_v5 }
 0x1d2   : > { %v2461_v22 = vadd.f32 %v2437_v38, %v4958_v24 }
 0x1d3   : > { %v2655_v3 = vpop.f32.mrf.mxu0 }
 0x1d4   : > { %v2707_v58 = vadd.f32 %v2683_v50, %v2461_v22  ;;  %v2689_v4 = vpop.f32.mrf.mxu1 }
 0x1d5   : > { %v2690_v15 = vadd.f32 %v2689_v4, %v2655_v3 }
 0x1d6   : > { %v2404_v10 = vpop.f32.mrf.mxu2  ;;  %v2721_v26 = vadd.f32 %v4993_v21, %v2707_v58 }
 0x1d7   : > { %v2438_v34 = vpop.f32.mrf.mxu3 }
 0x1d8   : > { %v2439_v43 = vadd.f32 %v2438_v34, %v2404_v10  ;;  %v2731_v37 = vmax.f32 %v2721_v26, 0.0 }
 0x1da   : > { %v2462_v29 = vadd.f32 %v2439_v43, %v4963_v36 }
 0x1db   : > { %v2658_v31 = vpop.f32.mrf.mxu0 }
 0x1dc   : > { %v2708_v39 = vadd.f32 %v2685_v23, %v2462_v29  ;;  %v2692_v32 = vpop.f32.mrf.mxu1 }
 0x1dd   : > { %v2693_v60 = vadd.f32 %v2692_v32, %v2658_v31 }
 0x1de   : > { %v2722_v24 = vadd.f32 %v4993_v21, %v2708_v39  ;;  %v2407_v55 = vpop.f32.mrf.mxu2 }
 0x1df   : > { %v2441_v47 = vpop.f32.mrf.mxu3 }
 0x1e0   : > { %v2732_v33 = vmax.f32 %v2722_v24, 0.0  ;;  %v2442_v14 = vadd.f32 %v2441_v47, %v2407_v55 }
 0x1e2   : > { %v3924_v36 = vpack.c.bf16 %v2732_v33, %v2731_v37  ;;  %v2463_v20 = vadd.f32 %v2442_v14, %v4966_v57 }
 0x1e3   : > { %v2660_v53 = vpop.f32.mrf.mxu0 }
 0x1e4   : > { %3925 = vst [vmem:[%s5002_s21] sm:$0xff] %v3924_v36   ;;  %v2709_v40 = vadd.f32 %v2688_v16, %v2463_v20  ;;  %v2694_v25 = vpop.f32.mrf.mxu1 }
 0x1e5   : > { %v2695_v44 = vadd.f32 %v2694_v25, %v2660_v53 }
 0x1e6   : > { %v2409_v7 = vpop.f32.mrf.mxu2  ;;  %v2723_v6 = vadd.f32 %v4993_v21, %v2709_v40 }
 0x1e7   : > { %v2443_v48 = vpop.f32.mrf.mxu3 }
 0x1e8   : > { %v2444_v0 = vadd.f32 %v2443_v48, %v2409_v7  ;;  %v2733_v57 = vmax.f32 %v2723_v6, 0.0 }
 0x1ea   : > { %v2464_v46 = vadd.f32 %v2444_v0, %v4969_v17 }
 0x1eb   : > { %v2663_v13 = vpop.f32.mrf.mxu0 }
 0x1ec   : > { %v2710_v54 = vadd.f32 %v2690_v15, %v2464_v46  ;;  %v2697_v1 = vpop.f32.mrf.mxu1 }
 0x1ed   : > { %v2698_v34 = vadd.f32 %v2697_v1, %v2663_v13 }
 0x1ee   : > { %v2724_v28 = vadd.f32 %v4993_v21, %v2710_v54  ;;  %v2412_v41 = vpop.f32.mrf.mxu2 }
 0x1ef   : > { %v2446_v63 = vpop.f32.mrf.mxu3 }
 0x1f0   : > { %v2734_v19 = vmax.f32 %v2724_v28, 0.0  ;;  %v2447_v52 = vadd.f32 %v2446_v63, %v2412_v41 }
 0x1f2   : > { %v3929_v42 = vpack.c.bf16 %v2734_v19, %v2733_v57  ;;  %v2465_v9 = vadd.f32 %v2447_v52, %v4972_v18 }
 0x1f3   : > { %v2665_v22 = vpop.f32.mrf.mxu0 }
 0x1f4   : > { %3946 = vst [vmem:[%s5002_s21 + $0x8] sm:$0xff] %v3929_v42   ;;  %v2711_v17 = vadd.f32 %v2693_v60, %v2465_v9  ;;  %v2699_v10 = vpop.f32.mrf.mxu1 }
 0x1f5   : > { %v2700_v3 = vadd.f32 %v2699_v10, %v2665_v22 }
 0x1f6   : > { %v2414_v49 = vpop.f32.mrf.mxu2  ;;  %v2725_v8 = vadd.f32 %v4993_v21, %v2711_v17 }
 0x1f7   : > { %v2448_v59 = vpop.f32.mrf.mxu3 }
 0x1f8   : > { %v2449_v2 = vadd.f32 %v2448_v59, %v2414_v49  ;;  %v2735_v30 = vmax.f32 %v2725_v8, 0.0 }
 0x1fa   : > { %v2466_v62 = vadd.f32 %v2449_v2, %v4975_v61 }
 0x1fb   : > { %v2668_v24 = vpop.f32.mrf.mxu0 }
 0x1fc   : > { %v2712_v11 = vadd.f32 %v2695_v44, %v2466_v62  ;;  %v2702_v55 = vpop.f32.mrf.mxu1 }
 0x1fe   : > { %v2726_v5 = vadd.f32 %v4993_v21, %v2712_v11  ;;  %v2417_v27 = vpop.f32.mrf.mxu2 }
 0x1ff   : > { %v2451_v38 = vpop.f32.mrf.mxu3 }
 0x200   : > { %v2736_v12 = vmax.f32 %v2726_v5, 0.0  ;;  %v2452_v18 = vadd.f32 %v2451_v38, %v2417_v27 }
 0x202   : > { %v3934_v50 = vpack.c.bf16 %v2736_v12, %v2735_v30  ;;  %v2467_v58 = vadd.f32 %v2452_v18, %v4978_v35  ;;  %v2703_v35 = vadd.f32 %v2702_v55, %v2668_v24 }
 0x203   : > { %v2670_v7 = vpop.f32.mrf.mxu0 }
 0x204   : > { %3947 = vst [vmem:[%s5002_s21 + $0x10] sm:$0xff] %v3934_v50   ;;  %v2713_v61 = vadd.f32 %v2698_v34, %v2467_v58  ;;  %v2704_v48 = vpop.f32.mrf.mxu1 }
 0x205   : > { %v2705_v46 = vadd.f32 %v2704_v48, %v2670_v7 }
 0x206   : > { %v2419_v43 = vpop.f32.mrf.mxu2  ;;  %v2727_v26 = vadd.f32 %v4993_v21, %v2713_v61 }
 0x207   : > { %v2453_v23 = vpop.f32.mrf.mxu3 }
 0x208   : > { %v2454_v29 = vadd.f32 %v2453_v23, %v2419_v43  ;;  %v2737_v14 = vmax.f32 %v2727_v26, 0.0 }
 0x20a   : > { %v2468_v4 = vadd.f32 %v2454_v29, %v4981_v56 }
 0x20c   : > { %v2714_v39 = vadd.f32 %v2700_v3, %v2468_v4 }
 0x20e   : > { %v2728_v47 = vadd.f32 %v4993_v21, %v2714_v39  ;;  %v2422_v37 = vpop.f32.mrf.mxu2 }
 0x20f   : > { %v2456_v33 = vpop.f32.mrf.mxu3 }
 0x210   : > { %v2738_v36 = vmax.f32 %v2728_v47, 0.0  ;;  %v2457_v16 = vadd.f32 %v2456_v33, %v2422_v37 }
 0x212   : > { %v3939_v20 = vpack.c.bf16 %v2738_v36, %v2737_v14  ;;  %v2469_v31 = vadd.f32 %v2457_v16, %v4984_v51 }
 0x214   : > { %3948 = vst [vmem:[%s5002_s21 + $0x18] sm:$0xff] %v3939_v20   ;;  %v2715_v32 = vadd.f32 %v2703_v35, %v2469_v31 }
 0x216   : > { %v2729_v56 = vadd.f32 %v4993_v21, %v2715_v32  ;;  %v2424_v40 = vpop.f32.mrf.mxu2 }
 0x217   : > { %v2458_v0 = vpop.f32.mrf.mxu3 }
 0x218   : > { %v2459_v15 = vadd.f32 %v2458_v0, %v2424_v40  ;;  %v2739_v53 = vmax.f32 %v2729_v56, 0.0 }
 0x21a   : > { %v2470_v6 = vadd.f32 %v2459_v15, %v4987_v45 }
 0x21c   : > { %v2716_v54 = vadd.f32 %v2705_v46, %v2470_v6 }
 0x21e   : > { %v2730_v28 = vadd.f32 %v4993_v21, %v2716_v54 }
 0x220   : > { %v2740_v25 = vmax.f32 %v2730_v28, 0.0 }
 0x222   : > { %v3944_v41 = vpack.c.bf16 %v2740_v25, %v2739_v53 }
 0x224   : > { %3949 = vst [vmem:[%s5002_s21 + $0x20] sm:$0xff] %v3944_v41  }
 0x225 PF: > { %s13_s12 = sadd.s32 1, %s3983_s12  }
 0x226   : > { %p10_p4 = scmp.ge.s32.totalorder %s13_s12, 4  }
 0x228   :  { %12 = sbr.rel (!%p10_p4) target bundleno = 1 (0x1), region = 70 }

// kernel: deeplab_forward.16
= control target key start
LH: loop header
LB: loop body
LE: loop exit
PB: predicated region body
PF: predicated region fallthrough
CT: control target
= control target key end

     0   :  { %s2271_s12 = smov 0   ;;  %s2770_s0 = inlined_call_operand.vmem [shape: bf16[2,1,102,128], index: 0, kind: input, shape index: {}]   ;;  %s2771_s1 = inlined_call_operand.vmem [shape: bf16[9,128,128], index: 1, kind: input, shape index: {}]   ;;  %s2772_s2 = inlined_call_operand.vmem [shape: f32[1,128], index: 2, kind: input, shape index: {}]   ;;  %s2773_s3 = inlined_call_operand.vmem [shape: bf16[2,80,128], index: 3, kind: output, shape index: {}]  }
   0x1 LB: > { %s1623_s13 = sadd.s32 4294967295, %s2249_s12   ;;  %p1627_p0 = scmp.ge.s32.totalorder %s2249_s12, 1  ;;  %s2249_s12 = sphi %s2271_s12, %s13_s12  }
   0x2   : > { %p137_p1 = scmp.lt.s32.totalorder %s2249_s12, 3 }
   0x4   : > { %p138_p2 = pnand %p1627_p0, %p137_p1 }
   0x5   : > { %p161_p3 = scmp.lt.s32.totalorder (!%p138_p2), %s1623_s13, 1 }
   0x6   : > { %141 = sbr.rel (%p138_p2) target bundleno = 375 (0x177), region = 32 }
   0xb   : > { %v2115_v0 = vld [vmem:[%s2771_s1 + $0x78] sm:$0xff]  ;;  %v2114_v1 = vld [vmem:[%s2771_s1 + $0x70] sm:$0xff]  ;;  %s2775_s13 = smov (!%p161_p3, %s1623_s13), 1  ;;  %v2113_v4 = vld [vmem:[%s2771_s1 + $0x68] sm:$0xff]  ;;  %vm243_vm0 = vsmask.f32 7424 }
   0xc   : > { %341 = vmatpush.bf16.msra.mxu0 %v2115_v0  ;;  %2216 = vmatpush.bf16.msra.mxu1 %v2115_v0  ;;  %v2135_v2 = vld [vmem:[%s2771_s1 + $0xf8] sm:$0xff]  ;;  %v2134_v3 = vld [vmem:[%s2771_s1 + $0xf0] sm:$0xff]  ;;  %s2232_s24 = smul.u32 52, %s2775_s13  ;;  %v2133_v5 = vld [vmem:[%s2771_s1 + $0xe8] sm:$0xff]  ;;  %vm483_vm1 = vcmask 1046528   ;;  %vm949_vm4 = vcmask 1045504  }
   0xd   : > { %2217 = vmatpush.bf16.msra.mxu2 %v2115_v0  ;;  %712 = vmatpush.bf16.msra.mxu3 %v2135_v2  ;;  %v2112_v6 = vld [vmem:[%s2771_s1 + $0x60] sm:$0xff]  ;;  %v2111_v9 = vld [vmem:[%s2771_s1 + $0x58] sm:$0xff]  ;;  %v2110_v17 = vld [vmem:[%s2771_s1 + $0x50] sm:$0xff]  ;;  %vm777_vm2 = vsmask.f32 6400  ;;  %vm1415_vm5 = vcmask 1044480  }
   0xe   : > { %s2306_s4 = scalar_lea.vmem %s2770_s0, %s2232_s24  ;;  %v2132_v7 = vld [vmem:[%s2771_s1 + $0xe0] sm:$0xff]  ;;  %v2131_v14 = vld [vmem:[%s2771_s1 + $0xd8] sm:$0xff]  ;;  %v2130_v24 = vld [vmem:[%s2771_s1 + $0xd0] sm:$0xff]  ;;  %vm1243_vm3 = vsmask.f32 5376  ;;  %s2233_s18 = smul.u32 40, %s2775_s13 }
   0xf   : > { %v197_v8 = vld [vmem:[%s2306_s4 + $0x28] sm:$0x1]  ;;  %v2316_v10 = vld [vmem:[%s2306_s4] sm:$0xff]   ;;  %v2319_v11 = vld [vmem:[%s2306_s4 + $0x10] sm:$0xff] }
  0x10   : > { %342 = vmatpush.bf16.msra.mxu0 %v2114_v1  ;;  %2218 = vmatpush.bf16.msra.mxu1 %v2114_v1  ;;  %v2322_v12 = vld [vmem:[%s2306_s4 + $0x20] sm:$0xff]  ;;  %v236_v13 = vunpack.c.l.b16 %v197_v8  ;;  %v2328_v15 = vld [vmem:[%s2306_s4 + $0x8] sm:$0xff]  ;;  %v247_v16 = vshll.u32 %v2316_v10, 16  ;;  %v2335_v18 = vld [vmem:[%s2306_s4 + $0x18] sm:$0xff]  ;;  %v260_v19 = vshll.u32 %v2319_v11, 16  ;;  %v245_v25 = vshrl.u32 %v2316_v10, 16  ;;  %s2745_s21 = scalar_lea.vmem %s2773_s3, %s2233_s18 }
  0x11   : > { %2219 = vmatpush.bf16.msra.mxu2 %v2114_v1  ;;  %713 = vmatpush.bf16.msra.mxu3 %v2134_v3  ;;  %v276_v21 = vshll.u32 %v2322_v12, 16  ;;  %v592_v22 = vld [vmem:[%s2306_s4 + $0x4] sm:$0xe]  ;;  %v2343_v23 = vld [vmem:[%s2306_s4 + $0x8] sm:$0xff]   ;;  %v252_v27 = vshll.u32 %v2328_v15, 16  ;;  %v264_v28 = vshrl.u32 %v2319_v11, 16 }
  0x12   : > { %v2338_v20 = vpack.c.b16 %v236_v13, %v236_v13  ;;  %v249_v26 = vrot.slane %v247_v16, 1  ;;  %v2109_v29 = vld [vmem:[%s2771_s1 + $0x48] sm:$0xff]  ;;  %v2354_v30 = vrot.slane %v260_v19, 1  ;;  %v268_v31 = vshll.u32 %v2335_v18, 16  ;;  %v2108_v39 = vld [vmem:[%s2771_s1 + $0x40] sm:$0xff]  ;;  %v2107_v45 = vld [vmem:[%s2771_s1 + $0x38] sm:$0xff] }
  0x13   : > { %v631_v32 = vunpack.c.l.b16 %v592_v22  ;;  %v632_v33 = vunpack.c.l.b16 %v2343_v23  ;;  %v2358_v34 = vrot.slane %v276_v21, 1  ;;  %v280_v35 = vshrl.u32 %v2322_v12, 16  ;;  %v2129_v37 = vld [vmem:[%s2771_s1 + $0xc8] sm:$0xff]  ;;  %v2123_v48 = vld [vmem:[%s2771_s1 + $0xb8] sm:$0xff]  ;;  %v2128_v52 = vld [vmem:[%s2771_s1 + $0xc0] sm:$0xff] }
  0x14   : > { %343 = vmatpush.bf16.msra.mxu0 %v2113_v4  ;;  %2220 = vmatpush.bf16.msra.mxu1 %v2113_v4  ;;  %v284_v36 = vshll.u32 %v2338_v20, 16  ;;  %v254_v38 = vrot.slane %v252_v27, 1  ;;  %v250_v40 = vor.u32 %v249_v26, %v245_v25  ;;  %v266_v41 = vor.u32 %v264_v28, %v2354_v30  ;;  %v2370_v43 = vld [vmem:[%s2306_s4 + $0xc] sm:$0xff]  ;;  %v2143_v49 = vld [vmem:[%s2771_s1 + $0x138] sm:$0xff]  ;;  %v2104_v3 = vld [vmem:[%s2771_s1 + $0x20] sm:$0xff] }
  0x15   : > { %2221 = vmatpush.bf16.msra.mxu2 %v2113_v4  ;;  %714 = vmatpush.bf16.msra.mxu3 %v2133_v5  ;;  %v270_v42 = vrot.slane %v268_v31, 1  ;;  %v2374_v44 = vpack.c.b16 %v632_v33, %v631_v32  ;;  %v282_v46 = vor.u32 %v280_v35, %v2358_v34  ;;  %v649_v54 = vrot.slane %v2370_v43, 1  ;;  %v2106_v56 = vld [vmem:[%s2771_s1 + $0x30] sm:$0xff]  ;;  %v2171_v57 = vld [vmem:[%s2771_s1 + $0x1f8] sm:$0xff]  ;;  %v2105_v61 = vld [vmem:[%s2771_s1 + $0x28] sm:$0xff] }
  0x16   : > { %v286_v47 = vrot.slane %v284_v36, 1  ;;  %v255_v50 = vsel %vm243_vm0, %v250_v40, %v254_v38  ;;  %v2122_v58 = vld [vmem:[%s2771_s1 + $0xb0] sm:$0xff]  ;;  %v2121_v63 = vld [vmem:[%s2771_s1 + $0xa8] sm:$0xff]  ;;  %v256_v1 = vshrl.u32 %v2328_v15, 16  ;;  %v272_v2 = vshrl.u32 %v2335_v18, 16  ;;  %v2120_v4 = vld [vmem:[%s2771_s1 + $0xa0] sm:$0xff] }
  0x17   : > { %v271_v51 = vsel %vm243_vm0, %v266_v41, %v270_v42  ;;  %v648_v53 = vrot.slane %v2374_v44, 1  ;;  %v2142_v59 = vld [vmem:[%s2771_s1 + $0x130] sm:$0xff]  ;;  %v2141_v0 = vld [vmem:[%s2771_s1 + $0x128] sm:$0xff]  ;;  %v2140_v5 = vld [vmem:[%s2771_s1 + $0x120] sm:$0xff]  ;;  %v779_v27 = vshrl.u32 %v2374_v44, 16  ;;  %v790_v31 = vshll.u32 %v2370_v43, 16 }
  0x18   : > { %344 = vmatpush.bf16.msra.mxu0 %v2112_v6  ;;  %2222 = vmatpush.bf16.msra.mxu1 %v2112_v6  ;;  %v287_v55 = vsel %vm243_vm0, %v282_v46, %v286_v47  ;;  %v2170_v62 = vld [vmem:[%s2771_s1 + $0x1f0] sm:$0xff]  ;;  %v2119_v13 = vld [vmem:[%s2771_s1 + $0x98] sm:$0xff]  ;;  %v2209_v25 = vld [vmem:[%s2306_s4] sm:$0xf0]  ;;  %v485_v46 = vrot.slane %v2328_v15, 1 }
  0x19   : > { %2223 = vmatpush.bf16.msra.mxu2 %v2112_v6  ;;  %715 = vmatpush.bf16.msra.mxu3 %v2132_v7  ;;  %v650_v60 = vsel %vm483_vm1, %v648_v53, %v649_v54  ;;  %v258_v6 = vor.u32 %v256_v1, %v254_v38  ;;  %v274_v7 = vor.u32 %v272_v2, %v270_v42  ;;  %v2431_v8 = vld [vmem:[%s2306_s4 + $0x14] sm:$0xff]  ;;  %v2210_v26 = vld [vmem:[%s2306_s4] sm:$0xe]  ;;  %v2169_v28 = vld [vmem:[%s2771_s1 + $0x1e8] sm:$0xff]  ;;  %v781_v38 = vrot.slane %v779_v27, 1 }
  0x1a   : > { %v651_v19 = vrot.slane %v2431_v8, 1  ;;  %v2102_v21 = vld [vmem:[%s2771_s1 + $0x10] sm:$0xff]  ;;  %v2117_v35 = vld [vmem:[%s2771_s1 + $0x88] sm:$0xff]  ;;  %v792_v41 = vrot.slane %v790_v31, 2  ;;  %v2100_v42 = vld [vmem:[%s2771_s1] sm:$0xff] }
  0x1b   : > { %v263_v16 = vsel %vm243_vm0, %v258_v6, %v2354_v30  ;;  %v2118_v22 = vld [vmem:[%s2771_s1 + $0x90] sm:$0xff]  ;;  %v787_v30 = vshrl.u32 %v2370_v43, 16  ;;  %v2137_v36 = vld [vmem:[%s2771_s1 + $0x108] sm:$0xff]  ;;  %v2136_v47 = vld [vmem:[%s2771_s1 + $0x100] sm:$0xff] }
  0x1c   : > { %345 = vmatpush.bf16.msra.mxu0 %v2111_v9  ;;  %2224 = vmatpush.bf16.msra.mxu1 %v2111_v9  ;;  %v652_v32 = vsel %vm483_vm1, %v649_v54, %v651_v19  ;;  %v2497_v53 = vld [vmem:[%s2306_s4 + $0x1c] sm:$0xff]  ;;  %v2146_v27 = vld [vmem:[%s2771_s1 + $0x150] sm:$0xff] }
  0x1d   : > { %2225 = vmatpush.bf16.msra.mxu2 %v2111_v9  ;;  %716 = vmatpush.bf16.msra.mxu3 %v2131_v14  ;;  %v2103_v9 = vld [vmem:[%s2771_s1 + $0x18] sm:$0xff]  ;;  %v789_v40 = vrot.slane %v787_v30, 1  ;;  %v2148_v6 = vld [vmem:[%s2771_s1 + $0x160] sm:$0xff]  ;;  %v2174_v31 = vld [vmem:[%s2771_s1 + $0x210] sm:$0xff] }
  0x1e   : > { %v2139_v14 = vld [vmem:[%s2771_s1 + $0x118] sm:$0xff] }
  0x1f   : > { %v2167_v2 = vld [vmem:[%s2771_s1 + $0x1d8] sm:$0xff] }
  0x20   : > { %346 = vmatpush.bf16.msra.mxu0 %v2110_v17  ;;  %2226 = vmatpush.bf16.msra.mxu1 %v2110_v17 }
  0x21   : > { %2227 = vmatpush.bf16.msra.mxu2 %v2110_v17  ;;  %717 = vmatpush.bf16.msra.mxu3 %v2130_v24  ;;  %v279_v17 = vsel %vm243_vm0, %v274_v7, %v2358_v34  ;;  %v2138_v24 = vld [vmem:[%s2771_s1 + $0x110] sm:$0xff]  ;;  %v2101_v34 = vld [vmem:[%s2771_s1 + $0x8] sm:$0xff]  ;;  %v2176_v7 = vld [vmem:[%s2771_s1 + $0x220] sm:$0xff] }
  0x24   : > { %347 = vmatpush.bf16.msra.mxu0 %v2109_v29  ;;  %2228 = vmatpush.bf16.msra.mxu1 %v2109_v29 }
  0x25   : > { %2229 = vmatpush.bf16.msra.mxu2 %v2109_v29  ;;  %718 = vmatpush.bf16.msra.mxu3 %v2129_v37  ;;  %v782_v29 = vshll.u32 %v2374_v44, 16  ;;  %v2211_v37 = vor.u32 %v2210_v26, %v2209_v25  ;;  %v2116_v44 = vld [vmem:[%s2771_s1 + $0x80] sm:$0xff]  ;;  %v2175_v25 = vld [vmem:[%s2771_s1 + $0x218] sm:$0xff]  ;;  %v2166_v26 = vld [vmem:[%s2771_s1 + $0x1d0] sm:$0xff] }
  0x28   : > { %348 = vmatpush.bf16.msra.mxu0 %v2108_v39  ;;  %2230 = vmatpush.bf16.msra.mxu1 %v2108_v39 }
  0x29   : > { %2231 = vmatpush.bf16.msra.mxu2 %v2108_v39  ;;  %719 = vmatpush.bf16.msra.mxu3 %v2128_v52  ;;  %v784_v39 = vrot.slane %v782_v29, 2  ;;  %v2179_v52 = vld [vmem:[%s2771_s1 + $0x238] sm:$0xff]  ;;  %v808_v29 = vshll.u32 %v2497_v53, 16 }
  0x2b   : > { %349 = vmatmul.bf16.vlgmr.msra.gmra.mxu0 %v255_v50  ;;  %359 = vmatmul.bf16.vlgmr.msra.gmra.mxu1 %v271_v51  ;;  %v785_v50 = vor.u32 %v784_v39, %v781_v38  ;;  %v793_v51 = vor.u32 %v792_v41, %v789_v40  ;;  %v489_v38 = vrot.slane %v2335_v18, 1 }
  0x2c   : > { %428 = vmatpush.bf16.msrb.mxu1 %v2107_v45  ;;  %884 = vmatpush.bf16.msrb.mxu0 %v2143_v49  ;;  %v484_v45 = vrot.slane %v2211_v37, 1  ;;  %v2151_v49 = vld [vmem:[%s2771_s1 + $0x178] sm:$0xff] }
  0x2d   : > { %548 = vmatpush.bf16.msrb.mxu2 %v2123_v48  ;;  %1350 = vmatpush.bf16.msrb.mxu3 %v2171_v57  ;;  %v2163_v48 = vld [vmem:[%s2771_s1 + $0x1b8] sm:$0xff]  ;;  %v2150_v57 = vld [vmem:[%s2771_s1 + $0x170] sm:$0xff] }
  0x2e   : > { %369 = vmatmul.bf16.vlgmr.msra.gmra.mxu2 %v287_v55  ;;  %720 = vmatmul.bf16.vlgmr.msra.gmra.mxu3 %v650_v60  ;;  %v486_v54 = vsel %vm483_vm1, %v484_v45, %v485_v46  ;;  %v794_v55 = vsel %vm777_vm2, %v785_v50, %v793_v51  ;;  %v2168_v60 = vld [vmem:[%s2771_s1 + $0x1e0] sm:$0xff] }
  0x30   : > { %429 = vmatpush.bf16.msrb.mxu1 %v2106_v56  ;;  %885 = vmatpush.bf16.msrb.mxu0 %v2142_v59  ;;  %v2162_v56 = vld [vmem:[%s2771_s1 + $0x1b0] sm:$0xff] }
  0x31   : > { %549 = vmatpush.bf16.msrb.mxu2 %v2122_v58  ;;  %1351 = vmatpush.bf16.msrb.mxu3 %v2170_v62  ;;  %v653_v58 = vrot.slane %v2497_v53, 1  ;;  %v2178_v59 = vld [vmem:[%s2771_s1 + $0x230] sm:$0xff]  ;;  %v799_v62 = vshll.u32 %v2431_v8, 16 }
  0x33   : > { %v654_v1 = vsel %vm483_vm1, %v651_v19, %v653_v58 }
  0x34   : > { %430 = vmatpush.bf16.msrb.mxu1 %v2105_v61  ;;  %886 = vmatpush.bf16.msrb.mxu0 %v2141_v0  ;;  %v796_v61 = vshrl.u32 %v2431_v8, 16  ;;  %v2149_v0 = vld [vmem:[%s2771_s1 + $0x168] sm:$0xff] }
  0x35   : > { %550 = vmatpush.bf16.msrb.mxu2 %v2121_v63  ;;  %1352 = vmatpush.bf16.msrb.mxu3 %v2169_v28  ;;  %v2161_v63 = vld [vmem:[%s2771_s1 + $0x1a8] sm:$0xff]  ;;  %v805_v28 = vshrl.u32 %v2497_v53, 16 }
  0x38   : > { %431 = vmatpush.bf16.msrb.mxu1 %v2104_v3  ;;  %887 = vmatpush.bf16.msrb.mxu0 %v2140_v5  ;;  %v798_v3 = vrot.slane %v796_v61, 1  ;;  %v2160_v5 = vld [vmem:[%s2771_s1 + $0x1a0] sm:$0xff] }
  0x39   : > { %551 = vmatpush.bf16.msrb.mxu2 %v2120_v4  ;;  %1353 = vmatpush.bf16.msrb.mxu3 %v2168_v60  ;;  %v801_v4 = vrot.slane %v799_v62, 2  ;;  %v756_v60 = vld [vmem:[%s2306_s4 + $0x2c] sm:$0x3] }
  0x3b   : > { %354 = vmatmul.bf16.gmra.mxu0 %v263_v16  ;;  %364 = vmatmul.bf16.gmra.mxu1 %v279_v17  ;;  %v2546_v16 = vld [vmem:[%s2306_s4 + $0x24] sm:$0xff]  ;;  %v2147_v17 = vld [vmem:[%s2771_s1 + $0x158] sm:$0xff] }
  0x3c   : > { %432 = vmatpush.bf16.msrb.mxu1 %v2103_v9  ;;  %888 = vmatpush.bf16.msrb.mxu0 %v2139_v14  ;;  %v487_v9 = vrot.slane %v2319_v11, 1  ;;  %v2159_v14 = vld [vmem:[%s2771_s1 + $0x198] sm:$0xff]  ;;  %v817_v50 = vshll.u32 %v2546_v16, 16 }
  0x3d   : > { %552 = vmatpush.bf16.msrb.mxu2 %v2119_v13  ;;  %1354 = vmatpush.bf16.msrb.mxu3 %v2167_v2  ;;  %v802_v13 = vor.u32 %v801_v4, %v798_v3  ;;  %v775_v2 = vunpack.c.l.b16 %v756_v60 }
  0x3e   : > { %725 = vmatmul.bf16.gmra.mxu3 %v652_v32  ;;  %v488_v19 = vsel %vm483_vm1, %v485_v46, %v487_v9  ;;  %v602_v32 = vld [vmem:[%s2306_s4 + $0x2c] sm:$0x1]  ;;  %v490_v41 = vsel %vm483_vm1, %v487_v9, %v489_v38  ;;  %v2172_v9 = vld [vmem:[%s2771_s1 + $0x200] sm:$0xff] }
  0x3f   : > { %v641_v37 = vunpack.c.l.b16 %v602_v32 }
  0x40   : > { %433 = vmatpush.bf16.msrb.mxu1 %v2102_v21  ;;  %889 = vmatpush.bf16.msrb.mxu0 %v2138_v24  ;;  %v803_v21 = vsel %vm777_vm2, %v793_v51, %v802_v13  ;;  %v2158_v24 = vld [vmem:[%s2771_s1 + $0x190] sm:$0xff]  ;;  %v2156_v51 = vld [vmem:[%s2771_s1 + $0x180] sm:$0xff] }
  0x41   : > { %553 = vmatpush.bf16.msrb.mxu2 %v2118_v22  ;;  %v655_v22 = vrot.slane %v2546_v16, 1  ;;  %1355 = vmatpush.bf16.msrb.mxu3 %v2166_v26  ;;  %v647_v40 = vpack.c.b16 %v641_v37, %v641_v37  ;;  %v1394_v37 = vld [vmem:[%s2306_s4 + $0x8] sm:$0x8] }
  0x43   : > { %v656_v30 = vsel %vm483_vm1, %v653_v58, %v655_v22  ;;  %v657_v45 = vrot.slane %v647_v40, 1 }
  0x44   : > { %434 = vmatpush.bf16.msrb.mxu1 %v2101_v34  ;;  %890 = vmatpush.bf16.msrb.mxu0 %v2137_v36  ;;  %v2165_v34 = vld [vmem:[%s2771_s1 + $0x1c8] sm:$0xff]  ;;  %v810_v36 = vrot.slane %v808_v29, 2 }
  0x45   : > { %554 = vmatpush.bf16.msrb.mxu2 %v2117_v35  ;;  %v807_v35 = vrot.slane %v805_v28, 1  ;;  %1356 = vmatpush.bf16.msrb.mxu3 %v2165_v34 }
  0x47   : > { %v811_v39 = vor.u32 %v810_v36, %v807_v35  ;;  %v928_v35 = vld [vmem:[%s2306_s4 + $0x4] sm:$0xc] }
  0x48   : > { %435 = vmatpush.bf16.msrb.mxu1 %v2100_v42  ;;  %891 = vmatpush.bf16.msrb.mxu0 %v2136_v47  ;;  %v1058_v42 = vld [vmem:[%s2306_s4 + $0x8] sm:$0xc]  ;;  %v1098_v47 = vunpack.c.h.b16 %v2343_v23 }
  0x49   : > { %555 = vmatpush.bf16.msrb.mxu2 %v2116_v44  ;;  %v812_v44 = vsel %vm777_vm2, %v802_v13, %v811_v39  ;;  %v1097_v46 = vunpack.c.l.b16 %v1058_v42 }
  0x4b   : > { %436 = vmatmul.bf16.vlgmr.msrb.gmra.mxu1 %v2316_v10  ;;  %892 = vmatmul.bf16.vlgmr.msrb.gmra.mxu0 %v794_v55  ;;  %v2177_v10 = vld [vmem:[%s2771_s1 + $0x228] sm:$0xff]  ;;  %v2144_v55 = vld [vmem:[%s2771_s1 + $0x140] sm:$0xff] }
  0x4c   : > { %1014 = vmatpush.bf16.msra.mxu1 %v2151_v49  ;;  %1480 = vmatpush.bf16.msra.mxu0 %v2179_v52  ;;  %v814_v49 = vshrl.u32 %v2546_v16, 16  ;;  %v2173_v52 = vld [vmem:[%s2771_s1 + $0x208] sm:$0xff] }
  0x4d   : > { %1178 = vmatpush.bf16.msra.mxu2 %v2163_v48  ;;  %v2145_v48 = vld [vmem:[%s2771_s1 + $0x148] sm:$0xff] }
  0x4e   : > { %556 = vmatmul.bf16.vlgmr.msrb.gmra.mxu2 %v486_v54  ;;  %730 = vmatmul.bf16.gmra.mxu3 %v654_v1  ;;  %v2164_v54 = vld [vmem:[%s2771_s1 + $0x1c0] sm:$0xff]  ;;  %v816_v58 = vrot.slane %v814_v49, 1  ;;  %v491_v1 = vrot.slane %v2322_v12, 1  ;;  %v951_v49 = vrot.slane %v2370_v43, 2  ;;  %v2658_v43 = vld [vmem:[%s2306_s4 + $0x28] sm:$0xff] }
  0x4f   : > { %1357 = vmatpush.bf16.msrb.mxu3 %v2164_v54 }
  0x50   : > { %1015 = vmatpush.bf16.msra.mxu1 %v2150_v57  ;;  %1481 = vmatpush.bf16.msra.mxu0 %v2178_v59  ;;  %v2609_v57 = vpack.c.b16 %v1098_v47, %v1097_v46  ;;  %v819_v59 = vrot.slane %v817_v50, 2 }
  0x51   : > { %1179 = vmatpush.bf16.msra.mxu2 %v2162_v56  ;;  %v2605_v56 = vld [vmem:[%s2306_s4 + $0x10] sm:$0xff] }
  0x52   : > { %v1245_v61 = vshrl.u32 %v2609_v57, 16  ;;  %v1248_v62 = vshll.u32 %v2609_v57, 16  ;;  %v1115_v46 = vrot.slane %v2605_v56, 2 }
  0x54   : > { %1016 = vmatpush.bf16.msra.mxu1 %v2149_v0  ;;  %1482 = vmatpush.bf16.msra.mxu0 %v2177_v10  ;;  %v1256_v0 = vshll.u32 %v2605_v56, 16  ;;  %v820_v10 = vor.u32 %v819_v59, %v816_v58  ;;  %v1247_v3 = vrot.slane %v1245_v61, 2  ;;  %v1250_v4 = vrot.slane %v1248_v62, 3 }
  0x55   : > { %1180 = vmatpush.bf16.msra.mxu2 %v2161_v63  ;;  %v1253_v63 = vshrl.u32 %v2605_v56, 16  ;;  %v953_v59 = vrot.slane %v2431_v8, 2 }
  0x56   : > { %v821_v13 = vsel %vm777_vm2, %v811_v39, %v820_v10  ;;  %v1413_v39 = vunpack.c.l.b16 %v1394_v37 }
  0x58   : > { %1017 = vmatpush.bf16.msra.mxu1 %v2148_v6  ;;  %1483 = vmatpush.bf16.msra.mxu0 %v2176_v7  ;;  %v1258_v6 = vrot.slane %v1256_v0, 3  ;;  %v492_v7 = vsel %vm483_vm1, %v489_v38, %v491_v1  ;;  %v947_v38 = vunpack.c.l.b16 %v928_v35  ;;  %v1414_v42 = vpack.c.b16 %v1098_v47, %v1413_v39  ;;  %v1222_v0 = vld [vmem:[%s2306_s4 + $0x30] sm:$0x7] }
  0x59   : > { %1181 = vmatpush.bf16.msra.mxu2 %v2160_v5  ;;  %v1255_v5 = vrot.slane %v1253_v63, 2  ;;  %v957_v39 = vrot.slane %v2546_v16, 2 }
  0x5a   : > { %v1416_v50 = vrot.slane %v1414_v42, 3 }
  0x5b   : > { %441 = vmatmul.bf16.gmra.mxu1 %v2328_v15  ;;  %897 = vmatmul.bf16.gmra.mxu0 %v803_v21  ;;  %v2157_v15 = vld [vmem:[%s2771_s1 + $0x188] sm:$0xff] }
  0x5c   : > { %1018 = vmatpush.bf16.msra.mxu1 %v2147_v17  ;;  %1484 = vmatpush.bf16.msra.mxu0 %v2175_v25  ;;  %v1251_v17 = vor.u32 %v1250_v4, %v1247_v3  ;;  %v2629_v25 = vld [vmem:[%s2306_s4 + $0x18] sm:$0xff] }
  0x5d   : > { %1182 = vmatpush.bf16.msra.mxu2 %v2159_v14  ;;  %v2622_v14 = vpack.c.b16 %v775_v2, %v775_v2  ;;  %v1262_v28 = vshrl.u32 %v2629_v25, 16  ;;  %v1265_v29 = vshll.u32 %v2629_v25, 16  ;;  %v1117_v58 = vrot.slane %v2629_v25, 2 }
  0x5e   : > { %561 = vmatmul.bf16.gmra.mxu2 %v488_v19  ;;  %735 = vmatmul.bf16.gmra.mxu3 %v656_v30  ;;  %v1259_v19 = vor.u32 %v1258_v6, %v1255_v5  ;;  %v1419_v60 = vrot.slane %v2629_v25, 3  ;;  %v954_v2 = vsel %vm949_vm4, %v951_v49, %v953_v59  ;;  %v1241_v5 = vunpack.c.l.b16 %v1222_v0 }
  0x5f   : > { %v823_v21 = vshrl.u32 %v2622_v14, 16  ;;  %v1118_v63 = vsel %vm949_vm4, %v1115_v46, %v1117_v58 }
  0x60   : > { %1019 = vmatpush.bf16.msra.mxu1 %v2146_v27  ;;  %1485 = vmatpush.bf16.msra.mxu0 %v2174_v31  ;;  %v1267_v31 = vrot.slane %v1265_v29, 3  ;;  %v2672_v6 = vpack.c.b16 %v1241_v5, %v1241_v5 }
  0x61   : > { %1183 = vmatpush.bf16.msra.mxu2 %v2158_v24  ;;  %v1260_v24 = vsel %vm1243_vm3, %v1251_v17, %v1259_v19  ;;  %v825_v26 = vrot.slane %v823_v21, 1 }
  0x62   : > { %v1292_v17 = vshll.u32 %v2672_v6, 16 }
  0x64   : > { %1020 = vmatpush.bf16.msra.mxu1 %v2145_v48  ;;  %1486 = vmatpush.bf16.msra.mxu0 %v2173_v52 }
  0x65   : > { %1184 = vmatpush.bf16.msra.mxu2 %v2157_v15  ;;  %v1264_v15 = vrot.slane %v1262_v28, 2 }
  0x67   : > { %v1268_v36 = vor.u32 %v1267_v31, %v1264_v15 }
  0x68   : > { %1021 = vmatpush.bf16.msra.mxu1 %v2144_v55  ;;  %1487 = vmatpush.bf16.msra.mxu0 %v2172_v9 }
  0x69   : > { %1185 = vmatpush.bf16.msra.mxu2 %v2156_v51  ;;  %v1269_v40 = vsel %vm1243_vm3, %v1259_v19, %v1268_v36 }
  0x6b   : > { %446 = vmatmul.bf16.gmra.mxu1 %v2319_v11  ;;  %902 = vmatmul.bf16.gmra.mxu0 %v812_v44  ;;  %v658_v11 = vsel %vm483_vm1, %v655_v22, %v657_v45  ;;  %v826_v22 = vshll.u32 %v2622_v14, 16 }
  0x6d   : > { %v828_v27 = vrot.slane %v826_v22, 2  ;;  %v955_v22 = vrot.slane %v2497_v53, 2 }
  0x6e   : > { %566 = vmatmul.bf16.gmra.mxu2 %v490_v41  ;;  %740 = vmatmul.bf16.gmra.mxu3 %v658_v11  ;;  %v2641_v41 = vld [vmem:[%s2306_s4 + $0x20] sm:$0xff] }
  0x6f   : > { %v829_v30 = vor.u32 %v828_v27, %v825_v26  ;;  %v1271_v44 = vshrl.u32 %v2641_v41, 16  ;;  %v1274_v45 = vshll.u32 %v2641_v41, 16  ;;  %v1119_v19 = vrot.slane %v2641_v41, 2 }
  0x70   : > { %v1294_v26 = vrot.slane %v1292_v17, 3 }
  0x71   : > { %v830_v34 = vsel %vm777_vm2, %v820_v10, %v829_v30  ;;  %v1273_v51 = vrot.slane %v1271_v44, 2  ;;  %v1276_v52 = vrot.slane %v1274_v45, 3  ;;  %v1120_v27 = vsel %vm949_vm4, %v1117_v58, %v1119_v19 }
  0x72   : > { %v958_v45 = vsel %vm949_vm4, %v955_v22, %v957_v39 }
  0x73   : > { %v1277_v11 = vor.u32 %v1276_v52, %v1273_v51 }
  0x75   : > { %v1278_v55 = vsel %vm1243_vm3, %v1268_v36, %v1277_v11  ;;  %v1121_v36 = vrot.slane %v2658_v43, 2 }
  0x7b   : > { %451 = vmatmul.bf16.gmra.mxu1 %v2335_v18  ;;  %907 = vmatmul.bf16.gmra.mxu0 %v821_v13  ;;  %v493_v18 = vrot.slane %v2338_v20, 1  ;;  %v948_v20 = vpack.c.b16 %v632_v33, %v947_v38  ;;  %v1417_v33 = vrot.slane %v2605_v56, 3  ;;  %v1280_v56 = vshrl.u32 %v2658_v43, 16 }
  0x7c   : > { %v1289_v13 = vshrl.u32 %v2672_v6, 16 }
  0x7d   : > { %v494_v32 = vsel %vm483_vm1, %v491_v1, %v493_v18  ;;  %v950_v48 = vrot.slane %v948_v20, 2  ;;  %v1418_v54 = vsel %vm1415_vm5, %v1416_v50, %v1417_v33  ;;  %v1282_v61 = vrot.slane %v1280_v56, 2  ;;  %v1068_v20 = vld [vmem:[%s2306_s4 + $0x30] sm:$0x3] }
  0x7e   : > { %571 = vmatmul.bf16.gmra.mxu2 %v492_v7  ;;  %1358 = vmatmul.bf16.vlgmr.msrb.gmra.mxu3 %v1260_v24  ;;  %v1420_v3 = vsel %vm1415_vm5, %v1417_v33, %v1419_v60  ;;  %v1421_v24 = vrot.slane %v2641_v41, 3  ;;  %v1291_v25 = vrot.slane %v1289_v13, 2  ;;  %v956_v18 = vsel %vm949_vm4, %v953_v59, %v955_v22 }
  0x7f   : > { %v952_v47 = vsel %vm949_vm4, %v950_v48, %v951_v49  ;;  %v1122_v41 = vsel %vm949_vm4, %v1119_v19, %v1121_v36  ;;  %v1107_v48 = vunpack.c.l.b16 %v1068_v20  ;;  %v959_v56 = vrot.slane %v2622_v14, 2 }
  0x80   : > { %v1422_v30 = vsel %vm1415_vm5, %v1419_v60, %v1421_v24  ;;  %v1295_v15 = vor.u32 %v1294_v26, %v1291_v25 }
  0x81   : > { %v1113_v16 = vpack.c.b16 %v1107_v48, %v1107_v48 }
  0x8b   : > { %456 = vmatmul.bf16.gmra.mxu1 %v2322_v12  ;;  %912 = vmatmul.bf16.gmra.mxu0 %v830_v34  ;;  %v1114_v12 = vrot.slane %v2609_v57, 2  ;;  %v1283_v57 = vshll.u32 %v2658_v43, 16 }
  0x8d   : > { %v1116_v23 = vsel %vm949_vm4, %v1114_v12, %v1115_v46  ;;  %v1285_v62 = vrot.slane %v1283_v57, 3  ;;  %v1425_v57 = vrot.slane %v2672_v6, 3 }
  0x8e   : > { %576 = vmatmul.bf16.gmra.mxu2 %v494_v32  ;;  %1363 = vmatmul.bf16.gmra.mxu3 %v1269_v40  ;;  %v1423_v40 = vrot.slane %v2658_v43, 3 }
  0x8f   : > { %v1286_v4 = vor.u32 %v1285_v62, %v1282_v61 }
  0x90   : > { %v1424_v12 = vsel %vm1415_vm5, %v1421_v24, %v1423_v40  ;;  %v1426_v0 = vsel %vm1415_vm5, %v1423_v40, %v1425_v57 }
  0x91   : > { %v1287_v8 = vsel %vm1243_vm3, %v1277_v11, %v1286_v4  ;;  %v1296_v53 = vsel %vm1243_vm3, %v1286_v4, %v1295_v15  ;;  %v1123_v11 = vrot.slane %v1113_v16, 2 }
  0x93   : > { %v1124_v59 = vsel %vm949_vm4, %v1121_v36, %v1123_v11 }
  0x9b   : > { %1022 = vmatmul.bf16.vlgmr.msra.gmra.mxu1 %v952_v47  ;;  %1488 = vmatmul.bf16.vlgmr.msra.gmra.mxu0 %v1418_v54 }
  0x9e   : > { %1186 = vmatmul.bf16.vlgmr.msra.gmra.mxu2 %v1116_v23  ;;  %1368 = vmatmul.bf16.gmra.mxu3 %v1278_v55 }
  0xa8   : > { %v350_v1 = vpop.f32.mrf.mxu0  ;;  %v2667_v10 = vpop.f32.mrf.mxu1 }
  0xab   : > { %1027 = vmatmul.bf16.gmra.mxu1 %v954_v2  ;;  %1493 = vmatmul.bf16.gmra.mxu0 %v1420_v3 }
  0xae   : > { %1191 = vmatmul.bf16.gmra.mxu2 %v1118_v63  ;;  %1373 = vmatmul.bf16.gmra.mxu3 %v1287_v8  ;;  %v960_v63 = vsel %vm949_vm4, %v957_v39, %v959_v56 }
  0xb0   : > { %v352_v7 = vpop.f32.mrf.mxu0  ;;  %v2674_v9 = vpop.f32.mrf.mxu1 }
  0xb1   : > { %v721_v21 = vpop.f32.mrf.mxu3  ;;  %v2686_v31 = vpop.f32.mrf.mxu2 }
  0xb8   : > { %v355_v28 = vpop.f32.mrf.mxu0  ;;  %v2682_v29 = vpop.f32.mrf.mxu1 }
  0xb9   : > { %v723_v32 = vpop.f32.mrf.mxu3  ;;  %v2692_v38 = vpop.f32.mrf.mxu2 }
  0xbb   : > { %1032 = vmatmul.bf16.gmra.mxu1 %v956_v18  ;;  %1498 = vmatmul.bf16.gmra.mxu0 %v1422_v30 }
  0xbe   : > { %1196 = vmatmul.bf16.gmra.mxu2 %v1120_v27  ;;  %1378 = vmatmul.bf16.gmra.mxu3 %v1296_v53 }
  0xc0   : > { %v357_v34 = vpop.f32.mrf.mxu0  ;;  %v2689_v35 = vpop.f32.mrf.mxu1 }
  0xc1   : > { %v726_v37 = vpop.f32.mrf.mxu3 }
  0xc8   : > { %v437_v42 = vpop.f32.mrf.mxu1  ;;  %v893_v44 = vpop.f32.mrf.mxu0 }
  0xc9   : > { %v438_v46 = vadd.f32 %v437_v42, %v350_v1  ;;  %v728_v49 = vpop.f32.mrf.mxu3 }
  0xcb   : > { %1037 = vmatmul.bf16.gmra.mxu1 %v958_v45  ;;  %1503 = vmatmul.bf16.gmra.mxu0 %v1424_v12 }
  0xce   : > { %1201 = vmatmul.bf16.gmra.mxu2 %v1122_v41 }
  0xd0   : > { %v439_v52 = vpop.f32.mrf.mxu1  ;;  %v895_v23 = vpop.f32.mrf.mxu0 }
  0xd1   : > { %v557_v50 = vpop.f32.mrf.mxu2  ;;  %v440_v47 = vadd.f32 %v439_v52, %v352_v7  ;;  %v731_v55 = vpop.f32.mrf.mxu3 }
  0xd2   : > { %v582_v33 = vadd.f32 %v557_v50, %v438_v46 }
  0xd4   : > { %v746_v51 = vadd.f32 %v721_v21, %v582_v33 }
  0xd6   : > { %v2700_v54 = vadd.f32 %v893_v44, %v746_v51 }
  0xd8   : > { %v442_v61 = vpop.f32.mrf.mxu1  ;;  %v898_v62 = vpop.f32.mrf.mxu0 }
  0xd9   : > { %v559_v43 = vpop.f32.mrf.mxu2  ;;  %v443_v1 = vadd.f32 %v442_v61, %v355_v28  ;;  %v733_v3 = vpop.f32.mrf.mxu3 }
  0xda   : > { %v583_v58 = vadd.f32 %v559_v43, %v440_v47 }
  0xdb   : > { %1042 = vmatmul.bf16.gmra.mxu1 %v960_v63  ;;  %1508 = vmatmul.bf16.gmra.mxu0 %v1426_v0 }
  0xdc   : > { %v747_v60 = vadd.f32 %v723_v32, %v583_v58 }
  0xde   : > { %1206 = vmatmul.bf16.gmra.mxu2 %v1124_v59  ;;  %v2707_v2 = vadd.f32 %v895_v23, %v747_v60 }
  0xe0   : > { %v444_v8 = vpop.f32.mrf.mxu1  ;;  %v900_v6 = vpop.f32.mrf.mxu0 }
  0xe1   : > { %v562_v14 = vpop.f32.mrf.mxu2  ;;  %v445_v7 = vadd.f32 %v444_v8, %v357_v34  ;;  %v736_v17 = vpop.f32.mrf.mxu3 }
  0xe2   : > { %v584_v4 = vadd.f32 %v562_v14, %v443_v1 }
  0xe4   : > { %v748_v5 = vadd.f32 %v726_v37, %v584_v4 }
  0xe6   : > { %v2709_v13 = vadd.f32 %v898_v62, %v748_v5 }
  0xe8   : > { %v447_v24 = vpop.f32.mrf.mxu1  ;;  %v903_v25 = vpop.f32.mrf.mxu0 }
  0xe9   : > { %v564_v19 = vpop.f32.mrf.mxu2  ;;  %v448_v26 = vadd.f32 %v447_v24, %v2667_v10  ;;  %v738_v30 = vpop.f32.mrf.mxu3 }
  0xea   : > { %v585_v21 = vadd.f32 %v564_v19, %v445_v7 }
  0xec   : > { %v749_v22 = vadd.f32 %v728_v49, %v585_v21 }
  0xee   : > { %v2712_v27 = vadd.f32 %v900_v6, %v749_v22  ;;  %v2736_v22 = vld [vmem:[%s2772_s2] ss:$0 sm:$0xff] }
  0xf0   : > { %v449_v32 = vpop.f32.mrf.mxu1  ;;  %v905_v53 = vpop.f32.mrf.mxu0 }
  0xf1   : > { %v567_v28 = vpop.f32.mrf.mxu2  ;;  %v450_v34 = vadd.f32 %v449_v32, %v2674_v9  ;;  %v741_v41 = vpop.f32.mrf.mxu3 }
  0xf2   : > { %v586_v18 = vadd.f32 %v567_v28, %v448_v26 }
  0xf4   : > { %v750_v15 = vadd.f32 %v731_v55, %v586_v18 }
  0xf6   : > { %v2715_v36 = vadd.f32 %v903_v25, %v750_v15 }
  0xf8   : > { %v452_v20 = vpop.f32.mrf.mxu1  ;;  %v908_v42 = vpop.f32.mrf.mxu0 }
  0xf9   : > { %v569_v37 = vpop.f32.mrf.mxu2  ;;  %v453_v10 = vadd.f32 %v452_v20, %v2682_v29  ;;  %v743_v9 = vpop.f32.mrf.mxu3 }
  0xfa   : > { %v587_v39 = vadd.f32 %v569_v37, %v450_v34 }
  0xfc   : > { %v751_v40 = vadd.f32 %v733_v3, %v587_v39 }
  0xfe   : > { %v2718_v44 = vadd.f32 %v905_v53, %v751_v40 }
 0x100   : > { %v454_v48 = vpop.f32.mrf.mxu1  ;;  %v910_v49 = vpop.f32.mrf.mxu0 }
 0x101   : > { %v572_v45 = vpop.f32.mrf.mxu2  ;;  %v455_v50 = vadd.f32 %v454_v48, %v2689_v35  ;;  %v1359_v55 = vpop.f32.mrf.mxu3 }
 0x102   : > { %v588_v12 = vadd.f32 %v572_v45, %v453_v10 }
 0x104   : > { %v752_v46 = vadd.f32 %v736_v17, %v588_v12 }
 0x106   : > { %v2721_v33 = vadd.f32 %v908_v42, %v752_v46 }
 0x108   : > { %v457_v23 = vpop.f32.mrf.mxu1  ;;  %v913_v47 = vpop.f32.mrf.mxu0 }
 0x109   : > { %v574_v16 = vpop.f32.mrf.mxu2  ;;  %v458_v11 = vadd.f32 %v457_v23, %v2686_v31  ;;  %v1361_v63 = vpop.f32.mrf.mxu3 }
 0x10a   : > { %v589_v51 = vadd.f32 %v574_v16, %v455_v50 }
 0x10c   : > { %v753_v52 = vadd.f32 %v738_v30, %v589_v51 }
 0x10e   : > { %v2724_v29 = vadd.f32 %v910_v49, %v753_v52 }
 0x110   : > { %v459_v58 = vpop.f32.mrf.mxu1  ;;  %v915_v59 = vpop.f32.mrf.mxu0 }
 0x111   : > { %v577_v43 = vpop.f32.mrf.mxu2  ;;  %v460_v35 = vadd.f32 %v459_v58, %v2692_v38  ;;  %v1364_v8 = vpop.f32.mrf.mxu3 }
 0x112   : > { %v590_v56 = vadd.f32 %v577_v43, %v458_v11 }
 0x114   : > { %v754_v57 = vadd.f32 %v741_v41, %v590_v56 }
 0x116   : > { %v2727_v60 = vadd.f32 %v913_v47, %v754_v57 }
 0x118   : > { %v1023_v1 = vpop.f32.mrf.mxu1  ;;  %v1489_v3 = vpop.f32.mrf.mxu0 }
 0x119   : > { %v579_v61 = vpop.f32.mrf.mxu2  ;;  %v1048_v31 = vadd.f32 %v1023_v1, %v2700_v54  ;;  %v1366_v15 = vpop.f32.mrf.mxu3 }
 0x11a   : > { %v591_v62 = vadd.f32 %v579_v61, %v460_v35 }
 0x11c   : > { %v755_v0 = vadd.f32 %v743_v9, %v591_v62 }
 0x11e   : > { %v2730_v14 = vadd.f32 %v915_v59, %v755_v0 }
 0x120   : > { %v1025_v6 = vpop.f32.mrf.mxu1  ;;  %v1491_v7 = vpop.f32.mrf.mxu0 }
 0x121   : > { %v1187_v4 = vpop.f32.mrf.mxu2  ;;  %v1049_v38 = vadd.f32 %v1025_v6, %v2707_v2  ;;  %v1369_v10 = vpop.f32.mrf.mxu3 }
 0x122   : > { %v1212_v5 = vadd.f32 %v1187_v4, %v1048_v31 }
 0x124   : > { %v1384_v17 = vadd.f32 %v1359_v55, %v1212_v5 }
 0x126   : > { %v1514_v21 = vadd.f32 %v1489_v3, %v1384_v17 }
 0x128   : > { %v1028_v25 = vpop.f32.mrf.mxu1  ;;  %v1494_v26 = vpop.f32.mrf.mxu0  ;;  %v1528_v28 = vadd.f32 %v2736_v22, %v1514_v21 }
 0x129   : > { %v1189_v19 = vpop.f32.mrf.mxu2  ;;  %v1050_v30 = vadd.f32 %v1028_v25, %v2709_v13 }
 0x12a   : > { %v1213_v24 = vadd.f32 %v1189_v19, %v1049_v38  ;;  %v1538_v53 = vmax.f32 %v1528_v28, 0.0 }
 0x12c   : > { %v1385_v54 = vadd.f32 %v1361_v63, %v1213_v24 }
 0x12e   : > { %v1515_v18 = vadd.f32 %v1491_v7, %v1385_v54 }
 0x130   : > { %v1529_v2 = vadd.f32 %v2736_v22, %v1515_v18  ;;  %v1030_v40 = vpop.f32.mrf.mxu1  ;;  %v1496_v41 = vpop.f32.mrf.mxu0 }
 0x131   : > { %v1192_v32 = vpop.f32.mrf.mxu2  ;;  %v1051_v13 = vadd.f32 %v1030_v40, %v2712_v27  ;;  %v1371_v27 = vpop.f32.mrf.mxu3 }
 0x132   : > { %v1539_v34 = vmax.f32 %v1529_v2, 0.0  ;;  %v1214_v37 = vadd.f32 %v1192_v32, %v1050_v30 }
 0x134   : > { %v2187_v39 = vpack.c.bf16 %v1539_v34, %v1538_v53  ;;  %v1386_v20 = vadd.f32 %v1364_v8, %v1214_v37 }
 0x136   : > { %2188 = vst [vmem:[%s2745_s21] sm:$0xff] %v2187_v39   ;;  %v1516_v45 = vadd.f32 %v1494_v26, %v1386_v20 }
 0x138   : > { %v1033_v48 = vpop.f32.mrf.mxu1  ;;  %v1499_v49 = vpop.f32.mrf.mxu0  ;;  %v1530_v50 = vadd.f32 %v2736_v22, %v1516_v45 }
 0x139   : > { %v1194_v42 = vpop.f32.mrf.mxu2  ;;  %v1052_v16 = vadd.f32 %v1033_v48, %v2715_v36  ;;  %v1374_v36 = vpop.f32.mrf.mxu3 }
 0x13a   : > { %v1215_v12 = vadd.f32 %v1194_v42, %v1051_v13  ;;  %v1540_v23 = vmax.f32 %v1530_v50, 0.0 }
 0x13c   : > { %v1387_v46 = vadd.f32 %v1366_v15, %v1215_v12 }
 0x13e   : > { %v1517_v9 = vadd.f32 %v1496_v41, %v1387_v46 }
 0x140   : > { %v1531_v51 = vadd.f32 %v2736_v22, %v1517_v9  ;;  %v1035_v43 = vpop.f32.mrf.mxu1  ;;  %v1501_v56 = vpop.f32.mrf.mxu0 }
 0x141   : > { %v1197_v52 = vpop.f32.mrf.mxu2  ;;  %v1053_v58 = vadd.f32 %v1035_v43, %v2718_v44  ;;  %v1376_v21 = vpop.f32.mrf.mxu3 }
 0x142   : > { %v1541_v47 = vmax.f32 %v1531_v51, 0.0  ;;  %v1216_v11 = vadd.f32 %v1197_v52, %v1052_v16 }
 0x144   : > { %v2192_v55 = vpack.c.bf16 %v1541_v47, %v1540_v23  ;;  %v1388_v57 = vadd.f32 %v1369_v10, %v1216_v11 }
 0x146   : > { %2212 = vst [vmem:[%s2745_s21 + $0x8] sm:$0xff] %v2192_v55   ;;  %v1518_v35 = vadd.f32 %v1499_v49, %v1388_v57 }
 0x148   : > { %v1038_v63 = vpop.f32.mrf.mxu1  ;;  %v1532_v0 = vadd.f32 %v2736_v22, %v1518_v35  ;;  %v1504_v31 = vpop.f32.mrf.mxu0 }
 0x149   : > { %v1199_v59 = vpop.f32.mrf.mxu2  ;;  %v1054_v3 = vadd.f32 %v1038_v63, %v2721_v33  ;;  %v1379_v32 = vpop.f32.mrf.mxu3 }
 0x14a   : > { %v1217_v61 = vadd.f32 %v1199_v59, %v1053_v58  ;;  %v1542_v8 = vmax.f32 %v1532_v0, 0.0 }
 0x14c   : > { %v1389_v62 = vadd.f32 %v1371_v27, %v1217_v61 }
 0x14e   : > { %v1519_v1 = vadd.f32 %v1501_v56, %v1389_v62 }
 0x150   : > { %v1533_v4 = vadd.f32 %v2736_v22, %v1519_v1  ;;  %v1040_v17 = vpop.f32.mrf.mxu1  ;;  %v1506_v24 = vpop.f32.mrf.mxu0 }
 0x151   : > { %v1202_v5 = vpop.f32.mrf.mxu2  ;;  %v1055_v19 = vadd.f32 %v1040_v17, %v2724_v29  ;;  %v1381_v12 = vpop.f32.mrf.mxu3 }
 0x152   : > { %v1543_v6 = vmax.f32 %v1533_v4, 0.0  ;;  %v1218_v7 = vadd.f32 %v1202_v5, %v1054_v3 }
 0x154   : > { %v2197_v44 = vpack.c.bf16 %v1543_v6, %v1542_v8  ;;  %v1390_v38 = vadd.f32 %v1374_v36, %v1218_v7 }
 0x156   : > { %2213 = vst [vmem:[%s2745_s21 + $0x10] sm:$0xff] %v2197_v44   ;;  %v1520_v25 = vadd.f32 %v1504_v31, %v1390_v38 }
 0x158   : > { %v1043_v28 = vpop.f32.mrf.mxu1  ;;  %v1534_v18 = vadd.f32 %v2736_v22, %v1520_v25  ;;  %v1509_v39 = vpop.f32.mrf.mxu0 }
 0x159   : > { %v1204_v54 = vpop.f32.mrf.mxu2  ;;  %v1056_v15 = vadd.f32 %v1043_v28, %v2727_v60 }
 0x15a   : > { %v1219_v26 = vadd.f32 %v1204_v54, %v1055_v19  ;;  %v1544_v34 = vmax.f32 %v1534_v18, 0.0 }
 0x15c   : > { %v1391_v33 = vadd.f32 %v1376_v21, %v1219_v26 }
 0x15e   : > { %v1521_v30 = vadd.f32 %v1506_v24, %v1391_v33 }
 0x160   : > { %v1535_v2 = vadd.f32 %v2736_v22, %v1521_v30  ;;  %v1045_v20 = vpop.f32.mrf.mxu1  ;;  %v1511_v48 = vpop.f32.mrf.mxu0 }
 0x161   : > { %v1207_v53 = vpop.f32.mrf.mxu2  ;;  %v1057_v42 = vadd.f32 %v1045_v20, %v2730_v14 }
 0x162   : > { %v1545_v37 = vmax.f32 %v1535_v2, 0.0  ;;  %v1220_v29 = vadd.f32 %v1207_v53, %v1056_v15 }
 0x164   : > { %v2202_v40 = vpack.c.bf16 %v1545_v37, %v1544_v34  ;;  %v1392_v41 = vadd.f32 %v1379_v32, %v1220_v29 }
 0x166   : > { %2214 = vst [vmem:[%s2745_s21 + $0x18] sm:$0xff] %v2202_v40   ;;  %v1522_v13 = vadd.f32 %v1509_v39, %v1392_v41 }
 0x168   : > { %v1536_v10 = vadd.f32 %v2736_v22, %v1522_v13 }
 0x169   : > { %v1209_v45 = vpop.f32.mrf.mxu2 }
 0x16a   : > { %v1221_v60 = vadd.f32 %v1209_v45, %v1057_v42  ;;  %v1546_v9 = vmax.f32 %v1536_v10, 0.0 }
 0x16c   : > { %v1393_v46 = vadd.f32 %v1381_v12, %v1221_v60 }
 0x16e   : > { %v1523_v49 = vadd.f32 %v1511_v48, %v1393_v46 }
 0x170   : > { %v1537_v50 = vadd.f32 %v2736_v22, %v1523_v49 }
 0x172   : > { %v1547_v16 = vmax.f32 %v1537_v50, 0.0 }
 0x174   : > { %v2207_v51 = vpack.c.bf16 %v1547_v16, %v1546_v9 }
 0x176   : > { %2215 = vst [vmem:[%s2745_s21 + $0x20] sm:$0xff] %v2207_v51  }
 0x177 PF: > { %s13_s12 = sadd.s32 1, %s2249_s12  }
 0x178   : > { %p10_p4 = scmp.ge.s32.totalorder %s13_s12, 4  }
 0x17a   :  { %12 = sbr.rel (!%p10_p4) target bundleno = 1 (0x1), region = 70 }

</bundles_post_ra>
